<compile_context>
chip_gen: v5e
topology: v5e:2x2
jax: 0.10.0
libtpu: 0.0.40
codegen_flags: <defaults>
</compile_context>

<pallas_src>
import jax
import jax.numpy as jnp
from jax.experimental import pallas as pl
from jax.experimental.pallas import tpu as pltpu


# ----------------------- static gather plan (pure Python) -------------------

SPATIAL_START_POINTS = (45, 48, 87, 90)
PATCH_SIZES = (3, 5, 7, 9)
FRAMES_PER_TUBE = len(PATCH_SIZES)          # 4 frames per tube / frame group
GRID_W = 14                                 # 14x14 token grid
N_TOKENS = GRID_W * GRID_W                  # 196


def _selected_indices(spatial_point: int, patch_size: int):
    """Sorted token indices picked from one frame (mirrors get_patch_index)."""
    sp = spatial_point - 15 * ((patch_size - 3) // 2)
    g = (patch_size + 1) // 2
    additional = [sp, sp + g, sp + 2 * g,
                  sp + GRID_W * g,
                  sp + GRID_W * g + 2 * g,
                  sp + GRID_W * g * 2,
                  sp + GRID_W * g * 2 + g,
                  sp + GRID_W * g * 2 + 2 * g]
    center = [GRID_W * i + sp + j + 1
              for j in range(patch_size) for i in range(patch_size)]
    sel = additional + center
    sel.sort()
    assert 0 <= sel[0] and sel[-1] < N_TOKENS
    return sel


def _build_copy_plan():
    """For each spatial start point: static (dst_row, frame_off, src_row, len)
    slab copies covering one whole output tube (contiguous source runs)."""
    plans = []
    rows_per_tube = None
    for sp_pt in SPATIAL_START_POINTS:
        copies = []
        dst = 0
        for foff, psize in enumerate(PATCH_SIZES):
            sel = _selected_indices(sp_pt, psize)
            run = 0
            for k in range(1, len(sel) + 1):
                if k == len(sel) or sel[k] != sel[k - 1] + 1:
                    copies.append((dst + run, foff, sel[run], k - run))
                    run = k
            dst += len(sel)
        if rows_per_tube is None:
            rows_per_tube = dst
        assert dst == rows_per_tube
        plans.append(tuple(copies))
    return tuple(plans), rows_per_tube


def _frame_fetch_rows():
    """Per frame offset: the 8-aligned prefix [0, R_f) of the 196 token rows
    that actually contains every row touched by any spatial start point.
    (Blocked row offsets must be multiples of the block size, so the window
    starts at 0; still trims ~11% of input HBM reads: 152/168/184/196.)"""
    rows = []
    for psize in PATCH_SIZES:
        hi = max(_selected_indices(sp, psize)[-1] + 1
                 for sp in SPATIAL_START_POINTS)
        r = -(-hi // 8) * 8                       # round up to sublane multiple
        rows.append(r if r < N_TOKENS else N_TOKENS)
    return tuple(rows)


_COPY_PLANS, TUBE_ROWS = _build_copy_plan()       # TUBE_ROWS == 196
_FRAME_ROWS = _frame_fetch_rows()                 # (152, 168, 184, 196)

# Every copy must stay inside the trimmed per-frame fetch window.
for _copies in _COPY_PLANS:
    for _dst, _foff, _src, _len in _copies:
        assert _src + _len <= _FRAME_ROWS[_foff]
        assert _dst + _len <= TUBE_ROWS


# ------------------------------- Pallas kernel ------------------------------

def _expand_tube_kernel(f0_ref, f1_ref, f2_ref, f3_ref, o_ref):
    # f{k}_ref: (R_k, TD)      -- trimmed token rows of frame k of this group
    # o_ref:    (4, 196, TD)   -- the 4 output tubes (one per spatial point)
    # Statically-unrolled contiguous-run copies straight between Refs; the
    # whole block is never materialised as a value (keeps vreg pressure low)
    # and the destination rows of each tube are covered exactly once.
    frames = (f0_ref, f1_ref, f2_ref, f3_ref)
    for s, copies in enumerate(_COPY_PLANS):
        for dst, foff, src, length in copies:
            o_ref[s, dst:dst + length, :] = frames[foff][src:src + length, :]


def expand_tubevit_forward(x):
    """Pallas implementation of expand_tubevit.forward.

    x: (B, F, N, D) with F % 4 == 0, N == 196 (14x14 tokens).
    returns: (B, F, N, D) -- for group g and spatial point s,
             out[b, 4g + s] is the gathered 196-row tube.
    """
    B, F, N, D = x.shape
    assert F % FRAMES_PER_TUBE == 0, "frame count must be a multiple of 4"
    assert N == TUBE_ROWS, "expand_tubevit assumes a 14x14 (=196) token grid"
    G = F // FRAMES_PER_TUBE

    # Full-D lane tile (fewer, bigger steps & DMAs for this mem-bound gather);
    # only split the feature dim when there would otherwise be a single grid
    # step, so v7x's two TensorCores both get work.
    if B * G < 2 and D > 128 and D % 128 == 0:
        td = 256 if D % 256 == 0 else 128
    else:
        td = D
    n_d = D // td

    def frame_spec(foff):
        rows = _FRAME_ROWS[foff]
        if n_d == 1:
            imap = lambda b, g: (b, FRAMES_PER_TUBE * g + foff, 0, 0)
        else:
            imap = lambda b, g, d: (b, FRAMES_PER_TUBE * g + foff, 0, d)
        # batch & frame dims squeezed out of the kernel Ref.
        return pl.BlockSpec((None, None, rows, td), imap)

    in_specs = [frame_spec(f) for f in range(FRAMES_PER_TUBE)]

    if n_d == 1:
        grid = (B, G)
        out_spec = pl.BlockSpec((None, FRAMES_PER_TUBE, N, td),
                                lambda b, g: (b, g, 0, 0))
        dims = ("parallel", "parallel")
    else:
        grid = (B, G, n_d)
        out_spec = pl.BlockSpec((None, FRAMES_PER_TUBE, N, td),
                                lambda b, g, d: (b, g, 0, d))
        dims = ("parallel", "parallel", "parallel")

    return pl.pallas_call(
        _expand_tube_kernel,
        out_shape=jax.ShapeDtypeStruct((B, F, N, D), x.dtype),
        grid=grid,
        in_specs=in_specs,
        out_specs=out_spec,
        compiler_params=pltpu.CompilerParams(dimension_semantics=dims),
    )(x, x, x, x)


# --------------------------- pure-JAX reference -----------------------------

def expand_tubevit_ref(x):
    """Literal translation of the PyTorch forward (loops + index_select)."""
    B, F, N, D = x.shape
    G = F // FRAMES_PER_TUBE
    out_b = []
    for b in range(B):
        tubes = []
        for g in range(G):
            for sp_pt in SPATIAL_START_POINTS:
                rows = []
                for foff, psize in enumerate(PATCH_SIZES):
                    sel = jnp.asarray(_selected_indices(sp_pt, psize), jnp.int32)
                    frame = x[b, g * FRAMES_PER_TUBE + foff]
                    rows.append(jnp.take(frame, sel, axis=0))
                tubes.append(jnp.concatenate(rows, axis=0))
        out_b.append(jnp.stack(tubes, axis=0))
    return jnp.stack(out_b, axis=0)


# ------------------------------------ main ----------------------------------

if __name__ == "__main__":
    width = 768                       # module hard-codes 768-dim tokens
    B, F, N, D = 2, 8, TUBE_ROWS, width

    key = jax.random.PRNGKey(0)
    kx, kc = jax.random.split(key)
    x = jax.random.normal(kx, (B, F, N, D), jnp.float32)

    # Module parameter (unused by forward, created only for faithfulness).
    scale = width ** -0.5
    class_embedding = scale * jax.random.normal(kc, (width,), jnp.float32)
    del class_embedding

    out = expand_tubevit_forward(x)
    out = jax.block_until_ready(out)

    ref = expand_tubevit_ref(x)
    assert out.shape == (B, F, N, D), out.shape
    assert bool(jnp.array_equal(out, ref)), (
        f"max abs err {float(jnp.max(jnp.abs(out - ref)))}")
    print("KERNEL_OK")
</pallas_src>

<mosaic_0001>
module attributes {stable_mosaic.version = 11 : i64} {
  func.func @_expand_tube_kernel(%arg0: i32, %arg1: i32, %arg2: memref<1x1x152x768xf32, #tpu.memory_space<vmem>>, %arg3: memref<1x1x168x768xf32, #tpu.memory_space<vmem>>, %arg4: memref<1x1x184x768xf32, #tpu.memory_space<vmem>>, %arg5: memref<1x1x196x768xf32, #tpu.memory_space<vmem>>, %arg6: memref<1x4x196x768xf32, #tpu.memory_space<vmem>>) attributes {dimension_semantics = [#tpu.dimension_semantics<parallel>, #tpu.dimension_semantics<parallel>], iteration_bounds = array<i64: 2, 2>, scalar_prefetch = 0 : i64, scratch_operands = 0 : i64, tpu.core_type = #tpu.core_type<tc>, window_params = [{transform_indices = @transform_0, window_bounds = array<i64: 1, 1, 152, 768>}, {transform_indices = @transform_1, window_bounds = array<i64: 1, 1, 168, 768>}, {transform_indices = @transform_2, window_bounds = array<i64: 1, 1, 184, 768>}, {transform_indices = @transform_3, window_bounds = array<i64: 1, 1, 196, 768>}, {transform_indices = @transform_4, window_bounds = array<i64: 1, 4, 196, 768>}]} {
    %c0 = arith.constant 0 : index
    %c0_0 = arith.constant 0 : index
    %c45 = arith.constant 45 : index
    %c0_1 = arith.constant 0 : index
    %0 = vector.load %arg2[%c0, %c0_0, %c45, %c0_1] : memref<1x1x152x768xf32, #tpu.memory_space<vmem>>, vector<1x1x3x768xf32>
    %1 = vector.shape_cast %0 : vector<1x1x3x768xf32> to vector<3x768xf32>
    %c0_2 = arith.constant 0 : index
    %c0_3 = arith.constant 0 : index
    %c0_4 = arith.constant 0 : index
    %c0_5 = arith.constant 0 : index
    %2 = vector.load %arg6[%c0_2, %c0_3, %c0_4, %c0_5] : memref<1x4x196x768xf32, #tpu.memory_space<vmem>>, vector<1x1x3x768xf32>
    %3 = vector.shape_cast %2 : vector<1x1x3x768xf32> to vector<3x768xf32>
    %4 = vector.shape_cast %1 : vector<3x768xf32> to vector<1x1x3x768xf32>
    tpu.vector_store %arg6[%c0_2, %c0_3, %c0_4, %c0_5], %4 {strides = array<i32>} : memref<1x4x196x768xf32, #tpu.memory_space<vmem>>, vector<1x1x3x768xf32>,
    %c0_6 = arith.constant 0 : index
    %c0_7 = arith.constant 0 : index
    %c47 = arith.constant 47 : index
    %c0_8 = arith.constant 0 : index
    %5 = vector.load %arg2[%c0_6, %c0_7, %c47, %c0_8] : memref<1x1x152x768xf32, #tpu.memory_space<vmem>>, vector<1x1x3x768xf32>
    %6 = vector.shape_cast %5 : vector<1x1x3x768xf32> to vector<3x768xf32>
    %c0_9 = arith.constant 0 : index
    %c0_10 = arith.constant 0 : index
    %c3 = arith.constant 3 : index
    %c0_11 = arith.constant 0 : index
    %7 = vector.load %arg6[%c0_9, %c0_10, %c3, %c0_11] : memref<1x4x196x768xf32, #tpu.memory_space<vmem>>, vector<1x1x3x768xf32>
    %8 = vector.shape_cast %7 : vector<1x1x3x768xf32> to vector<3x768xf32>
    %9 = vector.shape_cast %6 : vector<3x768xf32> to vector<1x1x3x768xf32>
    tpu.vector_store %arg6[%c0_9, %c0_10, %c3, %c0_11], %9 {strides = array<i32>} : memref<1x4x196x768xf32, #tpu.memory_space<vmem>>, vector<1x1x3x768xf32>,
    %c0_12 = arith.constant 0 : index
    %c0_13 = arith.constant 0 : index
    %c60 = arith.constant 60 : index
    %c0_14 = arith.constant 0 : index
    %10 = vector.load %arg2[%c0_12, %c0_13, %c60, %c0_14] : memref<1x1x152x768xf32, #tpu.memory_space<vmem>>, vector<1x1x3x768xf32>
    %11 = vector.shape_cast %10 : vector<1x1x3x768xf32> to vector<3x768xf32>
    %c0_15 = arith.constant 0 : index
    %c0_16 = arith.constant 0 : index
    %c6 = arith.constant 6 : index
    %c0_17 = arith.constant 0 : index
    %12 = vector.load %arg6[%c0_15, %c0_16, %c6, %c0_17] : memref<1x4x196x768xf32, #tpu.memory_space<vmem>>, vector<1x1x3x768xf32>
    %13 = vector.shape_cast %12 : vector<1x1x3x768xf32> to vector<3x768xf32>
    %14 = vector.shape_cast %11 : vector<3x768xf32> to vector<1x1x3x768xf32>
    tpu.vector_store %arg6[%c0_15, %c0_16, %c6, %c0_17], %14 {strides = array<i32>} : memref<1x4x196x768xf32, #tpu.memory_space<vmem>>, vector<1x1x3x768xf32>,
    %c0_18 = arith.constant 0 : index
    %c0_19 = arith.constant 0 : index
    %c73 = arith.constant 73 : index
    %c0_20 = arith.constant 0 : index
    %15 = vector.load %arg2[%c0_18, %c0_19, %c73, %c0_20] : memref<1x1x152x768xf32, #tpu.memory_space<vmem>>, vector<1x1x5x768xf32>
    %16 = vector.shape_cast %15 : vector<1x1x5x768xf32> to vector<5x768xf32>
    %c0_21 = arith.constant 0 : index
    %c0_22 = arith.constant 0 : index
    %c9 = arith.constant 9 : index
    %c0_23 = arith.constant 0 : index
    %17 = vector.load %arg6[%c0_21, %c0_22, %c9, %c0_23] : memref<1x4x196x768xf32, #tpu.memory_space<vmem>>, vector<1x1x5x768xf32>
    %18 = vector.shape_cast %17 : vector<1x1x5x768xf32> to vector<5x768xf32>
    %19 = vector.shape_cast %16 : vector<5x768xf32> to vector<1x1x5x768xf32>
    tpu.vector_store %arg6[%c0_21, %c0_22, %c9, %c0_23], %19 {strides = array<i32>} : memref<1x4x196x768xf32, #tpu.memory_space<vmem>>, vector<1x1x5x768xf32>,
    %c0_24 = arith.constant 0 : index
    %c0_25 = arith.constant 0 : index
    %c101 = arith.constant 101 : index
    %c0_26 = arith.constant 0 : index
    %20 = vector.load %arg2[%c0_24, %c0_25, %c101, %c0_26] : memref<1x1x152x768xf32, #tpu.memory_space<vmem>>, vector<1x1x1x768xf32>
    %21 = vector.shape_cast %20 : vector<1x1x1x768xf32> to vector<1x768xf32>
    %c0_27 = arith.constant 0 : index
    %c0_28 = arith.constant 0 : index
    %c14 = arith.constant 14 : index
    %c0_29 = arith.constant 0 : index
    %22 = vector.load %arg6[%c0_27, %c0_28, %c14, %c0_29] : memref<1x4x196x768xf32, #tpu.memory_space<vmem>>, vector<1x1x1x768xf32>
    %23 = vector.shape_cast %22 : vector<1x1x1x768xf32> to vector<1x768xf32>
    %24 = vector.shape_cast %21 : vector<1x768xf32> to vector<1x1x1x768xf32>
    tpu.vector_store %arg6[%c0_27, %c0_28, %c14, %c0_29], %24 {strides = array<i32>} : memref<1x4x196x768xf32, #tpu.memory_space<vmem>>, vector<1x1x1x768xf32>,
    %c0_30 = arith.constant 0 : index
    %c0_31 = arith.constant 0 : index
    %c103 = arith.constant 103 : index
    %c0_32 = arith.constant 0 : index
    %25 = vector.load %arg2[%c0_30, %c0_31, %c103, %c0_32] : memref<1x1x152x768xf32, #tpu.memory_space<vmem>>, vector<1x1x1x768xf32>
    %26 = vector.shape_cast %25 : vector<1x1x1x768xf32> to vector<1x768xf32>
    %c0_33 = arith.constant 0 : index
    %c0_34 = arith.constant 0 : index
    %c15 = arith.constant 15 : index
    %c0_35 = arith.constant 0 : index
    %27 = vector.load %arg6[%c0_33, %c0_34, %c15, %c0_35] : memref<1x4x196x768xf32, #tpu.memory_space<vmem>>, vector<1x1x1x768xf32>
    %28 = vector.shape_cast %27 : vector<1x1x1x768xf32> to vector<1x768xf32>
    %29 = vector.shape_cast %26 : vector<1x768xf32> to vector<1x1x1x768xf32>
    tpu.vector_store %arg6[%c0_33, %c0_34, %c15, %c0_35], %29 {strides = array<i32>} : memref<1x4x196x768xf32, #tpu.memory_space<vmem>>, vector<1x1x1x768xf32>,
    %c0_36 = arith.constant 0 : index
    %c0_37 = arith.constant 0 : index
    %c105 = arith.constant 105 : index
    %c0_38 = arith.constant 0 : index
    %30 = vector.load %arg2[%c0_36, %c0_37, %c105, %c0_38] : memref<1x1x152x768xf32, #tpu.memory_space<vmem>>, vector<1x1x1x768xf32>
    %31 = vector.shape_cast %30 : vector<1x1x1x768xf32> to vector<1x768xf32>
    %c0_39 = arith.constant 0 : index
    %c0_40 = arith.constant 0 : index
    %c16 = arith.constant 16 : index
    %c0_41 = arith.constant 0 : index
    %32 = vector.load %arg6[%c0_39, %c0_40, %c16, %c0_41] : memref<1x4x196x768xf32, #tpu.memory_space<vmem>>, vector<1x1x1x768xf32>
    %33 = vector.shape_cast %32 : vector<1x1x1x768xf32> to vector<1x768xf32>
    %34 = vector.shape_cast %31 : vector<1x768xf32> to vector<1x1x1x768xf32>
    tpu.vector_store %arg6[%c0_39, %c0_40, %c16, %c0_41], %34 {strides = array<i32>} : memref<1x4x196x768xf32, #tpu.memory_space<vmem>>, vector<1x1x1x768xf32>,
    %c0_42 = arith.constant 0 : index
    %c0_43 = arith.constant 0 : index
    %c30 = arith.constant 30 : index
    %c0_44 = arith.constant 0 : index
    %35 = vector.load %arg3[%c0_42, %c0_43, %c30, %c0_44] : memref<1x1x168x768xf32, #tpu.memory_space<vmem>>, vector<1x1x4x768xf32>
    %36 = vector.shape_cast %35 : vector<1x1x4x768xf32> to vector<4x768xf32>
    %c0_45 = arith.constant 0 : index
    %c0_46 = arith.constant 0 : index
    %c17 = arith.constant 17 : index
    %c0_47 = arith.constant 0 : index
    %37 = vector.load %arg6[%c0_45, %c0_46, %c17, %c0_47] : memref<1x4x196x768xf32, #tpu.memory_space<vmem>>, vector<1x1x4x768xf32>
    %38 = vector.shape_cast %37 : vector<1x1x4x768xf32> to vector<4x768xf32>
    %39 = vector.shape_cast %36 : vector<4x768xf32> to vector<1x1x4x768xf32>
    tpu.vector_store %arg6[%c0_45, %c0_46, %c17, %c0_47], %39 {strides = array<i32>} : memref<1x4x196x768xf32, #tpu.memory_space<vmem>>, vector<1x1x4x768xf32>,
    %c0_48 = arith.constant 0 : index
    %c0_49 = arith.constant 0 : index
    %c33 = arith.constant 33 : index
    %c0_50 = arith.constant 0 : index
    %40 = vector.load %arg3[%c0_48, %c0_49, %c33, %c0_50] : memref<1x1x168x768xf32, #tpu.memory_space<vmem>>, vector<1x1x4x768xf32>
    %41 = vector.shape_cast %40 : vector<1x1x4x768xf32> to vector<4x768xf32>
    %c0_51 = arith.constant 0 : index
    %c0_52 = arith.constant 0 : index
    %c21 = arith.constant 21 : index
    %c0_53 = arith.constant 0 : index
    %42 = vector.load %arg6[%c0_51, %c0_52, %c21, %c0_53] : memref<1x4x196x768xf32, #tpu.memory_space<vmem>>, vector<1x1x4x768xf32>
    %43 = vector.shape_cast %42 : vector<1x1x4x768xf32> to vector<4x768xf32>
    %44 = vector.shape_cast %41 : vector<4x768xf32> to vector<1x1x4x768xf32>
    tpu.vector_store %arg6[%c0_51, %c0_52, %c21, %c0_53], %44 {strides = array<i32>} : memref<1x4x196x768xf32, #tpu.memory_space<vmem>>, vector<1x1x4x768xf32>,
    %c0_54 = arith.constant 0 : index
    %c0_55 = arith.constant 0 : index
    %c45_56 = arith.constant 45 : index
    %c0_57 = arith.constant 0 : index
    %45 = vector.load %arg3[%c0_54, %c0_55, %c45_56, %c0_57] : memref<1x1x168x768xf32, #tpu.memory_space<vmem>>, vector<1x1x5x768xf32>
    %46 = vector.shape_cast %45 : vector<1x1x5x768xf32> to vector<5x768xf32>
    %c0_58 = arith.constant 0 : index
    %c0_59 = arith.constant 0 : index
    %c25 = arith.constant 25 : index
    %c0_60 = arith.constant 0 : index
    %47 = vector.load %arg6[%c0_58, %c0_59, %c25, %c0_60] : memref<1x4x196x768xf32, #tpu.memory_space<vmem>>, vector<1x1x5x768xf32>
    %48 = vector.shape_cast %47 : vector<1x1x5x768xf32> to vector<5x768xf32>
    %49 = vector.shape_cast %46 : vector<5x768xf32> to vector<1x1x5x768xf32>
    tpu.vector_store %arg6[%c0_58, %c0_59, %c25, %c0_60], %49 {strides = array<i32>} : memref<1x4x196x768xf32, #tpu.memory_space<vmem>>, vector<1x1x5x768xf32>,
    %c0_61 = arith.constant 0 : index
    %c0_62 = arith.constant 0 : index
    %c59 = arith.constant 59 : index
    %c0_63 = arith.constant 0 : index
    %50 = vector.load %arg3[%c0_61, %c0_62, %c59, %c0_63] : memref<1x1x168x768xf32, #tpu.memory_space<vmem>>, vector<1x1x5x768xf32>
    %51 = vector.shape_cast %50 : vector<1x1x5x768xf32> to vector<5x768xf32>
    %c0_64 = arith.constant 0 : index
    %c0_65 = arith.constant 0 : index
    %c30_66 = arith.constant 30 : index
    %c0_67 = arith.constant 0 : index
    %52 = vector.load %arg6[%c0_64, %c0_65, %c30_66, %c0_67] : memref<1x4x196x768xf32, #tpu.memory_space<vmem>>, vector<1x1x5x768xf32>
    %53 = vector.shape_cast %52 : vector<1x1x5x768xf32> to vector<5x768xf32>
    %54 = vector.shape_cast %51 : vector<5x768xf32> to vector<1x1x5x768xf32>
    tpu.vector_store %arg6[%c0_64, %c0_65, %c30_66, %c0_67], %54 {strides = array<i32>} : memref<1x4x196x768xf32, #tpu.memory_space<vmem>>, vector<1x1x5x768xf32>,
    %c0_68 = arith.constant 0 : index
    %c0_69 = arith.constant 0 : index
    %c72 = arith.constant 72 : index
    %c0_70 = arith.constant 0 : index
    %55 = vector.load %arg3[%c0_68, %c0_69, %c72, %c0_70] : memref<1x1x168x768xf32, #tpu.memory_space<vmem>>, vector<1x1x7x768xf32>
    %56 = vector.shape_cast %55 : vector<1x1x7x768xf32> to vector<7x768xf32>
    %c0_71 = arith.constant 0 : index
    %c0_72 = arith.constant 0 : index
    %c35 = arith.constant 35 : index
    %c0_73 = arith.constant 0 : index
    %57 = vector.load %arg6[%c0_71, %c0_72, %c35, %c0_73] : memref<1x4x196x768xf32, #tpu.memory_space<vmem>>, vector<1x1x7x768xf32>
    %58 = vector.shape_cast %57 : vector<1x1x7x768xf32> to vector<7x768xf32>
    %59 = vector.shape_cast %56 : vector<7x768xf32> to vector<1x1x7x768xf32>
    tpu.vector_store %arg6[%c0_71, %c0_72, %c35, %c0_73], %59 {strides = array<i32>} : memref<1x4x196x768xf32, #tpu.memory_space<vmem>>, vector<1x1x7x768xf32>,
    %c0_74 = arith.constant 0 : index
    %c0_75 = arith.constant 0 : index
    %c87 = arith.constant 87 : index
    %c0_76 = arith.constant 0 : index
    %60 = vector.load %arg3[%c0_74, %c0_75, %c87, %c0_76] : memref<1x1x168x768xf32, #tpu.memory_space<vmem>>, vector<1x1x5x768xf32>
    %61 = vector.shape_cast %60 : vector<1x1x5x768xf32> to vector<5x768xf32>
    %c0_77 = arith.constant 0 : index
    %c0_78 = arith.constant 0 : index
    %c42 = arith.constant 42 : index
    %c0_79 = arith.constant 0 : index
    %62 = vector.load %arg6[%c0_77, %c0_78, %c42, %c0_79] : memref<1x4x196x768xf32, #tpu.memory_space<vmem>>, vector<1x1x5x768xf32>
    %63 = vector.shape_cast %62 : vector<1x1x5x768xf32> to vector<5x768xf32>
    %64 = vector.shape_cast %61 : vector<5x768xf32> to vector<1x1x5x768xf32>
    tpu.vector_store %arg6[%c0_77, %c0_78, %c42, %c0_79], %64 {strides = array<i32>} : memref<1x4x196x768xf32, #tpu.memory_space<vmem>>, vector<1x1x5x768xf32>,
    %c0_80 = arith.constant 0 : index
    %c0_81 = arith.constant 0 : index
    %c114 = arith.constant 114 : index
    %c0_82 = arith.constant 0 : index
    %65 = vector.load %arg3[%c0_80, %c0_81, %c114, %c0_82] : memref<1x1x168x768xf32, #tpu.memory_space<vmem>>, vector<1x1x1x768xf32>
    %66 = vector.shape_cast %65 : vector<1x1x1x768xf32> to vector<1x768xf32>
    %c0_83 = arith.constant 0 : index
    %c0_84 = arith.constant 0 : index
    %c47_85 = arith.constant 47 : index
    %c0_86 = arith.constant 0 : index
    %67 = vector.load %arg6[%c0_83, %c0_84, %c47_85, %c0_86] : memref<1x4x196x768xf32, #tpu.memory_space<vmem>>, vector<1x1x1x768xf32>
    %68 = vector.shape_cast %67 : vector<1x1x1x768xf32> to vector<1x768xf32>
    %69 = vector.shape_cast %66 : vector<1x768xf32> to vector<1x1x1x768xf32>
    tpu.vector_store %arg6[%c0_83, %c0_84, %c47_85, %c0_86], %69 {strides = array<i32>} : memref<1x4x196x768xf32, #tpu.memory_space<vmem>>, vector<1x1x1x768xf32>,
    %c0_87 = arith.constant 0 : index
    %c0_88 = arith.constant 0 : index
    %c117 = arith.constant 117 : index
    %c0_89 = arith.constant 0 : index
    %70 = vector.load %arg3[%c0_87, %c0_88, %c117, %c0_89] : memref<1x1x168x768xf32, #tpu.memory_space<vmem>>, vector<1x1x1x768xf32>
    %71 = vector.shape_cast %70 : vector<1x1x1x768xf32> to vector<1x768xf32>
    %c0_90 = arith.constant 0 : index
    %c0_91 = arith.constant 0 : index
    %c48 = arith.constant 48 : index
    %c0_92 = arith.constant 0 : index
    %72 = vector.load %arg6[%c0_90, %c0_91, %c48, %c0_92] : memref<1x4x196x768xf32, #tpu.memory_space<vmem>>, vector<1x1x1x768xf32>
    %73 = vector.shape_cast %72 : vector<1x1x1x768xf32> to vector<1x768xf32>
    %74 = vector.shape_cast %71 : vector<1x768xf32> to vector<1x1x1x768xf32>
    tpu.vector_store %arg6[%c0_90, %c0_91, %c48, %c0_92], %74 {strides = array<i32>} : memref<1x4x196x768xf32, #tpu.memory_space<vmem>>, vector<1x1x1x768xf32>,
    %c0_93 = arith.constant 0 : index
    %c0_94 = arith.constant 0 : index
    %c120 = arith.constant 120 : index
    %c0_95 = arith.constant 0 : index
    %75 = vector.load %arg3[%c0_93, %c0_94, %c120, %c0_95] : memref<1x1x168x768xf32, #tpu.memory_space<vmem>>, vector<1x1x1x768xf32>
    %76 = vector.shape_cast %75 : vector<1x1x1x768xf32> to vector<1x768xf32>
    %c0_96 = arith.constant 0 : index
    %c0_97 = arith.constant 0 : index
    %c49 = arith.constant 49 : index
    %c0_98 = arith.constant 0 : index
    %77 = vector.load %arg6[%c0_96, %c0_97, %c49, %c0_98] : memref<1x4x196x768xf32, #tpu.memory_space<vmem>>, vector<1x1x1x768xf32>
    %78 = vector.shape_cast %77 : vector<1x1x1x768xf32> to vector<1x768xf32>
    %79 = vector.shape_cast %76 : vector<1x768xf32> to vector<1x1x1x768xf32>
    tpu.vector_store %arg6[%c0_96, %c0_97, %c49, %c0_98], %79 {strides = array<i32>} : memref<1x4x196x768xf32, #tpu.memory_space<vmem>>, vector<1x1x1x768xf32>,
    %c0_99 = arith.constant 0 : index
    %c0_100 = arith.constant 0 : index
    %c15_101 = arith.constant 15 : index
    %c0_102 = arith.constant 0 : index
    %80 = vector.load %arg4[%c0_99, %c0_100, %c15_101, %c0_102] : memref<1x1x184x768xf32, #tpu.memory_space<vmem>>, vector<1x1x5x768xf32>
    %81 = vector.shape_cast %80 : vector<1x1x5x768xf32> to vector<5x768xf32>
    %c0_103 = arith.constant 0 : index
    %c0_104 = arith.constant 0 : index
    %c50 = arith.constant 50 : index
    %c0_105 = arith.constant 0 : index
    %82 = vector.load %arg6[%c0_103, %c0_104, %c50, %c0_105] : memref<1x4x196x768xf32, #tpu.memory_space<vmem>>, vector<1x1x5x768xf32>
    %83 = vector.shape_cast %82 : vector<1x1x5x768xf32> to vector<5x768xf32>
    %84 = vector.shape_cast %81 : vector<5x768xf32> to vector<1x1x5x768xf32>
    tpu.vector_store %arg6[%c0_103, %c0_104, %c50, %c0_105], %84 {strides = array<i32>} : memref<1x4x196x768xf32, #tpu.memory_space<vmem>>, vector<1x1x5x768xf32>,
    %c0_106 = arith.constant 0 : index
    %c0_107 = arith.constant 0 : index
    %c19 = arith.constant 19 : index
    %c0_108 = arith.constant 0 : index
    %85 = vector.load %arg4[%c0_106, %c0_107, %c19, %c0_108] : memref<1x1x184x768xf32, #tpu.memory_space<vmem>>, vector<1x1x5x768xf32>
    %86 = vector.shape_cast %85 : vector<1x1x5x768xf32> to vector<5x768xf32>
    %c0_109 = arith.constant 0 : index
    %c0_110 = arith.constant 0 : index
    %c55 = arith.constant 55 : index
    %c0_111 = arith.constant 0 : index
    %87 = vector.load %arg6[%c0_109, %c0_110, %c55, %c0_111] : memref<1x4x196x768xf32, #tpu.memory_space<vmem>>, vector<1x1x5x768xf32>
    %88 = vector.shape_cast %87 : vector<1x1x5x768xf32> to vector<5x768xf32>
    %89 = vector.shape_cast %86 : vector<5x768xf32> to vector<1x1x5x768xf32>
    tpu.vector_store %arg6[%c0_109, %c0_110, %c55, %c0_111], %89 {strides = array<i32>} : memref<1x4x196x768xf32, #tpu.memory_space<vmem>>, vector<1x1x5x768xf32>,
    %c0_112 = arith.constant 0 : index
    %c0_113 = arith.constant 0 : index
    %c30_114 = arith.constant 30 : index
    %c0_115 = arith.constant 0 : index
    %90 = vector.load %arg4[%c0_112, %c0_113, %c30_114, %c0_115] : memref<1x1x184x768xf32, #tpu.memory_space<vmem>>, vector<1x1x7x768xf32>
    %91 = vector.shape_cast %90 : vector<1x1x7x768xf32> to vector<7x768xf32>
    %c0_116 = arith.constant 0 : index
    %c0_117 = arith.constant 0 : index
    %c60_118 = arith.constant 60 : index
    %c0_119 = arith.constant 0 : index
    %92 = vector.load %arg6[%c0_116, %c0_117, %c60_118, %c0_119] : memref<1x4x196x768xf32, #tpu.memory_space<vmem>>, vector<1x1x7x768xf32>
    %93 = vector.shape_cast %92 : vector<1x1x7x768xf32> to vector<7x768xf32>
    %94 = vector.shape_cast %91 : vector<7x768xf32> to vector<1x1x7x768xf32>
    tpu.vector_store %arg6[%c0_116, %c0_117, %c60_118, %c0_119], %94 {strides = array<i32>} : memref<1x4x196x768xf32, #tpu.memory_space<vmem>>, vector<1x1x7x768xf32>,
    %c0_120 = arith.constant 0 : index
    %c0_121 = arith.constant 0 : index
    %c44 = arith.constant 44 : index
    %c0_122 = arith.constant 0 : index
    %95 = vector.load %arg4[%c0_120, %c0_121, %c44, %c0_122] : memref<1x1x184x768xf32, #tpu.memory_space<vmem>>, vector<1x1x7x768xf32>
    %96 = vector.shape_cast %95 : vector<1x1x7x768xf32> to vector<7x768xf32>
    %c0_123 = arith.constant 0 : index
    %c0_124 = arith.constant 0 : index
    %c67 = arith.constant 67 : index
    %c0_125 = arith.constant 0 : index
    %97 = vector.load %arg6[%c0_123, %c0_124, %c67, %c0_125] : memref<1x4x196x768xf32, #tpu.memory_space<vmem>>, vector<1x1x7x768xf32>
    %98 = vector.shape_cast %97 : vector<1x1x7x768xf32> to vector<7x768xf32>
    %99 = vector.shape_cast %96 : vector<7x768xf32> to vector<1x1x7x768xf32>
    tpu.vector_store %arg6[%c0_123, %c0_124, %c67, %c0_125], %99 {strides = array<i32>} : memref<1x4x196x768xf32, #tpu.memory_space<vmem>>, vector<1x1x7x768xf32>,
    %c0_126 = arith.constant 0 : index
    %c0_127 = arith.constant 0 : index
    %c58 = arith.constant 58 : index
    %c0_128 = arith.constant 0 : index
    %100 = vector.load %arg4[%c0_126, %c0_127, %c58, %c0_128] : memref<1x1x184x768xf32, #tpu.memory_space<vmem>>, vector<1x1x7x768xf32>
    %101 = vector.shape_cast %100 : vector<1x1x7x768xf32> to vector<7x768xf32>
    %c0_129 = arith.constant 0 : index
    %c0_130 = arith.constant 0 : index
    %c74 = arith.constant 74 : index
    %c0_131 = arith.constant 0 : index
    %102 = vector.load %arg6[%c0_129, %c0_130, %c74, %c0_131] : memref<1x4x196x768xf32, #tpu.memory_space<vmem>>, vector<1x1x7x768xf32>
    %103 = vector.shape_cast %102 : vector<1x1x7x768xf32> to vector<7x768xf32>
    %104 = vector.shape_cast %101 : vector<7x768xf32> to vector<1x1x7x768xf32>
    tpu.vector_store %arg6[%c0_129, %c0_130, %c74, %c0_131], %104 {strides = array<i32>} : memref<1x4x196x768xf32, #tpu.memory_space<vmem>>, vector<1x1x7x768xf32>,
    %c0_132 = arith.constant 0 : index
    %c0_133 = arith.constant 0 : index
    %c71 = arith.constant 71 : index
    %c0_134 = arith.constant 0 : index
    %105 = vector.load %arg4[%c0_132, %c0_133, %c71, %c0_134] : memref<1x1x184x768xf32, #tpu.memory_space<vmem>>, vector<1x1x9x768xf32>
    %106 = vector.shape_cast %105 : vector<1x1x9x768xf32> to vector<9x768xf32>
    %c0_135 = arith.constant 0 : index
    %c0_136 = arith.constant 0 : index
    %c81 = arith.constant 81 : index
    %c0_137 = arith.constant 0 : index
    %107 = vector.load %arg6[%c0_135, %c0_136, %c81, %c0_137] : memref<1x4x196x768xf32, #tpu.memory_space<vmem>>, vector<1x1x9x768xf32>
    %108 = vector.shape_cast %107 : vector<1x1x9x768xf32> to vector<9x768xf32>
    %109 = vector.shape_cast %106 : vector<9x768xf32> to vector<1x1x9x768xf32>
    tpu.vector_store %arg6[%c0_135, %c0_136, %c81, %c0_137], %109 {strides = array<i32>} : memref<1x4x196x768xf32, #tpu.memory_space<vmem>>, vector<1x1x9x768xf32>,
    %c0_138 = arith.constant 0 : index
    %c0_139 = arith.constant 0 : index
    %c86 = arith.constant 86 : index
    %c0_140 = arith.constant 0 : index
    %110 = vector.load %arg4[%c0_138, %c0_139, %c86, %c0_140] : memref<1x1x184x768xf32, #tpu.memory_space<vmem>>, vector<1x1x7x768xf32>
    %111 = vector.shape_cast %110 : vector<1x1x7x768xf32> to vector<7x768xf32>
    %c0_141 = arith.constant 0 : index
    %c0_142 = arith.constant 0 : index
    %c90 = arith.constant 90 : index
    %c0_143 = arith.constant 0 : index
    %112 = vector.load %arg6[%c0_141, %c0_142, %c90, %c0_143] : memref<1x4x196x768xf32, #tpu.memory_space<vmem>>, vector<1x1x7x768xf32>
    %113 = vector.shape_cast %112 : vector<1x1x7x768xf32> to vector<7x768xf32>
    %114 = vector.shape_cast %111 : vector<7x768xf32> to vector<1x1x7x768xf32>
    tpu.vector_store %arg6[%c0_141, %c0_142, %c90, %c0_143], %114 {strides = array<i32>} : memref<1x4x196x768xf32, #tpu.memory_space<vmem>>, vector<1x1x7x768xf32>,
    %c0_144 = arith.constant 0 : index
    %c0_145 = arith.constant 0 : index
    %c100 = arith.constant 100 : index
    %c0_146 = arith.constant 0 : index
    %115 = vector.load %arg4[%c0_144, %c0_145, %c100, %c0_146] : memref<1x1x184x768xf32, #tpu.memory_space<vmem>>, vector<1x1x7x768xf32>
    %116 = vector.shape_cast %115 : vector<1x1x7x768xf32> to vector<7x768xf32>
    %c0_147 = arith.constant 0 : index
    %c0_148 = arith.constant 0 : index
    %c97 = arith.constant 97 : index
    %c0_149 = arith.constant 0 : index
    %117 = vector.load %arg6[%c0_147, %c0_148, %c97, %c0_149] : memref<1x4x196x768xf32, #tpu.memory_space<vmem>>, vector<1x1x7x768xf32>
    %118 = vector.shape_cast %117 : vector<1x1x7x768xf32> to vector<7x768xf32>
    %119 = vector.shape_cast %116 : vector<7x768xf32> to vector<1x1x7x768xf32>
    tpu.vector_store %arg6[%c0_147, %c0_148, %c97, %c0_149], %119 {strides = array<i32>} : memref<1x4x196x768xf32, #tpu.memory_space<vmem>>, vector<1x1x7x768xf32>,
    %c0_150 = arith.constant 0 : index
    %c0_151 = arith.constant 0 : index
    %c127 = arith.constant 127 : index
    %c0_152 = arith.constant 0 : index
    %120 = vector.load %arg4[%c0_150, %c0_151, %c127, %c0_152] : memref<1x1x184x768xf32, #tpu.memory_space<vmem>>, vector<1x1x1x768xf32>
    %121 = vector.shape_cast %120 : vector<1x1x1x768xf32> to vector<1x768xf32>
    %c0_153 = arith.constant 0 : index
    %c0_154 = arith.constant 0 : index
    %c104 = arith.constant 104 : index
    %c0_155 = arith.constant 0 : index
    %122 = vector.load %arg6[%c0_153, %c0_154, %c104, %c0_155] : memref<1x4x196x768xf32, #tpu.memory_space<vmem>>, vector<1x1x1x768xf32>
    %123 = vector.shape_cast %122 : vector<1x1x1x768xf32> to vector<1x768xf32>
    %124 = vector.shape_cast %121 : vector<1x768xf32> to vector<1x1x1x768xf32>
    tpu.vector_store %arg6[%c0_153, %c0_154, %c104, %c0_155], %124 {strides = array<i32>} : memref<1x4x196x768xf32, #tpu.memory_space<vmem>>, vector<1x1x1x768xf32>,
    %c0_156 = arith.constant 0 : index
    %c0_157 = arith.constant 0 : index
    %c131 = arith.constant 131 : index
    %c0_158 = arith.constant 0 : index
    %125 = vector.load %arg4[%c0_156, %c0_157, %c131, %c0_158] : memref<1x1x184x768xf32, #tpu.memory_space<vmem>>, vector<1x1x1x768xf32>
    %126 = vector.shape_cast %125 : vector<1x1x1x768xf32> to vector<1x768xf32>
    %c0_159 = arith.constant 0 : index
    %c0_160 = arith.constant 0 : index
    %c105_161 = arith.constant 105 : index
    %c0_162 = arith.constant 0 : index
    %127 = vector.load %arg6[%c0_159, %c0_160, %c105_161, %c0_162] : memref<1x4x196x768xf32, #tpu.memory_space<vmem>>, vector<1x1x1x768xf32>
    %128 = vector.shape_cast %127 : vector<1x1x1x768xf32> to vector<1x768xf32>
    %129 = vector.shape_cast %126 : vector<1x768xf32> to vector<1x1x1x768xf32>
    tpu.vector_store %arg6[%c0_159, %c0_160, %c105_161, %c0_162], %129 {strides = array<i32>} : memref<1x4x196x768xf32, #tpu.memory_space<vmem>>, vector<1x1x1x768xf32>,
    %c0_163 = arith.constant 0 : index
    %c0_164 = arith.constant 0 : index
    %c135 = arith.constant 135 : index
    %c0_165 = arith.constant 0 : index
    %130 = vector.load %arg4[%c0_163, %c0_164, %c135, %c0_165] : memref<1x1x184x768xf32, #tpu.memory_space<vmem>>, vector<1x1x1x768xf32>
    %131 = vector.shape_cast %130 : vector<1x1x1x768xf32> to vector<1x768xf32>
    %c0_166 = arith.constant 0 : index
    %c0_167 = arith.constant 0 : index
    %c106 = arith.constant 106 : index
    %c0_168 = arith.constant 0 : index
    %132 = vector.load %arg6[%c0_166, %c0_167, %c106, %c0_168] : memref<1x4x196x768xf32, #tpu.memory_space<vmem>>, vector<1x1x1x768xf32>
    %133 = vector.shape_cast %132 : vector<1x1x1x768xf32> to vector<1x768xf32>
    %134 = vector.shape_cast %131 : vector<1x768xf32> to vector<1x1x1x768xf32>
    tpu.vector_store %arg6[%c0_166, %c0_167, %c106, %c0_168], %134 {strides = array<i32>} : memref<1x4x196x768xf32, #tpu.memory_space<vmem>>, vector<1x1x1x768xf32>,
    %c0_169 = arith.constant 0 : index
    %c0_170 = arith.constant 0 : index
    %c0_171 = arith.constant 0 : index
    %c0_172 = arith.constant 0 : index
    %135 = vector.load %arg5[%c0_169, %c0_170, %c0_171, %c0_172] : memref<1x1x196x768xf32, #tpu.memory_space<vmem>>, vector<1x1x6x768xf32>
    %136 = vector.shape_cast %135 : vector<1x1x6x768xf32> to vector<6x768xf32>
    %c0_173 = arith.constant 0 : index
    %c0_174 = arith.constant 0 : index
    %c107 = arith.constant 107 : index
    %c0_175 = arith.constant 0 : index
    %137 = vector.load %arg6[%c0_173, %c0_174, %c107, %c0_175] : memref<1x4x196x768xf32, #tpu.memory_space<vmem>>, vector<1x1x6x768xf32>
    %138 = vector.shape_cast %137 : vector<1x1x6x768xf32> to vector<6x768xf32>
    %139 = vector.shape_cast %136 : vector<6x768xf32> to vector<1x1x6x768xf32>
    tpu.vector_store %arg6[%c0_173, %c0_174, %c107, %c0_175], %139 {strides = array<i32>} : memref<1x4x196x768xf32, #tpu.memory_space<vmem>>, vector<1x1x6x768xf32>,
    %c0_176 = arith.constant 0 : index
    %c0_177 = arith.constant 0 : index
    %c5 = arith.constant 5 : index
    %c0_178 = arith.constant 0 : index
    %140 = vector.load %arg5[%c0_176, %c0_177, %c5, %c0_178] : memref<1x1x196x768xf32, #tpu.memory_space<vmem>>, vector<1x1x6x768xf32>
    %141 = vector.shape_cast %140 : vector<1x1x6x768xf32> to vector<6x768xf32>
    %c0_179 = arith.constant 0 : index
    %c0_180 = arith.constant 0 : index
    %c113 = arith.constant 113 : index
    %c0_181 = arith.constant 0 : index
    %142 = vector.load %arg6[%c0_179, %c0_180, %c113, %c0_181] : memref<1x4x196x768xf32, #tpu.memory_space<vmem>>, vector<1x1x6x768xf32>
    %143 = vector.shape_cast %142 : vector<1x1x6x768xf32> to vector<6x768xf32>
    %144 = vector.shape_cast %141 : vector<6x768xf32> to vector<1x1x6x768xf32>
    tpu.vector_store %arg6[%c0_179, %c0_180, %c113, %c0_181], %144 {strides = array<i32>} : memref<1x4x196x768xf32, #tpu.memory_space<vmem>>, vector<1x1x6x768xf32>,
    %c0_182 = arith.constant 0 : index
    %c0_183 = arith.constant 0 : index
    %c15_184 = arith.constant 15 : index
    %c0_185 = arith.constant 0 : index
    %145 = vector.load %arg5[%c0_182, %c0_183, %c15_184, %c0_185] : memref<1x1x196x768xf32, #tpu.memory_space<vmem>>, vector<1x1x9x768xf32>
    %146 = vector.shape_cast %145 : vector<1x1x9x768xf32> to vector<9x768xf32>
    %c0_186 = arith.constant 0 : index
    %c0_187 = arith.constant 0 : index
    %c119 = arith.constant 119 : index
    %c0_188 = arith.constant 0 : index
    %147 = vector.load %arg6[%c0_186, %c0_187, %c119, %c0_188] : memref<1x4x196x768xf32, #tpu.memory_space<vmem>>, vector<1x1x9x768xf32>
    %148 = vector.shape_cast %147 : vector<1x1x9x768xf32> to vector<9x768xf32>
    %149 = vector.shape_cast %146 : vector<9x768xf32> to vector<1x1x9x768xf32>
    tpu.vector_store %arg6[%c0_186, %c0_187, %c119, %c0_188], %149 {strides = array<i32>} : memref<1x4x196x768xf32, #tpu.memory_space<vmem>>, vector<1x1x9x768xf32>,
    %c0_189 = arith.constant 0 : index
    %c0_190 = arith.constant 0 : index
    %c29 = arith.constant 29 : index
    %c0_191 = arith.constant 0 : index
    %150 = vector.load %arg5[%c0_189, %c0_190, %c29, %c0_191] : memref<1x1x196x768xf32, #tpu.memory_space<vmem>>, vector<1x1x9x768xf32>
    %151 = vector.shape_cast %150 : vector<1x1x9x768xf32> to vector<9x768xf32>
    %c0_192 = arith.constant 0 : index
    %c0_193 = arith.constant 0 : index
    %c128 = arith.constant 128 : index
    %c0_194 = arith.constant 0 : index
    %152 = vector.load %arg6[%c0_192, %c0_193, %c128, %c0_194] : memref<1x4x196x768xf32, #tpu.memory_space<vmem>>, vector<1x1x9x768xf32>
    %153 = vector.shape_cast %152 : vector<1x1x9x768xf32> to vector<9x768xf32>
    %154 = vector.shape_cast %151 : vector<9x768xf32> to vector<1x1x9x768xf32>
    tpu.vector_store %arg6[%c0_192, %c0_193, %c128, %c0_194], %154 {strides = array<i32>} : memref<1x4x196x768xf32, #tpu.memory_space<vmem>>, vector<1x1x9x768xf32>,
    %c0_195 = arith.constant 0 : index
    %c0_196 = arith.constant 0 : index
    %c43 = arith.constant 43 : index
    %c0_197 = arith.constant 0 : index
    %155 = vector.load %arg5[%c0_195, %c0_196, %c43, %c0_197] : memref<1x1x196x768xf32, #tpu.memory_space<vmem>>, vector<1x1x9x768xf32>
    %156 = vector.shape_cast %155 : vector<1x1x9x768xf32> to vector<9x768xf32>
    %c0_198 = arith.constant 0 : index
    %c0_199 = arith.constant 0 : index
    %c137 = arith.constant 137 : index
    %c0_200 = arith.constant 0 : index
    %157 = vector.load %arg6[%c0_198, %c0_199, %c137, %c0_200] : memref<1x4x196x768xf32, #tpu.memory_space<vmem>>, vector<1x1x9x768xf32>
    %158 = vector.shape_cast %157 : vector<1x1x9x768xf32> to vector<9x768xf32>
    %159 = vector.shape_cast %156 : vector<9x768xf32> to vector<1x1x9x768xf32>
    tpu.vector_store %arg6[%c0_198, %c0_199, %c137, %c0_200], %159 {strides = array<i32>} : memref<1x4x196x768xf32, #tpu.memory_space<vmem>>, vector<1x1x9x768xf32>,
    %c0_201 = arith.constant 0 : index
    %c0_202 = arith.constant 0 : index
    %c57 = arith.constant 57 : index
    %c0_203 = arith.constant 0 : index
    %160 = vector.load %arg5[%c0_201, %c0_202, %c57, %c0_203] : memref<1x1x196x768xf32, #tpu.memory_space<vmem>>, vector<1x1x9x768xf32>
    %161 = vector.shape_cast %160 : vector<1x1x9x768xf32> to vector<9x768xf32>
    %c0_204 = arith.constant 0 : index
    %c0_205 = arith.constant 0 : index
    %c146 = arith.constant 146 : index
    %c0_206 = arith.constant 0 : index
    %162 = vector.load %arg6[%c0_204, %c0_205, %c146, %c0_206] : memref<1x4x196x768xf32, #tpu.memory_space<vmem>>, vector<1x1x9x768xf32>
    %163 = vector.shape_cast %162 : vector<1x1x9x768xf32> to vector<9x768xf32>
    %164 = vector.shape_cast %161 : vector<9x768xf32> to vector<1x1x9x768xf32>
    tpu.vector_store %arg6[%c0_204, %c0_205, %c146, %c0_206], %164 {strides = array<i32>} : memref<1x4x196x768xf32, #tpu.memory_space<vmem>>, vector<1x1x9x768xf32>,
    %c0_207 = arith.constant 0 : index
    %c0_208 = arith.constant 0 : index
    %c70 = arith.constant 70 : index
    %c0_209 = arith.constant 0 : index
    %165 = vector.load %arg5[%c0_207, %c0_208, %c70, %c0_209] : memref<1x1x196x768xf32, #tpu.memory_space<vmem>>, vector<1x1x11x768xf32>
    %166 = vector.shape_cast %165 : vector<1x1x11x768xf32> to vector<11x768xf32>
    %c0_210 = arith.constant 0 : index
    %c0_211 = arith.constant 0 : index
    %c155 = arith.constant 155 : index
    %c0_212 = arith.constant 0 : index
    %167 = vector.load %arg6[%c0_210, %c0_211, %c155, %c0_212] : memref<1x4x196x768xf32, #tpu.memory_space<vmem>>, vector<1x1x11x768xf32>
    %168 = vector.shape_cast %167 : vector<1x1x11x768xf32> to vector<11x768xf32>
    %169 = vector.shape_cast %166 : vector<11x768xf32> to vector<1x1x11x768xf32>
    tpu.vector_store %arg6[%c0_210, %c0_211, %c155, %c0_212], %169 {strides = array<i32>} : memref<1x4x196x768xf32, #tpu.memory_space<vmem>>, vector<1x1x11x768xf32>,
    %c0_213 = arith.constant 0 : index
    %c0_214 = arith.constant 0 : index
    %c85 = arith.constant 85 : index
    %c0_215 = arith.constant 0 : index
    %170 = vector.load %arg5[%c0_213, %c0_214, %c85, %c0_215] : memref<1x1x196x768xf32, #tpu.memory_space<vmem>>, vector<1x1x9x768xf32>
    %171 = vector.shape_cast %170 : vector<1x1x9x768xf32> to vector<9x768xf32>
    %c0_216 = arith.constant 0 : index
    %c0_217 = arith.constant 0 : index
    %c166 = arith.constant 166 : index
    %c0_218 = arith.constant 0 : index
    %172 = vector.load %arg6[%c0_216, %c0_217, %c166, %c0_218] : memref<1x4x196x768xf32, #tpu.memory_space<vmem>>, vector<1x1x9x768xf32>
    %173 = vector.shape_cast %172 : vector<1x1x9x768xf32> to vector<9x768xf32>
    %174 = vector.shape_cast %171 : vector<9x768xf32> to vector<1x1x9x768xf32>
    tpu.vector_store %arg6[%c0_216, %c0_217, %c166, %c0_218], %174 {strides = array<i32>} : memref<1x4x196x768xf32, #tpu.memory_space<vmem>>, vector<1x1x9x768xf32>,
    %c0_219 = arith.constant 0 : index
    %c0_220 = arith.constant 0 : index
    %c99 = arith.constant 99 : index
    %c0_221 = arith.constant 0 : index
    %175 = vector.load %arg5[%c0_219, %c0_220, %c99, %c0_221] : memref<1x1x196x768xf32, #tpu.memory_space<vmem>>, vector<1x1x9x768xf32>
    %176 = vector.shape_cast %175 : vector<1x1x9x768xf32> to vector<9x768xf32>
    %c0_222 = arith.constant 0 : index
    %c0_223 = arith.constant 0 : index
    %c175 = arith.constant 175 : index
    %c0_224 = arith.constant 0 : index
    %177 = vector.load %arg6[%c0_222, %c0_223, %c175, %c0_224] : memref<1x4x196x768xf32, #tpu.memory_space<vmem>>, vector<1x1x9x768xf32>
    %178 = vector.shape_cast %177 : vector<1x1x9x768xf32> to vector<9x768xf32>
    %179 = vector.shape_cast %176 : vector<9x768xf32> to vector<1x1x9x768xf32>
    tpu.vector_store %arg6[%c0_222, %c0_223, %c175, %c0_224], %179 {strides = array<i32>} : memref<1x4x196x768xf32, #tpu.memory_space<vmem>>, vector<1x1x9x768xf32>,
    %c0_225 = arith.constant 0 : index
    %c0_226 = arith.constant 0 : index
    %c113_227 = arith.constant 113 : index
    %c0_228 = arith.constant 0 : index
    %180 = vector.load %arg5[%c0_225, %c0_226, %c113_227, %c0_228] : memref<1x1x196x768xf32, #tpu.memory_space<vmem>>, vector<1x1x9x768xf32>
    %181 = vector.shape_cast %180 : vector<1x1x9x768xf32> to vector<9x768xf32>
    %c0_229 = arith.constant 0 : index
    %c0_230 = arith.constant 0 : index
    %c184 = arith.constant 184 : index
    %c0_231 = arith.constant 0 : index
    %182 = vector.load %arg6[%c0_229, %c0_230, %c184, %c0_231] : memref<1x4x196x768xf32, #tpu.memory_space<vmem>>, vector<1x1x9x768xf32>
    %183 = vector.shape_cast %182 : vector<1x1x9x768xf32> to vector<9x768xf32>
    %184 = vector.shape_cast %181 : vector<9x768xf32> to vector<1x1x9x768xf32>
    tpu.vector_store %arg6[%c0_229, %c0_230, %c184, %c0_231], %184 {strides = array<i32>} : memref<1x4x196x768xf32, #tpu.memory_space<vmem>>, vector<1x1x9x768xf32>,
    %c0_232 = arith.constant 0 : index
    %c0_233 = arith.constant 0 : index
    %c140 = arith.constant 140 : index
    %c0_234 = arith.constant 0 : index
    %185 = vector.load %arg5[%c0_232, %c0_233, %c140, %c0_234] : memref<1x1x196x768xf32, #tpu.memory_space<vmem>>, vector<1x1x1x768xf32>
    %186 = vector.shape_cast %185 : vector<1x1x1x768xf32> to vector<1x768xf32>
    %c0_235 = arith.constant 0 : index
    %c0_236 = arith.constant 0 : index
    %c193 = arith.constant 193 : index
    %c0_237 = arith.constant 0 : index
    %187 = vector.load %arg6[%c0_235, %c0_236, %c193, %c0_237] : memref<1x4x196x768xf32, #tpu.memory_space<vmem>>, vector<1x1x1x768xf32>
    %188 = vector.shape_cast %187 : vector<1x1x1x768xf32> to vector<1x768xf32>
    %189 = vector.shape_cast %186 : vector<1x768xf32> to vector<1x1x1x768xf32>
    tpu.vector_store %arg6[%c0_235, %c0_236, %c193, %c0_237], %189 {strides = array<i32>} : memref<1x4x196x768xf32, #tpu.memory_space<vmem>>, vector<1x1x1x768xf32>,
    %c0_238 = arith.constant 0 : index
    %c0_239 = arith.constant 0 : index
    %c145 = arith.constant 145 : index
    %c0_240 = arith.constant 0 : index
    %190 = vector.load %arg5[%c0_238, %c0_239, %c145, %c0_240] : memref<1x1x196x768xf32, #tpu.memory_space<vmem>>, vector<1x1x1x768xf32>
    %191 = vector.shape_cast %190 : vector<1x1x1x768xf32> to vector<1x768xf32>
    %c0_241 = arith.constant 0 : index
    %c0_242 = arith.constant 0 : index
    %c194 = arith.constant 194 : index
    %c0_243 = arith.constant 0 : index
    %192 = vector.load %arg6[%c0_241, %c0_242, %c194, %c0_243] : memref<1x4x196x768xf32, #tpu.memory_space<vmem>>, vector<1x1x1x768xf32>
    %193 = vector.shape_cast %192 : vector<1x1x1x768xf32> to vector<1x768xf32>
    %194 = vector.shape_cast %191 : vector<1x768xf32> to vector<1x1x1x768xf32>
    tpu.vector_store %arg6[%c0_241, %c0_242, %c194, %c0_243], %194 {strides = array<i32>} : memref<1x4x196x768xf32, #tpu.memory_space<vmem>>, vector<1x1x1x768xf32>,
    %c0_244 = arith.constant 0 : index
    %c0_245 = arith.constant 0 : index
    %c150 = arith.constant 150 : index
    %c0_246 = arith.constant 0 : index
    %195 = vector.load %arg5[%c0_244, %c0_245, %c150, %c0_246] : memref<1x1x196x768xf32, #tpu.memory_space<vmem>>, vector<1x1x1x768xf32>
    %196 = vector.shape_cast %195 : vector<1x1x1x768xf32> to vector<1x768xf32>
    %c0_247 = arith.constant 0 : index
    %c0_248 = arith.constant 0 : index
    %c195 = arith.constant 195 : index
    %c0_249 = arith.constant 0 : index
    %197 = vector.load %arg6[%c0_247, %c0_248, %c195, %c0_249] : memref<1x4x196x768xf32, #tpu.memory_space<vmem>>, vector<1x1x1x768xf32>
    %198 = vector.shape_cast %197 : vector<1x1x1x768xf32> to vector<1x768xf32>
    %199 = vector.shape_cast %196 : vector<1x768xf32> to vector<1x1x1x768xf32>
    tpu.vector_store %arg6[%c0_247, %c0_248, %c195, %c0_249], %199 {strides = array<i32>} : memref<1x4x196x768xf32, #tpu.memory_space<vmem>>, vector<1x1x1x768xf32>,
    %c0_250 = arith.constant 0 : index
    %c0_251 = arith.constant 0 : index
    %c48_252 = arith.constant 48 : index
    %c0_253 = arith.constant 0 : index
    %200 = vector.load %arg2[%c0_250, %c0_251, %c48_252, %c0_253] : memref<1x1x152x768xf32, #tpu.memory_space<vmem>>, vector<1x1x3x768xf32>
    %201 = vector.shape_cast %200 : vector<1x1x3x768xf32> to vector<3x768xf32>
    %c0_254 = arith.constant 0 : index
    %c1 = arith.constant 1 : index
    %c0_255 = arith.constant 0 : index
    %c0_256 = arith.constant 0 : index
    %202 = vector.load %arg6[%c0_254, %c1, %c0_255, %c0_256] : memref<1x4x196x768xf32, #tpu.memory_space<vmem>>, vector<1x1x3x768xf32>
    %203 = vector.shape_cast %202 : vector<1x1x3x768xf32> to vector<3x768xf32>
    %204 = vector.shape_cast %201 : vector<3x768xf32> to vector<1x1x3x768xf32>
    tpu.vector_store %arg6[%c0_254, %c1, %c0_255, %c0_256], %204 {strides = array<i32>} : memref<1x4x196x768xf32, #tpu.memory_space<vmem>>, vector<1x1x3x768xf32>,
    %c0_257 = arith.constant 0 : index
    %c0_258 = arith.constant 0 : index
    %c50_259 = arith.constant 50 : index
    %c0_260 = arith.constant 0 : index
    %205 = vector.load %arg2[%c0_257, %c0_258, %c50_259, %c0_260] : memref<1x1x152x768xf32, #tpu.memory_space<vmem>>, vector<1x1x3x768xf32>
    %206 = vector.shape_cast %205 : vector<1x1x3x768xf32> to vector<3x768xf32>
    %c0_261 = arith.constant 0 : index
    %c1_262 = arith.constant 1 : index
    %c3_263 = arith.constant 3 : index
    %c0_264 = arith.constant 0 : index
    %207 = vector.load %arg6[%c0_261, %c1_262, %c3_263, %c0_264] : memref<1x4x196x768xf32, #tpu.memory_space<vmem>>, vector<1x1x3x768xf32>
    %208 = vector.shape_cast %207 : vector<1x1x3x768xf32> to vector<3x768xf32>
    %209 = vector.shape_cast %206 : vector<3x768xf32> to vector<1x1x3x768xf32>
    tpu.vector_store %arg6[%c0_261, %c1_262, %c3_263, %c0_264], %209 {strides = array<i32>} : memref<1x4x196x768xf32, #tpu.memory_space<vmem>>, vector<1x1x3x768xf32>,
    %c0_265 = arith.constant 0 : index
    %c0_266 = arith.constant 0 : index
    %c63 = arith.constant 63 : index
    %c0_267 = arith.constant 0 : index
    %210 = vector.load %arg2[%c0_265, %c0_266, %c63, %c0_267] : memref<1x1x152x768xf32, #tpu.memory_space<vmem>>, vector<1x1x3x768xf32>
    %211 = vector.shape_cast %210 : vector<1x1x3x768xf32> to vector<3x768xf32>
    %c0_268 = arith.constant 0 : index
    %c1_269 = arith.constant 1 : index
    %c6_270 = arith.constant 6 : index
    %c0_271 = arith.constant 0 : index
    %212 = vector.load %arg6[%c0_268, %c1_269, %c6_270, %c0_271] : memref<1x4x196x768xf32, #tpu.memory_space<vmem>>, vector<1x1x3x768xf32>
    %213 = vector.shape_cast %212 : vector<1x1x3x768xf32> to vector<3x768xf32>
    %214 = vector.shape_cast %211 : vector<3x768xf32> to vector<1x1x3x768xf32>
    tpu.vector_store %arg6[%c0_268, %c1_269, %c6_270, %c0_271], %214 {strides = array<i32>} : memref<1x4x196x768xf32, #tpu.memory_space<vmem>>, vector<1x1x3x768xf32>,
    %c0_272 = arith.constant 0 : index
    %c0_273 = arith.constant 0 : index
    %c76 = arith.constant 76 : index
    %c0_274 = arith.constant 0 : index
    %215 = vector.load %arg2[%c0_272, %c0_273, %c76, %c0_274] : memref<1x1x152x768xf32, #tpu.memory_space<vmem>>, vector<1x1x5x768xf32>
    %216 = vector.shape_cast %215 : vector<1x1x5x768xf32> to vector<5x768xf32>
    %c0_275 = arith.constant 0 : index
    %c1_276 = arith.constant 1 : index
    %c9_277 = arith.constant 9 : index
    %c0_278 = arith.constant 0 : index
    %217 = vector.load %arg6[%c0_275, %c1_276, %c9_277, %c0_278] : memref<1x4x196x768xf32, #tpu.memory_space<vmem>>, vector<1x1x5x768xf32>
    %218 = vector.shape_cast %217 : vector<1x1x5x768xf32> to vector<5x768xf32>
    %219 = vector.shape_cast %216 : vector<5x768xf32> to vector<1x1x5x768xf32>
    tpu.vector_store %arg6[%c0_275, %c1_276, %c9_277, %c0_278], %219 {strides = array<i32>} : memref<1x4x196x768xf32, #tpu.memory_space<vmem>>, vector<1x1x5x768xf32>,
    %c0_279 = arith.constant 0 : index
    %c0_280 = arith.constant 0 : index
    %c104_281 = arith.constant 104 : index
    %c0_282 = arith.constant 0 : index
    %220 = vector.load %arg2[%c0_279, %c0_280, %c104_281, %c0_282] : memref<1x1x152x768xf32, #tpu.memory_space<vmem>>, vector<1x1x1x768xf32>
    %221 = vector.shape_cast %220 : vector<1x1x1x768xf32> to vector<1x768xf32>
    %c0_283 = arith.constant 0 : index
    %c1_284 = arith.constant 1 : index
    %c14_285 = arith.constant 14 : index
    %c0_286 = arith.constant 0 : index
    %222 = vector.load %arg6[%c0_283, %c1_284, %c14_285, %c0_286] : memref<1x4x196x768xf32, #tpu.memory_space<vmem>>, vector<1x1x1x768xf32>
    %223 = vector.shape_cast %222 : vector<1x1x1x768xf32> to vector<1x768xf32>
    %224 = vector.shape_cast %221 : vector<1x768xf32> to vector<1x1x1x768xf32>
    tpu.vector_store %arg6[%c0_283, %c1_284, %c14_285, %c0_286], %224 {strides = array<i32>} : memref<1x4x196x768xf32, #tpu.memory_space<vmem>>, vector<1x1x1x768xf32>,
    %c0_287 = arith.constant 0 : index
    %c0_288 = arith.constant 0 : index
    %c106_289 = arith.constant 106 : index
    %c0_290 = arith.constant 0 : index
    %225 = vector.load %arg2[%c0_287, %c0_288, %c106_289, %c0_290] : memref<1x1x152x768xf32, #tpu.memory_space<vmem>>, vector<1x1x1x768xf32>
    %226 = vector.shape_cast %225 : vector<1x1x1x768xf32> to vector<1x768xf32>
    %c0_291 = arith.constant 0 : index
    %c1_292 = arith.constant 1 : index
    %c15_293 = arith.constant 15 : index
    %c0_294 = arith.constant 0 : index
    %227 = vector.load %arg6[%c0_291, %c1_292, %c15_293, %c0_294] : memref<1x4x196x768xf32, #tpu.memory_space<vmem>>, vector<1x1x1x768xf32>
    %228 = vector.shape_cast %227 : vector<1x1x1x768xf32> to vector<1x768xf32>
    %229 = vector.shape_cast %226 : vector<1x768xf32> to vector<1x1x1x768xf32>
    tpu.vector_store %arg6[%c0_291, %c1_292, %c15_293, %c0_294], %229 {strides = array<i32>} : memref<1x4x196x768xf32, #tpu.memory_space<vmem>>, vector<1x1x1x768xf32>,
    %c0_295 = arith.constant 0 : index
    %c0_296 = arith.constant 0 : index
    %c108 = arith.constant 108 : index
    %c0_297 = arith.constant 0 : index
    %230 = vector.load %arg2[%c0_295, %c0_296, %c108, %c0_297] : memref<1x1x152x768xf32, #tpu.memory_space<vmem>>, vector<1x1x1x768xf32>
    %231 = vector.shape_cast %230 : vector<1x1x1x768xf32> to vector<1x768xf32>
    %c0_298 = arith.constant 0 : index
    %c1_299 = arith.constant 1 : index
    %c16_300 = arith.constant 16 : index
    %c0_301 = arith.constant 0 : index
    %232 = vector.load %arg6[%c0_298, %c1_299, %c16_300, %c0_301] : memref<1x4x196x768xf32, #tpu.memory_space<vmem>>, vector<1x1x1x768xf32>
    %233 = vector.shape_cast %232 : vector<1x1x1x768xf32> to vector<1x768xf32>
    %234 = vector.shape_cast %231 : vector<1x768xf32> to vector<1x1x1x768xf32>
    tpu.vector_store %arg6[%c0_298, %c1_299, %c16_300, %c0_301], %234 {strides = array<i32>} : memref<1x4x196x768xf32, #tpu.memory_space<vmem>>, vector<1x1x1x768xf32>,
    %c0_302 = arith.constant 0 : index
    %c0_303 = arith.constant 0 : index
    %c33_304 = arith.constant 33 : index
    %c0_305 = arith.constant 0 : index
    %235 = vector.load %arg3[%c0_302, %c0_303, %c33_304, %c0_305] : memref<1x1x168x768xf32, #tpu.memory_space<vmem>>, vector<1x1x4x768xf32>
    %236 = vector.shape_cast %235 : vector<1x1x4x768xf32> to vector<4x768xf32>
    %c0_306 = arith.constant 0 : index
    %c1_307 = arith.constant 1 : index
    %c17_308 = arith.constant 17 : index
    %c0_309 = arith.constant 0 : index
    %237 = vector.load %arg6[%c0_306, %c1_307, %c17_308, %c0_309] : memref<1x4x196x768xf32, #tpu.memory_space<vmem>>, vector<1x1x4x768xf32>
    %238 = vector.shape_cast %237 : vector<1x1x4x768xf32> to vector<4x768xf32>
    %239 = vector.shape_cast %236 : vector<4x768xf32> to vector<1x1x4x768xf32>
    tpu.vector_store %arg6[%c0_306, %c1_307, %c17_308, %c0_309], %239 {strides = array<i32>} : memref<1x4x196x768xf32, #tpu.memory_space<vmem>>, vector<1x1x4x768xf32>,
    %c0_310 = arith.constant 0 : index
    %c0_311 = arith.constant 0 : index
    %c36 = arith.constant 36 : index
    %c0_312 = arith.constant 0 : index
    %240 = vector.load %arg3[%c0_310, %c0_311, %c36, %c0_312] : memref<1x1x168x768xf32, #tpu.memory_space<vmem>>, vector<1x1x4x768xf32>
    %241 = vector.shape_cast %240 : vector<1x1x4x768xf32> to vector<4x768xf32>
    %c0_313 = arith.constant 0 : index
    %c1_314 = arith.constant 1 : index
    %c21_315 = arith.constant 21 : index
    %c0_316 = arith.constant 0 : index
    %242 = vector.load %arg6[%c0_313, %c1_314, %c21_315, %c0_316] : memref<1x4x196x768xf32, #tpu.memory_space<vmem>>, vector<1x1x4x768xf32>
    %243 = vector.shape_cast %242 : vector<1x1x4x768xf32> to vector<4x768xf32>
    %244 = vector.shape_cast %241 : vector<4x768xf32> to vector<1x1x4x768xf32>
    tpu.vector_store %arg6[%c0_313, %c1_314, %c21_315, %c0_316], %244 {strides = array<i32>} : memref<1x4x196x768xf32, #tpu.memory_space<vmem>>, vector<1x1x4x768xf32>,
    %c0_317 = arith.constant 0 : index
    %c0_318 = arith.constant 0 : index
    %c48_319 = arith.constant 48 : index
    %c0_320 = arith.constant 0 : index
    %245 = vector.load %arg3[%c0_317, %c0_318, %c48_319, %c0_320] : memref<1x1x168x768xf32, #tpu.memory_space<vmem>>, vector<1x1x5x768xf32>
    %246 = vector.shape_cast %245 : vector<1x1x5x768xf32> to vector<5x768xf32>
    %c0_321 = arith.constant 0 : index
    %c1_322 = arith.constant 1 : index
    %c25_323 = arith.constant 25 : index
    %c0_324 = arith.constant 0 : index
    %247 = vector.load %arg6[%c0_321, %c1_322, %c25_323, %c0_324] : memref<1x4x196x768xf32, #tpu.memory_space<vmem>>, vector<1x1x5x768xf32>
    %248 = vector.shape_cast %247 : vector<1x1x5x768xf32> to vector<5x768xf32>
    %249 = vector.shape_cast %246 : vector<5x768xf32> to vector<1x1x5x768xf32>
    tpu.vector_store %arg6[%c0_321, %c1_322, %c25_323, %c0_324], %249 {strides = array<i32>} : memref<1x4x196x768xf32, #tpu.memory_space<vmem>>, vector<1x1x5x768xf32>,
    %c0_325 = arith.constant 0 : index
    %c0_326 = arith.constant 0 : index
    %c62 = arith.constant 62 : index
    %c0_327 = arith.constant 0 : index
    %250 = vector.load %arg3[%c0_325, %c0_326, %c62, %c0_327] : memref<1x1x168x768xf32, #tpu.memory_space<vmem>>, vector<1x1x5x768xf32>
    %251 = vector.shape_cast %250 : vector<1x1x5x768xf32> to vector<5x768xf32>
    %c0_328 = arith.constant 0 : index
    %c1_329 = arith.constant 1 : index
    %c30_330 = arith.constant 30 : index
    %c0_331 = arith.constant 0 : index
    %252 = vector.load %arg6[%c0_328, %c1_329, %c30_330, %c0_331] : memref<1x4x196x768xf32, #tpu.memory_space<vmem>>, vector<1x1x5x768xf32>
    %253 = vector.shape_cast %252 : vector<1x1x5x768xf32> to vector<5x768xf32>
    %254 = vector.shape_cast %251 : vector<5x768xf32> to vector<1x1x5x768xf32>
    tpu.vector_store %arg6[%c0_328, %c1_329, %c30_330, %c0_331], %254 {strides = array<i32>} : memref<1x4x196x768xf32, #tpu.memory_space<vmem>>, vector<1x1x5x768xf32>,
    %c0_332 = arith.constant 0 : index
    %c0_333 = arith.constant 0 : index
    %c75 = arith.constant 75 : index
    %c0_334 = arith.constant 0 : index
    %255 = vector.load %arg3[%c0_332, %c0_333, %c75, %c0_334] : memref<1x1x168x768xf32, #tpu.memory_space<vmem>>, vector<1x1x7x768xf32>
    %256 = vector.shape_cast %255 : vector<1x1x7x768xf32> to vector<7x768xf32>
    %c0_335 = arith.constant 0 : index
    %c1_336 = arith.constant 1 : index
    %c35_337 = arith.constant 35 : index
    %c0_338 = arith.constant 0 : index
    %257 = vector.load %arg6[%c0_335, %c1_336, %c35_337, %c0_338] : memref<1x4x196x768xf32, #tpu.memory_space<vmem>>, vector<1x1x7x768xf32>
    %258 = vector.shape_cast %257 : vector<1x1x7x768xf32> to vector<7x768xf32>
    %259 = vector.shape_cast %256 : vector<7x768xf32> to vector<1x1x7x768xf32>
    tpu.vector_store %arg6[%c0_335, %c1_336, %c35_337, %c0_338], %259 {strides = array<i32>} : memref<1x4x196x768xf32, #tpu.memory_space<vmem>>, vector<1x1x7x768xf32>,
    %c0_339 = arith.constant 0 : index
    %c0_340 = arith.constant 0 : index
    %c90_341 = arith.constant 90 : index
    %c0_342 = arith.constant 0 : index
    %260 = vector.load %arg3[%c0_339, %c0_340, %c90_341, %c0_342] : memref<1x1x168x768xf32, #tpu.memory_space<vmem>>, vector<1x1x5x768xf32>
    %261 = vector.shape_cast %260 : vector<1x1x5x768xf32> to vector<5x768xf32>
    %c0_343 = arith.constant 0 : index
    %c1_344 = arith.constant 1 : index
    %c42_345 = arith.constant 42 : index
    %c0_346 = arith.constant 0 : index
    %262 = vector.load %arg6[%c0_343, %c1_344, %c42_345, %c0_346] : memref<1x4x196x768xf32, #tpu.memory_space<vmem>>, vector<1x1x5x768xf32>
    %263 = vector.shape_cast %262 : vector<1x1x5x768xf32> to vector<5x768xf32>
    %264 = vector.shape_cast %261 : vector<5x768xf32> to vector<1x1x5x768xf32>
    tpu.vector_store %arg6[%c0_343, %c1_344, %c42_345, %c0_346], %264 {strides = array<i32>} : memref<1x4x196x768xf32, #tpu.memory_space<vmem>>, vector<1x1x5x768xf32>,
    %c0_347 = arith.constant 0 : index
    %c0_348 = arith.constant 0 : index
    %c117_349 = arith.constant 117 : index
    %c0_350 = arith.constant 0 : index
    %265 = vector.load %arg3[%c0_347, %c0_348, %c117_349, %c0_350] : memref<1x1x168x768xf32, #tpu.memory_space<vmem>>, vector<1x1x1x768xf32>
    %266 = vector.shape_cast %265 : vector<1x1x1x768xf32> to vector<1x768xf32>
    %c0_351 = arith.constant 0 : index
    %c1_352 = arith.constant 1 : index
    %c47_353 = arith.constant 47 : index
    %c0_354 = arith.constant 0 : index
    %267 = vector.load %arg6[%c0_351, %c1_352, %c47_353, %c0_354] : memref<1x4x196x768xf32, #tpu.memory_space<vmem>>, vector<1x1x1x768xf32>
    %268 = vector.shape_cast %267 : vector<1x1x1x768xf32> to vector<1x768xf32>
    %269 = vector.shape_cast %266 : vector<1x768xf32> to vector<1x1x1x768xf32>
    tpu.vector_store %arg6[%c0_351, %c1_352, %c47_353, %c0_354], %269 {strides = array<i32>} : memref<1x4x196x768xf32, #tpu.memory_space<vmem>>, vector<1x1x1x768xf32>,
    %c0_355 = arith.constant 0 : index
    %c0_356 = arith.constant 0 : index
    %c120_357 = arith.constant 120 : index
    %c0_358 = arith.constant 0 : index
    %270 = vector.load %arg3[%c0_355, %c0_356, %c120_357, %c0_358] : memref<1x1x168x768xf32, #tpu.memory_space<vmem>>, vector<1x1x1x768xf32>
    %271 = vector.shape_cast %270 : vector<1x1x1x768xf32> to vector<1x768xf32>
    %c0_359 = arith.constant 0 : index
    %c1_360 = arith.constant 1 : index
    %c48_361 = arith.constant 48 : index
    %c0_362 = arith.constant 0 : index
    %272 = vector.load %arg6[%c0_359, %c1_360, %c48_361, %c0_362] : memref<1x4x196x768xf32, #tpu.memory_space<vmem>>, vector<1x1x1x768xf32>
    %273 = vector.shape_cast %272 : vector<1x1x1x768xf32> to vector<1x768xf32>
    %274 = vector.shape_cast %271 : vector<1x768xf32> to vector<1x1x1x768xf32>
    tpu.vector_store %arg6[%c0_359, %c1_360, %c48_361, %c0_362], %274 {strides = array<i32>} : memref<1x4x196x768xf32, #tpu.memory_space<vmem>>, vector<1x1x1x768xf32>,
    %c0_363 = arith.constant 0 : index
    %c0_364 = arith.constant 0 : index
    %c123 = arith.constant 123 : index
    %c0_365 = arith.constant 0 : index
    %275 = vector.load %arg3[%c0_363, %c0_364, %c123, %c0_365] : memref<1x1x168x768xf32, #tpu.memory_space<vmem>>, vector<1x1x1x768xf32>
    %276 = vector.shape_cast %275 : vector<1x1x1x768xf32> to vector<1x768xf32>
    %c0_366 = arith.constant 0 : index
    %c1_367 = arith.constant 1 : index
    %c49_368 = arith.constant 49 : index
    %c0_369 = arith.constant 0 : index
    %277 = vector.load %arg6[%c0_366, %c1_367, %c49_368, %c0_369] : memref<1x4x196x768xf32, #tpu.memory_space<vmem>>, vector<1x1x1x768xf32>
    %278 = vector.shape_cast %277 : vector<1x1x1x768xf32> to vector<1x768xf32>
    %279 = vector.shape_cast %276 : vector<1x768xf32> to vector<1x1x1x768xf32>
    tpu.vector_store %arg6[%c0_366, %c1_367, %c49_368, %c0_369], %279 {strides = array<i32>} : memref<1x4x196x768xf32, #tpu.memory_space<vmem>>, vector<1x1x1x768xf32>,
    %c0_370 = arith.constant 0 : index
    %c0_371 = arith.constant 0 : index
    %c18 = arith.constant 18 : index
    %c0_372 = arith.constant 0 : index
    %280 = vector.load %arg4[%c0_370, %c0_371, %c18, %c0_372] : memref<1x1x184x768xf32, #tpu.memory_space<vmem>>, vector<1x1x5x768xf32>
    %281 = vector.shape_cast %280 : vector<1x1x5x768xf32> to vector<5x768xf32>
    %c0_373 = arith.constant 0 : index
    %c1_374 = arith.constant 1 : index
    %c50_375 = arith.constant 50 : index
    %c0_376 = arith.constant 0 : index
    %282 = vector.load %arg6[%c0_373, %c1_374, %c50_375, %c0_376] : memref<1x4x196x768xf32, #tpu.memory_space<vmem>>, vector<1x1x5x768xf32>
    %283 = vector.shape_cast %282 : vector<1x1x5x768xf32> to vector<5x768xf32>
    %284 = vector.shape_cast %281 : vector<5x768xf32> to vector<1x1x5x768xf32>
    tpu.vector_store %arg6[%c0_373, %c1_374, %c50_375, %c0_376], %284 {strides = array<i32>} : memref<1x4x196x768xf32, #tpu.memory_space<vmem>>, vector<1x1x5x768xf32>,
    %c0_377 = arith.constant 0 : index
    %c0_378 = arith.constant 0 : index
    %c22 = arith.constant 22 : index
    %c0_379 = arith.constant 0 : index
    %285 = vector.load %arg4[%c0_377, %c0_378, %c22, %c0_379] : memref<1x1x184x768xf32, #tpu.memory_space<vmem>>, vector<1x1x5x768xf32>
    %286 = vector.shape_cast %285 : vector<1x1x5x768xf32> to vector<5x768xf32>
    %c0_380 = arith.constant 0 : index
    %c1_381 = arith.constant 1 : index
    %c55_382 = arith.constant 55 : index
    %c0_383 = arith.constant 0 : index
    %287 = vector.load %arg6[%c0_380, %c1_381, %c55_382, %c0_383] : memref<1x4x196x768xf32, #tpu.memory_space<vmem>>, vector<1x1x5x768xf32>
    %288 = vector.shape_cast %287 : vector<1x1x5x768xf32> to vector<5x768xf32>
    %289 = vector.shape_cast %286 : vector<5x768xf32> to vector<1x1x5x768xf32>
    tpu.vector_store %arg6[%c0_380, %c1_381, %c55_382, %c0_383], %289 {strides = array<i32>} : memref<1x4x196x768xf32, #tpu.memory_space<vmem>>, vector<1x1x5x768xf32>,
    %c0_384 = arith.constant 0 : index
    %c0_385 = arith.constant 0 : index
    %c33_386 = arith.constant 33 : index
    %c0_387 = arith.constant 0 : index
    %290 = vector.load %arg4[%c0_384, %c0_385, %c33_386, %c0_387] : memref<1x1x184x768xf32, #tpu.memory_space<vmem>>, vector<1x1x7x768xf32>
    %291 = vector.shape_cast %290 : vector<1x1x7x768xf32> to vector<7x768xf32>
    %c0_388 = arith.constant 0 : index
    %c1_389 = arith.constant 1 : index
    %c60_390 = arith.constant 60 : index
    %c0_391 = arith.constant 0 : index
    %292 = vector.load %arg6[%c0_388, %c1_389, %c60_390, %c0_391] : memref<1x4x196x768xf32, #tpu.memory_space<vmem>>, vector<1x1x7x768xf32>
    %293 = vector.shape_cast %292 : vector<1x1x7x768xf32> to vector<7x768xf32>
    %294 = vector.shape_cast %291 : vector<7x768xf32> to vector<1x1x7x768xf32>
    tpu.vector_store %arg6[%c0_388, %c1_389, %c60_390, %c0_391], %294 {strides = array<i32>} : memref<1x4x196x768xf32, #tpu.memory_space<vmem>>, vector<1x1x7x768xf32>,
    %c0_392 = arith.constant 0 : index
    %c0_393 = arith.constant 0 : index
    %c47_394 = arith.constant 47 : index
    %c0_395 = arith.constant 0 : index
    %295 = vector.load %arg4[%c0_392, %c0_393, %c47_394, %c0_395] : memref<1x1x184x768xf32, #tpu.memory_space<vmem>>, vector<1x1x7x768xf32>
    %296 = vector.shape_cast %295 : vector<1x1x7x768xf32> to vector<7x768xf32>
    %c0_396 = arith.constant 0 : index
    %c1_397 = arith.constant 1 : index
    %c67_398 = arith.constant 67 : index
    %c0_399 = arith.constant 0 : index
    %297 = vector.load %arg6[%c0_396, %c1_397, %c67_398, %c0_399] : memref<1x4x196x768xf32, #tpu.memory_space<vmem>>, vector<1x1x7x768xf32>
    %298 = vector.shape_cast %297 : vector<1x1x7x768xf32> to vector<7x768xf32>
    %299 = vector.shape_cast %296 : vector<7x768xf32> to vector<1x1x7x768xf32>
    tpu.vector_store %arg6[%c0_396, %c1_397, %c67_398, %c0_399], %299 {strides = array<i32>} : memref<1x4x196x768xf32, #tpu.memory_space<vmem>>, vector<1x1x7x768xf32>,
    %c0_400 = arith.constant 0 : index
    %c0_401 = arith.constant 0 : index
    %c61 = arith.constant 61 : index
    %c0_402 = arith.constant 0 : index
    %300 = vector.load %arg4[%c0_400, %c0_401, %c61, %c0_402] : memref<1x1x184x768xf32, #tpu.memory_space<vmem>>, vector<1x1x7x768xf32>
    %301 = vector.shape_cast %300 : vector<1x1x7x768xf32> to vector<7x768xf32>
    %c0_403 = arith.constant 0 : index
    %c1_404 = arith.constant 1 : index
    %c74_405 = arith.constant 74 : index
    %c0_406 = arith.constant 0 : index
    %302 = vector.load %arg6[%c0_403, %c1_404, %c74_405, %c0_406] : memref<1x4x196x768xf32, #tpu.memory_space<vmem>>, vector<1x1x7x768xf32>
    %303 = vector.shape_cast %302 : vector<1x1x7x768xf32> to vector<7x768xf32>
    %304 = vector.shape_cast %301 : vector<7x768xf32> to vector<1x1x7x768xf32>
    tpu.vector_store %arg6[%c0_403, %c1_404, %c74_405, %c0_406], %304 {strides = array<i32>} : memref<1x4x196x768xf32, #tpu.memory_space<vmem>>, vector<1x1x7x768xf32>,
    %c0_407 = arith.constant 0 : index
    %c0_408 = arith.constant 0 : index
    %c74_409 = arith.constant 74 : index
    %c0_410 = arith.constant 0 : index
    %305 = vector.load %arg4[%c0_407, %c0_408, %c74_409, %c0_410] : memref<1x1x184x768xf32, #tpu.memory_space<vmem>>, vector<1x1x9x768xf32>
    %306 = vector.shape_cast %305 : vector<1x1x9x768xf32> to vector<9x768xf32>
    %c0_411 = arith.constant 0 : index
    %c1_412 = arith.constant 1 : index
    %c81_413 = arith.constant 81 : index
    %c0_414 = arith.constant 0 : index
    %307 = vector.load %arg6[%c0_411, %c1_412, %c81_413, %c0_414] : memref<1x4x196x768xf32, #tpu.memory_space<vmem>>, vector<1x1x9x768xf32>
    %308 = vector.shape_cast %307 : vector<1x1x9x768xf32> to vector<9x768xf32>
    %309 = vector.shape_cast %306 : vector<9x768xf32> to vector<1x1x9x768xf32>
    tpu.vector_store %arg6[%c0_411, %c1_412, %c81_413, %c0_414], %309 {strides = array<i32>} : memref<1x4x196x768xf32, #tpu.memory_space<vmem>>, vector<1x1x9x768xf32>,
    %c0_415 = arith.constant 0 : index
    %c0_416 = arith.constant 0 : index
    %c89 = arith.constant 89 : index
    %c0_417 = arith.constant 0 : index
    %310 = vector.load %arg4[%c0_415, %c0_416, %c89, %c0_417] : memref<1x1x184x768xf32, #tpu.memory_space<vmem>>, vector<1x1x7x768xf32>
    %311 = vector.shape_cast %310 : vector<1x1x7x768xf32> to vector<7x768xf32>
    %c0_418 = arith.constant 0 : index
    %c1_419 = arith.constant 1 : index
    %c90_420 = arith.constant 90 : index
    %c0_421 = arith.constant 0 : index
    %312 = vector.load %arg6[%c0_418, %c1_419, %c90_420, %c0_421] : memref<1x4x196x768xf32, #tpu.memory_space<vmem>>, vector<1x1x7x768xf32>
    %313 = vector.shape_cast %312 : vector<1x1x7x768xf32> to vector<7x768xf32>
    %314 = vector.shape_cast %311 : vector<7x768xf32> to vector<1x1x7x768xf32>
    tpu.vector_store %arg6[%c0_418, %c1_419, %c90_420, %c0_421], %314 {strides = array<i32>} : memref<1x4x196x768xf32, #tpu.memory_space<vmem>>, vector<1x1x7x768xf32>,
    %c0_422 = arith.constant 0 : index
    %c0_423 = arith.constant 0 : index
    %c103_424 = arith.constant 103 : index
    %c0_425 = arith.constant 0 : index
    %315 = vector.load %arg4[%c0_422, %c0_423, %c103_424, %c0_425] : memref<1x1x184x768xf32, #tpu.memory_space<vmem>>, vector<1x1x7x768xf32>
    %316 = vector.shape_cast %315 : vector<1x1x7x768xf32> to vector<7x768xf32>
    %c0_426 = arith.constant 0 : index
    %c1_427 = arith.constant 1 : index
    %c97_428 = arith.constant 97 : index
    %c0_429 = arith.constant 0 : index
    %317 = vector.load %arg6[%c0_426, %c1_427, %c97_428, %c0_429] : memref<1x4x196x768xf32, #tpu.memory_space<vmem>>, vector<1x1x7x768xf32>
    %318 = vector.shape_cast %317 : vector<1x1x7x768xf32> to vector<7x768xf32>
    %319 = vector.shape_cast %316 : vector<7x768xf32> to vector<1x1x7x768xf32>
    tpu.vector_store %arg6[%c0_426, %c1_427, %c97_428, %c0_429], %319 {strides = array<i32>} : memref<1x4x196x768xf32, #tpu.memory_space<vmem>>, vector<1x1x7x768xf32>,
    %c0_430 = arith.constant 0 : index
    %c0_431 = arith.constant 0 : index
    %c130 = arith.constant 130 : index
    %c0_432 = arith.constant 0 : index
    %320 = vector.load %arg4[%c0_430, %c0_431, %c130, %c0_432] : memref<1x1x184x768xf32, #tpu.memory_space<vmem>>, vector<1x1x1x768xf32>
    %321 = vector.shape_cast %320 : vector<1x1x1x768xf32> to vector<1x768xf32>
    %c0_433 = arith.constant 0 : index
    %c1_434 = arith.constant 1 : index
    %c104_435 = arith.constant 104 : index
    %c0_436 = arith.constant 0 : index
    %322 = vector.load %arg6[%c0_433, %c1_434, %c104_435, %c0_436] : memref<1x4x196x768xf32, #tpu.memory_space<vmem>>, vector<1x1x1x768xf32>
    %323 = vector.shape_cast %322 : vector<1x1x1x768xf32> to vector<1x768xf32>
    %324 = vector.shape_cast %321 : vector<1x768xf32> to vector<1x1x1x768xf32>
    tpu.vector_store %arg6[%c0_433, %c1_434, %c104_435, %c0_436], %324 {strides = array<i32>} : memref<1x4x196x768xf32, #tpu.memory_space<vmem>>, vector<1x1x1x768xf32>,
    %c0_437 = arith.constant 0 : index
    %c0_438 = arith.constant 0 : index
    %c134 = arith.constant 134 : index
    %c0_439 = arith.constant 0 : index
    %325 = vector.load %arg4[%c0_437, %c0_438, %c134, %c0_439] : memref<1x1x184x768xf32, #tpu.memory_space<vmem>>, vector<1x1x1x768xf32>
    %326 = vector.shape_cast %325 : vector<1x1x1x768xf32> to vector<1x768xf32>
    %c0_440 = arith.constant 0 : index
    %c1_441 = arith.constant 1 : index
    %c105_442 = arith.constant 105 : index
    %c0_443 = arith.constant 0 : index
    %327 = vector.load %arg6[%c0_440, %c1_441, %c105_442, %c0_443] : memref<1x4x196x768xf32, #tpu.memory_space<vmem>>, vector<1x1x1x768xf32>
    %328 = vector.shape_cast %327 : vector<1x1x1x768xf32> to vector<1x768xf32>
    %329 = vector.shape_cast %326 : vector<1x768xf32> to vector<1x1x1x768xf32>
    tpu.vector_store %arg6[%c0_440, %c1_441, %c105_442, %c0_443], %329 {strides = array<i32>} : memref<1x4x196x768xf32, #tpu.memory_space<vmem>>, vector<1x1x1x768xf32>,
    %c0_444 = arith.constant 0 : index
    %c0_445 = arith.constant 0 : index
    %c138 = arith.constant 138 : index
    %c0_446 = arith.constant 0 : index
    %330 = vector.load %arg4[%c0_444, %c0_445, %c138, %c0_446] : memref<1x1x184x768xf32, #tpu.memory_space<vmem>>, vector<1x1x1x768xf32>
    %331 = vector.shape_cast %330 : vector<1x1x1x768xf32> to vector<1x768xf32>
    %c0_447 = arith.constant 0 : index
    %c1_448 = arith.constant 1 : index
    %c106_449 = arith.constant 106 : index
    %c0_450 = arith.constant 0 : index
    %332 = vector.load %arg6[%c0_447, %c1_448, %c106_449, %c0_450] : memref<1x4x196x768xf32, #tpu.memory_space<vmem>>, vector<1x1x1x768xf32>
    %333 = vector.shape_cast %332 : vector<1x1x1x768xf32> to vector<1x768xf32>
    %334 = vector.shape_cast %331 : vector<1x768xf32> to vector<1x1x1x768xf32>
    tpu.vector_store %arg6[%c0_447, %c1_448, %c106_449, %c0_450], %334 {strides = array<i32>} : memref<1x4x196x768xf32, #tpu.memory_space<vmem>>, vector<1x1x1x768xf32>,
    %c0_451 = arith.constant 0 : index
    %c0_452 = arith.constant 0 : index
    %c3_453 = arith.constant 3 : index
    %c0_454 = arith.constant 0 : index
    %335 = vector.load %arg5[%c0_451, %c0_452, %c3_453, %c0_454] : memref<1x1x196x768xf32, #tpu.memory_space<vmem>>, vector<1x1x6x768xf32>
    %336 = vector.shape_cast %335 : vector<1x1x6x768xf32> to vector<6x768xf32>
    %c0_455 = arith.constant 0 : index
    %c1_456 = arith.constant 1 : index
    %c107_457 = arith.constant 107 : index
    %c0_458 = arith.constant 0 : index
    %337 = vector.load %arg6[%c0_455, %c1_456, %c107_457, %c0_458] : memref<1x4x196x768xf32, #tpu.memory_space<vmem>>, vector<1x1x6x768xf32>
    %338 = vector.shape_cast %337 : vector<1x1x6x768xf32> to vector<6x768xf32>
    %339 = vector.shape_cast %336 : vector<6x768xf32> to vector<1x1x6x768xf32>
    tpu.vector_store %arg6[%c0_455, %c1_456, %c107_457, %c0_458], %339 {strides = array<i32>} : memref<1x4x196x768xf32, #tpu.memory_space<vmem>>, vector<1x1x6x768xf32>,
    %c0_459 = arith.constant 0 : index
    %c0_460 = arith.constant 0 : index
    %c8 = arith.constant 8 : index
    %c0_461 = arith.constant 0 : index
    %340 = vector.load %arg5[%c0_459, %c0_460, %c8, %c0_461] : memref<1x1x196x768xf32, #tpu.memory_space<vmem>>, vector<1x1x6x768xf32>
    %341 = vector.shape_cast %340 : vector<1x1x6x768xf32> to vector<6x768xf32>
    %c0_462 = arith.constant 0 : index
    %c1_463 = arith.constant 1 : index
    %c113_464 = arith.constant 113 : index
    %c0_465 = arith.constant 0 : index
    %342 = vector.load %arg6[%c0_462, %c1_463, %c113_464, %c0_465] : memref<1x4x196x768xf32, #tpu.memory_space<vmem>>, vector<1x1x6x768xf32>
    %343 = vector.shape_cast %342 : vector<1x1x6x768xf32> to vector<6x768xf32>
    %344 = vector.shape_cast %341 : vector<6x768xf32> to vector<1x1x6x768xf32>
    tpu.vector_store %arg6[%c0_462, %c1_463, %c113_464, %c0_465], %344 {strides = array<i32>} : memref<1x4x196x768xf32, #tpu.memory_space<vmem>>, vector<1x1x6x768xf32>,
    %c0_466 = arith.constant 0 : index
    %c0_467 = arith.constant 0 : index
    %c18_468 = arith.constant 18 : index
    %c0_469 = arith.constant 0 : index
    %345 = vector.load %arg5[%c0_466, %c0_467, %c18_468, %c0_469] : memref<1x1x196x768xf32, #tpu.memory_space<vmem>>, vector<1x1x9x768xf32>
    %346 = vector.shape_cast %345 : vector<1x1x9x768xf32> to vector<9x768xf32>
    %c0_470 = arith.constant 0 : index
    %c1_471 = arith.constant 1 : index
    %c119_472 = arith.constant 119 : index
    %c0_473 = arith.constant 0 : index
    %347 = vector.load %arg6[%c0_470, %c1_471, %c119_472, %c0_473] : memref<1x4x196x768xf32, #tpu.memory_space<vmem>>, vector<1x1x9x768xf32>
    %348 = vector.shape_cast %347 : vector<1x1x9x768xf32> to vector<9x768xf32>
    %349 = vector.shape_cast %346 : vector<9x768xf32> to vector<1x1x9x768xf32>
    tpu.vector_store %arg6[%c0_470, %c1_471, %c119_472, %c0_473], %349 {strides = array<i32>} : memref<1x4x196x768xf32, #tpu.memory_space<vmem>>, vector<1x1x9x768xf32>,
    %c0_474 = arith.constant 0 : index
    %c0_475 = arith.constant 0 : index
    %c32 = arith.constant 32 : index
    %c0_476 = arith.constant 0 : index
    %350 = vector.load %arg5[%c0_474, %c0_475, %c32, %c0_476] : memref<1x1x196x768xf32, #tpu.memory_space<vmem>>, vector<1x1x9x768xf32>
    %351 = vector.shape_cast %350 : vector<1x1x9x768xf32> to vector<9x768xf32>
    %c0_477 = arith.constant 0 : index
    %c1_478 = arith.constant 1 : index
    %c128_479 = arith.constant 128 : index
    %c0_480 = arith.constant 0 : index
    %352 = vector.load %arg6[%c0_477, %c1_478, %c128_479, %c0_480] : memref<1x4x196x768xf32, #tpu.memory_space<vmem>>, vector<1x1x9x768xf32>
    %353 = vector.shape_cast %352 : vector<1x1x9x768xf32> to vector<9x768xf32>
    %354 = vector.shape_cast %351 : vector<9x768xf32> to vector<1x1x9x768xf32>
    tpu.vector_store %arg6[%c0_477, %c1_478, %c128_479, %c0_480], %354 {strides = array<i32>} : memref<1x4x196x768xf32, #tpu.memory_space<vmem>>, vector<1x1x9x768xf32>,
    %c0_481 = arith.constant 0 : index
    %c0_482 = arith.constant 0 : index
    %c46 = arith.constant 46 : index
    %c0_483 = arith.constant 0 : index
    %355 = vector.load %arg5[%c0_481, %c0_482, %c46, %c0_483] : memref<1x1x196x768xf32, #tpu.memory_space<vmem>>, vector<1x1x9x768xf32>
    %356 = vector.shape_cast %355 : vector<1x1x9x768xf32> to vector<9x768xf32>
    %c0_484 = arith.constant 0 : index
    %c1_485 = arith.constant 1 : index
    %c137_486 = arith.constant 137 : index
    %c0_487 = arith.constant 0 : index
    %357 = vector.load %arg6[%c0_484, %c1_485, %c137_486, %c0_487] : memref<1x4x196x768xf32, #tpu.memory_space<vmem>>, vector<1x1x9x768xf32>
    %358 = vector.shape_cast %357 : vector<1x1x9x768xf32> to vector<9x768xf32>
    %359 = vector.shape_cast %356 : vector<9x768xf32> to vector<1x1x9x768xf32>
    tpu.vector_store %arg6[%c0_484, %c1_485, %c137_486, %c0_487], %359 {strides = array<i32>} : memref<1x4x196x768xf32, #tpu.memory_space<vmem>>, vector<1x1x9x768xf32>,
    %c0_488 = arith.constant 0 : index
    %c0_489 = arith.constant 0 : index
    %c60_490 = arith.constant 60 : index
    %c0_491 = arith.constant 0 : index
    %360 = vector.load %arg5[%c0_488, %c0_489, %c60_490, %c0_491] : memref<1x1x196x768xf32, #tpu.memory_space<vmem>>, vector<1x1x9x768xf32>
    %361 = vector.shape_cast %360 : vector<1x1x9x768xf32> to vector<9x768xf32>
    %c0_492 = arith.constant 0 : index
    %c1_493 = arith.constant 1 : index
    %c146_494 = arith.constant 146 : index
    %c0_495 = arith.constant 0 : index
    %362 = vector.load %arg6[%c0_492, %c1_493, %c146_494, %c0_495] : memref<1x4x196x768xf32, #tpu.memory_space<vmem>>, vector<1x1x9x768xf32>
    %363 = vector.shape_cast %362 : vector<1x1x9x768xf32> to vector<9x768xf32>
    %364 = vector.shape_cast %361 : vector<9x768xf32> to vector<1x1x9x768xf32>
    tpu.vector_store %arg6[%c0_492, %c1_493, %c146_494, %c0_495], %364 {strides = array<i32>} : memref<1x4x196x768xf32, #tpu.memory_space<vmem>>, vector<1x1x9x768xf32>,
    %c0_496 = arith.constant 0 : index
    %c0_497 = arith.constant 0 : index
    %c73_498 = arith.constant 73 : index
    %c0_499 = arith.constant 0 : index
    %365 = vector.load %arg5[%c0_496, %c0_497, %c73_498, %c0_499] : memref<1x1x196x768xf32, #tpu.memory_space<vmem>>, vector<1x1x11x768xf32>
    %366 = vector.shape_cast %365 : vector<1x1x11x768xf32> to vector<11x768xf32>
    %c0_500 = arith.constant 0 : index
    %c1_501 = arith.constant 1 : index
    %c155_502 = arith.constant 155 : index
    %c0_503 = arith.constant 0 : index
    %367 = vector.load %arg6[%c0_500, %c1_501, %c155_502, %c0_503] : memref<1x4x196x768xf32, #tpu.memory_space<vmem>>, vector<1x1x11x768xf32>
    %368 = vector.shape_cast %367 : vector<1x1x11x768xf32> to vector<11x768xf32>
    %369 = vector.shape_cast %366 : vector<11x768xf32> to vector<1x1x11x768xf32>
    tpu.vector_store %arg6[%c0_500, %c1_501, %c155_502, %c0_503], %369 {strides = array<i32>} : memref<1x4x196x768xf32, #tpu.memory_space<vmem>>, vector<1x1x11x768xf32>,
    %c0_504 = arith.constant 0 : index
    %c0_505 = arith.constant 0 : index
    %c88 = arith.constant 88 : index
    %c0_506 = arith.constant 0 : index
    %370 = vector.load %arg5[%c0_504, %c0_505, %c88, %c0_506] : memref<1x1x196x768xf32, #tpu.memory_space<vmem>>, vector<1x1x9x768xf32>
    %371 = vector.shape_cast %370 : vector<1x1x9x768xf32> to vector<9x768xf32>
    %c0_507 = arith.constant 0 : index
    %c1_508 = arith.constant 1 : index
    %c166_509 = arith.constant 166 : index
    %c0_510 = arith.constant 0 : index
    %372 = vector.load %arg6[%c0_507, %c1_508, %c166_509, %c0_510] : memref<1x4x196x768xf32, #tpu.memory_space<vmem>>, vector<1x1x9x768xf32>
    %373 = vector.shape_cast %372 : vector<1x1x9x768xf32> to vector<9x768xf32>
    %374 = vector.shape_cast %371 : vector<9x768xf32> to vector<1x1x9x768xf32>
    tpu.vector_store %arg6[%c0_507, %c1_508, %c166_509, %c0_510], %374 {strides = array<i32>} : memref<1x4x196x768xf32, #tpu.memory_space<vmem>>, vector<1x1x9x768xf32>,
    %c0_511 = arith.constant 0 : index
    %c0_512 = arith.constant 0 : index
    %c102 = arith.constant 102 : index
    %c0_513 = arith.constant 0 : index
    %375 = vector.load %arg5[%c0_511, %c0_512, %c102, %c0_513] : memref<1x1x196x768xf32, #tpu.memory_space<vmem>>, vector<1x1x9x768xf32>
    %376 = vector.shape_cast %375 : vector<1x1x9x768xf32> to vector<9x768xf32>
    %c0_514 = arith.constant 0 : index
    %c1_515 = arith.constant 1 : index
    %c175_516 = arith.constant 175 : index
    %c0_517 = arith.constant 0 : index
    %377 = vector.load %arg6[%c0_514, %c1_515, %c175_516, %c0_517] : memref<1x4x196x768xf32, #tpu.memory_space<vmem>>, vector<1x1x9x768xf32>
    %378 = vector.shape_cast %377 : vector<1x1x9x768xf32> to vector<9x768xf32>
    %379 = vector.shape_cast %376 : vector<9x768xf32> to vector<1x1x9x768xf32>
    tpu.vector_store %arg6[%c0_514, %c1_515, %c175_516, %c0_517], %379 {strides = array<i32>} : memref<1x4x196x768xf32, #tpu.memory_space<vmem>>, vector<1x1x9x768xf32>,
    %c0_518 = arith.constant 0 : index
    %c0_519 = arith.constant 0 : index
    %c116 = arith.constant 116 : index
    %c0_520 = arith.constant 0 : index
    %380 = vector.load %arg5[%c0_518, %c0_519, %c116, %c0_520] : memref<1x1x196x768xf32, #tpu.memory_space<vmem>>, vector<1x1x9x768xf32>
    %381 = vector.shape_cast %380 : vector<1x1x9x768xf32> to vector<9x768xf32>
    %c0_521 = arith.constant 0 : index
    %c1_522 = arith.constant 1 : index
    %c184_523 = arith.constant 184 : index
    %c0_524 = arith.constant 0 : index
    %382 = vector.load %arg6[%c0_521, %c1_522, %c184_523, %c0_524] : memref<1x4x196x768xf32, #tpu.memory_space<vmem>>, vector<1x1x9x768xf32>
    %383 = vector.shape_cast %382 : vector<1x1x9x768xf32> to vector<9x768xf32>
    %384 = vector.shape_cast %381 : vector<9x768xf32> to vector<1x1x9x768xf32>
    tpu.vector_store %arg6[%c0_521, %c1_522, %c184_523, %c0_524], %384 {strides = array<i32>} : memref<1x4x196x768xf32, #tpu.memory_space<vmem>>, vector<1x1x9x768xf32>,
    %c0_525 = arith.constant 0 : index
    %c0_526 = arith.constant 0 : index
    %c143 = arith.constant 143 : index
    %c0_527 = arith.constant 0 : index
    %385 = vector.load %arg5[%c0_525, %c0_526, %c143, %c0_527] : memref<1x1x196x768xf32, #tpu.memory_space<vmem>>, vector<1x1x1x768xf32>
    %386 = vector.shape_cast %385 : vector<1x1x1x768xf32> to vector<1x768xf32>
    %c0_528 = arith.constant 0 : index
    %c1_529 = arith.constant 1 : index
    %c193_530 = arith.constant 193 : index
    %c0_531 = arith.constant 0 : index
    %387 = vector.load %arg6[%c0_528, %c1_529, %c193_530, %c0_531] : memref<1x4x196x768xf32, #tpu.memory_space<vmem>>, vector<1x1x1x768xf32>
    %388 = vector.shape_cast %387 : vector<1x1x1x768xf32> to vector<1x768xf32>
    %389 = vector.shape_cast %386 : vector<1x768xf32> to vector<1x1x1x768xf32>
    tpu.vector_store %arg6[%c0_528, %c1_529, %c193_530, %c0_531], %389 {strides = array<i32>} : memref<1x4x196x768xf32, #tpu.memory_space<vmem>>, vector<1x1x1x768xf32>,
    %c0_532 = arith.constant 0 : index
    %c0_533 = arith.constant 0 : index
    %c148 = arith.constant 148 : index
    %c0_534 = arith.constant 0 : index
    %390 = vector.load %arg5[%c0_532, %c0_533, %c148, %c0_534] : memref<1x1x196x768xf32, #tpu.memory_space<vmem>>, vector<1x1x1x768xf32>
    %391 = vector.shape_cast %390 : vector<1x1x1x768xf32> to vector<1x768xf32>
    %c0_535 = arith.constant 0 : index
    %c1_536 = arith.constant 1 : index
    %c194_537 = arith.constant 194 : index
    %c0_538 = arith.constant 0 : index
    %392 = vector.load %arg6[%c0_535, %c1_536, %c194_537, %c0_538] : memref<1x4x196x768xf32, #tpu.memory_space<vmem>>, vector<1x1x1x768xf32>
    %393 = vector.shape_cast %392 : vector<1x1x1x768xf32> to vector<1x768xf32>
    %394 = vector.shape_cast %391 : vector<1x768xf32> to vector<1x1x1x768xf32>
    tpu.vector_store %arg6[%c0_535, %c1_536, %c194_537, %c0_538], %394 {strides = array<i32>} : memref<1x4x196x768xf32, #tpu.memory_space<vmem>>, vector<1x1x1x768xf32>,
    %c0_539 = arith.constant 0 : index
    %c0_540 = arith.constant 0 : index
    %c153 = arith.constant 153 : index
    %c0_541 = arith.constant 0 : index
    %395 = vector.load %arg5[%c0_539, %c0_540, %c153, %c0_541] : memref<1x1x196x768xf32, #tpu.memory_space<vmem>>, vector<1x1x1x768xf32>
    %396 = vector.shape_cast %395 : vector<1x1x1x768xf32> to vector<1x768xf32>
    %c0_542 = arith.constant 0 : index
    %c1_543 = arith.constant 1 : index
    %c195_544 = arith.constant 195 : index
    %c0_545 = arith.constant 0 : index
    %397 = vector.load %arg6[%c0_542, %c1_543, %c195_544, %c0_545] : memref<1x4x196x768xf32, #tpu.memory_space<vmem>>, vector<1x1x1x768xf32>
    %398 = vector.shape_cast %397 : vector<1x1x1x768xf32> to vector<1x768xf32>
    %399 = vector.shape_cast %396 : vector<1x768xf32> to vector<1x1x1x768xf32>
    tpu.vector_store %arg6[%c0_542, %c1_543, %c195_544, %c0_545], %399 {strides = array<i32>} : memref<1x4x196x768xf32, #tpu.memory_space<vmem>>, vector<1x1x1x768xf32>,
    %c0_546 = arith.constant 0 : index
    %c0_547 = arith.constant 0 : index
    %c87_548 = arith.constant 87 : index
    %c0_549 = arith.constant 0 : index
    %400 = vector.load %arg2[%c0_546, %c0_547, %c87_548, %c0_549] : memref<1x1x152x768xf32, #tpu.memory_space<vmem>>, vector<1x1x3x768xf32>
    %401 = vector.shape_cast %400 : vector<1x1x3x768xf32> to vector<3x768xf32>
    %c0_550 = arith.constant 0 : index
    %c2 = arith.constant 2 : index
    %c0_551 = arith.constant 0 : index
    %c0_552 = arith.constant 0 : index
    %402 = vector.load %arg6[%c0_550, %c2, %c0_551, %c0_552] : memref<1x4x196x768xf32, #tpu.memory_space<vmem>>, vector<1x1x3x768xf32>
    %403 = vector.shape_cast %402 : vector<1x1x3x768xf32> to vector<3x768xf32>
    %404 = vector.shape_cast %401 : vector<3x768xf32> to vector<1x1x3x768xf32>
    tpu.vector_store %arg6[%c0_550, %c2, %c0_551, %c0_552], %404 {strides = array<i32>} : memref<1x4x196x768xf32, #tpu.memory_space<vmem>>, vector<1x1x3x768xf32>,
    %c0_553 = arith.constant 0 : index
    %c0_554 = arith.constant 0 : index
    %c89_555 = arith.constant 89 : index
    %c0_556 = arith.constant 0 : index
    %405 = vector.load %arg2[%c0_553, %c0_554, %c89_555, %c0_556] : memref<1x1x152x768xf32, #tpu.memory_space<vmem>>, vector<1x1x3x768xf32>
    %406 = vector.shape_cast %405 : vector<1x1x3x768xf32> to vector<3x768xf32>
    %c0_557 = arith.constant 0 : index
    %c2_558 = arith.constant 2 : index
    %c3_559 = arith.constant 3 : index
    %c0_560 = arith.constant 0 : index
    %407 = vector.load %arg6[%c0_557, %c2_558, %c3_559, %c0_560] : memref<1x4x196x768xf32, #tpu.memory_space<vmem>>, vector<1x1x3x768xf32>
    %408 = vector.shape_cast %407 : vector<1x1x3x768xf32> to vector<3x768xf32>
    %409 = vector.shape_cast %406 : vector<3x768xf32> to vector<1x1x3x768xf32>
    tpu.vector_store %arg6[%c0_557, %c2_558, %c3_559, %c0_560], %409 {strides = array<i32>} : memref<1x4x196x768xf32, #tpu.memory_space<vmem>>, vector<1x1x3x768xf32>,
    %c0_561 = arith.constant 0 : index
    %c0_562 = arith.constant 0 : index
    %c102_563 = arith.constant 102 : index
    %c0_564 = arith.constant 0 : index
    %410 = vector.load %arg2[%c0_561, %c0_562, %c102_563, %c0_564] : memref<1x1x152x768xf32, #tpu.memory_space<vmem>>, vector<1x1x3x768xf32>
    %411 = vector.shape_cast %410 : vector<1x1x3x768xf32> to vector<3x768xf32>
    %c0_565 = arith.constant 0 : index
    %c2_566 = arith.constant 2 : index
    %c6_567 = arith.constant 6 : index
    %c0_568 = arith.constant 0 : index
    %412 = vector.load %arg6[%c0_565, %c2_566, %c6_567, %c0_568] : memref<1x4x196x768xf32, #tpu.memory_space<vmem>>, vector<1x1x3x768xf32>
    %413 = vector.shape_cast %412 : vector<1x1x3x768xf32> to vector<3x768xf32>
    %414 = vector.shape_cast %411 : vector<3x768xf32> to vector<1x1x3x768xf32>
    tpu.vector_store %arg6[%c0_565, %c2_566, %c6_567, %c0_568], %414 {strides = array<i32>} : memref<1x4x196x768xf32, #tpu.memory_space<vmem>>, vector<1x1x3x768xf32>,
    %c0_569 = arith.constant 0 : index
    %c0_570 = arith.constant 0 : index
    %c115 = arith.constant 115 : index
    %c0_571 = arith.constant 0 : index
    %415 = vector.load %arg2[%c0_569, %c0_570, %c115, %c0_571] : memref<1x1x152x768xf32, #tpu.memory_space<vmem>>, vector<1x1x5x768xf32>
    %416 = vector.shape_cast %415 : vector<1x1x5x768xf32> to vector<5x768xf32>
    %c0_572 = arith.constant 0 : index
    %c2_573 = arith.constant 2 : index
    %c9_574 = arith.constant 9 : index
    %c0_575 = arith.constant 0 : index
    %417 = vector.load %arg6[%c0_572, %c2_573, %c9_574, %c0_575] : memref<1x4x196x768xf32, #tpu.memory_space<vmem>>, vector<1x1x5x768xf32>
    %418 = vector.shape_cast %417 : vector<1x1x5x768xf32> to vector<5x768xf32>
    %419 = vector.shape_cast %416 : vector<5x768xf32> to vector<1x1x5x768xf32>
    tpu.vector_store %arg6[%c0_572, %c2_573, %c9_574, %c0_575], %419 {strides = array<i32>} : memref<1x4x196x768xf32, #tpu.memory_space<vmem>>, vector<1x1x5x768xf32>,
    %c0_576 = arith.constant 0 : index
    %c0_577 = arith.constant 0 : index
    %c143_578 = arith.constant 143 : index
    %c0_579 = arith.constant 0 : index
    %420 = vector.load %arg2[%c0_576, %c0_577, %c143_578, %c0_579] : memref<1x1x152x768xf32, #tpu.memory_space<vmem>>, vector<1x1x1x768xf32>
    %421 = vector.shape_cast %420 : vector<1x1x1x768xf32> to vector<1x768xf32>
    %c0_580 = arith.constant 0 : index
    %c2_581 = arith.constant 2 : index
    %c14_582 = arith.constant 14 : index
    %c0_583 = arith.constant 0 : index
    %422 = vector.load %arg6[%c0_580, %c2_581, %c14_582, %c0_583] : memref<1x4x196x768xf32, #tpu.memory_space<vmem>>, vector<1x1x1x768xf32>
    %423 = vector.shape_cast %422 : vector<1x1x1x768xf32> to vector<1x768xf32>
    %424 = vector.shape_cast %421 : vector<1x768xf32> to vector<1x1x1x768xf32>
    tpu.vector_store %arg6[%c0_580, %c2_581, %c14_582, %c0_583], %424 {strides = array<i32>} : memref<1x4x196x768xf32, #tpu.memory_space<vmem>>, vector<1x1x1x768xf32>,
    %c0_584 = arith.constant 0 : index
    %c0_585 = arith.constant 0 : index
    %c145_586 = arith.constant 145 : index
    %c0_587 = arith.constant 0 : index
    %425 = vector.load %arg2[%c0_584, %c0_585, %c145_586, %c0_587] : memref<1x1x152x768xf32, #tpu.memory_space<vmem>>, vector<1x1x1x768xf32>
    %426 = vector.shape_cast %425 : vector<1x1x1x768xf32> to vector<1x768xf32>
    %c0_588 = arith.constant 0 : index
    %c2_589 = arith.constant 2 : index
    %c15_590 = arith.constant 15 : index
    %c0_591 = arith.constant 0 : index
    %427 = vector.load %arg6[%c0_588, %c2_589, %c15_590, %c0_591] : memref<1x4x196x768xf32, #tpu.memory_space<vmem>>, vector<1x1x1x768xf32>
    %428 = vector.shape_cast %427 : vector<1x1x1x768xf32> to vector<1x768xf32>
    %429 = vector.shape_cast %426 : vector<1x768xf32> to vector<1x1x1x768xf32>
    tpu.vector_store %arg6[%c0_588, %c2_589, %c15_590, %c0_591], %429 {strides = array<i32>} : memref<1x4x196x768xf32, #tpu.memory_space<vmem>>, vector<1x1x1x768xf32>,
    %c0_592 = arith.constant 0 : index
    %c0_593 = arith.constant 0 : index
    %c147 = arith.constant 147 : index
    %c0_594 = arith.constant 0 : index
    %430 = vector.load %arg2[%c0_592, %c0_593, %c147, %c0_594] : memref<1x1x152x768xf32, #tpu.memory_space<vmem>>, vector<1x1x1x768xf32>
    %431 = vector.shape_cast %430 : vector<1x1x1x768xf32> to vector<1x768xf32>
    %c0_595 = arith.constant 0 : index
    %c2_596 = arith.constant 2 : index
    %c16_597 = arith.constant 16 : index
    %c0_598 = arith.constant 0 : index
    %432 = vector.load %arg6[%c0_595, %c2_596, %c16_597, %c0_598] : memref<1x4x196x768xf32, #tpu.memory_space<vmem>>, vector<1x1x1x768xf32>
    %433 = vector.shape_cast %432 : vector<1x1x1x768xf32> to vector<1x768xf32>
    %434 = vector.shape_cast %431 : vector<1x768xf32> to vector<1x1x1x768xf32>
    tpu.vector_store %arg6[%c0_595, %c2_596, %c16_597, %c0_598], %434 {strides = array<i32>} : memref<1x4x196x768xf32, #tpu.memory_space<vmem>>, vector<1x1x1x768xf32>,
    %c0_599 = arith.constant 0 : index
    %c0_600 = arith.constant 0 : index
    %c72_601 = arith.constant 72 : index
    %c0_602 = arith.constant 0 : index
    %435 = vector.load %arg3[%c0_599, %c0_600, %c72_601, %c0_602] : memref<1x1x168x768xf32, #tpu.memory_space<vmem>>, vector<1x1x4x768xf32>
    %436 = vector.shape_cast %435 : vector<1x1x4x768xf32> to vector<4x768xf32>
    %c0_603 = arith.constant 0 : index
    %c2_604 = arith.constant 2 : index
    %c17_605 = arith.constant 17 : index
    %c0_606 = arith.constant 0 : index
    %437 = vector.load %arg6[%c0_603, %c2_604, %c17_605, %c0_606] : memref<1x4x196x768xf32, #tpu.memory_space<vmem>>, vector<1x1x4x768xf32>
    %438 = vector.shape_cast %437 : vector<1x1x4x768xf32> to vector<4x768xf32>
    %439 = vector.shape_cast %436 : vector<4x768xf32> to vector<1x1x4x768xf32>
    tpu.vector_store %arg6[%c0_603, %c2_604, %c17_605, %c0_606], %439 {strides = array<i32>} : memref<1x4x196x768xf32, #tpu.memory_space<vmem>>, vector<1x1x4x768xf32>,
    %c0_607 = arith.constant 0 : index
    %c0_608 = arith.constant 0 : index
    %c75_609 = arith.constant 75 : index
    %c0_610 = arith.constant 0 : index
    %440 = vector.load %arg3[%c0_607, %c0_608, %c75_609, %c0_610] : memref<1x1x168x768xf32, #tpu.memory_space<vmem>>, vector<1x1x4x768xf32>
    %441 = vector.shape_cast %440 : vector<1x1x4x768xf32> to vector<4x768xf32>
    %c0_611 = arith.constant 0 : index
    %c2_612 = arith.constant 2 : index
    %c21_613 = arith.constant 21 : index
    %c0_614 = arith.constant 0 : index
    %442 = vector.load %arg6[%c0_611, %c2_612, %c21_613, %c0_614] : memref<1x4x196x768xf32, #tpu.memory_space<vmem>>, vector<1x1x4x768xf32>
    %443 = vector.shape_cast %442 : vector<1x1x4x768xf32> to vector<4x768xf32>
    %444 = vector.shape_cast %441 : vector<4x768xf32> to vector<1x1x4x768xf32>
    tpu.vector_store %arg6[%c0_611, %c2_612, %c21_613, %c0_614], %444 {strides = array<i32>} : memref<1x4x196x768xf32, #tpu.memory_space<vmem>>, vector<1x1x4x768xf32>,
    %c0_615 = arith.constant 0 : index
    %c0_616 = arith.constant 0 : index
    %c87_617 = arith.constant 87 : index
    %c0_618 = arith.constant 0 : index
    %445 = vector.load %arg3[%c0_615, %c0_616, %c87_617, %c0_618] : memref<1x1x168x768xf32, #tpu.memory_space<vmem>>, vector<1x1x5x768xf32>
    %446 = vector.shape_cast %445 : vector<1x1x5x768xf32> to vector<5x768xf32>
    %c0_619 = arith.constant 0 : index
    %c2_620 = arith.constant 2 : index
    %c25_621 = arith.constant 25 : index
    %c0_622 = arith.constant 0 : index
    %447 = vector.load %arg6[%c0_619, %c2_620, %c25_621, %c0_622] : memref<1x4x196x768xf32, #tpu.memory_space<vmem>>, vector<1x1x5x768xf32>
    %448 = vector.shape_cast %447 : vector<1x1x5x768xf32> to vector<5x768xf32>
    %449 = vector.shape_cast %446 : vector<5x768xf32> to vector<1x1x5x768xf32>
    tpu.vector_store %arg6[%c0_619, %c2_620, %c25_621, %c0_622], %449 {strides = array<i32>} : memref<1x4x196x768xf32, #tpu.memory_space<vmem>>, vector<1x1x5x768xf32>,
    %c0_623 = arith.constant 0 : index
    %c0_624 = arith.constant 0 : index
    %c101_625 = arith.constant 101 : index
    %c0_626 = arith.constant 0 : index
    %450 = vector.load %arg3[%c0_623, %c0_624, %c101_625, %c0_626] : memref<1x1x168x768xf32, #tpu.memory_space<vmem>>, vector<1x1x5x768xf32>
    %451 = vector.shape_cast %450 : vector<1x1x5x768xf32> to vector<5x768xf32>
    %c0_627 = arith.constant 0 : index
    %c2_628 = arith.constant 2 : index
    %c30_629 = arith.constant 30 : index
    %c0_630 = arith.constant 0 : index
    %452 = vector.load %arg6[%c0_627, %c2_628, %c30_629, %c0_630] : memref<1x4x196x768xf32, #tpu.memory_space<vmem>>, vector<1x1x5x768xf32>
    %453 = vector.shape_cast %452 : vector<1x1x5x768xf32> to vector<5x768xf32>
    %454 = vector.shape_cast %451 : vector<5x768xf32> to vector<1x1x5x768xf32>
    tpu.vector_store %arg6[%c0_627, %c2_628, %c30_629, %c0_630], %454 {strides = array<i32>} : memref<1x4x196x768xf32, #tpu.memory_space<vmem>>, vector<1x1x5x768xf32>,
    %c0_631 = arith.constant 0 : index
    %c0_632 = arith.constant 0 : index
    %c114_633 = arith.constant 114 : index
    %c0_634 = arith.constant 0 : index
    %455 = vector.load %arg3[%c0_631, %c0_632, %c114_633, %c0_634] : memref<1x1x168x768xf32, #tpu.memory_space<vmem>>, vector<1x1x7x768xf32>
    %456 = vector.shape_cast %455 : vector<1x1x7x768xf32> to vector<7x768xf32>
    %c0_635 = arith.constant 0 : index
    %c2_636 = arith.constant 2 : index
    %c35_637 = arith.constant 35 : index
    %c0_638 = arith.constant 0 : index
    %457 = vector.load %arg6[%c0_635, %c2_636, %c35_637, %c0_638] : memref<1x4x196x768xf32, #tpu.memory_space<vmem>>, vector<1x1x7x768xf32>
    %458 = vector.shape_cast %457 : vector<1x1x7x768xf32> to vector<7x768xf32>
    %459 = vector.shape_cast %456 : vector<7x768xf32> to vector<1x1x7x768xf32>
    tpu.vector_store %arg6[%c0_635, %c2_636, %c35_637, %c0_638], %459 {strides = array<i32>} : memref<1x4x196x768xf32, #tpu.memory_space<vmem>>, vector<1x1x7x768xf32>,
    %c0_639 = arith.constant 0 : index
    %c0_640 = arith.constant 0 : index
    %c129 = arith.constant 129 : index
    %c0_641 = arith.constant 0 : index
    %460 = vector.load %arg3[%c0_639, %c0_640, %c129, %c0_641] : memref<1x1x168x768xf32, #tpu.memory_space<vmem>>, vector<1x1x5x768xf32>
    %461 = vector.shape_cast %460 : vector<1x1x5x768xf32> to vector<5x768xf32>
    %c0_642 = arith.constant 0 : index
    %c2_643 = arith.constant 2 : index
    %c42_644 = arith.constant 42 : index
    %c0_645 = arith.constant 0 : index
    %462 = vector.load %arg6[%c0_642, %c2_643, %c42_644, %c0_645] : memref<1x4x196x768xf32, #tpu.memory_space<vmem>>, vector<1x1x5x768xf32>
    %463 = vector.shape_cast %462 : vector<1x1x5x768xf32> to vector<5x768xf32>
    %464 = vector.shape_cast %461 : vector<5x768xf32> to vector<1x1x5x768xf32>
    tpu.vector_store %arg6[%c0_642, %c2_643, %c42_644, %c0_645], %464 {strides = array<i32>} : memref<1x4x196x768xf32, #tpu.memory_space<vmem>>, vector<1x1x5x768xf32>,
    %c0_646 = arith.constant 0 : index
    %c0_647 = arith.constant 0 : index
    %c156 = arith.constant 156 : index
    %c0_648 = arith.constant 0 : index
    %465 = vector.load %arg3[%c0_646, %c0_647, %c156, %c0_648] : memref<1x1x168x768xf32, #tpu.memory_space<vmem>>, vector<1x1x1x768xf32>
    %466 = vector.shape_cast %465 : vector<1x1x1x768xf32> to vector<1x768xf32>
    %c0_649 = arith.constant 0 : index
    %c2_650 = arith.constant 2 : index
    %c47_651 = arith.constant 47 : index
    %c0_652 = arith.constant 0 : index
    %467 = vector.load %arg6[%c0_649, %c2_650, %c47_651, %c0_652] : memref<1x4x196x768xf32, #tpu.memory_space<vmem>>, vector<1x1x1x768xf32>
    %468 = vector.shape_cast %467 : vector<1x1x1x768xf32> to vector<1x768xf32>
    %469 = vector.shape_cast %466 : vector<1x768xf32> to vector<1x1x1x768xf32>
    tpu.vector_store %arg6[%c0_649, %c2_650, %c47_651, %c0_652], %469 {strides = array<i32>} : memref<1x4x196x768xf32, #tpu.memory_space<vmem>>, vector<1x1x1x768xf32>,
    %c0_653 = arith.constant 0 : index
    %c0_654 = arith.constant 0 : index
    %c159 = arith.constant 159 : index
    %c0_655 = arith.constant 0 : index
    %470 = vector.load %arg3[%c0_653, %c0_654, %c159, %c0_655] : memref<1x1x168x768xf32, #tpu.memory_space<vmem>>, vector<1x1x1x768xf32>
    %471 = vector.shape_cast %470 : vector<1x1x1x768xf32> to vector<1x768xf32>
    %c0_656 = arith.constant 0 : index
    %c2_657 = arith.constant 2 : index
    %c48_658 = arith.constant 48 : index
    %c0_659 = arith.constant 0 : index
    %472 = vector.load %arg6[%c0_656, %c2_657, %c48_658, %c0_659] : memref<1x4x196x768xf32, #tpu.memory_space<vmem>>, vector<1x1x1x768xf32>
    %473 = vector.shape_cast %472 : vector<1x1x1x768xf32> to vector<1x768xf32>
    %474 = vector.shape_cast %471 : vector<1x768xf32> to vector<1x1x1x768xf32>
    tpu.vector_store %arg6[%c0_656, %c2_657, %c48_658, %c0_659], %474 {strides = array<i32>} : memref<1x4x196x768xf32, #tpu.memory_space<vmem>>, vector<1x1x1x768xf32>,
    %c0_660 = arith.constant 0 : index
    %c0_661 = arith.constant 0 : index
    %c162 = arith.constant 162 : index
    %c0_662 = arith.constant 0 : index
    %475 = vector.load %arg3[%c0_660, %c0_661, %c162, %c0_662] : memref<1x1x168x768xf32, #tpu.memory_space<vmem>>, vector<1x1x1x768xf32>
    %476 = vector.shape_cast %475 : vector<1x1x1x768xf32> to vector<1x768xf32>
    %c0_663 = arith.constant 0 : index
    %c2_664 = arith.constant 2 : index
    %c49_665 = arith.constant 49 : index
    %c0_666 = arith.constant 0 : index
    %477 = vector.load %arg6[%c0_663, %c2_664, %c49_665, %c0_666] : memref<1x4x196x768xf32, #tpu.memory_space<vmem>>, vector<1x1x1x768xf32>
    %478 = vector.shape_cast %477 : vector<1x1x1x768xf32> to vector<1x768xf32>
    %479 = vector.shape_cast %476 : vector<1x768xf32> to vector<1x1x1x768xf32>
    tpu.vector_store %arg6[%c0_663, %c2_664, %c49_665, %c0_666], %479 {strides = array<i32>} : memref<1x4x196x768xf32, #tpu.memory_space<vmem>>, vector<1x1x1x768xf32>,
    %c0_667 = arith.constant 0 : index
    %c0_668 = arith.constant 0 : index
    %c57_669 = arith.constant 57 : index
    %c0_670 = arith.constant 0 : index
    %480 = vector.load %arg4[%c0_667, %c0_668, %c57_669, %c0_670] : memref<1x1x184x768xf32, #tpu.memory_space<vmem>>, vector<1x1x5x768xf32>
    %481 = vector.shape_cast %480 : vector<1x1x5x768xf32> to vector<5x768xf32>
    %c0_671 = arith.constant 0 : index
    %c2_672 = arith.constant 2 : index
    %c50_673 = arith.constant 50 : index
    %c0_674 = arith.constant 0 : index
    %482 = vector.load %arg6[%c0_671, %c2_672, %c50_673, %c0_674] : memref<1x4x196x768xf32, #tpu.memory_space<vmem>>, vector<1x1x5x768xf32>
    %483 = vector.shape_cast %482 : vector<1x1x5x768xf32> to vector<5x768xf32>
    %484 = vector.shape_cast %481 : vector<5x768xf32> to vector<1x1x5x768xf32>
    tpu.vector_store %arg6[%c0_671, %c2_672, %c50_673, %c0_674], %484 {strides = array<i32>} : memref<1x4x196x768xf32, #tpu.memory_space<vmem>>, vector<1x1x5x768xf32>,
    %c0_675 = arith.constant 0 : index
    %c0_676 = arith.constant 0 : index
    %c61_677 = arith.constant 61 : index
    %c0_678 = arith.constant 0 : index
    %485 = vector.load %arg4[%c0_675, %c0_676, %c61_677, %c0_678] : memref<1x1x184x768xf32, #tpu.memory_space<vmem>>, vector<1x1x5x768xf32>
    %486 = vector.shape_cast %485 : vector<1x1x5x768xf32> to vector<5x768xf32>
    %c0_679 = arith.constant 0 : index
    %c2_680 = arith.constant 2 : index
    %c55_681 = arith.constant 55 : index
    %c0_682 = arith.constant 0 : index
    %487 = vector.load %arg6[%c0_679, %c2_680, %c55_681, %c0_682] : memref<1x4x196x768xf32, #tpu.memory_space<vmem>>, vector<1x1x5x768xf32>
    %488 = vector.shape_cast %487 : vector<1x1x5x768xf32> to vector<5x768xf32>
    %489 = vector.shape_cast %486 : vector<5x768xf32> to vector<1x1x5x768xf32>
    tpu.vector_store %arg6[%c0_679, %c2_680, %c55_681, %c0_682], %489 {strides = array<i32>} : memref<1x4x196x768xf32, #tpu.memory_space<vmem>>, vector<1x1x5x768xf32>,
    %c0_683 = arith.constant 0 : index
    %c0_684 = arith.constant 0 : index
    %c72_685 = arith.constant 72 : index
    %c0_686 = arith.constant 0 : index
    %490 = vector.load %arg4[%c0_683, %c0_684, %c72_685, %c0_686] : memref<1x1x184x768xf32, #tpu.memory_space<vmem>>, vector<1x1x7x768xf32>
    %491 = vector.shape_cast %490 : vector<1x1x7x768xf32> to vector<7x768xf32>
    %c0_687 = arith.constant 0 : index
    %c2_688 = arith.constant 2 : index
    %c60_689 = arith.constant 60 : index
    %c0_690 = arith.constant 0 : index
    %492 = vector.load %arg6[%c0_687, %c2_688, %c60_689, %c0_690] : memref<1x4x196x768xf32, #tpu.memory_space<vmem>>, vector<1x1x7x768xf32>
    %493 = vector.shape_cast %492 : vector<1x1x7x768xf32> to vector<7x768xf32>
    %494 = vector.shape_cast %491 : vector<7x768xf32> to vector<1x1x7x768xf32>
    tpu.vector_store %arg6[%c0_687, %c2_688, %c60_689, %c0_690], %494 {strides = array<i32>} : memref<1x4x196x768xf32, #tpu.memory_space<vmem>>, vector<1x1x7x768xf32>,
    %c0_691 = arith.constant 0 : index
    %c0_692 = arith.constant 0 : index
    %c86_693 = arith.constant 86 : index
    %c0_694 = arith.constant 0 : index
    %495 = vector.load %arg4[%c0_691, %c0_692, %c86_693, %c0_694] : memref<1x1x184x768xf32, #tpu.memory_space<vmem>>, vector<1x1x7x768xf32>
    %496 = vector.shape_cast %495 : vector<1x1x7x768xf32> to vector<7x768xf32>
    %c0_695 = arith.constant 0 : index
    %c2_696 = arith.constant 2 : index
    %c67_697 = arith.constant 67 : index
    %c0_698 = arith.constant 0 : index
    %497 = vector.load %arg6[%c0_695, %c2_696, %c67_697, %c0_698] : memref<1x4x196x768xf32, #tpu.memory_space<vmem>>, vector<1x1x7x768xf32>
    %498 = vector.shape_cast %497 : vector<1x1x7x768xf32> to vector<7x768xf32>
    %499 = vector.shape_cast %496 : vector<7x768xf32> to vector<1x1x7x768xf32>
    tpu.vector_store %arg6[%c0_695, %c2_696, %c67_697, %c0_698], %499 {strides = array<i32>} : memref<1x4x196x768xf32, #tpu.memory_space<vmem>>, vector<1x1x7x768xf32>,
    %c0_699 = arith.constant 0 : index
    %c0_700 = arith.constant 0 : index
    %c100_701 = arith.constant 100 : index
    %c0_702 = arith.constant 0 : index
    %500 = vector.load %arg4[%c0_699, %c0_700, %c100_701, %c0_702] : memref<1x1x184x768xf32, #tpu.memory_space<vmem>>, vector<1x1x7x768xf32>
    %501 = vector.shape_cast %500 : vector<1x1x7x768xf32> to vector<7x768xf32>
    %c0_703 = arith.constant 0 : index
    %c2_704 = arith.constant 2 : index
    %c74_705 = arith.constant 74 : index
    %c0_706 = arith.constant 0 : index
    %502 = vector.load %arg6[%c0_703, %c2_704, %c74_705, %c0_706] : memref<1x4x196x768xf32, #tpu.memory_space<vmem>>, vector<1x1x7x768xf32>
    %503 = vector.shape_cast %502 : vector<1x1x7x768xf32> to vector<7x768xf32>
    %504 = vector.shape_cast %501 : vector<7x768xf32> to vector<1x1x7x768xf32>
    tpu.vector_store %arg6[%c0_703, %c2_704, %c74_705, %c0_706], %504 {strides = array<i32>} : memref<1x4x196x768xf32, #tpu.memory_space<vmem>>, vector<1x1x7x768xf32>,
    %c0_707 = arith.constant 0 : index
    %c0_708 = arith.constant 0 : index
    %c113_709 = arith.constant 113 : index
    %c0_710 = arith.constant 0 : index
    %505 = vector.load %arg4[%c0_707, %c0_708, %c113_709, %c0_710] : memref<1x1x184x768xf32, #tpu.memory_space<vmem>>, vector<1x1x9x768xf32>
    %506 = vector.shape_cast %505 : vector<1x1x9x768xf32> to vector<9x768xf32>
    %c0_711 = arith.constant 0 : index
    %c2_712 = arith.constant 2 : index
    %c81_713 = arith.constant 81 : index
    %c0_714 = arith.constant 0 : index
    %507 = vector.load %arg6[%c0_711, %c2_712, %c81_713, %c0_714] : memref<1x4x196x768xf32, #tpu.memory_space<vmem>>, vector<1x1x9x768xf32>
    %508 = vector.shape_cast %507 : vector<1x1x9x768xf32> to vector<9x768xf32>
    %509 = vector.shape_cast %506 : vector<9x768xf32> to vector<1x1x9x768xf32>
    tpu.vector_store %arg6[%c0_711, %c2_712, %c81_713, %c0_714], %509 {strides = array<i32>} : memref<1x4x196x768xf32, #tpu.memory_space<vmem>>, vector<1x1x9x768xf32>,
    %c0_715 = arith.constant 0 : index
    %c0_716 = arith.constant 0 : index
    %c128_717 = arith.constant 128 : index
    %c0_718 = arith.constant 0 : index
    %510 = vector.load %arg4[%c0_715, %c0_716, %c128_717, %c0_718] : memref<1x1x184x768xf32, #tpu.memory_space<vmem>>, vector<1x1x7x768xf32>
    %511 = vector.shape_cast %510 : vector<1x1x7x768xf32> to vector<7x768xf32>
    %c0_719 = arith.constant 0 : index
    %c2_720 = arith.constant 2 : index
    %c90_721 = arith.constant 90 : index
    %c0_722 = arith.constant 0 : index
    %512 = vector.load %arg6[%c0_719, %c2_720, %c90_721, %c0_722] : memref<1x4x196x768xf32, #tpu.memory_space<vmem>>, vector<1x1x7x768xf32>
    %513 = vector.shape_cast %512 : vector<1x1x7x768xf32> to vector<7x768xf32>
    %514 = vector.shape_cast %511 : vector<7x768xf32> to vector<1x1x7x768xf32>
    tpu.vector_store %arg6[%c0_719, %c2_720, %c90_721, %c0_722], %514 {strides = array<i32>} : memref<1x4x196x768xf32, #tpu.memory_space<vmem>>, vector<1x1x7x768xf32>,
    %c0_723 = arith.constant 0 : index
    %c0_724 = arith.constant 0 : index
    %c142 = arith.constant 142 : index
    %c0_725 = arith.constant 0 : index
    %515 = vector.load %arg4[%c0_723, %c0_724, %c142, %c0_725] : memref<1x1x184x768xf32, #tpu.memory_space<vmem>>, vector<1x1x7x768xf32>
    %516 = vector.shape_cast %515 : vector<1x1x7x768xf32> to vector<7x768xf32>
    %c0_726 = arith.constant 0 : index
    %c2_727 = arith.constant 2 : index
    %c97_728 = arith.constant 97 : index
    %c0_729 = arith.constant 0 : index
    %517 = vector.load %arg6[%c0_726, %c2_727, %c97_728, %c0_729] : memref<1x4x196x768xf32, #tpu.memory_space<vmem>>, vector<1x1x7x768xf32>
    %518 = vector.shape_cast %517 : vector<1x1x7x768xf32> to vector<7x768xf32>
    %519 = vector.shape_cast %516 : vector<7x768xf32> to vector<1x1x7x768xf32>
    tpu.vector_store %arg6[%c0_726, %c2_727, %c97_728, %c0_729], %519 {strides = array<i32>} : memref<1x4x196x768xf32, #tpu.memory_space<vmem>>, vector<1x1x7x768xf32>,
    %c0_730 = arith.constant 0 : index
    %c0_731 = arith.constant 0 : index
    %c169 = arith.constant 169 : index
    %c0_732 = arith.constant 0 : index
    %520 = vector.load %arg4[%c0_730, %c0_731, %c169, %c0_732] : memref<1x1x184x768xf32, #tpu.memory_space<vmem>>, vector<1x1x1x768xf32>
    %521 = vector.shape_cast %520 : vector<1x1x1x768xf32> to vector<1x768xf32>
    %c0_733 = arith.constant 0 : index
    %c2_734 = arith.constant 2 : index
    %c104_735 = arith.constant 104 : index
    %c0_736 = arith.constant 0 : index
    %522 = vector.load %arg6[%c0_733, %c2_734, %c104_735, %c0_736] : memref<1x4x196x768xf32, #tpu.memory_space<vmem>>, vector<1x1x1x768xf32>
    %523 = vector.shape_cast %522 : vector<1x1x1x768xf32> to vector<1x768xf32>
    %524 = vector.shape_cast %521 : vector<1x768xf32> to vector<1x1x1x768xf32>
    tpu.vector_store %arg6[%c0_733, %c2_734, %c104_735, %c0_736], %524 {strides = array<i32>} : memref<1x4x196x768xf32, #tpu.memory_space<vmem>>, vector<1x1x1x768xf32>,
    %c0_737 = arith.constant 0 : index
    %c0_738 = arith.constant 0 : index
    %c173 = arith.constant 173 : index
    %c0_739 = arith.constant 0 : index
    %525 = vector.load %arg4[%c0_737, %c0_738, %c173, %c0_739] : memref<1x1x184x768xf32, #tpu.memory_space<vmem>>, vector<1x1x1x768xf32>
    %526 = vector.shape_cast %525 : vector<1x1x1x768xf32> to vector<1x768xf32>
    %c0_740 = arith.constant 0 : index
    %c2_741 = arith.constant 2 : index
    %c105_742 = arith.constant 105 : index
    %c0_743 = arith.constant 0 : index
    %527 = vector.load %arg6[%c0_740, %c2_741, %c105_742, %c0_743] : memref<1x4x196x768xf32, #tpu.memory_space<vmem>>, vector<1x1x1x768xf32>
    %528 = vector.shape_cast %527 : vector<1x1x1x768xf32> to vector<1x768xf32>
    %529 = vector.shape_cast %526 : vector<1x768xf32> to vector<1x1x1x768xf32>
    tpu.vector_store %arg6[%c0_740, %c2_741, %c105_742, %c0_743], %529 {strides = array<i32>} : memref<1x4x196x768xf32, #tpu.memory_space<vmem>>, vector<1x1x1x768xf32>,
    %c0_744 = arith.constant 0 : index
    %c0_745 = arith.constant 0 : index
    %c177 = arith.constant 177 : index
    %c0_746 = arith.constant 0 : index
    %530 = vector.load %arg4[%c0_744, %c0_745, %c177, %c0_746] : memref<1x1x184x768xf32, #tpu.memory_space<vmem>>, vector<1x1x1x768xf32>
    %531 = vector.shape_cast %530 : vector<1x1x1x768xf32> to vector<1x768xf32>
    %c0_747 = arith.constant 0 : index
    %c2_748 = arith.constant 2 : index
    %c106_749 = arith.constant 106 : index
    %c0_750 = arith.constant 0 : index
    %532 = vector.load %arg6[%c0_747, %c2_748, %c106_749, %c0_750] : memref<1x4x196x768xf32, #tpu.memory_space<vmem>>, vector<1x1x1x768xf32>
    %533 = vector.shape_cast %532 : vector<1x1x1x768xf32> to vector<1x768xf32>
    %534 = vector.shape_cast %531 : vector<1x768xf32> to vector<1x1x1x768xf32>
    tpu.vector_store %arg6[%c0_747, %c2_748, %c106_749, %c0_750], %534 {strides = array<i32>} : memref<1x4x196x768xf32, #tpu.memory_space<vmem>>, vector<1x1x1x768xf32>,
    %c0_751 = arith.constant 0 : index
    %c0_752 = arith.constant 0 : index
    %c42_753 = arith.constant 42 : index
    %c0_754 = arith.constant 0 : index
    %535 = vector.load %arg5[%c0_751, %c0_752, %c42_753, %c0_754] : memref<1x1x196x768xf32, #tpu.memory_space<vmem>>, vector<1x1x6x768xf32>
    %536 = vector.shape_cast %535 : vector<1x1x6x768xf32> to vector<6x768xf32>
    %c0_755 = arith.constant 0 : index
    %c2_756 = arith.constant 2 : index
    %c107_757 = arith.constant 107 : index
    %c0_758 = arith.constant 0 : index
    %537 = vector.load %arg6[%c0_755, %c2_756, %c107_757, %c0_758] : memref<1x4x196x768xf32, #tpu.memory_space<vmem>>, vector<1x1x6x768xf32>
    %538 = vector.shape_cast %537 : vector<1x1x6x768xf32> to vector<6x768xf32>
    %539 = vector.shape_cast %536 : vector<6x768xf32> to vector<1x1x6x768xf32>
    tpu.vector_store %arg6[%c0_755, %c2_756, %c107_757, %c0_758], %539 {strides = array<i32>} : memref<1x4x196x768xf32, #tpu.memory_space<vmem>>, vector<1x1x6x768xf32>,
    %c0_759 = arith.constant 0 : index
    %c0_760 = arith.constant 0 : index
    %c47_761 = arith.constant 47 : index
    %c0_762 = arith.constant 0 : index
    %540 = vector.load %arg5[%c0_759, %c0_760, %c47_761, %c0_762] : memref<1x1x196x768xf32, #tpu.memory_space<vmem>>, vector<1x1x6x768xf32>
    %541 = vector.shape_cast %540 : vector<1x1x6x768xf32> to vector<6x768xf32>
    %c0_763 = arith.constant 0 : index
    %c2_764 = arith.constant 2 : index
    %c113_765 = arith.constant 113 : index
    %c0_766 = arith.constant 0 : index
    %542 = vector.load %arg6[%c0_763, %c2_764, %c113_765, %c0_766] : memref<1x4x196x768xf32, #tpu.memory_space<vmem>>, vector<1x1x6x768xf32>
    %543 = vector.shape_cast %542 : vector<1x1x6x768xf32> to vector<6x768xf32>
    %544 = vector.shape_cast %541 : vector<6x768xf32> to vector<1x1x6x768xf32>
    tpu.vector_store %arg6[%c0_763, %c2_764, %c113_765, %c0_766], %544 {strides = array<i32>} : memref<1x4x196x768xf32, #tpu.memory_space<vmem>>, vector<1x1x6x768xf32>,
    %c0_767 = arith.constant 0 : index
    %c0_768 = arith.constant 0 : index
    %c57_769 = arith.constant 57 : index
    %c0_770 = arith.constant 0 : index
    %545 = vector.load %arg5[%c0_767, %c0_768, %c57_769, %c0_770] : memref<1x1x196x768xf32, #tpu.memory_space<vmem>>, vector<1x1x9x768xf32>
    %546 = vector.shape_cast %545 : vector<1x1x9x768xf32> to vector<9x768xf32>
    %c0_771 = arith.constant 0 : index
    %c2_772 = arith.constant 2 : index
    %c119_773 = arith.constant 119 : index
    %c0_774 = arith.constant 0 : index
    %547 = vector.load %arg6[%c0_771, %c2_772, %c119_773, %c0_774] : memref<1x4x196x768xf32, #tpu.memory_space<vmem>>, vector<1x1x9x768xf32>
    %548 = vector.shape_cast %547 : vector<1x1x9x768xf32> to vector<9x768xf32>
    %549 = vector.shape_cast %546 : vector<9x768xf32> to vector<1x1x9x768xf32>
    tpu.vector_store %arg6[%c0_771, %c2_772, %c119_773, %c0_774], %549 {strides = array<i32>} : memref<1x4x196x768xf32, #tpu.memory_space<vmem>>, vector<1x1x9x768xf32>,
    %c0_775 = arith.constant 0 : index
    %c0_776 = arith.constant 0 : index
    %c71_777 = arith.constant 71 : index
    %c0_778 = arith.constant 0 : index
    %550 = vector.load %arg5[%c0_775, %c0_776, %c71_777, %c0_778] : memref<1x1x196x768xf32, #tpu.memory_space<vmem>>, vector<1x1x9x768xf32>
    %551 = vector.shape_cast %550 : vector<1x1x9x768xf32> to vector<9x768xf32>
    %c0_779 = arith.constant 0 : index
    %c2_780 = arith.constant 2 : index
    %c128_781 = arith.constant 128 : index
    %c0_782 = arith.constant 0 : index
    %552 = vector.load %arg6[%c0_779, %c2_780, %c128_781, %c0_782] : memref<1x4x196x768xf32, #tpu.memory_space<vmem>>, vector<1x1x9x768xf32>
    %553 = vector.shape_cast %552 : vector<1x1x9x768xf32> to vector<9x768xf32>
    %554 = vector.shape_cast %551 : vector<9x768xf32> to vector<1x1x9x768xf32>
    tpu.vector_store %arg6[%c0_779, %c2_780, %c128_781, %c0_782], %554 {strides = array<i32>} : memref<1x4x196x768xf32, #tpu.memory_space<vmem>>, vector<1x1x9x768xf32>,
    %c0_783 = arith.constant 0 : index
    %c0_784 = arith.constant 0 : index
    %c85_785 = arith.constant 85 : index
    %c0_786 = arith.constant 0 : index
    %555 = vector.load %arg5[%c0_783, %c0_784, %c85_785, %c0_786] : memref<1x1x196x768xf32, #tpu.memory_space<vmem>>, vector<1x1x9x768xf32>
    %556 = vector.shape_cast %555 : vector<1x1x9x768xf32> to vector<9x768xf32>
    %c0_787 = arith.constant 0 : index
    %c2_788 = arith.constant 2 : index
    %c137_789 = arith.constant 137 : index
    %c0_790 = arith.constant 0 : index
    %557 = vector.load %arg6[%c0_787, %c2_788, %c137_789, %c0_790] : memref<1x4x196x768xf32, #tpu.memory_space<vmem>>, vector<1x1x9x768xf32>
    %558 = vector.shape_cast %557 : vector<1x1x9x768xf32> to vector<9x768xf32>
    %559 = vector.shape_cast %556 : vector<9x768xf32> to vector<1x1x9x768xf32>
    tpu.vector_store %arg6[%c0_787, %c2_788, %c137_789, %c0_790], %559 {strides = array<i32>} : memref<1x4x196x768xf32, #tpu.memory_space<vmem>>, vector<1x1x9x768xf32>,
    %c0_791 = arith.constant 0 : index
    %c0_792 = arith.constant 0 : index
    %c99_793 = arith.constant 99 : index
    %c0_794 = arith.constant 0 : index
    %560 = vector.load %arg5[%c0_791, %c0_792, %c99_793, %c0_794] : memref<1x1x196x768xf32, #tpu.memory_space<vmem>>, vector<1x1x9x768xf32>
    %561 = vector.shape_cast %560 : vector<1x1x9x768xf32> to vector<9x768xf32>
    %c0_795 = arith.constant 0 : index
    %c2_796 = arith.constant 2 : index
    %c146_797 = arith.constant 146 : index
    %c0_798 = arith.constant 0 : index
    %562 = vector.load %arg6[%c0_795, %c2_796, %c146_797, %c0_798] : memref<1x4x196x768xf32, #tpu.memory_space<vmem>>, vector<1x1x9x768xf32>
    %563 = vector.shape_cast %562 : vector<1x1x9x768xf32> to vector<9x768xf32>
    %564 = vector.shape_cast %561 : vector<9x768xf32> to vector<1x1x9x768xf32>
    tpu.vector_store %arg6[%c0_795, %c2_796, %c146_797, %c0_798], %564 {strides = array<i32>} : memref<1x4x196x768xf32, #tpu.memory_space<vmem>>, vector<1x1x9x768xf32>,
    %c0_799 = arith.constant 0 : index
    %c0_800 = arith.constant 0 : index
    %c112 = arith.constant 112 : index
    %c0_801 = arith.constant 0 : index
    %565 = vector.load %arg5[%c0_799, %c0_800, %c112, %c0_801] : memref<1x1x196x768xf32, #tpu.memory_space<vmem>>, vector<1x1x11x768xf32>
    %566 = vector.shape_cast %565 : vector<1x1x11x768xf32> to vector<11x768xf32>
    %c0_802 = arith.constant 0 : index
    %c2_803 = arith.constant 2 : index
    %c155_804 = arith.constant 155 : index
    %c0_805 = arith.constant 0 : index
    %567 = vector.load %arg6[%c0_802, %c2_803, %c155_804, %c0_805] : memref<1x4x196x768xf32, #tpu.memory_space<vmem>>, vector<1x1x11x768xf32>
    %568 = vector.shape_cast %567 : vector<1x1x11x768xf32> to vector<11x768xf32>
    %569 = vector.shape_cast %566 : vector<11x768xf32> to vector<1x1x11x768xf32>
    tpu.vector_store %arg6[%c0_802, %c2_803, %c155_804, %c0_805], %569 {strides = array<i32>} : memref<1x4x196x768xf32, #tpu.memory_space<vmem>>, vector<1x1x11x768xf32>,
    %c0_806 = arith.constant 0 : index
    %c0_807 = arith.constant 0 : index
    %c127_808 = arith.constant 127 : index
    %c0_809 = arith.constant 0 : index
    %570 = vector.load %arg5[%c0_806, %c0_807, %c127_808, %c0_809] : memref<1x1x196x768xf32, #tpu.memory_space<vmem>>, vector<1x1x9x768xf32>
    %571 = vector.shape_cast %570 : vector<1x1x9x768xf32> to vector<9x768xf32>
    %c0_810 = arith.constant 0 : index
    %c2_811 = arith.constant 2 : index
    %c166_812 = arith.constant 166 : index
    %c0_813 = arith.constant 0 : index
    %572 = vector.load %arg6[%c0_810, %c2_811, %c166_812, %c0_813] : memref<1x4x196x768xf32, #tpu.memory_space<vmem>>, vector<1x1x9x768xf32>
    %573 = vector.shape_cast %572 : vector<1x1x9x768xf32> to vector<9x768xf32>
    %574 = vector.shape_cast %571 : vector<9x768xf32> to vector<1x1x9x768xf32>
    tpu.vector_store %arg6[%c0_810, %c2_811, %c166_812, %c0_813], %574 {strides = array<i32>} : memref<1x4x196x768xf32, #tpu.memory_space<vmem>>, vector<1x1x9x768xf32>,
    %c0_814 = arith.constant 0 : index
    %c0_815 = arith.constant 0 : index
    %c141 = arith.constant 141 : index
    %c0_816 = arith.constant 0 : index
    %575 = vector.load %arg5[%c0_814, %c0_815, %c141, %c0_816] : memref<1x1x196x768xf32, #tpu.memory_space<vmem>>, vector<1x1x9x768xf32>
    %576 = vector.shape_cast %575 : vector<1x1x9x768xf32> to vector<9x768xf32>
    %c0_817 = arith.constant 0 : index
    %c2_818 = arith.constant 2 : index
    %c175_819 = arith.constant 175 : index
    %c0_820 = arith.constant 0 : index
    %577 = vector.load %arg6[%c0_817, %c2_818, %c175_819, %c0_820] : memref<1x4x196x768xf32, #tpu.memory_space<vmem>>, vector<1x1x9x768xf32>
    %578 = vector.shape_cast %577 : vector<1x1x9x768xf32> to vector<9x768xf32>
    %579 = vector.shape_cast %576 : vector<9x768xf32> to vector<1x1x9x768xf32>
    tpu.vector_store %arg6[%c0_817, %c2_818, %c175_819, %c0_820], %579 {strides = array<i32>} : memref<1x4x196x768xf32, #tpu.memory_space<vmem>>, vector<1x1x9x768xf32>,
    %c0_821 = arith.constant 0 : index
    %c0_822 = arith.constant 0 : index
    %c155_823 = arith.constant 155 : index
    %c0_824 = arith.constant 0 : index
    %580 = vector.load %arg5[%c0_821, %c0_822, %c155_823, %c0_824] : memref<1x1x196x768xf32, #tpu.memory_space<vmem>>, vector<1x1x9x768xf32>
    %581 = vector.shape_cast %580 : vector<1x1x9x768xf32> to vector<9x768xf32>
    %c0_825 = arith.constant 0 : index
    %c2_826 = arith.constant 2 : index
    %c184_827 = arith.constant 184 : index
    %c0_828 = arith.constant 0 : index
    %582 = vector.load %arg6[%c0_825, %c2_826, %c184_827, %c0_828] : memref<1x4x196x768xf32, #tpu.memory_space<vmem>>, vector<1x1x9x768xf32>
    %583 = vector.shape_cast %582 : vector<1x1x9x768xf32> to vector<9x768xf32>
    %584 = vector.shape_cast %581 : vector<9x768xf32> to vector<1x1x9x768xf32>
    tpu.vector_store %arg6[%c0_825, %c2_826, %c184_827, %c0_828], %584 {strides = array<i32>} : memref<1x4x196x768xf32, #tpu.memory_space<vmem>>, vector<1x1x9x768xf32>,
    %c0_829 = arith.constant 0 : index
    %c0_830 = arith.constant 0 : index
    %c182 = arith.constant 182 : index
    %c0_831 = arith.constant 0 : index
    %585 = vector.load %arg5[%c0_829, %c0_830, %c182, %c0_831] : memref<1x1x196x768xf32, #tpu.memory_space<vmem>>, vector<1x1x1x768xf32>
    %586 = vector.shape_cast %585 : vector<1x1x1x768xf32> to vector<1x768xf32>
    %c0_832 = arith.constant 0 : index
    %c2_833 = arith.constant 2 : index
    %c193_834 = arith.constant 193 : index
    %c0_835 = arith.constant 0 : index
    %587 = vector.load %arg6[%c0_832, %c2_833, %c193_834, %c0_835] : memref<1x4x196x768xf32, #tpu.memory_space<vmem>>, vector<1x1x1x768xf32>
    %588 = vector.shape_cast %587 : vector<1x1x1x768xf32> to vector<1x768xf32>
    %589 = vector.shape_cast %586 : vector<1x768xf32> to vector<1x1x1x768xf32>
    tpu.vector_store %arg6[%c0_832, %c2_833, %c193_834, %c0_835], %589 {strides = array<i32>} : memref<1x4x196x768xf32, #tpu.memory_space<vmem>>, vector<1x1x1x768xf32>,
    %c0_836 = arith.constant 0 : index
    %c0_837 = arith.constant 0 : index
    %c187 = arith.constant 187 : index
    %c0_838 = arith.constant 0 : index
    %590 = vector.load %arg5[%c0_836, %c0_837, %c187, %c0_838] : memref<1x1x196x768xf32, #tpu.memory_space<vmem>>, vector<1x1x1x768xf32>
    %591 = vector.shape_cast %590 : vector<1x1x1x768xf32> to vector<1x768xf32>
    %c0_839 = arith.constant 0 : index
    %c2_840 = arith.constant 2 : index
    %c194_841 = arith.constant 194 : index
    %c0_842 = arith.constant 0 : index
    %592 = vector.load %arg6[%c0_839, %c2_840, %c194_841, %c0_842] : memref<1x4x196x768xf32, #tpu.memory_space<vmem>>, vector<1x1x1x768xf32>
    %593 = vector.shape_cast %592 : vector<1x1x1x768xf32> to vector<1x768xf32>
    %594 = vector.shape_cast %591 : vector<1x768xf32> to vector<1x1x1x768xf32>
    tpu.vector_store %arg6[%c0_839, %c2_840, %c194_841, %c0_842], %594 {strides = array<i32>} : memref<1x4x196x768xf32, #tpu.memory_space<vmem>>, vector<1x1x1x768xf32>,
    %c0_843 = arith.constant 0 : index
    %c0_844 = arith.constant 0 : index
    %c192 = arith.constant 192 : index
    %c0_845 = arith.constant 0 : index
    %595 = vector.load %arg5[%c0_843, %c0_844, %c192, %c0_845] : memref<1x1x196x768xf32, #tpu.memory_space<vmem>>, vector<1x1x1x768xf32>
    %596 = vector.shape_cast %595 : vector<1x1x1x768xf32> to vector<1x768xf32>
    %c0_846 = arith.constant 0 : index
    %c2_847 = arith.constant 2 : index
    %c195_848 = arith.constant 195 : index
    %c0_849 = arith.constant 0 : index
    %597 = vector.load %arg6[%c0_846, %c2_847, %c195_848, %c0_849] : memref<1x4x196x768xf32, #tpu.memory_space<vmem>>, vector<1x1x1x768xf32>
    %598 = vector.shape_cast %597 : vector<1x1x1x768xf32> to vector<1x768xf32>
    %599 = vector.shape_cast %596 : vector<1x768xf32> to vector<1x1x1x768xf32>
    tpu.vector_store %arg6[%c0_846, %c2_847, %c195_848, %c0_849], %599 {strides = array<i32>} : memref<1x4x196x768xf32, #tpu.memory_space<vmem>>, vector<1x1x1x768xf32>,
    %c0_850 = arith.constant 0 : index
    %c0_851 = arith.constant 0 : index
    %c90_852 = arith.constant 90 : index
    %c0_853 = arith.constant 0 : index
    %600 = vector.load %arg2[%c0_850, %c0_851, %c90_852, %c0_853] : memref<1x1x152x768xf32, #tpu.memory_space<vmem>>, vector<1x1x3x768xf32>
    %601 = vector.shape_cast %600 : vector<1x1x3x768xf32> to vector<3x768xf32>
    %c0_854 = arith.constant 0 : index
    %c3_855 = arith.constant 3 : index
    %c0_856 = arith.constant 0 : index
    %c0_857 = arith.constant 0 : index
    %602 = vector.load %arg6[%c0_854, %c3_855, %c0_856, %c0_857] : memref<1x4x196x768xf32, #tpu.memory_space<vmem>>, vector<1x1x3x768xf32>
    %603 = vector.shape_cast %602 : vector<1x1x3x768xf32> to vector<3x768xf32>
    %604 = vector.shape_cast %601 : vector<3x768xf32> to vector<1x1x3x768xf32>
    tpu.vector_store %arg6[%c0_854, %c3_855, %c0_856, %c0_857], %604 {strides = array<i32>} : memref<1x4x196x768xf32, #tpu.memory_space<vmem>>, vector<1x1x3x768xf32>,
    %c0_858 = arith.constant 0 : index
    %c0_859 = arith.constant 0 : index
    %c92 = arith.constant 92 : index
    %c0_860 = arith.constant 0 : index
    %605 = vector.load %arg2[%c0_858, %c0_859, %c92, %c0_860] : memref<1x1x152x768xf32, #tpu.memory_space<vmem>>, vector<1x1x3x768xf32>
    %606 = vector.shape_cast %605 : vector<1x1x3x768xf32> to vector<3x768xf32>
    %c0_861 = arith.constant 0 : index
    %c3_862 = arith.constant 3 : index
    %c3_863 = arith.constant 3 : index
    %c0_864 = arith.constant 0 : index
    %607 = vector.load %arg6[%c0_861, %c3_862, %c3_863, %c0_864] : memref<1x4x196x768xf32, #tpu.memory_space<vmem>>, vector<1x1x3x768xf32>
    %608 = vector.shape_cast %607 : vector<1x1x3x768xf32> to vector<3x768xf32>
    %609 = vector.shape_cast %606 : vector<3x768xf32> to vector<1x1x3x768xf32>
    tpu.vector_store %arg6[%c0_861, %c3_862, %c3_863, %c0_864], %609 {strides = array<i32>} : memref<1x4x196x768xf32, #tpu.memory_space<vmem>>, vector<1x1x3x768xf32>,
    %c0_865 = arith.constant 0 : index
    %c0_866 = arith.constant 0 : index
    %c105_867 = arith.constant 105 : index
    %c0_868 = arith.constant 0 : index
    %610 = vector.load %arg2[%c0_865, %c0_866, %c105_867, %c0_868] : memref<1x1x152x768xf32, #tpu.memory_space<vmem>>, vector<1x1x3x768xf32>
    %611 = vector.shape_cast %610 : vector<1x1x3x768xf32> to vector<3x768xf32>
    %c0_869 = arith.constant 0 : index
    %c3_870 = arith.constant 3 : index
    %c6_871 = arith.constant 6 : index
    %c0_872 = arith.constant 0 : index
    %612 = vector.load %arg6[%c0_869, %c3_870, %c6_871, %c0_872] : memref<1x4x196x768xf32, #tpu.memory_space<vmem>>, vector<1x1x3x768xf32>
    %613 = vector.shape_cast %612 : vector<1x1x3x768xf32> to vector<3x768xf32>
    %614 = vector.shape_cast %611 : vector<3x768xf32> to vector<1x1x3x768xf32>
    tpu.vector_store %arg6[%c0_869, %c3_870, %c6_871, %c0_872], %614 {strides = array<i32>} : memref<1x4x196x768xf32, #tpu.memory_space<vmem>>, vector<1x1x3x768xf32>,
    %c0_873 = arith.constant 0 : index
    %c0_874 = arith.constant 0 : index
    %c118 = arith.constant 118 : index
    %c0_875 = arith.constant 0 : index
    %615 = vector.load %arg2[%c0_873, %c0_874, %c118, %c0_875] : memref<1x1x152x768xf32, #tpu.memory_space<vmem>>, vector<1x1x5x768xf32>
    %616 = vector.shape_cast %615 : vector<1x1x5x768xf32> to vector<5x768xf32>
    %c0_876 = arith.constant 0 : index
    %c3_877 = arith.constant 3 : index
    %c9_878 = arith.constant 9 : index
    %c0_879 = arith.constant 0 : index
    %617 = vector.load %arg6[%c0_876, %c3_877, %c9_878, %c0_879] : memref<1x4x196x768xf32, #tpu.memory_space<vmem>>, vector<1x1x5x768xf32>
    %618 = vector.shape_cast %617 : vector<1x1x5x768xf32> to vector<5x768xf32>
    %619 = vector.shape_cast %616 : vector<5x768xf32> to vector<1x1x5x768xf32>
    tpu.vector_store %arg6[%c0_876, %c3_877, %c9_878, %c0_879], %619 {strides = array<i32>} : memref<1x4x196x768xf32, #tpu.memory_space<vmem>>, vector<1x1x5x768xf32>,
    %c0_880 = arith.constant 0 : index
    %c0_881 = arith.constant 0 : index
    %c146_882 = arith.constant 146 : index
    %c0_883 = arith.constant 0 : index
    %620 = vector.load %arg2[%c0_880, %c0_881, %c146_882, %c0_883] : memref<1x1x152x768xf32, #tpu.memory_space<vmem>>, vector<1x1x1x768xf32>
    %621 = vector.shape_cast %620 : vector<1x1x1x768xf32> to vector<1x768xf32>
    %c0_884 = arith.constant 0 : index
    %c3_885 = arith.constant 3 : index
    %c14_886 = arith.constant 14 : index
    %c0_887 = arith.constant 0 : index
    %622 = vector.load %arg6[%c0_884, %c3_885, %c14_886, %c0_887] : memref<1x4x196x768xf32, #tpu.memory_space<vmem>>, vector<1x1x1x768xf32>
    %623 = vector.shape_cast %622 : vector<1x1x1x768xf32> to vector<1x768xf32>
    %624 = vector.shape_cast %621 : vector<1x768xf32> to vector<1x1x1x768xf32>
    tpu.vector_store %arg6[%c0_884, %c3_885, %c14_886, %c0_887], %624 {strides = array<i32>} : memref<1x4x196x768xf32, #tpu.memory_space<vmem>>, vector<1x1x1x768xf32>,
    %c0_888 = arith.constant 0 : index
    %c0_889 = arith.constant 0 : index
    %c148_890 = arith.constant 148 : index
    %c0_891 = arith.constant 0 : index
    %625 = vector.load %arg2[%c0_888, %c0_889, %c148_890, %c0_891] : memref<1x1x152x768xf32, #tpu.memory_space<vmem>>, vector<1x1x1x768xf32>
    %626 = vector.shape_cast %625 : vector<1x1x1x768xf32> to vector<1x768xf32>
    %c0_892 = arith.constant 0 : index
    %c3_893 = arith.constant 3 : index
    %c15_894 = arith.constant 15 : index
    %c0_895 = arith.constant 0 : index
    %627 = vector.load %arg6[%c0_892, %c3_893, %c15_894, %c0_895] : memref<1x4x196x768xf32, #tpu.memory_space<vmem>>, vector<1x1x1x768xf32>
    %628 = vector.shape_cast %627 : vector<1x1x1x768xf32> to vector<1x768xf32>
    %629 = vector.shape_cast %626 : vector<1x768xf32> to vector<1x1x1x768xf32>
    tpu.vector_store %arg6[%c0_892, %c3_893, %c15_894, %c0_895], %629 {strides = array<i32>} : memref<1x4x196x768xf32, #tpu.memory_space<vmem>>, vector<1x1x1x768xf32>,
    %c0_896 = arith.constant 0 : index
    %c0_897 = arith.constant 0 : index
    %c150_898 = arith.constant 150 : index
    %c0_899 = arith.constant 0 : index
    %630 = vector.load %arg2[%c0_896, %c0_897, %c150_898, %c0_899] : memref<1x1x152x768xf32, #tpu.memory_space<vmem>>, vector<1x1x1x768xf32>
    %631 = vector.shape_cast %630 : vector<1x1x1x768xf32> to vector<1x768xf32>
    %c0_900 = arith.constant 0 : index
    %c3_901 = arith.constant 3 : index
    %c16_902 = arith.constant 16 : index
    %c0_903 = arith.constant 0 : index
    %632 = vector.load %arg6[%c0_900, %c3_901, %c16_902, %c0_903] : memref<1x4x196x768xf32, #tpu.memory_space<vmem>>, vector<1x1x1x768xf32>
    %633 = vector.shape_cast %632 : vector<1x1x1x768xf32> to vector<1x768xf32>
    %634 = vector.shape_cast %631 : vector<1x768xf32> to vector<1x1x1x768xf32>
    tpu.vector_store %arg6[%c0_900, %c3_901, %c16_902, %c0_903], %634 {strides = array<i32>} : memref<1x4x196x768xf32, #tpu.memory_space<vmem>>, vector<1x1x1x768xf32>,
    %c0_904 = arith.constant 0 : index
    %c0_905 = arith.constant 0 : index
    %c75_906 = arith.constant 75 : index
    %c0_907 = arith.constant 0 : index
    %635 = vector.load %arg3[%c0_904, %c0_905, %c75_906, %c0_907] : memref<1x1x168x768xf32, #tpu.memory_space<vmem>>, vector<1x1x4x768xf32>
    %636 = vector.shape_cast %635 : vector<1x1x4x768xf32> to vector<4x768xf32>
    %c0_908 = arith.constant 0 : index
    %c3_909 = arith.constant 3 : index
    %c17_910 = arith.constant 17 : index
    %c0_911 = arith.constant 0 : index
    %637 = vector.load %arg6[%c0_908, %c3_909, %c17_910, %c0_911] : memref<1x4x196x768xf32, #tpu.memory_space<vmem>>, vector<1x1x4x768xf32>
    %638 = vector.shape_cast %637 : vector<1x1x4x768xf32> to vector<4x768xf32>
    %639 = vector.shape_cast %636 : vector<4x768xf32> to vector<1x1x4x768xf32>
    tpu.vector_store %arg6[%c0_908, %c3_909, %c17_910, %c0_911], %639 {strides = array<i32>} : memref<1x4x196x768xf32, #tpu.memory_space<vmem>>, vector<1x1x4x768xf32>,
    %c0_912 = arith.constant 0 : index
    %c0_913 = arith.constant 0 : index
    %c78 = arith.constant 78 : index
    %c0_914 = arith.constant 0 : index
    %640 = vector.load %arg3[%c0_912, %c0_913, %c78, %c0_914] : memref<1x1x168x768xf32, #tpu.memory_space<vmem>>, vector<1x1x4x768xf32>
    %641 = vector.shape_cast %640 : vector<1x1x4x768xf32> to vector<4x768xf32>
    %c0_915 = arith.constant 0 : index
    %c3_916 = arith.constant 3 : index
    %c21_917 = arith.constant 21 : index
    %c0_918 = arith.constant 0 : index
    %642 = vector.load %arg6[%c0_915, %c3_916, %c21_917, %c0_918] : memref<1x4x196x768xf32, #tpu.memory_space<vmem>>, vector<1x1x4x768xf32>
    %643 = vector.shape_cast %642 : vector<1x1x4x768xf32> to vector<4x768xf32>
    %644 = vector.shape_cast %641 : vector<4x768xf32> to vector<1x1x4x768xf32>
    tpu.vector_store %arg6[%c0_915, %c3_916, %c21_917, %c0_918], %644 {strides = array<i32>} : memref<1x4x196x768xf32, #tpu.memory_space<vmem>>, vector<1x1x4x768xf32>,
    %c0_919 = arith.constant 0 : index
    %c0_920 = arith.constant 0 : index
    %c90_921 = arith.constant 90 : index
    %c0_922 = arith.constant 0 : index
    %645 = vector.load %arg3[%c0_919, %c0_920, %c90_921, %c0_922] : memref<1x1x168x768xf32, #tpu.memory_space<vmem>>, vector<1x1x5x768xf32>
    %646 = vector.shape_cast %645 : vector<1x1x5x768xf32> to vector<5x768xf32>
    %c0_923 = arith.constant 0 : index
    %c3_924 = arith.constant 3 : index
    %c25_925 = arith.constant 25 : index
    %c0_926 = arith.constant 0 : index
    %647 = vector.load %arg6[%c0_923, %c3_924, %c25_925, %c0_926] : memref<1x4x196x768xf32, #tpu.memory_space<vmem>>, vector<1x1x5x768xf32>
    %648 = vector.shape_cast %647 : vector<1x1x5x768xf32> to vector<5x768xf32>
    %649 = vector.shape_cast %646 : vector<5x768xf32> to vector<1x1x5x768xf32>
    tpu.vector_store %arg6[%c0_923, %c3_924, %c25_925, %c0_926], %649 {strides = array<i32>} : memref<1x4x196x768xf32, #tpu.memory_space<vmem>>, vector<1x1x5x768xf32>,
    %c0_927 = arith.constant 0 : index
    %c0_928 = arith.constant 0 : index
    %c104_929 = arith.constant 104 : index
    %c0_930 = arith.constant 0 : index
    %650 = vector.load %arg3[%c0_927, %c0_928, %c104_929, %c0_930] : memref<1x1x168x768xf32, #tpu.memory_space<vmem>>, vector<1x1x5x768xf32>
    %651 = vector.shape_cast %650 : vector<1x1x5x768xf32> to vector<5x768xf32>
    %c0_931 = arith.constant 0 : index
    %c3_932 = arith.constant 3 : index
    %c30_933 = arith.constant 30 : index
    %c0_934 = arith.constant 0 : index
    %652 = vector.load %arg6[%c0_931, %c3_932, %c30_933, %c0_934] : memref<1x4x196x768xf32, #tpu.memory_space<vmem>>, vector<1x1x5x768xf32>
    %653 = vector.shape_cast %652 : vector<1x1x5x768xf32> to vector<5x768xf32>
    %654 = vector.shape_cast %651 : vector<5x768xf32> to vector<1x1x5x768xf32>
    tpu.vector_store %arg6[%c0_931, %c3_932, %c30_933, %c0_934], %654 {strides = array<i32>} : memref<1x4x196x768xf32, #tpu.memory_space<vmem>>, vector<1x1x5x768xf32>,
    %c0_935 = arith.constant 0 : index
    %c0_936 = arith.constant 0 : index
    %c117_937 = arith.constant 117 : index
    %c0_938 = arith.constant 0 : index
    %655 = vector.load %arg3[%c0_935, %c0_936, %c117_937, %c0_938] : memref<1x1x168x768xf32, #tpu.memory_space<vmem>>, vector<1x1x7x768xf32>
    %656 = vector.shape_cast %655 : vector<1x1x7x768xf32> to vector<7x768xf32>
    %c0_939 = arith.constant 0 : index
    %c3_940 = arith.constant 3 : index
    %c35_941 = arith.constant 35 : index
    %c0_942 = arith.constant 0 : index
    %657 = vector.load %arg6[%c0_939, %c3_940, %c35_941, %c0_942] : memref<1x4x196x768xf32, #tpu.memory_space<vmem>>, vector<1x1x7x768xf32>
    %658 = vector.shape_cast %657 : vector<1x1x7x768xf32> to vector<7x768xf32>
    %659 = vector.shape_cast %656 : vector<7x768xf32> to vector<1x1x7x768xf32>
    tpu.vector_store %arg6[%c0_939, %c3_940, %c35_941, %c0_942], %659 {strides = array<i32>} : memref<1x4x196x768xf32, #tpu.memory_space<vmem>>, vector<1x1x7x768xf32>,
    %c0_943 = arith.constant 0 : index
    %c0_944 = arith.constant 0 : index
    %c132 = arith.constant 132 : index
    %c0_945 = arith.constant 0 : index
    %660 = vector.load %arg3[%c0_943, %c0_944, %c132, %c0_945] : memref<1x1x168x768xf32, #tpu.memory_space<vmem>>, vector<1x1x5x768xf32>
    %661 = vector.shape_cast %660 : vector<1x1x5x768xf32> to vector<5x768xf32>
    %c0_946 = arith.constant 0 : index
    %c3_947 = arith.constant 3 : index
    %c42_948 = arith.constant 42 : index
    %c0_949 = arith.constant 0 : index
    %662 = vector.load %arg6[%c0_946, %c3_947, %c42_948, %c0_949] : memref<1x4x196x768xf32, #tpu.memory_space<vmem>>, vector<1x1x5x768xf32>
    %663 = vector.shape_cast %662 : vector<1x1x5x768xf32> to vector<5x768xf32>
    %664 = vector.shape_cast %661 : vector<5x768xf32> to vector<1x1x5x768xf32>
    tpu.vector_store %arg6[%c0_946, %c3_947, %c42_948, %c0_949], %664 {strides = array<i32>} : memref<1x4x196x768xf32, #tpu.memory_space<vmem>>, vector<1x1x5x768xf32>,
    %c0_950 = arith.constant 0 : index
    %c0_951 = arith.constant 0 : index
    %c159_952 = arith.constant 159 : index
    %c0_953 = arith.constant 0 : index
    %665 = vector.load %arg3[%c0_950, %c0_951, %c159_952, %c0_953] : memref<1x1x168x768xf32, #tpu.memory_space<vmem>>, vector<1x1x1x768xf32>
    %666 = vector.shape_cast %665 : vector<1x1x1x768xf32> to vector<1x768xf32>
    %c0_954 = arith.constant 0 : index
    %c3_955 = arith.constant 3 : index
    %c47_956 = arith.constant 47 : index
    %c0_957 = arith.constant 0 : index
    %667 = vector.load %arg6[%c0_954, %c3_955, %c47_956, %c0_957] : memref<1x4x196x768xf32, #tpu.memory_space<vmem>>, vector<1x1x1x768xf32>
    %668 = vector.shape_cast %667 : vector<1x1x1x768xf32> to vector<1x768xf32>
    %669 = vector.shape_cast %666 : vector<1x768xf32> to vector<1x1x1x768xf32>
    tpu.vector_store %arg6[%c0_954, %c3_955, %c47_956, %c0_957], %669 {strides = array<i32>} : memref<1x4x196x768xf32, #tpu.memory_space<vmem>>, vector<1x1x1x768xf32>,
    %c0_958 = arith.constant 0 : index
    %c0_959 = arith.constant 0 : index
    %c162_960 = arith.constant 162 : index
    %c0_961 = arith.constant 0 : index
    %670 = vector.load %arg3[%c0_958, %c0_959, %c162_960, %c0_961] : memref<1x1x168x768xf32, #tpu.memory_space<vmem>>, vector<1x1x1x768xf32>
    %671 = vector.shape_cast %670 : vector<1x1x1x768xf32> to vector<1x768xf32>
    %c0_962 = arith.constant 0 : index
    %c3_963 = arith.constant 3 : index
    %c48_964 = arith.constant 48 : index
    %c0_965 = arith.constant 0 : index
    %672 = vector.load %arg6[%c0_962, %c3_963, %c48_964, %c0_965] : memref<1x4x196x768xf32, #tpu.memory_space<vmem>>, vector<1x1x1x768xf32>
    %673 = vector.shape_cast %672 : vector<1x1x1x768xf32> to vector<1x768xf32>
    %674 = vector.shape_cast %671 : vector<1x768xf32> to vector<1x1x1x768xf32>
    tpu.vector_store %arg6[%c0_962, %c3_963, %c48_964, %c0_965], %674 {strides = array<i32>} : memref<1x4x196x768xf32, #tpu.memory_space<vmem>>, vector<1x1x1x768xf32>,
    %c0_966 = arith.constant 0 : index
    %c0_967 = arith.constant 0 : index
    %c165 = arith.constant 165 : index
    %c0_968 = arith.constant 0 : index
    %675 = vector.load %arg3[%c0_966, %c0_967, %c165, %c0_968] : memref<1x1x168x768xf32, #tpu.memory_space<vmem>>, vector<1x1x1x768xf32>
    %676 = vector.shape_cast %675 : vector<1x1x1x768xf32> to vector<1x768xf32>
    %c0_969 = arith.constant 0 : index
    %c3_970 = arith.constant 3 : index
    %c49_971 = arith.constant 49 : index
    %c0_972 = arith.constant 0 : index
    %677 = vector.load %arg6[%c0_969, %c3_970, %c49_971, %c0_972] : memref<1x4x196x768xf32, #tpu.memory_space<vmem>>, vector<1x1x1x768xf32>
    %678 = vector.shape_cast %677 : vector<1x1x1x768xf32> to vector<1x768xf32>
    %679 = vector.shape_cast %676 : vector<1x768xf32> to vector<1x1x1x768xf32>
    tpu.vector_store %arg6[%c0_969, %c3_970, %c49_971, %c0_972], %679 {strides = array<i32>} : memref<1x4x196x768xf32, #tpu.memory_space<vmem>>, vector<1x1x1x768xf32>,
    %c0_973 = arith.constant 0 : index
    %c0_974 = arith.constant 0 : index
    %c60_975 = arith.constant 60 : index
    %c0_976 = arith.constant 0 : index
    %680 = vector.load %arg4[%c0_973, %c0_974, %c60_975, %c0_976] : memref<1x1x184x768xf32, #tpu.memory_space<vmem>>, vector<1x1x5x768xf32>
    %681 = vector.shape_cast %680 : vector<1x1x5x768xf32> to vector<5x768xf32>
    %c0_977 = arith.constant 0 : index
    %c3_978 = arith.constant 3 : index
    %c50_979 = arith.constant 50 : index
    %c0_980 = arith.constant 0 : index
    %682 = vector.load %arg6[%c0_977, %c3_978, %c50_979, %c0_980] : memref<1x4x196x768xf32, #tpu.memory_space<vmem>>, vector<1x1x5x768xf32>
    %683 = vector.shape_cast %682 : vector<1x1x5x768xf32> to vector<5x768xf32>
    %684 = vector.shape_cast %681 : vector<5x768xf32> to vector<1x1x5x768xf32>
    tpu.vector_store %arg6[%c0_977, %c3_978, %c50_979, %c0_980], %684 {strides = array<i32>} : memref<1x4x196x768xf32, #tpu.memory_space<vmem>>, vector<1x1x5x768xf32>,
    %c0_981 = arith.constant 0 : index
    %c0_982 = arith.constant 0 : index
    %c64 = arith.constant 64 : index
    %c0_983 = arith.constant 0 : index
    %685 = vector.load %arg4[%c0_981, %c0_982, %c64, %c0_983] : memref<1x1x184x768xf32, #tpu.memory_space<vmem>>, vector<1x1x5x768xf32>
    %686 = vector.shape_cast %685 : vector<1x1x5x768xf32> to vector<5x768xf32>
    %c0_984 = arith.constant 0 : index
    %c3_985 = arith.constant 3 : index
    %c55_986 = arith.constant 55 : index
    %c0_987 = arith.constant 0 : index
    %687 = vector.load %arg6[%c0_984, %c3_985, %c55_986, %c0_987] : memref<1x4x196x768xf32, #tpu.memory_space<vmem>>, vector<1x1x5x768xf32>
    %688 = vector.shape_cast %687 : vector<1x1x5x768xf32> to vector<5x768xf32>
    %689 = vector.shape_cast %686 : vector<5x768xf32> to vector<1x1x5x768xf32>
    tpu.vector_store %arg6[%c0_984, %c3_985, %c55_986, %c0_987], %689 {strides = array<i32>} : memref<1x4x196x768xf32, #tpu.memory_space<vmem>>, vector<1x1x5x768xf32>,
    %c0_988 = arith.constant 0 : index
    %c0_989 = arith.constant 0 : index
    %c75_990 = arith.constant 75 : index
    %c0_991 = arith.constant 0 : index
    %690 = vector.load %arg4[%c0_988, %c0_989, %c75_990, %c0_991] : memref<1x1x184x768xf32, #tpu.memory_space<vmem>>, vector<1x1x7x768xf32>
    %691 = vector.shape_cast %690 : vector<1x1x7x768xf32> to vector<7x768xf32>
    %c0_992 = arith.constant 0 : index
    %c3_993 = arith.constant 3 : index
    %c60_994 = arith.constant 60 : index
    %c0_995 = arith.constant 0 : index
    %692 = vector.load %arg6[%c0_992, %c3_993, %c60_994, %c0_995] : memref<1x4x196x768xf32, #tpu.memory_space<vmem>>, vector<1x1x7x768xf32>
    %693 = vector.shape_cast %692 : vector<1x1x7x768xf32> to vector<7x768xf32>
    %694 = vector.shape_cast %691 : vector<7x768xf32> to vector<1x1x7x768xf32>
    tpu.vector_store %arg6[%c0_992, %c3_993, %c60_994, %c0_995], %694 {strides = array<i32>} : memref<1x4x196x768xf32, #tpu.memory_space<vmem>>, vector<1x1x7x768xf32>,
    %c0_996 = arith.constant 0 : index
    %c0_997 = arith.constant 0 : index
    %c89_998 = arith.constant 89 : index
    %c0_999 = arith.constant 0 : index
    %695 = vector.load %arg4[%c0_996, %c0_997, %c89_998, %c0_999] : memref<1x1x184x768xf32, #tpu.memory_space<vmem>>, vector<1x1x7x768xf32>
    %696 = vector.shape_cast %695 : vector<1x1x7x768xf32> to vector<7x768xf32>
    %c0_1000 = arith.constant 0 : index
    %c3_1001 = arith.constant 3 : index
    %c67_1002 = arith.constant 67 : index
    %c0_1003 = arith.constant 0 : index
    %697 = vector.load %arg6[%c0_1000, %c3_1001, %c67_1002, %c0_1003] : memref<1x4x196x768xf32, #tpu.memory_space<vmem>>, vector<1x1x7x768xf32>
    %698 = vector.shape_cast %697 : vector<1x1x7x768xf32> to vector<7x768xf32>
    %699 = vector.shape_cast %696 : vector<7x768xf32> to vector<1x1x7x768xf32>
    tpu.vector_store %arg6[%c0_1000, %c3_1001, %c67_1002, %c0_1003], %699 {strides = array<i32>} : memref<1x4x196x768xf32, #tpu.memory_space<vmem>>, vector<1x1x7x768xf32>,
    %c0_1004 = arith.constant 0 : index
    %c0_1005 = arith.constant 0 : index
    %c103_1006 = arith.constant 103 : index
    %c0_1007 = arith.constant 0 : index
    %700 = vector.load %arg4[%c0_1004, %c0_1005, %c103_1006, %c0_1007] : memref<1x1x184x768xf32, #tpu.memory_space<vmem>>, vector<1x1x7x768xf32>
    %701 = vector.shape_cast %700 : vector<1x1x7x768xf32> to vector<7x768xf32>
    %c0_1008 = arith.constant 0 : index
    %c3_1009 = arith.constant 3 : index
    %c74_1010 = arith.constant 74 : index
    %c0_1011 = arith.constant 0 : index
    %702 = vector.load %arg6[%c0_1008, %c3_1009, %c74_1010, %c0_1011] : memref<1x4x196x768xf32, #tpu.memory_space<vmem>>, vector<1x1x7x768xf32>
    %703 = vector.shape_cast %702 : vector<1x1x7x768xf32> to vector<7x768xf32>
    %704 = vector.shape_cast %701 : vector<7x768xf32> to vector<1x1x7x768xf32>
    tpu.vector_store %arg6[%c0_1008, %c3_1009, %c74_1010, %c0_1011], %704 {strides = array<i32>} : memref<1x4x196x768xf32, #tpu.memory_space<vmem>>, vector<1x1x7x768xf32>,
    %c0_1012 = arith.constant 0 : index
    %c0_1013 = arith.constant 0 : index
    %c116_1014 = arith.constant 116 : index
    %c0_1015 = arith.constant 0 : index
    %705 = vector.load %arg4[%c0_1012, %c0_1013, %c116_1014, %c0_1015] : memref<1x1x184x768xf32, #tpu.memory_space<vmem>>, vector<1x1x9x768xf32>
    %706 = vector.shape_cast %705 : vector<1x1x9x768xf32> to vector<9x768xf32>
    %c0_1016 = arith.constant 0 : index
    %c3_1017 = arith.constant 3 : index
    %c81_1018 = arith.constant 81 : index
    %c0_1019 = arith.constant 0 : index
    %707 = vector.load %arg6[%c0_1016, %c3_1017, %c81_1018, %c0_1019] : memref<1x4x196x768xf32, #tpu.memory_space<vmem>>, vector<1x1x9x768xf32>
    %708 = vector.shape_cast %707 : vector<1x1x9x768xf32> to vector<9x768xf32>
    %709 = vector.shape_cast %706 : vector<9x768xf32> to vector<1x1x9x768xf32>
    tpu.vector_store %arg6[%c0_1016, %c3_1017, %c81_1018, %c0_1019], %709 {strides = array<i32>} : memref<1x4x196x768xf32, #tpu.memory_space<vmem>>, vector<1x1x9x768xf32>,
    %c0_1020 = arith.constant 0 : index
    %c0_1021 = arith.constant 0 : index
    %c131_1022 = arith.constant 131 : index
    %c0_1023 = arith.constant 0 : index
    %710 = vector.load %arg4[%c0_1020, %c0_1021, %c131_1022, %c0_1023] : memref<1x1x184x768xf32, #tpu.memory_space<vmem>>, vector<1x1x7x768xf32>
    %711 = vector.shape_cast %710 : vector<1x1x7x768xf32> to vector<7x768xf32>
    %c0_1024 = arith.constant 0 : index
    %c3_1025 = arith.constant 3 : index
    %c90_1026 = arith.constant 90 : index
    %c0_1027 = arith.constant 0 : index
    %712 = vector.load %arg6[%c0_1024, %c3_1025, %c90_1026, %c0_1027] : memref<1x4x196x768xf32, #tpu.memory_space<vmem>>, vector<1x1x7x768xf32>
    %713 = vector.shape_cast %712 : vector<1x1x7x768xf32> to vector<7x768xf32>
    %714 = vector.shape_cast %711 : vector<7x768xf32> to vector<1x1x7x768xf32>
    tpu.vector_store %arg6[%c0_1024, %c3_1025, %c90_1026, %c0_1027], %714 {strides = array<i32>} : memref<1x4x196x768xf32, #tpu.memory_space<vmem>>, vector<1x1x7x768xf32>,
    %c0_1028 = arith.constant 0 : index
    %c0_1029 = arith.constant 0 : index
    %c145_1030 = arith.constant 145 : index
    %c0_1031 = arith.constant 0 : index
    %715 = vector.load %arg4[%c0_1028, %c0_1029, %c145_1030, %c0_1031] : memref<1x1x184x768xf32, #tpu.memory_space<vmem>>, vector<1x1x7x768xf32>
    %716 = vector.shape_cast %715 : vector<1x1x7x768xf32> to vector<7x768xf32>
    %c0_1032 = arith.constant 0 : index
    %c3_1033 = arith.constant 3 : index
    %c97_1034 = arith.constant 97 : index
    %c0_1035 = arith.constant 0 : index
    %717 = vector.load %arg6[%c0_1032, %c3_1033, %c97_1034, %c0_1035] : memref<1x4x196x768xf32, #tpu.memory_space<vmem>>, vector<1x1x7x768xf32>
    %718 = vector.shape_cast %717 : vector<1x1x7x768xf32> to vector<7x768xf32>
    %719 = vector.shape_cast %716 : vector<7x768xf32> to vector<1x1x7x768xf32>
    tpu.vector_store %arg6[%c0_1032, %c3_1033, %c97_1034, %c0_1035], %719 {strides = array<i32>} : memref<1x4x196x768xf32, #tpu.memory_space<vmem>>, vector<1x1x7x768xf32>,
    %c0_1036 = arith.constant 0 : index
    %c0_1037 = arith.constant 0 : index
    %c172 = arith.constant 172 : index
    %c0_1038 = arith.constant 0 : index
    %720 = vector.load %arg4[%c0_1036, %c0_1037, %c172, %c0_1038] : memref<1x1x184x768xf32, #tpu.memory_space<vmem>>, vector<1x1x1x768xf32>
    %721 = vector.shape_cast %720 : vector<1x1x1x768xf32> to vector<1x768xf32>
    %c0_1039 = arith.constant 0 : index
    %c3_1040 = arith.constant 3 : index
    %c104_1041 = arith.constant 104 : index
    %c0_1042 = arith.constant 0 : index
    %722 = vector.load %arg6[%c0_1039, %c3_1040, %c104_1041, %c0_1042] : memref<1x4x196x768xf32, #tpu.memory_space<vmem>>, vector<1x1x1x768xf32>
    %723 = vector.shape_cast %722 : vector<1x1x1x768xf32> to vector<1x768xf32>
    %724 = vector.shape_cast %721 : vector<1x768xf32> to vector<1x1x1x768xf32>
    tpu.vector_store %arg6[%c0_1039, %c3_1040, %c104_1041, %c0_1042], %724 {strides = array<i32>} : memref<1x4x196x768xf32, #tpu.memory_space<vmem>>, vector<1x1x1x768xf32>,
    %c0_1043 = arith.constant 0 : index
    %c0_1044 = arith.constant 0 : index
    %c176 = arith.constant 176 : index
    %c0_1045 = arith.constant 0 : index
    %725 = vector.load %arg4[%c0_1043, %c0_1044, %c176, %c0_1045] : memref<1x1x184x768xf32, #tpu.memory_space<vmem>>, vector<1x1x1x768xf32>
    %726 = vector.shape_cast %725 : vector<1x1x1x768xf32> to vector<1x768xf32>
    %c0_1046 = arith.constant 0 : index
    %c3_1047 = arith.constant 3 : index
    %c105_1048 = arith.constant 105 : index
    %c0_1049 = arith.constant 0 : index
    %727 = vector.load %arg6[%c0_1046, %c3_1047, %c105_1048, %c0_1049] : memref<1x4x196x768xf32, #tpu.memory_space<vmem>>, vector<1x1x1x768xf32>
    %728 = vector.shape_cast %727 : vector<1x1x1x768xf32> to vector<1x768xf32>
    %729 = vector.shape_cast %726 : vector<1x768xf32> to vector<1x1x1x768xf32>
    tpu.vector_store %arg6[%c0_1046, %c3_1047, %c105_1048, %c0_1049], %729 {strides = array<i32>} : memref<1x4x196x768xf32, #tpu.memory_space<vmem>>, vector<1x1x1x768xf32>,
    %c0_1050 = arith.constant 0 : index
    %c0_1051 = arith.constant 0 : index
    %c180 = arith.constant 180 : index
    %c0_1052 = arith.constant 0 : index
    %730 = vector.load %arg4[%c0_1050, %c0_1051, %c180, %c0_1052] : memref<1x1x184x768xf32, #tpu.memory_space<vmem>>, vector<1x1x1x768xf32>
    %731 = vector.shape_cast %730 : vector<1x1x1x768xf32> to vector<1x768xf32>
    %c0_1053 = arith.constant 0 : index
    %c3_1054 = arith.constant 3 : index
    %c106_1055 = arith.constant 106 : index
    %c0_1056 = arith.constant 0 : index
    %732 = vector.load %arg6[%c0_1053, %c3_1054, %c106_1055, %c0_1056] : memref<1x4x196x768xf32, #tpu.memory_space<vmem>>, vector<1x1x1x768xf32>
    %733 = vector.shape_cast %732 : vector<1x1x1x768xf32> to vector<1x768xf32>
    %734 = vector.shape_cast %731 : vector<1x768xf32> to vector<1x1x1x768xf32>
    tpu.vector_store %arg6[%c0_1053, %c3_1054, %c106_1055, %c0_1056], %734 {strides = array<i32>} : memref<1x4x196x768xf32, #tpu.memory_space<vmem>>, vector<1x1x1x768xf32>,
    %c0_1057 = arith.constant 0 : index
    %c0_1058 = arith.constant 0 : index
    %c45_1059 = arith.constant 45 : index
    %c0_1060 = arith.constant 0 : index
    %735 = vector.load %arg5[%c0_1057, %c0_1058, %c45_1059, %c0_1060] : memref<1x1x196x768xf32, #tpu.memory_space<vmem>>, vector<1x1x6x768xf32>
    %736 = vector.shape_cast %735 : vector<1x1x6x768xf32> to vector<6x768xf32>
    %c0_1061 = arith.constant 0 : index
    %c3_1062 = arith.constant 3 : index
    %c107_1063 = arith.constant 107 : index
    %c0_1064 = arith.constant 0 : index
    %737 = vector.load %arg6[%c0_1061, %c3_1062, %c107_1063, %c0_1064] : memref<1x4x196x768xf32, #tpu.memory_space<vmem>>, vector<1x1x6x768xf32>
    %738 = vector.shape_cast %737 : vector<1x1x6x768xf32> to vector<6x768xf32>
    %739 = vector.shape_cast %736 : vector<6x768xf32> to vector<1x1x6x768xf32>
    tpu.vector_store %arg6[%c0_1061, %c3_1062, %c107_1063, %c0_1064], %739 {strides = array<i32>} : memref<1x4x196x768xf32, #tpu.memory_space<vmem>>, vector<1x1x6x768xf32>,
    %c0_1065 = arith.constant 0 : index
    %c0_1066 = arith.constant 0 : index
    %c50_1067 = arith.constant 50 : index
    %c0_1068 = arith.constant 0 : index
    %740 = vector.load %arg5[%c0_1065, %c0_1066, %c50_1067, %c0_1068] : memref<1x1x196x768xf32, #tpu.memory_space<vmem>>, vector<1x1x6x768xf32>
    %741 = vector.shape_cast %740 : vector<1x1x6x768xf32> to vector<6x768xf32>
    %c0_1069 = arith.constant 0 : index
    %c3_1070 = arith.constant 3 : index
    %c113_1071 = arith.constant 113 : index
    %c0_1072 = arith.constant 0 : index
    %742 = vector.load %arg6[%c0_1069, %c3_1070, %c113_1071, %c0_1072] : memref<1x4x196x768xf32, #tpu.memory_space<vmem>>, vector<1x1x6x768xf32>
    %743 = vector.shape_cast %742 : vector<1x1x6x768xf32> to vector<6x768xf32>
    %744 = vector.shape_cast %741 : vector<6x768xf32> to vector<1x1x6x768xf32>
    tpu.vector_store %arg6[%c0_1069, %c3_1070, %c113_1071, %c0_1072], %744 {strides = array<i32>} : memref<1x4x196x768xf32, #tpu.memory_space<vmem>>, vector<1x1x6x768xf32>,
    %c0_1073 = arith.constant 0 : index
    %c0_1074 = arith.constant 0 : index
    %c60_1075 = arith.constant 60 : index
    %c0_1076 = arith.constant 0 : index
    %745 = vector.load %arg5[%c0_1073, %c0_1074, %c60_1075, %c0_1076] : memref<1x1x196x768xf32, #tpu.memory_space<vmem>>, vector<1x1x9x768xf32>
    %746 = vector.shape_cast %745 : vector<1x1x9x768xf32> to vector<9x768xf32>
    %c0_1077 = arith.constant 0 : index
    %c3_1078 = arith.constant 3 : index
    %c119_1079 = arith.constant 119 : index
    %c0_1080 = arith.constant 0 : index
    %747 = vector.load %arg6[%c0_1077, %c3_1078, %c119_1079, %c0_1080] : memref<1x4x196x768xf32, #tpu.memory_space<vmem>>, vector<1x1x9x768xf32>
    %748 = vector.shape_cast %747 : vector<1x1x9x768xf32> to vector<9x768xf32>
    %749 = vector.shape_cast %746 : vector<9x768xf32> to vector<1x1x9x768xf32>
    tpu.vector_store %arg6[%c0_1077, %c3_1078, %c119_1079, %c0_1080], %749 {strides = array<i32>} : memref<1x4x196x768xf32, #tpu.memory_space<vmem>>, vector<1x1x9x768xf32>,
    %c0_1081 = arith.constant 0 : index
    %c0_1082 = arith.constant 0 : index
    %c74_1083 = arith.constant 74 : index
    %c0_1084 = arith.constant 0 : index
    %750 = vector.load %arg5[%c0_1081, %c0_1082, %c74_1083, %c0_1084] : memref<1x1x196x768xf32, #tpu.memory_space<vmem>>, vector<1x1x9x768xf32>
    %751 = vector.shape_cast %750 : vector<1x1x9x768xf32> to vector<9x768xf32>
    %c0_1085 = arith.constant 0 : index
    %c3_1086 = arith.constant 3 : index
    %c128_1087 = arith.constant 128 : index
    %c0_1088 = arith.constant 0 : index
    %752 = vector.load %arg6[%c0_1085, %c3_1086, %c128_1087, %c0_1088] : memref<1x4x196x768xf32, #tpu.memory_space<vmem>>, vector<1x1x9x768xf32>
    %753 = vector.shape_cast %752 : vector<1x1x9x768xf32> to vector<9x768xf32>
    %754 = vector.shape_cast %751 : vector<9x768xf32> to vector<1x1x9x768xf32>
    tpu.vector_store %arg6[%c0_1085, %c3_1086, %c128_1087, %c0_1088], %754 {strides = array<i32>} : memref<1x4x196x768xf32, #tpu.memory_space<vmem>>, vector<1x1x9x768xf32>,
    %c0_1089 = arith.constant 0 : index
    %c0_1090 = arith.constant 0 : index
    %c88_1091 = arith.constant 88 : index
    %c0_1092 = arith.constant 0 : index
    %755 = vector.load %arg5[%c0_1089, %c0_1090, %c88_1091, %c0_1092] : memref<1x1x196x768xf32, #tpu.memory_space<vmem>>, vector<1x1x9x768xf32>
    %756 = vector.shape_cast %755 : vector<1x1x9x768xf32> to vector<9x768xf32>
    %c0_1093 = arith.constant 0 : index
    %c3_1094 = arith.constant 3 : index
    %c137_1095 = arith.constant 137 : index
    %c0_1096 = arith.constant 0 : index
    %757 = vector.load %arg6[%c0_1093, %c3_1094, %c137_1095, %c0_1096] : memref<1x4x196x768xf32, #tpu.memory_space<vmem>>, vector<1x1x9x768xf32>
    %758 = vector.shape_cast %757 : vector<1x1x9x768xf32> to vector<9x768xf32>
    %759 = vector.shape_cast %756 : vector<9x768xf32> to vector<1x1x9x768xf32>
    tpu.vector_store %arg6[%c0_1093, %c3_1094, %c137_1095, %c0_1096], %759 {strides = array<i32>} : memref<1x4x196x768xf32, #tpu.memory_space<vmem>>, vector<1x1x9x768xf32>,
    %c0_1097 = arith.constant 0 : index
    %c0_1098 = arith.constant 0 : index
    %c102_1099 = arith.constant 102 : index
    %c0_1100 = arith.constant 0 : index
    %760 = vector.load %arg5[%c0_1097, %c0_1098, %c102_1099, %c0_1100] : memref<1x1x196x768xf32, #tpu.memory_space<vmem>>, vector<1x1x9x768xf32>
    %761 = vector.shape_cast %760 : vector<1x1x9x768xf32> to vector<9x768xf32>
    %c0_1101 = arith.constant 0 : index
    %c3_1102 = arith.constant 3 : index
    %c146_1103 = arith.constant 146 : index
    %c0_1104 = arith.constant 0 : index
    %762 = vector.load %arg6[%c0_1101, %c3_1102, %c146_1103, %c0_1104] : memref<1x4x196x768xf32, #tpu.memory_space<vmem>>, vector<1x1x9x768xf32>
    %763 = vector.shape_cast %762 : vector<1x1x9x768xf32> to vector<9x768xf32>
    %764 = vector.shape_cast %761 : vector<9x768xf32> to vector<1x1x9x768xf32>
    tpu.vector_store %arg6[%c0_1101, %c3_1102, %c146_1103, %c0_1104], %764 {strides = array<i32>} : memref<1x4x196x768xf32, #tpu.memory_space<vmem>>, vector<1x1x9x768xf32>,
    %c0_1105 = arith.constant 0 : index
    %c0_1106 = arith.constant 0 : index
    %c115_1107 = arith.constant 115 : index
    %c0_1108 = arith.constant 0 : index
    %765 = vector.load %arg5[%c0_1105, %c0_1106, %c115_1107, %c0_1108] : memref<1x1x196x768xf32, #tpu.memory_space<vmem>>, vector<1x1x11x768xf32>
    %766 = vector.shape_cast %765 : vector<1x1x11x768xf32> to vector<11x768xf32>
    %c0_1109 = arith.constant 0 : index
    %c3_1110 = arith.constant 3 : index
    %c155_1111 = arith.constant 155 : index
    %c0_1112 = arith.constant 0 : index
    %767 = vector.load %arg6[%c0_1109, %c3_1110, %c155_1111, %c0_1112] : memref<1x4x196x768xf32, #tpu.memory_space<vmem>>, vector<1x1x11x768xf32>
    %768 = vector.shape_cast %767 : vector<1x1x11x768xf32> to vector<11x768xf32>
    %769 = vector.shape_cast %766 : vector<11x768xf32> to vector<1x1x11x768xf32>
    tpu.vector_store %arg6[%c0_1109, %c3_1110, %c155_1111, %c0_1112], %769 {strides = array<i32>} : memref<1x4x196x768xf32, #tpu.memory_space<vmem>>, vector<1x1x11x768xf32>,
    %c0_1113 = arith.constant 0 : index
    %c0_1114 = arith.constant 0 : index
    %c130_1115 = arith.constant 130 : index
    %c0_1116 = arith.constant 0 : index
    %770 = vector.load %arg5[%c0_1113, %c0_1114, %c130_1115, %c0_1116] : memref<1x1x196x768xf32, #tpu.memory_space<vmem>>, vector<1x1x9x768xf32>
    %771 = vector.shape_cast %770 : vector<1x1x9x768xf32> to vector<9x768xf32>
    %c0_1117 = arith.constant 0 : index
    %c3_1118 = arith.constant 3 : index
    %c166_1119 = arith.constant 166 : index
    %c0_1120 = arith.constant 0 : index
    %772 = vector.load %arg6[%c0_1117, %c3_1118, %c166_1119, %c0_1120] : memref<1x4x196x768xf32, #tpu.memory_space<vmem>>, vector<1x1x9x768xf32>
    %773 = vector.shape_cast %772 : vector<1x1x9x768xf32> to vector<9x768xf32>
    %774 = vector.shape_cast %771 : vector<9x768xf32> to vector<1x1x9x768xf32>
    tpu.vector_store %arg6[%c0_1117, %c3_1118, %c166_1119, %c0_1120], %774 {strides = array<i32>} : memref<1x4x196x768xf32, #tpu.memory_space<vmem>>, vector<1x1x9x768xf32>,
    %c0_1121 = arith.constant 0 : index
    %c0_1122 = arith.constant 0 : index
    %c144 = arith.constant 144 : index
    %c0_1123 = arith.constant 0 : index
    %775 = vector.load %arg5[%c0_1121, %c0_1122, %c144, %c0_1123] : memref<1x1x196x768xf32, #tpu.memory_space<vmem>>, vector<1x1x9x768xf32>
    %776 = vector.shape_cast %775 : vector<1x1x9x768xf32> to vector<9x768xf32>
    %c0_1124 = arith.constant 0 : index
    %c3_1125 = arith.constant 3 : index
    %c175_1126 = arith.constant 175 : index
    %c0_1127 = arith.constant 0 : index
    %777 = vector.load %arg6[%c0_1124, %c3_1125, %c175_1126, %c0_1127] : memref<1x4x196x768xf32, #tpu.memory_space<vmem>>, vector<1x1x9x768xf32>
    %778 = vector.shape_cast %777 : vector<1x1x9x768xf32> to vector<9x768xf32>
    %779 = vector.shape_cast %776 : vector<9x768xf32> to vector<1x1x9x768xf32>
    tpu.vector_store %arg6[%c0_1124, %c3_1125, %c175_1126, %c0_1127], %779 {strides = array<i32>} : memref<1x4x196x768xf32, #tpu.memory_space<vmem>>, vector<1x1x9x768xf32>,
    %c0_1128 = arith.constant 0 : index
    %c0_1129 = arith.constant 0 : index
    %c158 = arith.constant 158 : index
    %c0_1130 = arith.constant 0 : index
    %780 = vector.load %arg5[%c0_1128, %c0_1129, %c158, %c0_1130] : memref<1x1x196x768xf32, #tpu.memory_space<vmem>>, vector<1x1x9x768xf32>
    %781 = vector.shape_cast %780 : vector<1x1x9x768xf32> to vector<9x768xf32>
    %c0_1131 = arith.constant 0 : index
    %c3_1132 = arith.constant 3 : index
    %c184_1133 = arith.constant 184 : index
    %c0_1134 = arith.constant 0 : index
    %782 = vector.load %arg6[%c0_1131, %c3_1132, %c184_1133, %c0_1134] : memref<1x4x196x768xf32, #tpu.memory_space<vmem>>, vector<1x1x9x768xf32>
    %783 = vector.shape_cast %782 : vector<1x1x9x768xf32> to vector<9x768xf32>
    %784 = vector.shape_cast %781 : vector<9x768xf32> to vector<1x1x9x768xf32>
    tpu.vector_store %arg6[%c0_1131, %c3_1132, %c184_1133, %c0_1134], %784 {strides = array<i32>} : memref<1x4x196x768xf32, #tpu.memory_space<vmem>>, vector<1x1x9x768xf32>,
    %c0_1135 = arith.constant 0 : index
    %c0_1136 = arith.constant 0 : index
    %c185 = arith.constant 185 : index
    %c0_1137 = arith.constant 0 : index
    %785 = vector.load %arg5[%c0_1135, %c0_1136, %c185, %c0_1137] : memref<1x1x196x768xf32, #tpu.memory_space<vmem>>, vector<1x1x1x768xf32>
    %786 = vector.shape_cast %785 : vector<1x1x1x768xf32> to vector<1x768xf32>
    %c0_1138 = arith.constant 0 : index
    %c3_1139 = arith.constant 3 : index
    %c193_1140 = arith.constant 193 : index
    %c0_1141 = arith.constant 0 : index
    %787 = vector.load %arg6[%c0_1138, %c3_1139, %c193_1140, %c0_1141] : memref<1x4x196x768xf32, #tpu.memory_space<vmem>>, vector<1x1x1x768xf32>
    %788 = vector.shape_cast %787 : vector<1x1x1x768xf32> to vector<1x768xf32>
    %789 = vector.shape_cast %786 : vector<1x768xf32> to vector<1x1x1x768xf32>
    tpu.vector_store %arg6[%c0_1138, %c3_1139, %c193_1140, %c0_1141], %789 {strides = array<i32>} : memref<1x4x196x768xf32, #tpu.memory_space<vmem>>, vector<1x1x1x768xf32>,
    %c0_1142 = arith.constant 0 : index
    %c0_1143 = arith.constant 0 : index
    %c190 = arith.constant 190 : index
    %c0_1144 = arith.constant 0 : index
    %790 = vector.load %arg5[%c0_1142, %c0_1143, %c190, %c0_1144] : memref<1x1x196x768xf32, #tpu.memory_space<vmem>>, vector<1x1x1x768xf32>
    %791 = vector.shape_cast %790 : vector<1x1x1x768xf32> to vector<1x768xf32>
    %c0_1145 = arith.constant 0 : index
    %c3_1146 = arith.constant 3 : index
    %c194_1147 = arith.constant 194 : index
    %c0_1148 = arith.constant 0 : index
    %792 = vector.load %arg6[%c0_1145, %c3_1146, %c194_1147, %c0_1148] : memref<1x4x196x768xf32, #tpu.memory_space<vmem>>, vector<1x1x1x768xf32>
    %793 = vector.shape_cast %792 : vector<1x1x1x768xf32> to vector<1x768xf32>
    %794 = vector.shape_cast %791 : vector<1x768xf32> to vector<1x1x1x768xf32>
    tpu.vector_store %arg6[%c0_1145, %c3_1146, %c194_1147, %c0_1148], %794 {strides = array<i32>} : memref<1x4x196x768xf32, #tpu.memory_space<vmem>>, vector<1x1x1x768xf32>,
    %c0_1149 = arith.constant 0 : index
    %c0_1150 = arith.constant 0 : index
    %c195_1151 = arith.constant 195 : index
    %c0_1152 = arith.constant 0 : index
    %795 = vector.load %arg5[%c0_1149, %c0_1150, %c195_1151, %c0_1152] : memref<1x1x196x768xf32, #tpu.memory_space<vmem>>, vector<1x1x1x768xf32>
    %796 = vector.shape_cast %795 : vector<1x1x1x768xf32> to vector<1x768xf32>
    %c0_1153 = arith.constant 0 : index
    %c3_1154 = arith.constant 3 : index
    %c195_1155 = arith.constant 195 : index
    %c0_1156 = arith.constant 0 : index
    %797 = vector.load %arg6[%c0_1153, %c3_1154, %c195_1155, %c0_1156] : memref<1x4x196x768xf32, #tpu.memory_space<vmem>>, vector<1x1x1x768xf32>
    %798 = vector.shape_cast %797 : vector<1x1x1x768xf32> to vector<1x768xf32>
    %799 = vector.shape_cast %796 : vector<1x768xf32> to vector<1x1x1x768xf32>
    tpu.vector_store %arg6[%c0_1153, %c3_1154, %c195_1155, %c0_1156], %799 {strides = array<i32>} : memref<1x4x196x768xf32, #tpu.memory_space<vmem>>, vector<1x1x1x768xf32>,
    return
  }
  func.func @transform_0(%arg0: i32, %arg1: i32) -> (i32, i32, i32, i32) {
    %c4_i32 = arith.constant 4 : i32
    %0 = arith.muli %c4_i32, %arg1 : i32
    %c0_i32 = arith.constant 0 : i32
    %1 = arith.addi %0, %c0_i32 : i32
    %c0_i32_0 = arith.constant 0 : i32
    %c0_i32_1 = arith.constant 0 : i32
    %c0_i32_2 = arith.constant 0 : i32
    return %arg0, %1, %c0_i32_0, %c0_i32_1 : i32, i32, i32, i32
  }
  func.func @transform_1(%arg0: i32, %arg1: i32) -> (i32, i32, i32, i32) {
    %c4_i32 = arith.constant 4 : i32
    %0 = arith.muli %c4_i32, %arg1 : i32
    %c1_i32 = arith.constant 1 : i32
    %1 = arith.addi %0, %c1_i32 : i32
    %c0_i32 = arith.constant 0 : i32
    %c0_i32_0 = arith.constant 0 : i32
    %c0_i32_1 = arith.constant 0 : i32
    return %arg0, %1, %c0_i32, %c0_i32_0 : i32, i32, i32, i32
  }
  func.func @transform_2(%arg0: i32, %arg1: i32) -> (i32, i32, i32, i32) {
    %c4_i32 = arith.constant 4 : i32
    %0 = arith.muli %c4_i32, %arg1 : i32
    %c2_i32 = arith.constant 2 : i32
    %1 = arith.addi %0, %c2_i32 : i32
    %c0_i32 = arith.constant 0 : i32
    %c0_i32_0 = arith.constant 0 : i32
    %c0_i32_1 = arith.constant 0 : i32
    return %arg0, %1, %c0_i32, %c0_i32_0 : i32, i32, i32, i32
  }
  func.func @transform_3(%arg0: i32, %arg1: i32) -> (i32, i32, i32, i32) {
    %c4_i32 = arith.constant 4 : i32
    %0 = arith.muli %c4_i32, %arg1 : i32
    %c3_i32 = arith.constant 3 : i32
    %1 = arith.addi %0, %c3_i32 : i32
    %c0_i32 = arith.constant 0 : i32
    %c0_i32_0 = arith.constant 0 : i32
    %c0_i32_1 = arith.constant 0 : i32
    return %arg0, %1, %c0_i32, %c0_i32_0 : i32, i32, i32, i32
  }
  func.func @transform_4(%arg0: i32, %arg1: i32) -> (i32, i32, i32, i32) {
    %c0_i32 = arith.constant 0 : i32
    %c0_i32_0 = arith.constant 0 : i32
    %c0_i32_1 = arith.constant 0 : i32
    return %arg0, %arg1, %c0_i32, %c0_i32_0 : i32, i32, i32, i32
  }
}

</mosaic_0001>

<bundles_post_ra>
// kernel: tpu_custom_call.1
= control target key start
LH: loop header
LB: loop body
LE: loop exit
PB: predicated region body
PF: predicated region fallthrough
CT: control target
= control target key end

     0   :  { %s7613_s15 = smov 0   ;;  %s7615_s16 = smov 0   ;;  %s10781_s0 = inlined_call_operand.vmem [shape: f32[2,8,196,768], index: 0, kind: input, shape index: {}]   ;;  %s10782_s1 = inlined_call_operand.vmem [shape: f32[2,8,196,768], index: 1, kind: input, shape index: {}]   ;;  %s10783_s2 = inlined_call_operand.vmem [shape: f32[2,8,196,768], index: 2, kind: input, shape index: {}]   ;;  %s10784_s3 = inlined_call_operand.vmem [shape: f32[2,8,196,768], index: 3, kind: input, shape index: {}]   ;;  %s10785_s4 = inlined_call_operand.vmem [shape: f32[2,8,196,768], index: 4, kind: output, shape index: {}]  }
   0x1   :  { %s7617_s17 = smov 0   ;;  %s7619_s18 = smov 0  }
   0x2   :  { %s7621_s19 = smov 0  }
   0x3 LB: > { %s23_s20 = sadd.s32 1, %s7578_s17  ;;  %s26_s21 = sadd.s32 1, %s7582_s18  ;;  %s7586_s19 = sphi %s7621_s19, %s14_s19   ;;  %s7582_s18 = sphi %s7619_s18, %s10794_s18   ;;  %s7578_s17 = sphi %s7617_s17, %s10793_s17   ;;  %s7574_s16 = sphi %s7615_s16, %s10792_s16   ;;  %s7570_s15 = sphi %s7613_s15, %s10791_s15  }
   0x4   : > { %p24_p0 = scmp.ge.s32.totalorder %s23_s20, 2  ;;  %p6452_p1 = scmp.ge.s32.totalorder %s7586_s19, 1 }
   0x5   : > { %p258_p2 = scmp.lt.s32.totalorder %s7586_s19, 5 }
   0x6   : > { %s10796_s20 = smov (%p24_p0, %s23_s20), 0  ;;  %s10798_s21 = smov (!%p24_p0, %s26_s21), %s7582_s18 }
   0x7   : > { %p259_p3 = pnand %p6452_p1, %p258_p2  ;;  %p28_p4 = scmp.ge.s32.totalorder %s10798_s21, 2 }
   0x8   : > { %s7643_s22 = sshll.u32 (!%p259_p3), %s7570_s15, 2  ;;  %p328_p5 = scmp.lt.s32.totalorder (!%p259_p3), %s7574_s16, 1 }
   0x9   : > { %s10800_s21 = smov (%p28_p4, %s10798_s21), 0  ;;  %262 = sbr.rel (%p259_p3) target bundleno = 1251 (0x4e3), region = 36 }
   0xa   : > { %p330_p6 = scmp.lt.s32.totalorder (!%p259_p3), %s7643_s22, 7  ;;  %s352_s26 = sadd.s32 (!%p259_p3), 2, %s7643_s22 }
   0xb   : > { %p7651_p7 = scmp.lt.s32.totalorder (!%p259_p3), %s352_s26, 7  ;;  %s365_s7 = sadd.s32 (!%p259_p3), 3, %s7643_s22 }
   0xc   : > { %p7661_p8 = scmp.lt.s32.totalorder (!%p259_p3), %s365_s7, 7  ;;  %s339_s12 = sadd.s32 (!%p259_p3), 1, %s7643_s22 }
   0xd   : > { %p7695_p9 = scmp.lt.s32.totalorder (!%p259_p3), %s339_s12, 7 }
   0xe   : > { %s10802_s16 = smov (!%p328_p5, %s7574_s16), 1  ;;  %vm442_vm0 = vcmask 1043456   ;;  %s10804_s26 = smov (!%p7651_p7, %s352_s26), 7  ;;  %v525_v53 = vlaneseq  ;;  %vm570_vm2 = vcmask 1042432   ;;  %vm952_vm3 = vcmask 1045504  }
   0xf   : > { %s331_s23 = scalar_select %p330_p6, %s7643_s22, 7  ;;  %vm1019_vm4 = vcmask 1046528   ;;  %vm1110_vm5 = vcmask 1041408   ;;  %vm1243_vm6 = vcmask 1044480   ;;  %vm1565_vm7 = vcmask 1040384  }
  0x10   : > { %s7647_s24 = smul.u32 1200, %s10802_s16  ;;  %s10806_s7 = smov (!%p7661_p8, %s365_s7), 7  ;;  %vm7753_vm1 = vcmp.lt.s32.totalorder %v525_v53, 768 }
  0x11   : > { %s7503_s25 = smul.u32 150, %s331_s23  ;;  %s10808_s12 = smov (!%p7695_p9, %s339_s12), 7 }
  0x12   : > { %s7506_s13 = smul.u32 150, %s10804_s26 }
  0x13   : > { %s334_s27 = sadd.s32 %s7647_s24, %s7503_s25  ;;  %s7507_s14 = smul.u32 150, %s10806_s7 }
  0x14   : > { %s6454_s28 = sshll.u32 %s334_s27, 3  ;;  %s7689_s15 = sadd.s32 %s7506_s13, %s7647_s24 }
  0x15   : > { %s7658_s6 = scalar_lea.vmem %s10781_s0, %s6454_s28  ;;  %s7670_s11 = scalar_lea.vmem %s10785_s4, %s6454_s28 }
  0x16   : > { %v388_v0 = vld [vmem:[%s7658_s6 + $0xf0] sm:$0xe0]  ;;  %v389_v1 = vld [vmem:[%s7658_s6 + $0xf8] sm:$0xe0]  ;;  %v390_v4 = vld [vmem:[%s7658_s6 + $0x100] sm:$0xe0]  ;;  %s7700_s23 = sadd.s32 %s7507_s14, %s7647_s24 }
  0x17   : > { %v400_v2 = vrot.slane %v388_v0, 5  ;;  %v401_v3 = vrot.slane %v389_v1, 5  ;;  %v402_v5 = vrot.slane %v390_v4, 5  ;;  %v391_v6 = vld [vmem:[%s7658_s6 + $0x108] sm:$0xe0]  ;;  %s7505_s22 = smul.u32 150, %s10808_s12 }
  0x18   : > { %v392_v7 = vld [vmem:[%s7658_s6 + $0x110] sm:$0xe0]  ;;  %v403_v8 = vrot.slane %v391_v6, 5  ;;  %v393_v10 = vld [vmem:[%s7658_s6 + $0x118] sm:$0xe0]  ;;  %s6458_s29 = sshll.u32 %s7689_s15, 3 }
  0x19   : > { %412 = vst [vmem:[%s7670_s11] sm:$0x7] %v400_v2  ;;  %v404_v9 = vrot.slane %v392_v7, 5  ;;  %v405_v11 = vrot.slane %v393_v10, 5  ;;  %v418_v12 = vld [vmem:[%s7658_s6 + $0xf0] sm:$0x80]  ;;  %s346_s25 = sadd.s32 %s7505_s22, %s7647_s24  ;;  %s7906_s7 = scalar_lea.vmem %s10783_s2, %s6458_s29 }
  0x1a   : > { %413 = vst [vmem:[%s7670_s11 + $0x8] sm:$0x7] %v401_v3  ;;  %v424_v13 = vld [vmem:[%s7658_s6 + $0x120] sm:$0x3]  ;;  %v443_v14 = vrot.slane %v418_v12, 4  ;;  %s6456_s26 = sshll.u32 %s346_s25, 3 }
  0x1b   : > { %414 = vst [vmem:[%s7670_s11 + $0x10] sm:$0x7] %v402_v5  ;;  %v444_v15 = vrot.slane %v424_v13, 4  ;;  %v419_v16 = vld [vmem:[%s7658_s6 + $0xf8] sm:$0x80]  ;;  %s7745_s28 = scalar_lea.vmem %s10782_s1, %s6456_s26  ;;  %s6460_s8 = sshll.u32 %s7700_s23, 3 }
  0x1c   : > { %415 = vst [vmem:[%s7670_s11 + $0x18] sm:$0x7] %v403_v8  ;;  %v425_v17 = vld [vmem:[%s7658_s6 + $0x128] sm:$0x3]  ;;  %v446_v18 = vrot.slane %v419_v16, 4  ;;  %s8162_s12 = scalar_lea.vmem %s10784_s3, %s6460_s8 }
  0x1d   : > { %416 = vst [vmem:[%s7670_s11 + $0x20] sm:$0x7] %v404_v9  ;;  %v445_v19 = vsel %vm442_vm0, %v443_v14, %v444_v15  ;;  %v447_v20 = vrot.slane %v425_v17, 4  ;;  %v420_v21 = vld [vmem:[%s7658_s6 + $0x100] sm:$0x80] }
  0x1e   : > { %417 = vst [vmem:[%s7670_s11 + $0x28] sm:$0x7] %v405_v11  ;;  %v426_v22 = vld [vmem:[%s7658_s6 + $0x130] sm:$0x3]  ;;  %v449_v23 = vrot.slane %v420_v21, 4 }
  0x1f   : > { %467 = vst [vmem:[%s7670_s11] sm:$0x38] %v445_v19  ;;  %v448_v24 = vsel %vm442_vm0, %v446_v18, %v447_v20  ;;  %v450_v25 = vrot.slane %v426_v22, 4  ;;  %v421_v26 = vld [vmem:[%s7658_s6 + $0x108] sm:$0x80]  ;;  %v427_v27 = vld [vmem:[%s7658_s6 + $0x138] sm:$0x3] }
  0x20   : > { %468 = vst [vmem:[%s7670_s11 + $0x8] sm:$0x38] %v448_v24  ;;  %v452_v28 = vrot.slane %v421_v26, 4  ;;  %v453_v29 = vrot.slane %v427_v27, 4  ;;  %v422_v30 = vld [vmem:[%s7658_s6 + $0x110] sm:$0x80] }
  0x21   : > { %v451_v31 = vsel %vm442_vm0, %v449_v23, %v450_v25  ;;  %v428_v32 = vld [vmem:[%s7658_s6 + $0x140] sm:$0x3]  ;;  %v455_v33 = vrot.slane %v422_v30, 4  ;;  %v423_v34 = vld [vmem:[%s7658_s6 + $0x118] sm:$0x80] }
  0x22   : > { %469 = vst [vmem:[%s7670_s11 + $0x10] sm:$0x38] %v451_v31  ;;  %v454_v35 = vsel %vm442_vm0, %v452_v28, %v453_v29  ;;  %v456_v36 = vrot.slane %v428_v32, 4  ;;  %v429_v37 = vld [vmem:[%s7658_s6 + $0x148] sm:$0x3]  ;;  %v458_v38 = vrot.slane %v423_v34, 4 }
  0x23   : > { %470 = vst [vmem:[%s7670_s11 + $0x18] sm:$0x38] %v454_v35  ;;  %v459_v39 = vrot.slane %v429_v37, 4  ;;  %v473_v40 = vld [vmem:[%s7658_s6 + $0x150] sm:$0x70] }
  0x24   : > { %v457_v41 = vsel %vm442_vm0, %v455_v33, %v456_v36  ;;  %v485_v42 = vrot.slane %v473_v40, 6  ;;  %v474_v43 = vld [vmem:[%s7658_s6 + $0x158] sm:$0x70]  ;;  %v475_v44 = vld [vmem:[%s7658_s6 + $0x160] sm:$0x70] }
  0x25   : > { %471 = vst [vmem:[%s7670_s11 + $0x20] sm:$0x38] %v457_v41  ;;  %v460_v45 = vsel %vm442_vm0, %v458_v38, %v459_v39  ;;  %v486_v46 = vrot.slane %v474_v43, 6  ;;  %v476_v47 = vld [vmem:[%s7658_s6 + $0x168] sm:$0x70]  ;;  %v487_v48 = vrot.slane %v475_v44, 6 }
  0x26   : > { %472 = vst [vmem:[%s7670_s11 + $0x28] sm:$0x38] %v460_v45  ;;  %v477_v49 = vld [vmem:[%s7658_s6 + $0x170] sm:$0x70]  ;;  %v488_v50 = vrot.slane %v476_v47, 6 }
  0x27   : > { %497 = vst [vmem:[%s7670_s11] sm:$0xc0] %v485_v42  ;;  %v478_v51 = vld [vmem:[%s7658_s6 + $0x178] sm:$0x70]  ;;  %v489_v52 = vrot.slane %v477_v49, 6  ;;  %v509_v55 = vld [vmem:[%s7658_s6 + $0x1b0] sm:$0x3e] }
  0x28   : > { %503 = vst [vmem:[%s7670_s11 + $0x30] sm:$0x1] %v485_v42  ;;  %v490_v54 = vrot.slane %v478_v51, 6  ;;  %v510_v56 = vld [vmem:[%s7658_s6 + $0x1b8] sm:$0x3e] }
  0x29   : > { %498 = vst [vmem:[%s7670_s11 + $0x8] sm:$0xc0] %v486_v46  ;;  %v511_v57 = vld [vmem:[%s7658_s6 + $0x1c0] sm:$0x3e]  ;;  %v512_v60 = vld [vmem:[%s7658_s6 + $0x1c8] sm:$0x3e] }
  0x2a   : > { %504 = vst [vmem:[%s7670_s11 + $0x38] sm:$0x1] %v486_v46  ;;  %v6463_v58 = vld [vmem:[%s7658_s6 + $0x245] ss:$8 sm:$0xf] }
  0x2b   : > { %499 = vst [vmem:[%s7670_s11 + $0x10] sm:$0xc0] %v487_v48  ;;  %v6464_v61 = vld [vmem:[%s7658_s6 + $0x245] ss:$8 sm:$0x30] }
  0x2c   : > { %505 = vst [vmem:[%s7670_s11 + $0x40] sm:$0x1] %v487_v48  ;;  %v513_v62 = vld [vmem:[%s7658_s6 + $0x1d0] sm:$0x3e]  ;;  %v546_v1 = vld [vmem:[%s7745_s28 + $0x90] sm:$0xc0]  ;;  %v524_v8 = vor.u32 %v6464_v61, %v6463_v58 }
  0x2d   : > { %500 = vst [vmem:[%s7670_s11 + $0x18] sm:$0xc0] %v488_v50  ;;  %v6467_v63 = vld [vmem:[%s7658_s6 + $0x247] ss:$8 sm:$0xf]  ;;  %v571_v10 = vrot.slane %v546_v1, 5 }
  0x2e   : > { %506 = vst [vmem:[%s7670_s11 + $0x48] sm:$0x1] %v488_v50  ;;  %v6468_v0 = vld [vmem:[%s7658_s6 + $0x247] ss:$8 sm:$0x30] }
  0x2f   : > { %501 = vst [vmem:[%s7670_s11 + $0x20] sm:$0xc0] %v489_v52  ;;  %v514_v2 = vld [vmem:[%s7658_s6 + $0x1d8] sm:$0x3e]  ;;  %v552_v3 = vld [vmem:[%s7745_s28 + $0xc0] sm:$0x3]  ;;  %v535_v14 = vor.u32 %v6468_v0, %v6467_v63 }
  0x30   : > { %507 = vst [vmem:[%s7670_s11 + $0x50] sm:$0x1] %v489_v52  ;;  %v547_v4 = vld [vmem:[%s7745_s28 + $0x98] sm:$0xc0]  ;;  %v553_v6 = vld [vmem:[%s7745_s28 + $0xc8] sm:$0x3] }
  0x31   : > { %502 = vst [vmem:[%s7670_s11 + $0x28] sm:$0xc0] %v490_v54  ;;  %v6471_v5 = vld [vmem:[%s7658_s6 + $0x271] ss:$8 sm:$0xf]  ;;  %v572_v11 = vrot.slane %v552_v3, 5 }
  0x32   : > { %508 = vst [vmem:[%s7670_s11 + $0x58] sm:$0x1] %v490_v54  ;;  %v548_v7 = vld [vmem:[%s7745_s28 + $0xa0] sm:$0xc0]  ;;  %v574_v12 = vrot.slane %v547_v4, 5  ;;  %v575_v15 = vrot.slane %v553_v6, 5 }
  0x33   : > { %515 = vst [vmem:[%s7670_s11 + $0x30] sm:$0x3e] %v509_v55  ;;  %v6472_v9 = vld [vmem:[%s7658_s6 + $0x271] ss:$8 sm:$0x30]  ;;  %v577_v16 = vrot.slane %v548_v7, 5  ;;  %v573_v27 = vsel %vm570_vm2, %v571_v10, %v572_v11 }
  0x34   : > { %516 = vst [vmem:[%s7670_s11 + $0x38] sm:$0x3e] %v510_v56  ;;  %v554_v13 = vld [vmem:[%s7745_s28 + $0xd0] sm:$0x3]  ;;  %v549_v17 = vld [vmem:[%s7745_s28 + $0xa8] sm:$0xc0]  ;;  %v542_v20 = vor.u32 %v6472_v9, %v6471_v5  ;;  %v576_v30 = vsel %vm570_vm2, %v574_v12, %v575_v15 }
  0x35   : > { %517 = vst [vmem:[%s7670_s11 + $0x40] sm:$0x3e] %v511_v57  ;;  %v555_v18 = vld [vmem:[%s7745_s28 + $0xd8] sm:$0x3]  ;;  %v550_v19 = vld [vmem:[%s7745_s28 + $0xb0] sm:$0xc0] }
  0x36   : > { %518 = vst [vmem:[%s7670_s11 + $0x48] sm:$0x3e] %v512_v60  ;;  %v578_v21 = vrot.slane %v554_v13, 5  ;;  %v556_v22 = vld [vmem:[%s7745_s28 + $0xe0] sm:$0x3]  ;;  %v580_v23 = vrot.slane %v549_v17, 5 }
  0x37   : > { %519 = vst [vmem:[%s7670_s11 + $0x50] sm:$0x3e] %v513_v62  ;;  %v551_v24 = vld [vmem:[%s7745_s28 + $0xb8] sm:$0xc0]  ;;  %v581_v25 = vrot.slane %v555_v18, 5  ;;  %v583_v28 = vrot.slane %v550_v19, 5 }
  0x38   : > { %520 = vst [vmem:[%s7670_s11 + $0x58] sm:$0x3e] %v514_v2  ;;  %v557_v26 = vld [vmem:[%s7745_s28 + $0xe8] sm:$0x3]  ;;  %v584_v29 = vrot.slane %v556_v22, 5  ;;  %v586_v31 = vrot.slane %v551_v24, 5  ;;  %v579_v33 = vsel %vm570_vm2, %v577_v16, %v578_v21 }
  0x39   : > { %6465 = vst.msk [vmem:[%s7670_s11 + $0x36] ss:$8 sm:$0xf] %vm7753_vm1, %v524_v8  ;;  %v587_v32 = vrot.slane %v557_v26, 5  ;;  %v601_v34 = vld [vmem:[%s7745_s28 + $0xc0] sm:$0x1e]  ;;  %v582_v35 = vsel %vm570_vm2, %v580_v23, %v581_v25 }
  0x3a   : > { %6466 = vst.msk [vmem:[%s7670_s11 + $0x36] ss:$8 sm:$0x30] %vm7753_vm1, %v524_v8  ;;  %v602_v36 = vld [vmem:[%s7745_s28 + $0xc8] sm:$0x1e]  ;;  %v585_v38 = vsel %vm570_vm2, %v583_v28, %v584_v29  ;;  %v613_v40 = vrot.slane %v601_v34, 4 }
  0x3b   : > { %6469 = vst.msk [vmem:[%s7670_s11 + $0x37] ss:$8 sm:$0xf] %vm7753_vm1, %v535_v14  ;;  %v603_v37 = vld [vmem:[%s7745_s28 + $0xd0] sm:$0x1e]  ;;  %v588_v39 = vsel %vm570_vm2, %v586_v31, %v587_v32  ;;  %v614_v41 = vrot.slane %v602_v36, 4 }
  0x3c   : > { %6470 = vst.msk [vmem:[%s7670_s11 + $0x37] ss:$8 sm:$0x30] %vm7753_vm1, %v535_v14  ;;  %v615_v42 = vrot.slane %v603_v37, 4  ;;  %v604_v43 = vld [vmem:[%s7745_s28 + $0xd8] sm:$0x1e] }
  0x3d   : > { %6473 = vst.msk [vmem:[%s7670_s11 + $0x60] ss:$8 sm:$0xf] %vm7753_vm1, %v542_v20  ;;  %v605_v44 = vld [vmem:[%s7745_s28 + $0xe0] sm:$0x1e]  ;;  %v616_v50 = vrot.slane %v604_v43, 4 }
  0x3e   : > { %6474 = vst.msk [vmem:[%s7670_s11 + $0x60] ss:$8 sm:$0x30] %vm7753_vm1, %v542_v20  ;;  %v606_v45 = vld [vmem:[%s7745_s28 + $0xe8] sm:$0x1e]  ;;  %v617_v51 = vrot.slane %v605_v44, 4 }
  0x3f   : > { %595 = vst [vmem:[%s7670_s11 + $0x60] sm:$0x1e] %v573_v27  ;;  %v637_v46 = vld [vmem:[%s7745_s28 + $0xf0] sm:$0xe0]  ;;  %v643_v47 = vld [vmem:[%s7745_s28 + $0x120] sm:$0x3] }
  0x40   : > { %596 = vst [vmem:[%s7670_s11 + $0x68] sm:$0x1e] %v576_v30  ;;  %v638_v48 = vld [vmem:[%s7745_s28 + $0xf8] sm:$0xe0]  ;;  %v644_v49 = vld [vmem:[%s7745_s28 + $0x128] sm:$0x3] }
  0x41   : > { %597 = vst [vmem:[%s7670_s11 + $0x70] sm:$0x1e] %v579_v33  ;;  %v618_v52 = vrot.slane %v606_v45, 4  ;;  %v661_v53 = vrot.slane %v637_v46, 4  ;;  %v662_v54 = vrot.slane %v643_v47, 4  ;;  %v664_v55 = vrot.slane %v638_v48, 4 }
  0x42   : > { %598 = vst [vmem:[%s7670_s11 + $0x78] sm:$0x1e] %v582_v35  ;;  %v665_v56 = vrot.slane %v644_v49, 4  ;;  %v639_v57 = vld [vmem:[%s7745_s28 + $0x100] sm:$0xe0] }
  0x43   : > { %599 = vst [vmem:[%s7670_s11 + $0x80] sm:$0x1e] %v585_v38  ;;  %v645_v58 = vld [vmem:[%s7745_s28 + $0x130] sm:$0x3]  ;;  %v640_v60 = vld [vmem:[%s7745_s28 + $0x108] sm:$0xe0]  ;;  %v663_v6 = vsel %vm442_vm0, %v661_v53, %v662_v54 }
  0x44   : > { %600 = vst [vmem:[%s7670_s11 + $0x88] sm:$0x1e] %v588_v39  ;;  %v646_v61 = vld [vmem:[%s7745_s28 + $0x138] sm:$0x3]  ;;  %v641_v62 = vld [vmem:[%s7745_s28 + $0x110] sm:$0xe0]  ;;  %v666_v9 = vsel %vm442_vm0, %v664_v55, %v665_v56 }
  0x45   : > { %625 = vst [vmem:[%s7670_s11 + $0x60] sm:$0xe0] %v613_v40  ;;  %v647_v63 = vld [vmem:[%s7745_s28 + $0x140] sm:$0x3]  ;;  %v667_v0 = vrot.slane %v639_v57, 4  ;;  %v668_v1 = vrot.slane %v645_v58, 4 }
  0x46   : > { %631 = vst [vmem:[%s7670_s11 + $0x90] sm:$0x1] %v613_v40  ;;  %v642_v2 = vld [vmem:[%s7745_s28 + $0x118] sm:$0xe0]  ;;  %v670_v3 = vrot.slane %v640_v60, 4  ;;  %v671_v4 = vrot.slane %v646_v61, 4 }
  0x47   : > { %626 = vst [vmem:[%s7670_s11 + $0x68] sm:$0xe0] %v614_v41  ;;  %v648_v5 = vld [vmem:[%s7745_s28 + $0x148] sm:$0x3]  ;;  %v673_v7 = vrot.slane %v641_v62, 4  ;;  %v674_v8 = vrot.slane %v647_v63, 4  ;;  %v669_v12 = vsel %vm442_vm0, %v667_v0, %v668_v1 }
  0x48   : > { %632 = vst [vmem:[%s7670_s11 + $0x98] sm:$0x1] %v614_v41  ;;  %v676_v10 = vrot.slane %v642_v2, 4  ;;  %v677_v11 = vrot.slane %v648_v5, 4  ;;  %v691_v13 = vld [vmem:[%s7745_s28 + $0x150] sm:$0xf8]  ;;  %v672_v14 = vsel %vm442_vm0, %v670_v3, %v671_v4 }
  0x49   : > { %627 = vst [vmem:[%s7670_s11 + $0x70] sm:$0xe0] %v615_v42  ;;  %v675_v15 = vsel %vm442_vm0, %v673_v7, %v674_v8  ;;  %v692_v16 = vld [vmem:[%s7745_s28 + $0x158] sm:$0xf8]  ;;  %v703_v18 = vrot.slane %v691_v13, 5 }
  0x4a   : > { %633 = vst [vmem:[%s7670_s11 + $0xa0] sm:$0x1] %v615_v42  ;;  %v678_v17 = vsel %vm442_vm0, %v676_v10, %v677_v11  ;;  %v693_v19 = vld [vmem:[%s7745_s28 + $0x160] sm:$0xf8]  ;;  %v704_v20 = vrot.slane %v692_v16, 5 }
  0x4b   : > { %628 = vst [vmem:[%s7670_s11 + $0x78] sm:$0xe0] %v616_v50  ;;  %v694_v21 = vld [vmem:[%s7745_s28 + $0x168] sm:$0xf8]  ;;  %v705_v22 = vrot.slane %v693_v19, 5 }
  0x4c   : > { %634 = vst [vmem:[%s7670_s11 + $0xa8] sm:$0x1] %v616_v50  ;;  %v695_v23 = vld [vmem:[%s7745_s28 + $0x170] sm:$0xf8]  ;;  %v706_v24 = vrot.slane %v694_v21, 5 }
  0x4d   : > { %629 = vst [vmem:[%s7670_s11 + $0x80] sm:$0xe0] %v617_v51  ;;  %v696_v25 = vld [vmem:[%s7745_s28 + $0x178] sm:$0xf8]  ;;  %v727_v26 = vld [vmem:[%s7745_s28 + $0x1b0] sm:$0x7f] }
  0x4e   : > { %635 = vst [vmem:[%s7670_s11 + $0xb0] sm:$0x1] %v617_v51  ;;  %v707_v27 = vrot.slane %v695_v23, 5  ;;  %v708_v28 = vrot.slane %v696_v25, 5  ;;  %v739_v29 = vrot.slane %v727_v26, 5 }
  0x4f   : > { %630 = vst [vmem:[%s7670_s11 + $0x88] sm:$0xe0] %v618_v52  ;;  %v728_v30 = vld [vmem:[%s7745_s28 + $0x1b8] sm:$0x7f]  ;;  %v729_v31 = vld [vmem:[%s7745_s28 + $0x1c0] sm:$0x7f] }
  0x50   : > { %636 = vst [vmem:[%s7670_s11 + $0xb8] sm:$0x1] %v618_v52  ;;  %v730_v32 = vld [vmem:[%s7745_s28 + $0x1c8] sm:$0x7f]  ;;  %v731_v33 = vld [vmem:[%s7745_s28 + $0x1d0] sm:$0x7f] }
  0x51   : > { %685 = vst [vmem:[%s7670_s11 + $0x90] sm:$0x3e] %v663_v6  ;;  %v732_v34 = vld [vmem:[%s7745_s28 + $0x1d8] sm:$0x7f]  ;;  %v763_v35 = vld [vmem:[%s7745_s28 + $0x1e0] sm:$0x80] }
  0x52   : > { %686 = vst [vmem:[%s7670_s11 + $0x98] sm:$0x3e] %v666_v9  ;;  %v769_v36 = vld [vmem:[%s7745_s28 + $0x210] sm:$0xf]  ;;  %v740_v37 = vrot.slane %v728_v30, 5  ;;  %v741_v38 = vrot.slane %v729_v31, 5 }
  0x53   : > { %687 = vst [vmem:[%s7670_s11 + $0xa0] sm:$0x3e] %v669_v12  ;;  %v742_v39 = vrot.slane %v730_v32, 5  ;;  %v743_v40 = vrot.slane %v731_v33, 5  ;;  %v744_v41 = vrot.slane %v732_v34, 5  ;;  %v787_v42 = vrot.slane %v763_v35, 5 }
  0x54   : > { %688 = vst [vmem:[%s7670_s11 + $0xa8] sm:$0x3e] %v672_v14  ;;  %v788_v43 = vrot.slane %v769_v36, 5  ;;  %v764_v44 = vld [vmem:[%s7745_s28 + $0x1e8] sm:$0x80] }
  0x55   : > { %689 = vst [vmem:[%s7670_s11 + $0xb0] sm:$0x3e] %v675_v15  ;;  %v770_v45 = vld [vmem:[%s7745_s28 + $0x218] sm:$0xf]  ;;  %v765_v46 = vld [vmem:[%s7745_s28 + $0x1f0] sm:$0x80] }
  0x56   : > { %690 = vst [vmem:[%s7670_s11 + $0xb8] sm:$0x3e] %v678_v17  ;;  %v771_v47 = vld [vmem:[%s7745_s28 + $0x220] sm:$0xf]  ;;  %v766_v48 = vld [vmem:[%s7745_s28 + $0x1f8] sm:$0x80]  ;;  %v789_v1 = vsel %vm570_vm2, %v787_v42, %v788_v43 }
  0x57   : > { %715 = vst [vmem:[%s7670_s11 + $0x90] sm:$0xc0] %v703_v18  ;;  %v772_v49 = vld [vmem:[%s7745_s28 + $0x228] sm:$0xf]  ;;  %v767_v50 = vld [vmem:[%s7745_s28 + $0x200] sm:$0x80] }
  0x58   : > { %721 = vst [vmem:[%s7670_s11 + $0xc0] sm:$0x7] %v703_v18  ;;  %v773_v51 = vld [vmem:[%s7745_s28 + $0x230] sm:$0xf]  ;;  %v790_v52 = vrot.slane %v764_v44, 5  ;;  %v791_v53 = vrot.slane %v770_v45, 5 }
  0x59   : > { %716 = vst [vmem:[%s7670_s11 + $0x98] sm:$0xc0] %v704_v20  ;;  %v768_v54 = vld [vmem:[%s7745_s28 + $0x208] sm:$0x80]  ;;  %v793_v55 = vrot.slane %v765_v46, 5  ;;  %v794_v56 = vrot.slane %v771_v47, 5 }
  0x5a   : > { %722 = vst [vmem:[%s7670_s11 + $0xc8] sm:$0x7] %v704_v20  ;;  %v774_v57 = vld [vmem:[%s7745_s28 + $0x238] sm:$0xf]  ;;  %v796_v58 = vrot.slane %v766_v48, 5  ;;  %v797_v60 = vrot.slane %v772_v49, 5  ;;  %v792_v4 = vsel %vm570_vm2, %v790_v52, %v791_v53 }
  0x5b   : > { %717 = vst [vmem:[%s7670_s11 + $0xa0] sm:$0xc0] %v705_v22  ;;  %v799_v61 = vrot.slane %v767_v50, 5  ;;  %v800_v62 = vrot.slane %v773_v51, 5  ;;  %v802_v63 = vrot.slane %v768_v54, 5  ;;  %v803_v2 = vrot.slane %v774_v57, 5 }
  0x5c   : > { %723 = vst [vmem:[%s7670_s11 + $0xd0] sm:$0x7] %v705_v22  ;;  %v6475_v0 = vld [vmem:[%s7745_s28 + $0x2a2] ss:$8 sm:$0xf]  ;;  %v795_v7 = vsel %vm570_vm2, %v793_v55, %v794_v56  ;;  %v798_v11 = vsel %vm570_vm2, %v796_v58, %v797_v60 }
  0x5d   : > { %718 = vst [vmem:[%s7670_s11 + $0xa8] sm:$0xc0] %v706_v24  ;;  %v6476_v3 = vld [vmem:[%s7745_s28 + $0x2a2] ss:$8 sm:$0x30]  ;;  %v801_v13 = vsel %vm570_vm2, %v799_v61, %v800_v62  ;;  %v804_v14 = vsel %vm570_vm2, %v802_v63, %v803_v2 }
  0x5e   : > { %724 = vst [vmem:[%s7670_s11 + $0xd8] sm:$0x7] %v706_v24  ;;  %v838_v5 = vld [vmem:[%s7906_s7 + $0x30] sm:$0x80]  ;;  %v844_v6 = vld [vmem:[%s7906_s7 + $0x60] sm:$0xf]  ;;  %v820_v15 = vor.u32 %v6476_v3, %v6475_v0 }
  0x5f   : > { %719 = vst [vmem:[%s7670_s11 + $0xb0] sm:$0xc0] %v707_v27  ;;  %v6479_v8 = vld [vmem:[%s7745_s28 + $0x2a5] ss:$8 sm:$0xf]  ;;  %v862_v18 = vrot.slane %v838_v5, 5 }
  0x60   : > { %725 = vst [vmem:[%s7670_s11 + $0xe0] sm:$0x7] %v707_v27  ;;  %v839_v9 = vld [vmem:[%s7906_s7 + $0x38] sm:$0x80]  ;;  %v845_v10 = vld [vmem:[%s7906_s7 + $0x68] sm:$0xf] }
  0x61   : > { %720 = vst [vmem:[%s7670_s11 + $0xb8] sm:$0xc0] %v708_v28  ;;  %v6480_v12 = vld [vmem:[%s7745_s28 + $0x2a5] ss:$8 sm:$0x30]  ;;  %v863_v19 = vrot.slane %v844_v6, 5 }
  0x62   : > { %726 = vst [vmem:[%s7670_s11 + $0xe8] sm:$0x7] %v708_v28  ;;  %v6483_v16 = vld [vmem:[%s7745_s28 + $0x2d0] ss:$8 sm:$0xf]  ;;  %v865_v20 = vrot.slane %v839_v9, 5  ;;  %v827_v24 = vor.u32 %v6480_v12, %v6479_v8 }
  0x63   : > { %751 = vst [vmem:[%s7670_s11 + $0xc0] sm:$0xf8] %v739_v29  ;;  %v6484_v17 = vld [vmem:[%s7745_s28 + $0x2d0] ss:$8 sm:$0x30]  ;;  %v866_v21 = vrot.slane %v845_v10, 5  ;;  %v864_v36 = vsel %vm570_vm2, %v862_v18, %v863_v19 }
  0x64   : > { %757 = vst [vmem:[%s7670_s11 + $0xf0] sm:$0x3] %v739_v29  ;;  %v840_v22 = vld [vmem:[%s7906_s7 + $0x40] sm:$0x80]  ;;  %v846_v23 = vld [vmem:[%s7906_s7 + $0x70] sm:$0xf]  ;;  %v834_v29 = vor.u32 %v6484_v17, %v6483_v16 }
  0x65   : > { %752 = vst [vmem:[%s7670_s11 + $0xc8] sm:$0xf8] %v740_v37  ;;  %v841_v25 = vld [vmem:[%s7906_s7 + $0x48] sm:$0x80]  ;;  %v847_v26 = vld [vmem:[%s7906_s7 + $0x78] sm:$0xf] }
  0x66   : > { %758 = vst [vmem:[%s7670_s11 + $0xf8] sm:$0x3] %v740_v37  ;;  %v842_v27 = vld [vmem:[%s7906_s7 + $0x50] sm:$0x80]  ;;  %v848_v28 = vld [vmem:[%s7906_s7 + $0x80] sm:$0xf] }
  0x67   : > { %753 = vst [vmem:[%s7670_s11 + $0xd0] sm:$0xf8] %v741_v38  ;;  %v868_v30 = vrot.slane %v840_v22, 5  ;;  %v843_v31 = vld [vmem:[%s7906_s7 + $0x58] sm:$0x80]  ;;  %v869_v32 = vrot.slane %v846_v23, 5 }
  0x68   : > { %759 = vst [vmem:[%s7670_s11 + $0x100] sm:$0x3] %v741_v38  ;;  %v849_v33 = vld [vmem:[%s7906_s7 + $0x88] sm:$0xf]  ;;  %v871_v34 = vrot.slane %v841_v25, 5  ;;  %v872_v35 = vrot.slane %v847_v26, 5 }
  0x69   : > { %754 = vst [vmem:[%s7670_s11 + $0xd8] sm:$0xf8] %v742_v39  ;;  %v874_v37 = vrot.slane %v842_v27, 5  ;;  %v875_v38 = vrot.slane %v848_v28, 5  ;;  %v870_v42 = vsel %vm570_vm2, %v868_v30, %v869_v32  ;;  %v892_v43 = vld [vmem:[%s7906_s7 + $0x60] sm:$0xf8] }
  0x6a   : > { %760 = vst [vmem:[%s7670_s11 + $0x108] sm:$0x3] %v742_v39  ;;  %v867_v39 = vsel %vm570_vm2, %v865_v20, %v866_v21  ;;  %v873_v44 = vsel %vm570_vm2, %v871_v34, %v872_v35  ;;  %v893_v46 = vld [vmem:[%s7906_s7 + $0x68] sm:$0xf8]  ;;  %v904_v48 = vrot.slane %v892_v43, 4 }
  0x6b   : > { %755 = vst [vmem:[%s7670_s11 + $0xe0] sm:$0xf8] %v743_v40  ;;  %v876_v45 = vsel %vm570_vm2, %v874_v37, %v875_v38  ;;  %v894_v49 = vld [vmem:[%s7906_s7 + $0x70] sm:$0xf8]  ;;  %v905_v50 = vrot.slane %v893_v46, 4 }
  0x6c   : > { %761 = vst [vmem:[%s7670_s11 + $0x110] sm:$0x3] %v743_v40  ;;  %v877_v40 = vrot.slane %v843_v31, 5  ;;  %v895_v51 = vld [vmem:[%s7906_s7 + $0x78] sm:$0xf8]  ;;  %v906_v52 = vrot.slane %v894_v49, 4 }
  0x6d   : > { %756 = vst [vmem:[%s7670_s11 + $0xe8] sm:$0xf8] %v744_v41  ;;  %v896_v53 = vld [vmem:[%s7906_s7 + $0x80] sm:$0xf8]  ;;  %v907_v54 = vrot.slane %v895_v51, 4 }
  0x6e   : > { %762 = vst [vmem:[%s7670_s11 + $0x118] sm:$0x3] %v744_v41  ;;  %v878_v41 = vrot.slane %v849_v33, 5  ;;  %v897_v55 = vld [vmem:[%s7906_s7 + $0x88] sm:$0xf8]  ;;  %v908_v58 = vrot.slane %v896_v53, 4 }
  0x6f   : > { %811 = vst [vmem:[%s7670_s11 + $0xf0] sm:$0x7c] %v789_v1  ;;  %v928_v56 = vld [vmem:[%s7906_s7 + $0x90] sm:$0xc0]  ;;  %v934_v57 = vld [vmem:[%s7906_s7 + $0xc0] sm:$0x1f] }
  0x70   : > { %812 = vst [vmem:[%s7670_s11 + $0xf8] sm:$0x7c] %v792_v4  ;;  %v879_v47 = vsel %vm570_vm2, %v877_v40, %v878_v41  ;;  %v929_v60 = vld [vmem:[%s7906_s7 + $0x98] sm:$0xc0]  ;;  %v935_v61 = vld [vmem:[%s7906_s7 + $0xc8] sm:$0x1f] }
  0x71   : > { %813 = vst [vmem:[%s7670_s11 + $0x100] sm:$0x7c] %v795_v7  ;;  %v909_v62 = vrot.slane %v897_v55, 4  ;;  %v953_v63 = vrot.slane %v928_v56, 2  ;;  %v954_v0 = vrot.slane %v934_v57, 2  ;;  %v956_v3 = vrot.slane %v929_v60, 2 }
  0x72   : > { %814 = vst [vmem:[%s7670_s11 + $0x108] sm:$0x7c] %v798_v11  ;;  %v930_v1 = vld [vmem:[%s7906_s7 + $0xa0] sm:$0xc0]  ;;  %v936_v2 = vld [vmem:[%s7906_s7 + $0xd0] sm:$0x1f] }
  0x73   : > { %815 = vst [vmem:[%s7670_s11 + $0x110] sm:$0x7c] %v801_v13  ;;  %v957_v4 = vrot.slane %v935_v61, 2  ;;  %v931_v5 = vld [vmem:[%s7906_s7 + $0xa8] sm:$0xc0]  ;;  %v955_v7 = vsel %vm952_vm3, %v953_v63, %v954_v0  ;;  %v959_v8 = vrot.slane %v930_v1, 2 }
  0x74   : > { %816 = vst [vmem:[%s7670_s11 + $0x118] sm:$0x7c] %v804_v14  ;;  %v937_v6 = vld [vmem:[%s7906_s7 + $0xd8] sm:$0x1f]  ;;  %v960_v9 = vrot.slane %v936_v2, 2  ;;  %v962_v13 = vrot.slane %v931_v5, 2 }
  0x75   : > { %6477 = vst.msk [vmem:[%s7670_s11 + $0xf7] ss:$8 sm:$0xf] %vm7753_vm1, %v820_v15  ;;  %v932_v10 = vld [vmem:[%s7906_s7 + $0xb0] sm:$0xc0]  ;;  %v958_v12 = vsel %vm952_vm3, %v956_v3, %v957_v4  ;;  %v963_v14 = vrot.slane %v937_v6, 2 }
  0x76   : > { %6478 = vst.msk [vmem:[%s7670_s11 + $0xf7] ss:$8 sm:$0x30] %vm7753_vm1, %v820_v15  ;;  %v938_v11 = vld [vmem:[%s7906_s7 + $0xe0] sm:$0x1f]  ;;  %v961_v17 = vsel %vm952_vm3, %v959_v8, %v960_v9  ;;  %v965_v18 = vrot.slane %v932_v10, 2 }
  0x77   : > { %6481 = vst.msk [vmem:[%s7670_s11 + $0x120] ss:$8 sm:$0xf] %vm7753_vm1, %v827_v24  ;;  %v933_v15 = vld [vmem:[%s7906_s7 + $0xb8] sm:$0xc0]  ;;  %v966_v19 = vrot.slane %v938_v11, 2  ;;  %v964_v22 = vsel %vm952_vm3, %v962_v13, %v963_v14 }
  0x78   : > { %6482 = vst.msk [vmem:[%s7670_s11 + $0x120] ss:$8 sm:$0x30] %vm7753_vm1, %v827_v24  ;;  %v939_v16 = vld [vmem:[%s7906_s7 + $0xe8] sm:$0x1f]  ;;  %v968_v23 = vrot.slane %v933_v15, 2 }
  0x79   : > { %6485 = vst.msk [vmem:[%s7670_s11 + $0x121] ss:$8 sm:$0xf] %vm7753_vm1, %v834_v29  ;;  %v995_v20 = vld [vmem:[%s7906_s7 + $0xf0] sm:$0xf0]  ;;  %v969_v24 = vrot.slane %v939_v16, 2  ;;  %v967_v27 = vsel %vm952_vm3, %v965_v18, %v966_v19 }
  0x7a   : > { %6486 = vst.msk [vmem:[%s7670_s11 + $0x121] ss:$8 sm:$0x30] %vm7753_vm1, %v834_v29  ;;  %v1001_v21 = vld [vmem:[%s7906_s7 + $0x120] sm:$0x7]  ;;  %v1020_v28 = vrot.slane %v995_v20, 1 }
  0x7b   : > { %886 = vst [vmem:[%s7670_s11 + $0x120] sm:$0x7c] %v864_v36  ;;  %v996_v25 = vld [vmem:[%s7906_s7 + $0xf8] sm:$0xf0]  ;;  %v1002_v26 = vld [vmem:[%s7906_s7 + $0x128] sm:$0x7]  ;;  %v970_v32 = vsel %vm952_vm3, %v968_v23, %v969_v24 }
  0x7c   : > { %887 = vst [vmem:[%s7670_s11 + $0x128] sm:$0x7c] %v867_v39  ;;  %v1021_v29 = vrot.slane %v1001_v21, 1  ;;  %v997_v30 = vld [vmem:[%s7906_s7 + $0x100] sm:$0xf0]  ;;  %v1023_v33 = vrot.slane %v996_v25, 1 }
  0x7d   : > { %888 = vst [vmem:[%s7670_s11 + $0x130] sm:$0x7c] %v870_v42  ;;  %v1003_v31 = vld [vmem:[%s7906_s7 + $0x130] sm:$0x7]  ;;  %v1024_v34 = vrot.slane %v1002_v26, 1  ;;  %v1026_v38 = vrot.slane %v997_v30, 1 }
  0x7e   : > { %889 = vst [vmem:[%s7670_s11 + $0x138] sm:$0x7c] %v873_v44  ;;  %v998_v35 = vld [vmem:[%s7906_s7 + $0x108] sm:$0xf0]  ;;  %v1004_v36 = vld [vmem:[%s7906_s7 + $0x138] sm:$0x7]  ;;  %v1022_v37 = vsel %vm1019_vm4, %v1020_v28, %v1021_v29 }
  0x7f   : > { %890 = vst [vmem:[%s7670_s11 + $0x140] sm:$0x7c] %v876_v45  ;;  %v1027_v39 = vrot.slane %v1003_v31, 1  ;;  %v999_v40 = vld [vmem:[%s7906_s7 + $0x110] sm:$0xf0]  ;;  %v1025_v42 = vsel %vm1019_vm4, %v1023_v33, %v1024_v34  ;;  %v1029_v43 = vrot.slane %v998_v35, 1 }
  0x80   : > { %891 = vst [vmem:[%s7670_s11 + $0x148] sm:$0x7c] %v879_v47  ;;  %v1005_v41 = vld [vmem:[%s7906_s7 + $0x140] sm:$0x7]  ;;  %v1030_v44 = vrot.slane %v1004_v36, 1  ;;  %v1092_v57 = vld [vmem:[%s7906_s7 + $0x1b0] sm:$0xff] }
  0x81   : > { %916 = vst [vmem:[%s7670_s11 + $0x120] sm:$0x80] %v904_v48  ;;  %v1000_v45 = vld [vmem:[%s7906_s7 + $0x118] sm:$0xf0]  ;;  %v1006_v46 = vld [vmem:[%s7906_s7 + $0x148] sm:$0x7]  ;;  %v1028_v47 = vsel %vm1019_vm4, %v1026_v38, %v1027_v39 }
  0x82   : > { %922 = vst [vmem:[%s7670_s11 + $0x150] sm:$0xf] %v904_v48  ;;  %v1032_v48 = vrot.slane %v999_v40, 1  ;;  %v1033_v49 = vrot.slane %v1005_v41, 1  ;;  %v1035_v51 = vrot.slane %v1000_v45, 1  ;;  %v1093_v1 = vld [vmem:[%s7906_s7 + $0x1b8] sm:$0xff] }
  0x83   : > { %917 = vst [vmem:[%s7670_s11 + $0x128] sm:$0x80] %v905_v50  ;;  %v1062_v55 = vld [vmem:[%s7906_s7 + $0x150] sm:$0xfc]  ;;  %v1063_v56 = vld [vmem:[%s7906_s7 + $0x158] sm:$0xfc] }
  0x84   : > { %923 = vst [vmem:[%s7670_s11 + $0x158] sm:$0xf] %v905_v50  ;;  %v1031_v50 = vsel %vm1019_vm4, %v1029_v43, %v1030_v44  ;;  %v1034_v53 = vsel %vm1019_vm4, %v1032_v48, %v1033_v49  ;;  %v1065_v60 = vld [vmem:[%s7906_s7 + $0x168] sm:$0xfc]  ;;  %v1066_v61 = vld [vmem:[%s7906_s7 + $0x170] sm:$0xfc] }
  0x85   : > { %918 = vst [vmem:[%s7670_s11 + $0x130] sm:$0x80] %v906_v52  ;;  %v1067_v63 = vld [vmem:[%s7906_s7 + $0x178] sm:$0xfc]  ;;  %v1068_v2 = vld [vmem:[%s7906_s7 + $0x180] sm:$0x1] }
  0x86   : > { %924 = vst [vmem:[%s7670_s11 + $0x160] sm:$0xf] %v906_v52  ;;  %v1036_v52 = vrot.slane %v1006_v46, 1  ;;  %v1069_v3 = vld [vmem:[%s7906_s7 + $0x188] sm:$0x1]  ;;  %v1096_v21 = vld [vmem:[%s7906_s7 + $0x1d0] sm:$0xff] }
  0x87   : > { %919 = vst [vmem:[%s7670_s11 + $0x138] sm:$0x80] %v907_v54  ;;  %v1070_v5 = vld [vmem:[%s7906_s7 + $0x190] sm:$0x1]  ;;  %v1087_v6 = vld [vmem:[%s7906_s7 + $0x188] sm:$0x80] }
  0x88   : > { %925 = vst [vmem:[%s7670_s11 + $0x168] sm:$0xf] %v907_v54  ;;  %v1037_v54 = vsel %vm1019_vm4, %v1035_v51, %v1036_v52  ;;  %v1088_v10 = vld [vmem:[%s7906_s7 + $0x190] sm:$0x80]  ;;  %v1089_v11 = vld [vmem:[%s7906_s7 + $0x198] sm:$0x80] }
  0x89   : > { %920 = vst [vmem:[%s7670_s11 + $0x140] sm:$0x80] %v908_v58  ;;  %v1114_v13 = vrot.slane %v1087_v6, 6  ;;  %v1073_v15 = vld [vmem:[%s7906_s7 + $0x1a8] sm:$0x1]  ;;  %v1120_v20 = vrot.slane %v1089_v11, 6 }
  0x8a   : > { %926 = vst [vmem:[%s7670_s11 + $0x170] sm:$0xf] %v908_v58  ;;  %v1064_v58 = vld [vmem:[%s7906_s7 + $0x160] sm:$0xfc]  ;;  %v1124_v30 = vrot.slane %v1096_v21, 6 }
  0x8b   : > { %921 = vst [vmem:[%s7670_s11 + $0x148] sm:$0x80] %v909_v62  ;;  %v1090_v23 = vld [vmem:[%s7906_s7 + $0x1a0] sm:$0x80]  ;;  %v1154_v36 = vld [vmem:[%s7906_s7 + $0x1e8] sm:$0xc0] }
  0x8c   : > { %927 = vst [vmem:[%s7670_s11 + $0x178] sm:$0xf] %v909_v62  ;;  %v1112_v62 = vrot.slane %v1092_v57, 6  ;;  %v1153_v26 = vld [vmem:[%s7906_s7 + $0x1e0] sm:$0xc0] }
  0x8d   : > { %983 = vst [vmem:[%s7670_s11 + $0x150] sm:$0xf0] %v955_v7  ;;  %v1071_v7 = vld [vmem:[%s7906_s7 + $0x198] sm:$0x1]  ;;  %v1177_v33 = vrot.slane %v1153_v26, 4 }
  0x8e   : > { %989 = vst [vmem:[%s7670_s11 + $0x180] sm:$0x7] %v954_v0  ;;  %v1086_v0 = vld [vmem:[%s7906_s7 + $0x180] sm:$0x80]  ;;  %v1155_v38 = vld [vmem:[%s7906_s7 + $0x1f0] sm:$0xc0] }
  0x8f   : > { %984 = vst [vmem:[%s7670_s11 + $0x158] sm:$0xf0] %v958_v12  ;;  %v1111_v8 = vrot.slane %v1086_v0, 6  ;;  %v1072_v12 = vld [vmem:[%s7906_s7 + $0x1a0] sm:$0x1]  ;;  %v1183_v46 = vrot.slane %v1155_v38, 4 }
  0x90   : > { %990 = vst [vmem:[%s7670_s11 + $0x188] sm:$0x7] %v957_v4  ;;  %v1094_v4 = vld [vmem:[%s7906_s7 + $0x1c0] sm:$0xff]  ;;  %v1156_v41 = vld [vmem:[%s7906_s7 + $0x1f8] sm:$0xc0] }
  0x91   : > { %985 = vst [vmem:[%s7670_s11 + $0x160] sm:$0xf0] %v961_v17  ;;  %v1118_v16 = vrot.slane %v1094_v4, 6  ;;  %v1113_v18 = vsel %vm1110_vm5, %v1111_v8, %v1112_v62  ;;  %v1186_v48 = vrot.slane %v1156_v41, 4  ;;  %v1157_v51 = vld [vmem:[%s7906_s7 + $0x200] sm:$0xc0] }
  0x92   : > { %991 = vst [vmem:[%s7670_s11 + $0x190] sm:$0x7] %v960_v9  ;;  %v1095_v9 = vld [vmem:[%s7906_s7 + $0x1c8] sm:$0xff]  ;;  %v1225_v57 = vld [vmem:[%s7906_s7 + $0x270] sm:$0x7] }
  0x93   : > { %986 = vst [vmem:[%s7670_s11 + $0x168] sm:$0xf0] %v964_v22  ;;  %v1121_v17 = vrot.slane %v1095_v9, 6  ;;  %v1097_v22 = vld [vmem:[%s7906_s7 + $0x1d8] sm:$0xff]  ;;  %v1227_v8 = vld [vmem:[%s7906_s7 + $0x280] sm:$0x7] }
  0x94   : > { %992 = vst [vmem:[%s7670_s11 + $0x198] sm:$0x7] %v963_v14  ;;  %v1115_v14 = vrot.slane %v1093_v1, 6  ;;  %v1222_v9 = vld [vmem:[%s7906_s7 + $0x258] sm:$0xf0] }
  0x95   : > { %987 = vst [vmem:[%s7670_s11 + $0x170] sm:$0xf0] %v967_v27  ;;  %v1159_v27 = vld [vmem:[%s7906_s7 + $0x210] sm:$0x1f]  ;;  %v1122_v35 = vsel %vm1110_vm5, %v1120_v20, %v1121_v17  ;;  %v1228_v11 = vld [vmem:[%s7906_s7 + $0x288] sm:$0x7] }
  0x96   : > { %993 = vst [vmem:[%s7670_s11 + $0x1a0] sm:$0x7] %v966_v19  ;;  %v1117_v19 = vrot.slane %v1088_v10, 6  ;;  %v1116_v25 = vsel %vm1110_vm5, %v1114_v13, %v1115_v14  ;;  %v1229_v13 = vld [vmem:[%s7906_s7 + $0x290] sm:$0x7]  ;;  %v1254_v20 = vrot.slane %v1228_v11, 3 }
  0x97   : > { %988 = vst [vmem:[%s7670_s11 + $0x178] sm:$0xf0] %v970_v32  ;;  %v1127_v32 = vrot.slane %v1097_v22, 6  ;;  %v1296_v41 = vld [vmem:[%s8162_s12 + $0x8] sm:$0x3f] }
  0x98   : > { %994 = vst [vmem:[%s7670_s11 + $0x1a8] sm:$0x7] %v969_v24  ;;  %v1091_v24 = vld [vmem:[%s7906_s7 + $0x1a8] sm:$0x80]  ;;  %v1119_v28 = vsel %vm1110_vm5, %v1117_v19, %v1118_v16  ;;  %v1253_v19 = vrot.slane %v1222_v9, 3 }
  0x99   : > { %1050 = vst [vmem:[%s7670_s11 + $0x180] sm:$0xf8] %v1022_v37  ;;  %v1126_v31 = vrot.slane %v1091_v24, 6  ;;  %v1160_v37 = vld [vmem:[%s7906_s7 + $0x218] sm:$0x1f] }
  0x9a   : > { %1056 = vst [vmem:[%s7670_s11 + $0x1b0] sm:$0x3] %v1021_v29  ;;  %v1123_v29 = vrot.slane %v1090_v23, 6  ;;  %v1181_v45 = vrot.slane %v1160_v37, 4  ;;  %v1257_v23 = vrot.slane %v1229_v13, 3 }
  0x9b   : > { %1051 = vst [vmem:[%s7670_s11 + $0x188] sm:$0xf8] %v1025_v42  ;;  %v1162_v42 = vld [vmem:[%s7906_s7 + $0x228] sm:$0x1f]  ;;  %v1128_v43 = vsel %vm1110_vm5, %v1126_v31, %v1127_v32 }
  0x9c   : > { %1057 = vst [vmem:[%s7670_s11 + $0x1b8] sm:$0x3] %v1024_v34  ;;  %v1178_v34 = vrot.slane %v1159_v27, 4  ;;  %v1125_v40 = vsel %vm1110_vm5, %v1123_v29, %v1124_v30  ;;  %v6487_v27 = vld [vmem:[%s7906_s7 + $0x2d7] ss:$8 sm:$0xf] }
  0x9d   : > { %1052 = vst [vmem:[%s7670_s11 + $0x190] sm:$0xf8] %v1028_v47  ;;  %v6488_v29 = vld [vmem:[%s7906_s7 + $0x2d7] ss:$8 sm:$0x30] }
  0x9e   : > { %1058 = vst [vmem:[%s7670_s11 + $0x1c0] sm:$0x3] %v1027_v39  ;;  %v1161_v39 = vld [vmem:[%s7906_s7 + $0x220] sm:$0x1f] }
  0x9f   : > { %1053 = vst [vmem:[%s7670_s11 + $0x198] sm:$0xf8] %v1031_v50  ;;  %v1184_v47 = vrot.slane %v1161_v39, 4  ;;  %v1179_v50 = vsel %vm442_vm0, %v1177_v33, %v1178_v34  ;;  %v6491_v31 = vld [vmem:[%s7906_s7 + $0x303] ss:$8 sm:$0xf] }
  0xa0   : > { %1059 = vst [vmem:[%s7670_s11 + $0x1c8] sm:$0x3] %v1030_v44  ;;  %v1180_v44 = vrot.slane %v1154_v36, 4  ;;  %v6492_v33 = vld [vmem:[%s7906_s7 + $0x303] ss:$8 sm:$0x30] }
  0xa1   : > { %1054 = vst [vmem:[%s7670_s11 + $0x1a0] sm:$0xf8] %v1034_v53  ;;  %v1158_v53 = vld [vmem:[%s7906_s7 + $0x208] sm:$0xc0]  ;;  %v1284_v38 = vor.u32 %v6492_v33, %v6491_v31  ;;  %v1295_v39 = vld [vmem:[%s8162_s12] sm:$0x3f] }
  0xa2   : > { %1060 = vst [vmem:[%s7670_s11 + $0x1d0] sm:$0x3] %v1033_v49  ;;  %v1187_v49 = vrot.slane %v1162_v42, 4  ;;  %v1192_v0 = vrot.slane %v1158_v53, 4  ;;  %v1307_v42 = vrot.slane %v1295_v39, 5  ;;  %v1393_v31 = vld [vmem:[%s8162_s12 + $0x70] sm:$0xff] }
  0xa3   : > { %1055 = vst [vmem:[%s7670_s11 + $0x1a8] sm:$0xf8] %v1037_v54  ;;  %v1164_v54 = vld [vmem:[%s7906_s7 + $0x238] sm:$0x1f]  ;;  %v1333_v53 = vld [vmem:[%s8162_s12 + $0x10] sm:$0xe0] }
  0xa4   : > { %1061 = vst [vmem:[%s7670_s11 + $0x1d8] sm:$0x3] %v1036_v52  ;;  %v1163_v52 = vld [vmem:[%s7906_s7 + $0x230] sm:$0x1f]  ;;  %v1193_v1 = vrot.slane %v1164_v54, 4  ;;  %v1188_v4 = vsel %vm442_vm0, %v1186_v48, %v1187_v49 }
  0xa5   : > { %1074 = vst [vmem:[%s7670_s11 + $0x1b0] sm:$0xfc] %v1062_v55  ;;  %v1182_v55 = vsel %vm442_vm0, %v1180_v44, %v1181_v45  ;;  %v6495_v36 = vld [vmem:[%s7906_s7 + $0x307] ss:$8 sm:$0xf] }
  0xa6   : > { %1075 = vst [vmem:[%s7670_s11 + $0x1b8] sm:$0xfc] %v1063_v56  ;;  %v1219_v56 = vld [vmem:[%s7906_s7 + $0x240] sm:$0xf0]  ;;  %v1298_v44 = vld [vmem:[%s8162_s12 + $0x18] sm:$0x3f] }
  0xa7   : > { %1076 = vst [vmem:[%s7670_s11 + $0x1c0] sm:$0xfc] %v1064_v58  ;;  %v1220_v58 = vld [vmem:[%s7906_s7 + $0x248] sm:$0xf0]  ;;  %v1331_v48 = vld [vmem:[%s8162_s12] sm:$0xe0] }
  0xa8   : > { %1077 = vst [vmem:[%s7670_s11 + $0x1c8] sm:$0xfc] %v1065_v60  ;;  %v1226_v60 = vld [vmem:[%s7906_s7 + $0x278] sm:$0x7]  ;;  %v1339_v54 = vld [vmem:[%s8162_s12 + $0x40] sm:$0x7] }
  0xa9   : > { %1078 = vst [vmem:[%s7670_s11 + $0x1d0] sm:$0xfc] %v1066_v61  ;;  %v1185_v61 = vsel %vm442_vm0, %v1183_v46, %v1184_v47  ;;  %v1248_v6 = vrot.slane %v1226_v60, 3  ;;  %v6496_v37 = vld [vmem:[%s7906_s7 + $0x307] ss:$8 sm:$0x30] }
  0xaa   : > { %1079 = vst [vmem:[%s7670_s11 + $0x1d8] sm:$0xfc] %v1067_v63  ;;  %v1190_v63 = vrot.slane %v1163_v52, 4  ;;  %v1299_v46 = vld [vmem:[%s8162_s12 + $0x20] sm:$0x3f] }
  0xab   : > { %1080 = vst [vmem:[%s7670_s11 + $0x1e0] sm:$0x1] %v1068_v2  ;;  %v1244_v2 = vrot.slane %v1219_v56, 3  ;;  %v1338_v52 = vld [vmem:[%s8162_s12 + $0x38] sm:$0x7]  ;;  %v1311_v56 = vrot.slane %v1299_v46, 5 }
  0xac   : > { %1081 = vst [vmem:[%s7670_s11 + $0x1e8] sm:$0x1] %v1069_v3  ;;  %v1245_v3 = vrot.slane %v1225_v57, 3  ;;  %v1413_v46 = vld [vmem:[%s8162_s12 + $0xb0] sm:$0xe0] }
  0xad   : > { %1082 = vst [vmem:[%s7670_s11 + $0x1f0] sm:$0x1] %v1070_v5  ;;  %v1247_v5 = vrot.slane %v1220_v58, 3  ;;  %v1355_v58 = vrot.slane %v1331_v48, 4 }
  0xae   : > { %1083 = vst [vmem:[%s7670_s11 + $0x1f8] sm:$0x1] %v1071_v7  ;;  %v1221_v7 = vld [vmem:[%s7906_s7 + $0x250] sm:$0xf0]  ;;  %v1246_v21 = vsel %vm1243_vm6, %v1244_v2, %v1245_v3  ;;  %v1340_v2 = vld [vmem:[%s8162_s12 + $0x48] sm:$0x7] }
  0xaf   : > { %1084 = vst [vmem:[%s7670_s11 + $0x200] sm:$0x1] %v1072_v12  ;;  %v1223_v12 = vld [vmem:[%s7906_s7 + $0x260] sm:$0xf0] }
  0xb0   : > { %1085 = vst [vmem:[%s7670_s11 + $0x208] sm:$0x1] %v1073_v15  ;;  %v1194_v15 = vsel %vm442_vm0, %v1192_v0, %v1193_v1  ;;  %v1256_v22 = vrot.slane %v1223_v12, 3  ;;  %v1362_v0 = vrot.slane %v1339_v54, 4  ;;  %v1335_v3 = vld [vmem:[%s8162_s12 + $0x20] sm:$0xe0] }
  0xb1   : > { %1141 = vst [vmem:[%s7670_s11 + $0x1e0] sm:$0xfe] %v1113_v18  ;;  %v1230_v18 = vld [vmem:[%s7906_s7 + $0x298] sm:$0x7]  ;;  %v1445_v54 = vrot.slane %v1413_v46, 5 }
  0xb2   : > { %1147 = vst [vmem:[%s7670_s11 + $0x210] sm:$0x3] %v1112_v62  ;;  %v1189_v62 = vrot.slane %v1157_v51, 4  ;;  %v1260_v26 = vrot.slane %v1230_v18, 3  ;;  %v1332_v51 = vld [vmem:[%s8162_s12 + $0x8] sm:$0xe0] }
  0xb3   : > { %1142 = vst [vmem:[%s7670_s11 + $0x1e8] sm:$0xfe] %v1116_v25  ;;  %v1249_v25 = vsel %vm1243_vm6, %v1247_v5, %v1248_v6  ;;  %v1336_v5 = vld [vmem:[%s8162_s12 + $0x28] sm:$0xe0]  ;;  %v1342_v6 = vld [vmem:[%s8162_s12 + $0x58] sm:$0x7] }
  0xb4   : > { %1148 = vst [vmem:[%s7670_s11 + $0x218] sm:$0x3] %v1115_v14  ;;  %v1191_v10 = vsel %vm442_vm0, %v1189_v62, %v1190_v63  ;;  %v1224_v14 = vld [vmem:[%s7906_s7 + $0x268] sm:$0xf0]  ;;  %v1359_v62 = vrot.slane %v1338_v52, 4  ;;  %v1370_v13 = vrot.slane %v1336_v5, 4 }
  0xb5   : > { %1143 = vst [vmem:[%s7670_s11 + $0x1f0] sm:$0xfe] %v1119_v28  ;;  %v1259_v24 = vrot.slane %v1224_v14, 3  ;;  %v1371_v14 = vrot.slane %v1342_v6, 4  ;;  %v1420_v52 = vld [vmem:[%s8162_s12 + $0xe8] sm:$0x3f] }
  0xb6   : > { %1149 = vst [vmem:[%s7670_s11 + $0x220] sm:$0x3] %v1118_v16  ;;  %v1250_v16 = vrot.slane %v1221_v7, 3  ;;  %v1551_v46 = vld [vmem:[%s8162_s12 + $0x1a0] sm:$0x3] }
  0xb7   : > { %1144 = vst [vmem:[%s7670_s11 + $0x1f8] sm:$0xfe] %v1122_v35  ;;  %v1277_v35 = vor.u32 %v6488_v29, %v6487_v27  ;;  %v1372_v18 = vsel %vm442_vm0, %v1370_v13, %v1371_v14  ;;  %v1391_v27 = vld [vmem:[%s8162_s12 + $0x60] sm:$0xff]  ;;  %v1410_v29 = vld [vmem:[%s8162_s12 + $0x98] sm:$0xe0] }
  0xb8   : > { %1150 = vst [vmem:[%s7670_s11 + $0x228] sm:$0x3] %v1121_v17  ;;  %v1251_v17 = vrot.slane %v1227_v8, 3  ;;  %v1365_v8 = vrot.slane %v1340_v2, 4  ;;  %v1479_v13 = vld [vmem:[%s8162_s12 + $0x110] sm:$0xf8] }
  0xb9   : > { %1145 = vst [vmem:[%s7670_s11 + $0x200] sm:$0xfe] %v1125_v40  ;;  %v1291_v40 = vor.u32 %v6496_v37, %v6495_v36  ;;  %v1417_v36 = vld [vmem:[%s8162_s12 + $0xd0] sm:$0x3f]  ;;  %v1395_v37 = vld [vmem:[%s8162_s12 + $0x80] sm:$0xff] }
  0xba   : > { %1151 = vst [vmem:[%s7670_s11 + $0x230] sm:$0x3] %v1124_v30  ;;  %v1252_v28 = vsel %vm1243_vm6, %v1250_v16, %v1251_v17  ;;  %v1255_v30 = vsel %vm1243_vm6, %v1253_v19, %v1254_v20  ;;  %v1385_v19 = vld [vmem:[%s8162_s12 + $0x30] sm:$0x80]  ;;  %v1386_v20 = vld [vmem:[%s8162_s12 + $0x38] sm:$0x80] }
  0xbb   : > { %1146 = vst [vmem:[%s7670_s11 + $0x208] sm:$0xfe] %v1128_v43  ;;  %v1297_v43 = vld [vmem:[%s8162_s12 + $0x10] sm:$0x3f]  ;;  %v1485_v14 = vld [vmem:[%s8162_s12 + $0x140] sm:$0xf] }
  0xbc   : > { %1152 = vst [vmem:[%s7670_s11 + $0x238] sm:$0x3] %v1127_v32  ;;  %v1258_v32 = vsel %vm1243_vm6, %v1256_v22, %v1257_v23  ;;  %v1388_v22 = vld [vmem:[%s8162_s12 + $0x48] sm:$0x80]  ;;  %v1389_v23 = vld [vmem:[%s8162_s12 + $0x50] sm:$0x80] }
  0xbd   : > { %1207 = vst [vmem:[%s7670_s11 + $0x210] sm:$0xfc] %v1179_v50  ;;  %v1337_v50 = vld [vmem:[%s8162_s12 + $0x30] sm:$0x7] }
  0xbe   : > { %1213 = vst [vmem:[%s7670_s11 + $0x240] sm:$0x1] %v1178_v34  ;;  %v1261_v34 = vsel %vm1243_vm6, %v1259_v24, %v1260_v26  ;;  %v1356_v60 = vrot.slane %v1337_v50, 4  ;;  %v1390_v24 = vld [vmem:[%s8162_s12 + $0x58] sm:$0x80] }
  0xbf   : > { %1208 = vst [vmem:[%s7670_s11 + $0x218] sm:$0xfc] %v1182_v55  ;;  %v1310_v55 = vrot.slane %v1298_v44, 5  ;;  %v1415_v26 = vld [vmem:[%s8162_s12 + $0xc0] sm:$0x3f] }
  0xc0   : > { %1214 = vst [vmem:[%s7670_s11 + $0x248] sm:$0x1] %v1181_v45  ;;  %v1308_v45 = vrot.slane %v1296_v41, 5  ;;  %v1357_v9 = vsel %vm442_vm0, %v1355_v58, %v1356_v60  ;;  %v1434_v33 = vrot.slane %v1415_v26, 5  ;;  %v1412_v41 = vld [vmem:[%s8162_s12 + $0xa8] sm:$0xe0] }
  0xc1   : > { %1209 = vst [vmem:[%s7670_s11 + $0x220] sm:$0xfc] %v1185_v61  ;;  %v1358_v61 = vrot.slane %v1332_v51, 4  ;;  %v1414_v51 = vld [vmem:[%s8162_s12 + $0xb8] sm:$0xe0] }
  0xc2   : > { %1215 = vst [vmem:[%s7670_s11 + $0x250] sm:$0x1] %v1184_v47  ;;  %v1300_v47 = vld [vmem:[%s8162_s12 + $0x28] sm:$0x3f]  ;;  %v1448_v60 = vrot.slane %v1414_v51, 5 }
  0xc3   : > { %1210 = vst [vmem:[%s7670_s11 + $0x228] sm:$0xfc] %v1188_v4  ;;  %v1312_v57 = vrot.slane %v1300_v47, 5  ;;  %v1341_v4 = vld [vmem:[%s8162_s12 + $0x50] sm:$0x7]  ;;  %v1360_v12 = vsel %vm442_vm0, %v1358_v61, %v1359_v62  ;;  %v1449_v61 = vrot.slane %v1420_v52, 5 }
  0xc4   : > { %1216 = vst [vmem:[%s7670_s11 + $0x258] sm:$0x1] %v1187_v49  ;;  %v1309_v49 = vrot.slane %v1297_v43, 5  ;;  %v1368_v11 = vrot.slane %v1341_v4, 4  ;;  %v1419_v47 = vld [vmem:[%s8162_s12 + $0xe0] sm:$0x3f] }
  0xc5   : > { %1211 = vst [vmem:[%s7670_s11 + $0x230] sm:$0xfc] %v1191_v10  ;;  %v1367_v10 = vrot.slane %v1335_v3, 4  ;;  %v1476_v62 = vld [vmem:[%s8162_s12 + $0xf8] sm:$0xf8]  ;;  %v1450_v5 = vsel %vm570_vm2, %v1448_v60, %v1449_v61 }
  0xc6   : > { %1217 = vst [vmem:[%s7670_s11 + $0x260] sm:$0x1] %v1190_v63  ;;  %v1361_v63 = vrot.slane %v1333_v53, 4  ;;  %v1477_v3 = vld [vmem:[%s8162_s12 + $0x100] sm:$0xf8]  ;;  %v1502_v6 = vrot.slane %v1476_v62, 2 }
  0xc7   : > { %1212 = vst [vmem:[%s7670_s11 + $0x238] sm:$0xfc] %v1194_v15  ;;  %v1369_v17 = vsel %vm442_vm0, %v1367_v10, %v1368_v11  ;;  %v1483_v4 = vld [vmem:[%s8162_s12 + $0x130] sm:$0xf]  ;;  %v1505_v11 = vrot.slane %v1477_v3, 2 }
  0xc8   : > { %1218 = vst [vmem:[%s7670_s11 + $0x268] sm:$0x1] %v1193_v1  ;;  %v1334_v1 = vld [vmem:[%s8162_s12 + $0x18] sm:$0xe0]  ;;  %v1363_v15 = vsel %vm442_vm0, %v1361_v63, %v1362_v0  ;;  %v1482_v63 = vld [vmem:[%s8162_s12 + $0x128] sm:$0xf] }
  0xc9   : > { %1268 = vst [vmem:[%s7670_s11 + $0x240] sm:$0xfe] %v1246_v21  ;;  %v1364_v7 = vrot.slane %v1334_v1, 4  ;;  %v1387_v21 = vld [vmem:[%s8162_s12 + $0x40] sm:$0x80] }
  0xca   : > { %1269 = vst [vmem:[%s7670_s11 + $0x248] sm:$0xfe] %v1249_v25  ;;  %v1409_v25 = vld [vmem:[%s8162_s12 + $0x90] sm:$0xe0]  ;;  %v1608_v51 = vld [vmem:[%s8162_s12 + $0x180] sm:$0xc0] }
  0xcb   : > { %1270 = vst [vmem:[%s7670_s11 + $0x250] sm:$0xfe] %v1252_v28  ;;  %v1366_v16 = vsel %vm442_vm0, %v1364_v7, %v1365_v8  ;;  %v1392_v28 = vld [vmem:[%s8162_s12 + $0x68] sm:$0xff]  ;;  %v1503_v7 = vrot.slane %v1482_v63, 2  ;;  %v1611_v60 = vld [vmem:[%s8162_s12 + $0x198] sm:$0xc0] }
  0xcc   : > { %1271 = vst [vmem:[%s7670_s11 + $0x258] sm:$0xfe] %v1255_v30  ;;  %v1416_v30 = vld [vmem:[%s8162_s12 + $0xc8] sm:$0x3f]  ;;  %v1609_v52 = vld [vmem:[%s8162_s12 + $0x188] sm:$0xc0] }
  0xcd   : > { %1272 = vst [vmem:[%s7670_s11 + $0x260] sm:$0xfe] %v1258_v32  ;;  %v1433_v32 = vrot.slane %v1409_v25, 5  ;;  %v1437_v39 = vrot.slane %v1416_v30, 5  ;;  %v1478_v8 = vld [vmem:[%s8162_s12 + $0x108] sm:$0xf8] }
  0xce   : > { %1273 = vst [vmem:[%s7670_s11 + $0x268] sm:$0xfe] %v1261_v34  ;;  %v1394_v34 = vld [vmem:[%s8162_s12 + $0x78] sm:$0xff]  ;;  %v1644_v63 = vrot.slane %v1608_v51, 3  ;;  %v1702_v51 = vld [vmem:[%s8162_s12 + $0x200] sm:$0xe0] }
  0xcf   : > { %6489 = vst.msk [vmem:[%s7670_s11 + $0x270] ss:$8 sm:$0xf] %vm7753_vm1, %v1277_v35  ;;  %v1435_v43 = vsel %vm570_vm2, %v1433_v32, %v1434_v33  ;;  %v1544_v32 = vld [vmem:[%s8162_s12 + $0x168] sm:$0xfe] }
  0xd0   : > { %6490 = vst.msk [vmem:[%s7670_s11 + $0x270] ss:$8 sm:$0x30] %vm7753_vm1, %v1277_v35  ;;  %v1411_v35 = vld [vmem:[%s8162_s12 + $0xa0] sm:$0xe0] }
  0xd1   : > { %6493 = vst.msk [vmem:[%s7670_s11 + $0x271] ss:$8 sm:$0xf] %vm7753_vm1, %v1284_v38  ;;  %v1439_v44 = vrot.slane %v1411_v35, 5  ;;  %v1546_v35 = vld [vmem:[%s8162_s12 + $0x178] sm:$0xfe] }
  0xd2   : > { %6494 = vst.msk [vmem:[%s7670_s11 + $0x271] ss:$8 sm:$0x30] %vm7753_vm1, %v1284_v38  ;;  %v1436_v38 = vrot.slane %v1410_v29, 5 }
  0xd3   : > { %6497 = vst.msk [vmem:[%s7670_s11 + $0x272] ss:$8 sm:$0xf] %vm7753_vm1, %v1291_v40 }
  0xd4   : > { %6498 = vst.msk [vmem:[%s7670_s11 + $0x272] ss:$8 sm:$0x30] %vm7753_vm1, %v1291_v40  ;;  %v1396_v40 = vld [vmem:[%s8162_s12 + $0x88] sm:$0xff]  ;;  %v1438_v48 = vsel %vm570_vm2, %v1436_v38, %v1437_v39 }
  0xd5   : > { %1319 = vst [vmem:[%s7670_s11 + $0x270] sm:$0xf8] %v1307_v42  ;;  %v1548_v38 = vld [vmem:[%s8162_s12 + $0x188] sm:$0x3] }
  0xd6   : > { %1325 = vst [vmem:[%s7670_s11 + $0x2a0] sm:$0x1] %v1307_v42  ;;  %v1418_v42 = vld [vmem:[%s8162_s12 + $0xd8] sm:$0x3f] }
  0xd7   : > { %1320 = vst [vmem:[%s7670_s11 + $0x278] sm:$0xf8] %v1308_v45  ;;  %v1443_v50 = vrot.slane %v1418_v42, 5 }
  0xd8   : > { %1326 = vst [vmem:[%s7670_s11 + $0x2a8] sm:$0x1] %v1308_v45  ;;  %v1440_v45 = vrot.slane %v1417_v36, 5  ;;  %v1547_v36 = vld [vmem:[%s8162_s12 + $0x180] sm:$0x3] }
  0xd9   : > { %1321 = vst [vmem:[%s7670_s11 + $0x280] sm:$0xf8] %v1309_v49 }
  0xda   : > { %1327 = vst [vmem:[%s7670_s11 + $0x2b0] sm:$0x1] %v1309_v49  ;;  %v1442_v49 = vrot.slane %v1412_v41, 5  ;;  %v1441_v53 = vsel %vm570_vm2, %v1439_v44, %v1440_v45  ;;  %v1569_v41 = vrot.slane %v1544_v32, 7  ;;  %v1572_v44 = vrot.slane %v1547_v36, 7 }
  0xdb   : > { %1322 = vst [vmem:[%s7670_s11 + $0x288] sm:$0xf8] %v1310_v55 }
  0xdc   : > { %1328 = vst [vmem:[%s7670_s11 + $0x2b8] sm:$0x1] %v1310_v55  ;;  %v1446_v55 = vrot.slane %v1419_v47, 5  ;;  %v1444_v58 = vsel %vm570_vm2, %v1442_v49, %v1443_v50  ;;  %v8327_v47 = vld [vmem:[%s8162_s12 + $0x1b0] sm:$0xff] }
  0xdd   : > { %1323 = vst [vmem:[%s7670_s11 + $0x290] sm:$0xf8] %v1311_v56 }
  0xde   : > { %1329 = vst [vmem:[%s7670_s11 + $0x2c0] sm:$0x1] %v1311_v56  ;;  %v1475_v56 = vld [vmem:[%s8162_s12 + $0xf0] sm:$0xf8]  ;;  %v1447_v0 = vsel %vm570_vm2, %v1445_v54, %v1446_v55 }
  0xdf   : > { %1324 = vst [vmem:[%s7670_s11 + $0x298] sm:$0xf8] %v1312_v57  ;;  %v1499_v1 = vrot.slane %v1475_v56, 2  ;;  %v1610_v54 = vld [vmem:[%s8162_s12 + $0x190] sm:$0xc0] }
  0xe0   : > { %1330 = vst [vmem:[%s7670_s11 + $0x2c8] sm:$0x1] %v1312_v57  ;;  %v1481_v57 = vld [vmem:[%s8162_s12 + $0x120] sm:$0xf] }
  0xe1   : > { %1379 = vst [vmem:[%s7670_s11 + $0x2a0] sm:$0x7e] %v1357_v9  ;;  %v1500_v2 = vrot.slane %v1481_v57, 2  ;;  %v1484_v9 = vld [vmem:[%s8162_s12 + $0x138] sm:$0xf] }
  0xe2   : > { %1380 = vst [vmem:[%s7670_s11 + $0x2a8] sm:$0x7e] %v1360_v12  ;;  %v1506_v12 = vrot.slane %v1483_v4, 2  ;;  %v1650_v4 = vrot.slane %v1610_v54, 3  ;;  %v1706_v54 = vld [vmem:[%s8162_s12 + $0x220] sm:$0x3f] }
  0xe3   : > { %1381 = vst [vmem:[%s7670_s11 + $0x2b0] sm:$0x7e] %v1363_v15  ;;  %v1501_v10 = vsel %vm952_vm3, %v1499_v1, %v1500_v2  ;;  %v1504_v15 = vsel %vm952_vm3, %v1502_v6, %v1503_v7  ;;  %v1617_v1 = vld [vmem:[%s8162_s12 + $0x1c8] sm:$0xff] }
  0xe4   : > { %1382 = vst [vmem:[%s7670_s11 + $0x2b8] sm:$0x7e] %v1366_v16  ;;  %v1508_v16 = vrot.slane %v1478_v8, 2  ;;  %v1612_v8 = vld [vmem:[%s8162_s12 + $0x1a0] sm:$0xc0] }
  0xe5   : > { %1383 = vst [vmem:[%s7670_s11 + $0x2c0] sm:$0x7e] %v1369_v17  ;;  %v1509_v17 = vrot.slane %v1484_v9, 2  ;;  %v1618_v9 = vld [vmem:[%s8162_s12 + $0x1d0] sm:$0xff] }
  0xe6   : > { %1384 = vst [vmem:[%s7670_s11 + $0x2c8] sm:$0x7e] %v1372_v18  ;;  %v1480_v18 = vld [vmem:[%s8162_s12 + $0x118] sm:$0xf8] }
  0xe7   : > { %1397 = vst [vmem:[%s7670_s11 + $0x2a0] sm:$0x80] %v1385_v19  ;;  %v1486_v19 = vld [vmem:[%s8162_s12 + $0x148] sm:$0xf]  ;;  %v1510_v25 = vsel %vm952_vm3, %v1508_v16, %v1509_v17  ;;  %v1514_v26 = vrot.slane %v1480_v18, 2  ;;  %v1656_v18 = vrot.slane %v1612_v8, 3 }
  0xe8   : > { %1398 = vst [vmem:[%s7670_s11 + $0x2a8] sm:$0x80] %v1386_v20  ;;  %v1507_v20 = vsel %vm952_vm3, %v1505_v11, %v1506_v12  ;;  %v1654_v11 = vrot.slane %v1617_v1, 3  ;;  %v1621_v16 = vld [vmem:[%s8162_s12 + $0x1e8] sm:$0x1] }
  0xe9   : > { %1399 = vst [vmem:[%s7670_s11 + $0x2b0] sm:$0x80] %v1387_v21  ;;  %v1511_v21 = vrot.slane %v1479_v13, 2  ;;  %v1619_v13 = vld [vmem:[%s8162_s12 + $0x1d8] sm:$0xff] }
  0xea   : > { %1400 = vst [vmem:[%s7670_s11 + $0x2b8] sm:$0x80] %v1388_v22  ;;  %v1512_v22 = vrot.slane %v1485_v14, 2 }
  0xeb   : > { %1401 = vst [vmem:[%s7670_s11 + $0x2c0] sm:$0x80] %v1389_v23  ;;  %v1541_v23 = vld [vmem:[%s8162_s12 + $0x150] sm:$0xfe] }
  0xec   : > { %1402 = vst [vmem:[%s7670_s11 + $0x2c8] sm:$0x80] %v1390_v24  ;;  %v1542_v24 = vld [vmem:[%s8162_s12 + $0x158] sm:$0xfe]  ;;  %v1566_v29 = vrot.slane %v1541_v23, 7 }
  0xed   : > { %1403 = vst [vmem:[%s7670_s11 + $0x2d0] sm:$0xff] %v1391_v27  ;;  %v1515_v27 = vrot.slane %v1486_v19, 2  ;;  %v1567_v30 = vrot.slane %v1542_v24, 7  ;;  %v1657_v19 = vrot.slane %v1618_v9, 3  ;;  %v1622_v23 = vld [vmem:[%s8162_s12 + $0x1f0] sm:$0x1] }
  0xee   : > { %1404 = vst [vmem:[%s7670_s11 + $0x2d8] sm:$0xff] %v1392_v28  ;;  %v1513_v28 = vsel %vm952_vm3, %v1511_v21, %v1512_v22  ;;  %v1573_v56 = vsel %vm1565_vm7, %v1566_v29, %v1572_v44  ;;  %v1666_v32 = vrot.slane %v1622_v23, 3 }
  0xef   : > { %1405 = vst [vmem:[%s7670_s11 + $0x2e0] sm:$0xff] %v1393_v31  ;;  %v1543_v31 = vld [vmem:[%s8162_s12 + $0x160] sm:$0xfe] }
  0xf0   : > { %1406 = vst [vmem:[%s7670_s11 + $0x2e8] sm:$0xff] %v1394_v34  ;;  %v1516_v34 = vsel %vm952_vm3, %v1514_v26, %v1515_v27  ;;  %v1664_v26 = vrot.slane %v1621_v16, 3  ;;  %v1770_v16 = vld [vmem:[%s8162_s12 + $0x270] sm:$0xf] }
  0xf1   : > { %1407 = vst [vmem:[%s7670_s11 + $0x2f0] sm:$0xff] %v1395_v37  ;;  %v1568_v37 = vrot.slane %v1543_v31, 7  ;;  %v1658_v31 = vsel %vm1243_vm6, %v1656_v18, %v1657_v19 }
  0xf2   : > { %1408 = vst [vmem:[%s7670_s11 + $0x2f8] sm:$0xff] %v1396_v40  ;;  %v1550_v40 = vld [vmem:[%s8162_s12 + $0x198] sm:$0x3] }
  0xf3   : > { %1463 = vst [vmem:[%s7670_s11 + $0x300] sm:$0xff] %v1435_v43  ;;  %v1571_v43 = vrot.slane %v1546_v35, 7  ;;  %v1578_v49 = vrot.slane %v1550_v40, 7  ;;  %v1699_v40 = vld [vmem:[%s8162_s12 + $0x1e8] sm:$0xe0] }
  0xf4   : > { %1469 = vst [vmem:[%s7670_s11 + $0x330] sm:$0x1] %v1434_v33  ;;  %v1545_v33 = vld [vmem:[%s8162_s12 + $0x170] sm:$0xfe] }
  0xf5   : > { %1464 = vst [vmem:[%s7670_s11 + $0x308] sm:$0xff] %v1438_v48  ;;  %v1570_v42 = vrot.slane %v1545_v33, 7  ;;  %v1579_v6 = vsel %vm1565_vm7, %v1569_v41, %v1578_v49  ;;  %v1701_v49 = vld [vmem:[%s8162_s12 + $0x1f8] sm:$0xe0] }
  0xf6   : > { %1470 = vst [vmem:[%s7670_s11 + $0x338] sm:$0x1] %v1437_v39  ;;  %v1549_v39 = vld [vmem:[%s8162_s12 + $0x190] sm:$0x3] }
  0xf7   : > { %1465 = vst [vmem:[%s7670_s11 + $0x310] sm:$0xff] %v1441_v53  ;;  %v1576_v48 = vrot.slane %v1549_v39, 7  ;;  %v8336_v53 = vld [vmem:[%s8162_s12 + $0x1b8] sm:$0xff] }
  0xf8   : > { %1471 = vst [vmem:[%s7670_s11 + $0x340] sm:$0x1] %v1440_v45  ;;  %v1574_v45 = vrot.slane %v1548_v38, 7  ;;  %v1648_v3 = vrot.slane %v8336_v53, 3  ;;  %v1698_v38 = vld [vmem:[%s8162_s12 + $0x1e0] sm:$0xe0] }
  0xf9   : > { %1466 = vst [vmem:[%s7670_s11 + $0x318] sm:$0xff] %v1444_v58  ;;  %v1580_v58 = vrot.slane %v1551_v46, 7  ;;  %v1723_v46 = vrot.slane %v1699_v40, 7  ;;  %v1703_v53 = vld [vmem:[%s8162_s12 + $0x208] sm:$0xe0] }
  0xfa   : > { %1472 = vst [vmem:[%s7670_s11 + $0x348] sm:$0x1] %v1443_v50  ;;  %v1552_v50 = vld [vmem:[%s8162_s12 + $0x1a8] sm:$0x3]  ;;  %v1575_v57 = vsel %vm1565_vm7, %v1567_v30, %v1574_v45  ;;  %v1665_v39 = vsel %vm1243_vm6, %v1648_v3, %v1664_v26  ;;  %v1722_v45 = vrot.slane %v1698_v38, 7 }
  0xfb   : > { %1467 = vst [vmem:[%s7670_s11 + $0x320] sm:$0xff] %v1447_v0  ;;  %v1582_v62 = vrot.slane %v1552_v50, 7  ;;  %v1645_v0 = vrot.slane %v8327_v47, 3  ;;  %v1704_v50 = vld [vmem:[%s8162_s12 + $0x210] sm:$0x3f] }
  0xfc   : > { %1473 = vst [vmem:[%s7670_s11 + $0x350] sm:$0x1] %v1446_v55  ;;  %v8340_v55 = vld [vmem:[%s8162_s12 + $0x1c0] sm:$0xff]  ;;  %v1831_v38 = vld [vmem:[%s8162_s12 + $0x2a8] sm:$0xfe] }
  0xfd   : > { %1468 = vst [vmem:[%s7670_s11 + $0x328] sm:$0xff] %v1450_v5  ;;  %v1651_v5 = vrot.slane %v8340_v55, 3  ;;  %v1583_v14 = vsel %vm1565_vm7, %v1571_v43, %v1582_v62  ;;  %v1725_v55 = vrot.slane %v1701_v49, 7  ;;  %v1727_v62 = vrot.slane %v1703_v53, 7 }
  0xfe   : > { %1474 = vst [vmem:[%s7670_s11 + $0x358] sm:$0x1] %v1449_v61  ;;  %v1577_v61 = vsel %vm1565_vm7, %v1568_v37, %v1576_v48 }
  0xff   : > { %1529 = vst [vmem:[%s7670_s11 + $0x330] sm:$0xfe] %v1501_v10  ;;  %v1581_v10 = vsel %vm1565_vm7, %v1570_v42, %v1580_v58  ;;  %v1652_v24 = vsel %vm1243_vm6, %v1650_v4, %v1651_v5  ;;  %v1726_v58 = vrot.slane %v1702_v51, 7  ;;  %v1839_v51 = vld [vmem:[%s8162_s12 + $0x2e8] sm:$0x3] }
 0x100   : > { %1535 = vst [vmem:[%s7670_s11 + $0x360] sm:$0x3] %v1500_v2  ;;  %v1647_v2 = vrot.slane %v1609_v52, 3  ;;  %v1705_v52 = vld [vmem:[%s8162_s12 + $0x218] sm:$0x3f] }
 0x101   : > { %1530 = vst [vmem:[%s7670_s11 + $0x338] sm:$0xfe] %v1504_v15  ;;  %v1620_v15 = vld [vmem:[%s8162_s12 + $0x1e0] sm:$0x1] }
 0x102   : > { %1536 = vst [vmem:[%s7670_s11 + $0x368] sm:$0x3] %v1503_v7  ;;  %v1653_v7 = vrot.slane %v1611_v60, 3  ;;  %v1730_v60 = vrot.slane %v1705_v52, 7 }
 0x103   : > { %1531 = vst [vmem:[%s7670_s11 + $0x340] sm:$0xfe] %v1507_v20  ;;  %v1649_v20 = vsel %vm1243_vm6, %v1647_v2, %v1648_v3  ;;  %v1764_v2 = vld [vmem:[%s8162_s12 + $0x240] sm:$0xf8] }
 0x104   : > { %1537 = vst [vmem:[%s7670_s11 + $0x370] sm:$0x3] %v1506_v12  ;;  %v1613_v12 = vld [vmem:[%s8162_s12 + $0x1a8] sm:$0xc0]  ;;  %v1788_v8 = vrot.slane %v1764_v2, 4 }
 0x105   : > { %1532 = vst [vmem:[%s7670_s11 + $0x348] sm:$0xfe] %v1510_v25  ;;  %v1659_v21 = vrot.slane %v1613_v12, 3  ;;  %v1662_v25 = vrot.slane %v1620_v15, 3 }
 0x106   : > { %1538 = vst [vmem:[%s7670_s11 + $0x378] sm:$0x3] %v1509_v17  ;;  %v1646_v17 = vsel %vm1243_vm6, %v1644_v63, %v1645_v0  ;;  %v1732_v63 = vrot.slane %v1706_v54, 7 }
 0x107   : > { %1533 = vst [vmem:[%s7670_s11 + $0x350] sm:$0xfe] %v1513_v28  ;;  %v1655_v28 = vsel %vm1243_vm6, %v1653_v7, %v1654_v11  ;;  %v1663_v35 = vsel %vm1243_vm6, %v1645_v0, %v1662_v25  ;;  %v1709_v0 = vld [vmem:[%s8162_s12 + $0x238] sm:$0x3f]  ;;  %v1794_v25 = vrot.slane %v1770_v16, 4 }
 0x108   : > { %1539 = vst [vmem:[%s7670_s11 + $0x380] sm:$0x3] %v1512_v22  ;;  %v1660_v22 = vrot.slane %v1619_v13, 3  ;;  %v1767_v13 = vld [vmem:[%s8162_s12 + $0x258] sm:$0xf8] }
 0x109   : > { %1534 = vst [vmem:[%s7670_s11 + $0x358] sm:$0xfe] %v1516_v34  ;;  %v1791_v23 = vrot.slane %v1767_v13, 4  ;;  %v6508_v13 = vld [vmem:[%s8162_s12 + $0x366] ss:$8 sm:$0x30] }
 0x10a   : > { %1540 = vst [vmem:[%s7670_s11 + $0x388] sm:$0x3] %v1515_v27  ;;  %v1623_v27 = vld [vmem:[%s8162_s12 + $0x1f8] sm:$0x1]  ;;  %v1661_v33 = vsel %vm1243_vm6, %v1659_v21, %v1660_v22  ;;  %v1772_v21 = vld [vmem:[%s8162_s12 + $0x280] sm:$0xf] }
 0x10b   : > { %1596 = vst [vmem:[%s7670_s11 + $0x360] sm:$0xfc] %v1566_v29  ;;  %v1624_v29 = vld [vmem:[%s8162_s12 + $0x200] sm:$0x1]  ;;  %v1668_v34 = vrot.slane %v1623_v27, 3 }
 0x10c   : > { %1597 = vst [vmem:[%s7670_s11 + $0x368] sm:$0xfc] %v1567_v30  ;;  %v1625_v30 = vld [vmem:[%s8162_s12 + $0x208] sm:$0x1]  ;;  %v1670_v36 = vrot.slane %v1624_v29, 3 }
 0x10d   : > { %1598 = vst [vmem:[%s7670_s11 + $0x370] sm:$0xfc] %v1568_v37  ;;  %v1672_v37 = vrot.slane %v1625_v30, 3  ;;  %v1774_v27 = vld [vmem:[%s8162_s12 + $0x290] sm:$0xf]  ;;  %v1798_v30 = vrot.slane %v1772_v21, 4 }
 0x10e   : > { %1599 = vst [vmem:[%s7670_s11 + $0x378] sm:$0xfc] %v1569_v41  ;;  %v1700_v41 = vld [vmem:[%s8162_s12 + $0x1f0] sm:$0xe0]  ;;  %v1671_v44 = vsel %vm1243_vm6, %v1657_v19, %v1670_v36  ;;  %v1917_v16 = vld [vmem:[%s7658_s6 + $0x120] sm:$0x7] }
 0x10f   : > { %1600 = vst [vmem:[%s7670_s11 + $0x380] sm:$0xfc] %v1570_v42  ;;  %v1667_v42 = vsel %vm1243_vm6, %v1651_v5, %v1666_v32  ;;  %v1724_v47 = vrot.slane %v1700_v41, 7  ;;  %v1673_v48 = vsel %vm1243_vm6, %v1660_v22, %v1672_v37  ;;  %v1731_v5 = vsel %vm1565_vm7, %v1723_v46, %v1730_v60  ;;  %v1773_v22 = vld [vmem:[%s8162_s12 + $0x288] sm:$0xf] }
 0x110   : > { %1601 = vst [vmem:[%s7670_s11 + $0x388] sm:$0xfc] %v1571_v43  ;;  %v1669_v43 = vsel %vm1243_vm6, %v1654_v11, %v1668_v34  ;;  %v1766_v11 = vld [vmem:[%s8162_s12 + $0x250] sm:$0xf8]  ;;  %v1830_v32 = vld [vmem:[%s8162_s12 + $0x2a0] sm:$0xfe]  ;;  %v1795_v34 = vsel %vm442_vm0, %v1788_v8, %v1794_v25 }
 0x111   : > { %1602 = vst [vmem:[%s7670_s11 + $0x390] sm:$0x7] %v1573_v56  ;;  %v1728_v56 = vrot.slane %v1704_v50, 7  ;;  %v1733_v7 = vsel %vm1565_vm7, %v1724_v47, %v1732_v63  ;;  %v1790_v19 = vrot.slane %v1766_v11, 4  ;;  %v1854_v41 = vrot.slane %v1830_v32, 1 }
 0x112   : > { %1603 = vst [vmem:[%s7670_s11 + $0x398] sm:$0x7] %v1575_v57  ;;  %v1707_v57 = vld [vmem:[%s8162_s12 + $0x228] sm:$0x3f]  ;;  %v1833_v50 = vld [vmem:[%s8162_s12 + $0x2b8] sm:$0xfe] }
 0x113   : > { %1604 = vst [vmem:[%s7670_s11 + $0x3a0] sm:$0x7] %v1577_v61  ;;  %v1708_v61 = vld [vmem:[%s8162_s12 + $0x230] sm:$0x3f]  ;;  %v1734_v1 = vrot.slane %v1707_v57, 7  ;;  %v1729_v3 = vsel %vm1565_vm7, %v1722_v45, %v1728_v56  ;;  %v1799_v40 = vsel %vm442_vm0, %v1790_v19, %v1798_v30  ;;  %v1864_v60 = vrot.slane %v1839_v51, 1 }
 0x114   : > { %1605 = vst [vmem:[%s7670_s11 + $0x3a8] sm:$0x7] %v1579_v6  ;;  %v1736_v4 = vrot.slane %v1708_v61, 7  ;;  %v1738_v6 = vrot.slane %v1709_v0, 7  ;;  %v1840_v56 = vld [vmem:[%s8162_s12 + $0x2f0] sm:$0x3] }
 0x115   : > { %1606 = vst [vmem:[%s7670_s11 + $0x3b0] sm:$0x7] %v1581_v10  ;;  %v1735_v9 = vsel %vm1565_vm7, %v1725_v55, %v1734_v1  ;;  %v1765_v10 = vld [vmem:[%s8162_s12 + $0x248] sm:$0xf8]  ;;  %v1867_v1 = vrot.slane %v1840_v56, 1 }
 0x116   : > { %1607 = vst [vmem:[%s7670_s11 + $0x3b8] sm:$0x7] %v1583_v14  ;;  %v1737_v12 = vsel %vm1565_vm7, %v1726_v58, %v1736_v4  ;;  %v1768_v14 = vld [vmem:[%s8162_s12 + $0x260] sm:$0xf8]  ;;  %v1739_v15 = vsel %vm1565_vm7, %v1727_v62, %v1738_v6  ;;  %v1789_v18 = vrot.slane %v1765_v10, 4 }
 0x117   : > { %1686 = vst [vmem:[%s7670_s11 + $0x390] sm:$0xf8] %v1646_v17  ;;  %v1771_v17 = vld [vmem:[%s8162_s12 + $0x278] sm:$0xf]  ;;  %v1835_v61 = vld [vmem:[%s8162_s12 + $0x2c8] sm:$0xfe] }
 0x118   : > { %1687 = vst [vmem:[%s7670_s11 + $0x398] sm:$0xf8] %v1649_v20  ;;  %v1769_v20 = vld [vmem:[%s8162_s12 + $0x268] sm:$0xf8]  ;;  %v1796_v26 = vrot.slane %v1771_v17, 4 }
 0x119   : > { %1688 = vst [vmem:[%s7670_s11 + $0x3a0] sm:$0xf8] %v1652_v24  ;;  %v1792_v24 = vrot.slane %v1768_v14, 4  ;;  %v1793_v29 = vrot.slane %v1769_v20, 4  ;;  %v1930_v17 = vld [vmem:[%s7658_s6 + $0x120] sm:$0x1c] }
 0x11a   : > { %1689 = vst [vmem:[%s7670_s11 + $0x3a8] sm:$0xf8] %v1655_v28  ;;  %v1775_v28 = vld [vmem:[%s8162_s12 + $0x298] sm:$0xf]  ;;  %v1797_v37 = vsel %vm442_vm0, %v1789_v18, %v1796_v26  ;;  %v1932_v20 = vld [vmem:[%s7658_s6 + $0x130] sm:$0x1c] }
 0x11b   : > { %1690 = vst [vmem:[%s7670_s11 + $0x3b0] sm:$0xf8] %v1658_v31  ;;  %v1800_v31 = vrot.slane %v1773_v22, 4  ;;  %v1804_v36 = vrot.slane %v1775_v28, 4  ;;  %v1919_v21 = vld [vmem:[%s7658_s6 + $0x130] sm:$0x7] }
 0x11c   : > { %1691 = vst [vmem:[%s7670_s11 + $0x3b8] sm:$0xf8] %v1661_v33  ;;  %v1836_v33 = vld [vmem:[%s8162_s12 + $0x2d0] sm:$0x3]  ;;  %v1933_v22 = vld [vmem:[%s7658_s6 + $0x138] sm:$0x1c] }
 0x11d   : > { %1692 = vst [vmem:[%s7670_s11 + $0x3c0] sm:$0x3f] %v1663_v35  ;;  %v1802_v35 = vrot.slane %v1774_v27, 4  ;;  %v1805_v49 = vsel %vm442_vm0, %v1793_v29, %v1804_v36  ;;  %v6504_v10 = vld [vmem:[%s8162_s12 + $0x361] ss:$8 sm:$0x30] }
 0x11e   : > { %1693 = vst [vmem:[%s7670_s11 + $0x3c8] sm:$0x3f] %v1665_v39  ;;  %v1837_v39 = vld [vmem:[%s8162_s12 + $0x2d8] sm:$0x3]  ;;  %v1921_v25 = vld [vmem:[%s7658_s6 + $0x140] sm:$0x7] }
 0x11f   : > { %1694 = vst [vmem:[%s7670_s11 + $0x3d0] sm:$0x3f] %v1667_v42  ;;  %v1855_v42 = vrot.slane %v1836_v33, 1  ;;  %v1966_v26 = vld [vmem:[%s7658_s6 + $0x180] sm:$0x3]  ;;  %v1942_v28 = vrot.slane %v1930_v17, 7 }
 0x120   : > { %1695 = vst [vmem:[%s7670_s11 + $0x3d8] sm:$0x3f] %v1669_v43  ;;  %v1801_v43 = vsel %vm442_vm0, %v1791_v23, %v1800_v31  ;;  %v1922_v27 = vld [vmem:[%s7658_s6 + $0x148] sm:$0x7]  ;;  %v1944_v30 = vrot.slane %v1932_v20, 7  ;;  %v1945_v31 = vrot.slane %v1933_v22, 7 }
 0x121   : > { %1696 = vst [vmem:[%s7670_s11 + $0x3e0] sm:$0x3f] %v1671_v44  ;;  %v1832_v44 = vld [vmem:[%s8162_s12 + $0x2b0] sm:$0xfe]  ;;  %v1856_v52 = vsel %vm1019_vm4, %v1854_v41, %v1855_v42  ;;  %v1934_v32 = vld [vmem:[%s7658_s6 + $0x140] sm:$0x1c] }
 0x122   : > { %1697 = vst [vmem:[%s7670_s11 + $0x3e8] sm:$0x3f] %v1673_v48  ;;  %v1858_v48 = vrot.slane %v1837_v39, 1  ;;  %v1860_v53 = vrot.slane %v1832_v44, 1  ;;  %v1935_v33 = vld [vmem:[%s7658_s6 + $0x148] sm:$0x1c] }
 0x123   : > { %1752 = vst [vmem:[%s7670_s11 + $0x3c0] sm:$0xc0] %v1722_v45  ;;  %v1838_v45 = vld [vmem:[%s8162_s12 + $0x2e0] sm:$0x3]  ;;  %v1961_v36 = vld [vmem:[%s7658_s6 + $0x158] sm:$0x80] }
 0x124   : > { %1753 = vst [vmem:[%s7670_s11 + $0x3c8] sm:$0xc0] %v1723_v46  ;;  %v1803_v46 = vsel %vm442_vm0, %v1792_v24, %v1802_v35  ;;  %v1861_v54 = vrot.slane %v1838_v45, 1  ;;  %v1985_v35 = vrot.slane %v1966_v26, 1  ;;  %v1968_v39 = vld [vmem:[%s7658_s6 + $0x190] sm:$0x3] }
 0x125   : > { %1754 = vst [vmem:[%s7670_s11 + $0x3d0] sm:$0xc0] %v1724_v47  ;;  %v1857_v47 = vrot.slane %v1831_v38, 1  ;;  %v1962_v38 = vld [vmem:[%s7658_s6 + $0x160] sm:$0x80]  ;;  %v1987_v44 = vrot.slane %v1961_v36, 1 }
 0x126   : > { %1755 = vst [vmem:[%s7670_s11 + $0x3d8] sm:$0xc0] %v1725_v55  ;;  %v1834_v55 = vld [vmem:[%s8162_s12 + $0x2c0] sm:$0xfe]  ;;  %v1862_v63 = vsel %vm1019_vm4, %v1860_v53, %v1861_v54  ;;  %v1969_v41 = vld [vmem:[%s7658_s6 + $0x198] sm:$0x3] }
 0x127   : > { %1756 = vst [vmem:[%s7670_s11 + $0x3e0] sm:$0xc0] %v1726_v58  ;;  %v1859_v57 = vsel %vm1019_vm4, %v1857_v47, %v1858_v48  ;;  %v1863_v58 = vrot.slane %v1833_v50, 1  ;;  %v1866_v0 = vrot.slane %v1834_v55, 1  ;;  %v1991_v47 = vrot.slane %v1968_v39, 1 }
 0x128   : > { %1757 = vst [vmem:[%s7670_s11 + $0x3e8] sm:$0xc0] %v1727_v62  ;;  %v1841_v62 = vld [vmem:[%s8162_s12 + $0x2f8] sm:$0x3]  ;;  %v1964_v51 = vld [vmem:[%s7658_s6 + $0x170] sm:$0x80] }
 0x129   : > { %1758 = vst [vmem:[%s7670_s11 + $0x3f0] sm:$0x7f] %v1729_v3  ;;  %v1865_v2 = vsel %vm1019_vm4, %v1863_v58, %v1864_v60  ;;  %v1869_v3 = vrot.slane %v1835_v61, 1  ;;  %v1870_v4 = vrot.slane %v1841_v62, 1  ;;  %v1868_v6 = vsel %vm1019_vm4, %v1866_v0, %v1867_v1  ;;  %v1965_v53 = vld [vmem:[%s7658_s6 + $0x178] sm:$0x80] }
 0x12a   : > { %1759 = vst [vmem:[%s7670_s11 + $0x3f8] sm:$0x7f] %v1731_v5  ;;  %v6499_v5 = vld [vmem:[%s8162_s12 + $0x334] ss:$8 sm:$0xf]  ;;  %v1996_v62 = vrot.slane %v1964_v51, 1 }
 0x12b   : > { %1760 = vst [vmem:[%s7670_s11 + $0x400] sm:$0x7f] %v1733_v7  ;;  %v6500_v7 = vld [vmem:[%s8162_s12 + $0x334] ss:$8 sm:$0x30]  ;;  %v1999_v0 = vrot.slane %v1965_v53, 1 }
 0x12c   : > { %1761 = vst [vmem:[%s7670_s11 + $0x408] sm:$0x7f] %v1735_v9  ;;  %v1871_v9 = vsel %vm1019_vm4, %v1869_v3, %v1870_v4  ;;  %v1899_v11 = vor.u32 %v6500_v7, %v6499_v5  ;;  %v2026_v56 = vld [vmem:[%s7658_s6 + $0x1b0] sm:$0xf0]  ;;  %v2027_v58 = vld [vmem:[%s7658_s6 + $0x1b8] sm:$0xf0] }
 0x12d   : > { %1762 = vst [vmem:[%s7670_s11 + $0x410] sm:$0x7f] %v1737_v12  ;;  %v6507_v12 = vld [vmem:[%s8162_s12 + $0x366] ss:$8 sm:$0xf]  ;;  %v2053_v5 = vrot.slane %v2027_v58, 3 }
 0x12e   : > { %1763 = vst [vmem:[%s7670_s11 + $0x418] sm:$0x7f] %v1739_v15  ;;  %v1913_v15 = vor.u32 %v6508_v13, %v6507_v12  ;;  %v2028_v7 = vld [vmem:[%s7658_s6 + $0x1c0] sm:$0xf0]  ;;  %v2030_v12 = vld [vmem:[%s7658_s6 + $0x1d0] sm:$0xf0] }
 0x12f   : > { %1818 = vst [vmem:[%s7670_s11 + $0x3f0] sm:$0x80] %v1788_v8  ;;  %v6503_v8 = vld [vmem:[%s8162_s12 + $0x361] ss:$8 sm:$0xf]  ;;  %v2062_v22 = vrot.slane %v2030_v12, 3 }
 0x130   : > { %1819 = vst [vmem:[%s7670_s11 + $0x3f8] sm:$0x80] %v1789_v18  ;;  %v1906_v14 = vor.u32 %v6504_v10, %v6503_v8  ;;  %v1931_v18 = vld [vmem:[%s7658_s6 + $0x128] sm:$0x1c]  ;;  %v2034_v8 = vld [vmem:[%s7658_s6 + $0x1f0] sm:$0x1] }
 0x131   : > { %1820 = vst [vmem:[%s7670_s11 + $0x400] sm:$0x80] %v1790_v19  ;;  %v1918_v19 = vld [vmem:[%s7658_s6 + $0x128] sm:$0x7]  ;;  %v2036_v13 = vld [vmem:[%s7658_s6 + $0x200] sm:$0x1] }
 0x132   : > { %1821 = vst [vmem:[%s7670_s11 + $0x408] sm:$0x80] %v1791_v23  ;;  %v1920_v23 = vld [vmem:[%s7658_s6 + $0x138] sm:$0x7]  ;;  %v2057_v17 = vrot.slane %v2034_v8, 3 }
 0x133   : > { %1822 = vst [vmem:[%s7670_s11 + $0x410] sm:$0x80] %v1792_v24  ;;  %v1960_v24 = vld [vmem:[%s7658_s6 + $0x150] sm:$0x80]  ;;  %v2116_v51 = vld [vmem:[%s7745_s28 + $0xd8] sm:$0xf0] }
 0x134   : > { %1823 = vst [vmem:[%s7670_s11 + $0x418] sm:$0x80] %v1793_v29  ;;  %v1943_v29 = vrot.slane %v1931_v18, 7  ;;  %v2037_v18 = vld [vmem:[%s7658_s6 + $0x208] sm:$0x1] }
 0x135   : > { %1824 = vst [vmem:[%s7670_s11 + $0x420] sm:$0xff] %v1795_v34  ;;  %v1984_v34 = vrot.slane %v1960_v24, 1  ;;  %v2066_v26 = vrot.slane %v2037_v18, 3  ;;  %v6549_v36 = vld [vmem:[%s7658_s6 + $0x274] ss:$8 sm:$0xf] }
 0x136   : > { %1825 = vst [vmem:[%s7670_s11 + $0x428] sm:$0xff] %v1797_v37  ;;  %v1967_v37 = vld [vmem:[%s7658_s6 + $0x188] sm:$0x3]  ;;  %v2117_v53 = vld [vmem:[%s7745_s28 + $0xe0] sm:$0xf0] }
 0x137   : > { %1826 = vst [vmem:[%s7670_s11 + $0x430] sm:$0xff] %v1799_v40  ;;  %v1963_v40 = vld [vmem:[%s7658_s6 + $0x168] sm:$0x80]  ;;  %v1988_v45 = vrot.slane %v1967_v37, 1  ;;  %v1986_v50 = vsel %vm1019_vm4, %v1984_v34, %v1985_v35  ;;  %v2180_v8 = vld [vmem:[%s7745_s28 + $0x158] sm:$0xc0] }
 0x138   : > { %1827 = vst [vmem:[%s7670_s11 + $0x438] sm:$0xff] %v1801_v43  ;;  %v1947_v43 = vrot.slane %v1935_v33, 7  ;;  %v6546_v33 = vld [vmem:[%s7658_s6 + $0x272] ss:$8 sm:$0x30] }
 0x139   : > { %1828 = vst [vmem:[%s7670_s11 + $0x440] sm:$0xff] %v1803_v46  ;;  %v1990_v46 = vrot.slane %v1962_v38, 1  ;;  %v1989_v55 = vsel %vm1019_vm4, %v1987_v44, %v1988_v45  ;;  %v6550_v37 = vld [vmem:[%s7658_s6 + $0x274] ss:$8 sm:$0x30] }
 0x13a   : > { %1829 = vst [vmem:[%s7670_s11 + $0x448] sm:$0xff] %v1805_v49  ;;  %v1994_v49 = vrot.slane %v1969_v41, 1  ;;  %v2097_v39 = vor.u32 %v6550_v37, %v6549_v36  ;;  %v2102_v41 = vld [vmem:[%s7745_s28 + $0xc8] sm:$0x1e]  ;;  %v2104_v44 = vld [vmem:[%s7745_s28 + $0xd8] sm:$0x1e] }
 0x13b   : > { %1884 = vst [vmem:[%s7670_s11 + $0x450] sm:$0xff] %v1856_v52  ;;  %v1970_v52 = vld [vmem:[%s7658_s6 + $0x1a0] sm:$0x3]  ;;  %v1992_v61 = vsel %vm1019_vm4, %v1990_v46, %v1991_v47  ;;  %v2114_v46 = vld [vmem:[%s7745_s28 + $0xc8] sm:$0xf0] }
 0x13c   : > { %1890 = vst [vmem:[%s7670_s11 + $0x480] sm:$0x1] %v1855_v42  ;;  %v1946_v42 = vrot.slane %v1934_v32, 7  ;;  %v2184_v12 = vld [vmem:[%s7745_s28 + $0x178] sm:$0xc0] }
 0x13d   : > { %1885 = vst [vmem:[%s7670_s11 + $0x458] sm:$0xff] %v1859_v57  ;;  %v2032_v57 = vld [vmem:[%s7658_s6 + $0x1e0] sm:$0x1]  ;;  %v2190_v18 = vld [vmem:[%s7745_s28 + $0x1a8] sm:$0x7] }
 0x13e   : > { %1891 = vst [vmem:[%s7670_s11 + $0x488] sm:$0x1] %v1858_v48  ;;  %v1993_v48 = vrot.slane %v1963_v40, 1  ;;  %v2051_v3 = vrot.slane %v2032_v57, 3  ;;  %v2101_v40 = vld [vmem:[%s7745_s28 + $0xc0] sm:$0x1e] }
 0x13f   : > { %1886 = vst [vmem:[%s7670_s11 + $0x460] sm:$0xff] %v1862_v63  ;;  %v1997_v63 = vrot.slane %v1970_v52, 1  ;;  %v2149_v57 = vld [vmem:[%s7745_s28 + $0x120] sm:$0x1f]  ;;  %v2231_v36 = vld [vmem:[%s7745_s28 + $0x230] sm:$0x7c] }
 0x140   : > { %1892 = vst [vmem:[%s7670_s11 + $0x490] sm:$0x1] %v1861_v54  ;;  %v1971_v54 = vld [vmem:[%s7658_s6 + $0x1a8] sm:$0x3] }
 0x141   : > { %1887 = vst [vmem:[%s7670_s11 + $0x468] sm:$0xff] %v1865_v2  ;;  %v2050_v2 = vrot.slane %v2026_v56, 3  ;;  %v1998_v10 = vsel %vm1019_vm4, %v1996_v62, %v1997_v63  ;;  %v2129_v56 = vrot.slane %v2117_v53, 7  ;;  %v2161_v62 = vrot.slane %v2149_v57, 7  ;;  %v2262_v53 = vld [vmem:[%s7906_s7 + $0x80] sm:$0x7c] }
 0x142   : > { %1893 = vst [vmem:[%s7670_s11 + $0x498] sm:$0x1] %v1864_v60  ;;  %v2033_v60 = vld [vmem:[%s7658_s6 + $0x1e8] sm:$0x1] }
 0x143   : > { %1888 = vst [vmem:[%s7670_s11 + $0x470] sm:$0xff] %v1868_v6  ;;  %v2054_v6 = vrot.slane %v2033_v60, 3  ;;  %v2150_v60 = vld [vmem:[%s7745_s28 + $0x128] sm:$0x1f] }
 0x144   : > { %1894 = vst [vmem:[%s7670_s11 + $0x4a0] sm:$0x1] %v1867_v1  ;;  %v2000_v1 = vrot.slane %v1971_v54, 1  ;;  %v2128_v54 = vrot.slane %v2116_v51, 7  ;;  %v2272_v51 = vld [vmem:[%s7906_s7 + $0x70] sm:$0xc0] }
 0x145   : > { %1889 = vst [vmem:[%s7670_s11 + $0x478] sm:$0xff] %v1871_v9  ;;  %v2029_v9 = vld [vmem:[%s7658_s6 + $0x1c8] sm:$0xf0]  ;;  %v2296_v57 = vrot.slane %v2272_v51, 7  ;;  %v2377_v51 = vld [vmem:[%s7906_s7 + $0x118] sm:$0x80] }
 0x146   : > { %1895 = vst [vmem:[%s7670_s11 + $0x4a8] sm:$0x1] %v1870_v4  ;;  %v1995_v4 = vsel %vm1019_vm4, %v1993_v48, %v1994_v49  ;;  %v6608_v37 = vld [vmem:[%s7745_s28 + $0x2a5] ss:$8 sm:$0x30] }
 0x147   : > { %6501 = vst.msk [vmem:[%s7670_s11 + $0x481] ss:$8 sm:$0xf] %vm7753_vm1, %v1899_v11 }
 0x148   : > { %6502 = vst.msk [vmem:[%s7670_s11 + $0x481] ss:$8 sm:$0x30] %vm7753_vm1, %v1899_v11  ;;  %v2035_v11 = vld [vmem:[%s7658_s6 + $0x1f8] sm:$0x1] }
 0x149   : > { %6505 = vst.msk [vmem:[%s7670_s11 + $0x482] ss:$8 sm:$0xf] %vm7753_vm1, %v1906_v14  ;;  %v2060_v20 = vrot.slane %v2035_v11, 3  ;;  %v2183_v11 = vld [vmem:[%s7745_s28 + $0x170] sm:$0xc0] }
 0x14a   : > { %6506 = vst.msk [vmem:[%s7670_s11 + $0x482] ss:$8 sm:$0x30] %vm7753_vm1, %v1906_v14  ;;  %v2031_v14 = vld [vmem:[%s7658_s6 + $0x1d8] sm:$0xf0] }
 0x14b   : > { %6509 = vst.msk [vmem:[%s7670_s11 + $0x483] ss:$8 sm:$0xf] %vm7753_vm1, %v1913_v15  ;;  %v2065_v24 = vrot.slane %v2031_v14, 3  ;;  %v2186_v14 = vld [vmem:[%s7745_s28 + $0x188] sm:$0x7] }
 0x14c   : > { %6510 = vst.msk [vmem:[%s7670_s11 + $0x483] ss:$8 sm:$0x30] %vm7753_vm1, %v1913_v15  ;;  %v2001_v15 = vsel %vm1019_vm4, %v1999_v0, %v2000_v1  ;;  %v2162_v0 = vrot.slane %v2150_v60, 7  ;;  %v2276_v60 = vld [vmem:[%s7906_s7 + $0x90] sm:$0x7] }
 0x14d   : > { %6511 = vst [vmem:[%s7670_s11 + $0x4b0] sm:$0x7] %v1917_v16  ;;  %v2056_v16 = vrot.slane %v2028_v7, 3  ;;  %v2067_v34 = vsel %vm1243_vm6, %v2065_v24, %v2066_v26  ;;  %v2179_v7 = vld [vmem:[%s7745_s28 + $0x150] sm:$0xc0] }
 0x14e   : > { %6512 = vst [vmem:[%s7670_s11 + $0x4b8] sm:$0x7] %v1918_v19  ;;  %v2059_v19 = vrot.slane %v2029_v9, 3  ;;  %v2181_v9 = vld [vmem:[%s7745_s28 + $0x160] sm:$0xc0] }
 0x14f   : > { %6513 = vst [vmem:[%s7670_s11 + $0x4c0] sm:$0x7] %v1919_v21  ;;  %v2052_v21 = vsel %vm1243_vm6, %v2050_v2, %v2051_v3  ;;  %v2154_v3 = vld [vmem:[%s7745_s28 + $0x148] sm:$0x1f]  ;;  %v2208_v24 = vld [vmem:[%s7745_s28 + $0x1d8] sm:$0xf8] }
 0x150   : > { %6514 = vst [vmem:[%s7670_s11 + $0x4c8] sm:$0x7] %v1920_v23  ;;  %v2063_v23 = vrot.slane %v2036_v13, 3  ;;  %v2185_v13 = vld [vmem:[%s7745_s28 + $0x180] sm:$0x7] }
 0x151   : > { %6515 = vst [vmem:[%s7670_s11 + $0x4d0] sm:$0x7] %v1921_v25  ;;  %v2055_v25 = vsel %vm1243_vm6, %v2053_v5, %v2054_v6  ;;  %v2166_v6 = vrot.slane %v2154_v3, 7  ;;  %v2210_v26 = vld [vmem:[%s7745_s28 + $0x1e8] sm:$0x3] }
 0x152   : > { %6516 = vst [vmem:[%s7670_s11 + $0x4d8] sm:$0x7] %v1922_v27  ;;  %v6541_v27 = vld [vmem:[%s7658_s6 + $0x270] ss:$8 sm:$0xf]  ;;  %v2064_v32 = vsel %vm1243_vm6, %v2062_v22, %v2063_v23 }
 0x153   : > { %6517 = vst [vmem:[%s7670_s11 + $0x4b0] sm:$0x38] %v1942_v28  ;;  %v2058_v28 = vsel %vm1243_vm6, %v2056_v16, %v2057_v17  ;;  %v2188_v16 = vld [vmem:[%s7745_s28 + $0x198] sm:$0x7]  ;;  %v2189_v17 = vld [vmem:[%s7745_s28 + $0x1a0] sm:$0x7] }
 0x154   : > { %6518 = vst [vmem:[%s7670_s11 + $0x4b8] sm:$0x38] %v1943_v29  ;;  %v6542_v29 = vld [vmem:[%s7658_s6 + $0x270] ss:$8 sm:$0x30] }
 0x155   : > { %6519 = vst [vmem:[%s7670_s11 + $0x4c0] sm:$0x38] %v1944_v30  ;;  %v2061_v30 = vsel %vm1243_vm6, %v2059_v19, %v2060_v20  ;;  %v2203_v19 = vld [vmem:[%s7745_s28 + $0x1b0] sm:$0xf8]  ;;  %v2204_v20 = vld [vmem:[%s7745_s28 + $0x1b8] sm:$0xf8] }
 0x156   : > { %6520 = vst [vmem:[%s7670_s11 + $0x4c8] sm:$0x38] %v1945_v31  ;;  %v6545_v31 = vld [vmem:[%s7658_s6 + $0x272] ss:$8 sm:$0xf] }
 0x157   : > { %6521 = vst [vmem:[%s7670_s11 + $0x4d0] sm:$0x38] %v1946_v42  ;;  %v2090_v38 = vor.u32 %v6546_v33, %v6545_v31  ;;  %v2103_v42 = vld [vmem:[%s7745_s28 + $0xd0] sm:$0x1e]  ;;  %v2206_v22 = vld [vmem:[%s7745_s28 + $0x1c8] sm:$0xf8] }
 0x158   : > { %6522 = vst [vmem:[%s7670_s11 + $0x4d8] sm:$0x38] %v1947_v43  ;;  %v2113_v43 = vld [vmem:[%s7745_s28 + $0xc0] sm:$0xf0]  ;;  %v2207_v23 = vld [vmem:[%s7745_s28 + $0x1d0] sm:$0xf8] }
 0x159   : > { %6523 = vst [vmem:[%s7670_s11 + $0x4b0] sm:$0xc0] %v1986_v50  ;;  %v2125_v48 = vrot.slane %v2113_v43, 7  ;;  %v2126_v50 = vrot.slane %v2114_v46, 7  ;;  %v2227_v31 = vld [vmem:[%s7745_s28 + $0x210] sm:$0x7c] }
 0x15a   : > { %6529 = vst [vmem:[%s7670_s11 + $0x4e0] sm:$0x1] %v1985_v35  ;;  %v2083_v35 = vor.u32 %v6542_v29, %v6541_v27  ;;  %v2211_v27 = vld [vmem:[%s7745_s28 + $0x1f0] sm:$0x3]  ;;  %v2213_v29 = vld [vmem:[%s7745_s28 + $0x200] sm:$0x3] }
 0x15b   : > { %6524 = vst [vmem:[%s7670_s11 + $0x4b8] sm:$0xc0] %v1989_v55  ;;  %v2118_v55 = vld [vmem:[%s7745_s28 + $0xe8] sm:$0xf0]  ;;  %v2229_v33 = vld [vmem:[%s7745_s28 + $0x220] sm:$0x7c] }
 0x15c   : > { %6530 = vst [vmem:[%s7670_s11 + $0x4e8] sm:$0x1] %v1988_v45  ;;  %v2105_v45 = vld [vmem:[%s7745_s28 + $0xe0] sm:$0x1e]  ;;  %v2130_v58 = vrot.slane %v2118_v55, 7 }
 0x15d   : > { %6525 = vst [vmem:[%s7670_s11 + $0x4c0] sm:$0xc0] %v1992_v61  ;;  %v2151_v61 = vld [vmem:[%s7745_s28 + $0x130] sm:$0x1f]  ;;  %v2258_v46 = vld [vmem:[%s7906_s7 + $0x60] sm:$0x7c] }
 0x15e   : > { %6531 = vst [vmem:[%s7670_s11 + $0x4f0] sm:$0x1] %v1991_v47  ;;  %v2106_v47 = vld [vmem:[%s7745_s28 + $0xe8] sm:$0x1e]  ;;  %v2163_v2 = vrot.slane %v2151_v61, 7 }
 0x15f   : > { %6526 = vst [vmem:[%s7670_s11 + $0x4c8] sm:$0xc0] %v1995_v4  ;;  %v6616_v43 = vld [vmem:[%s7745_s28 + $0x2d3] ss:$8 sm:$0x30] }
 0x160   : > { %6532 = vst [vmem:[%s7670_s11 + $0x4f8] sm:$0x1] %v1994_v49  ;;  %v2115_v49 = vld [vmem:[%s7745_s28 + $0xd0] sm:$0xf0]  ;;  %v2263_v55 = vld [vmem:[%s7906_s7 + $0x88] sm:$0x7c] }
 0x161   : > { %6527 = vst [vmem:[%s7670_s11 + $0x4d0] sm:$0xc0] %v1998_v10  ;;  %v2127_v52 = vrot.slane %v2115_v49, 7  ;;  %v2182_v10 = vld [vmem:[%s7745_s28 + $0x168] sm:$0xc0] }
 0x162   : > { %6533 = vst [vmem:[%s7670_s11 + $0x500] sm:$0x1] %v1997_v63  ;;  %v2152_v63 = vld [vmem:[%s7745_s28 + $0x138] sm:$0x1f]  ;;  %v2260_v49 = vld [vmem:[%s7906_s7 + $0x70] sm:$0x7c] }
 0x163   : > { %6528 = vst [vmem:[%s7670_s11 + $0x4d8] sm:$0xc0] %v2001_v15  ;;  %v2164_v4 = vrot.slane %v2152_v63, 7  ;;  %v2187_v15 = vld [vmem:[%s7745_s28 + $0x190] sm:$0x7] }
 0x164   : > { %6534 = vst [vmem:[%s7670_s11 + $0x508] sm:$0x1] %v2000_v1  ;;  %v2153_v1 = vld [vmem:[%s7745_s28 + $0x140] sm:$0x1f]  ;;  %v2274_v61 = vld [vmem:[%s7906_s7 + $0x80] sm:$0xc0] }
 0x165   : > { %6535 = vst [vmem:[%s7670_s11 + $0x4e0] sm:$0x3e] %v2052_v21  ;;  %v2165_v5 = vrot.slane %v2153_v1, 7  ;;  %v2205_v21 = vld [vmem:[%s7745_s28 + $0x1c0] sm:$0xf8] }
 0x166   : > { %6536 = vst [vmem:[%s7670_s11 + $0x4e8] sm:$0x3e] %v2055_v25  ;;  %v2209_v25 = vld [vmem:[%s7745_s28 + $0x1e0] sm:$0x3]  ;;  %v2275_v63 = vld [vmem:[%s7906_s7 + $0x88] sm:$0xc0] }
 0x167   : > { %6537 = vst [vmem:[%s7670_s11 + $0x4f0] sm:$0x3e] %v2058_v28  ;;  %v2212_v28 = vld [vmem:[%s7745_s28 + $0x1f8] sm:$0x3]  ;;  %v2279_v3 = vld [vmem:[%s7906_s7 + $0xa8] sm:$0x7] }
 0x168   : > { %6538 = vst [vmem:[%s7670_s11 + $0x4f8] sm:$0x3e] %v2061_v30  ;;  %v2214_v30 = vld [vmem:[%s7745_s28 + $0x208] sm:$0x3] }
 0x169   : > { %6539 = vst [vmem:[%s7670_s11 + $0x500] sm:$0x3e] %v2064_v32  ;;  %v2228_v32 = vld [vmem:[%s7745_s28 + $0x218] sm:$0x7c] }
 0x16a   : > { %6540 = vst [vmem:[%s7670_s11 + $0x508] sm:$0x3e] %v2067_v34  ;;  %v2230_v34 = vld [vmem:[%s7745_s28 + $0x228] sm:$0x7c] }
 0x16b   : > { %6543 = vst.msk [vmem:[%s7670_s11 + $0x4e6] ss:$8 sm:$0xf] %vm7753_vm1, %v2083_v35 }
 0x16c   : > { %6544 = vst.msk [vmem:[%s7670_s11 + $0x4e6] ss:$8 sm:$0x30] %vm7753_vm1, %v2083_v35  ;;  %v6607_v35 = vld [vmem:[%s7745_s28 + $0x2a5] ss:$8 sm:$0xf] }
 0x16d   : > { %6547 = vst.msk [vmem:[%s7670_s11 + $0x4e7] ss:$8 sm:$0xf] %vm7753_vm1, %v2090_v38 }
 0x16e   : > { %6548 = vst.msk [vmem:[%s7670_s11 + $0x4e7] ss:$8 sm:$0x30] %vm7753_vm1, %v2090_v38  ;;  %v2232_v38 = vld [vmem:[%s7745_s28 + $0x238] sm:$0x7c] }
 0x16f   : > { %6551 = vst.msk [vmem:[%s7670_s11 + $0x510] ss:$8 sm:$0xf] %vm7753_vm1, %v2097_v39 }
 0x170   : > { %6552 = vst.msk [vmem:[%s7670_s11 + $0x510] ss:$8 sm:$0x30] %vm7753_vm1, %v2097_v39  ;;  %v6611_v39 = vld [vmem:[%s7745_s28 + $0x2d0] ss:$8 sm:$0xf] }
 0x171   : > { %6553 = vst [vmem:[%s7670_s11 + $0x510] sm:$0x1e] %v2101_v40  ;;  %v6612_v40 = vld [vmem:[%s7745_s28 + $0x2d0] ss:$8 sm:$0x30] }
 0x172   : > { %6554 = vst [vmem:[%s7670_s11 + $0x518] sm:$0x1e] %v2102_v41  ;;  %v2241_v41 = vor.u32 %v6608_v37, %v6607_v35  ;;  %v2374_v37 = vld [vmem:[%s7906_s7 + $0x100] sm:$0x80] }
 0x173   : > { %6555 = vst [vmem:[%s7670_s11 + $0x520] sm:$0x1e] %v2103_v42  ;;  %v6615_v42 = vld [vmem:[%s7745_s28 + $0x2d3] ss:$8 sm:$0xf] }
 0x174   : > { %6556 = vst [vmem:[%s7670_s11 + $0x528] sm:$0x1e] %v2104_v44  ;;  %v2247_v44 = vor.u32 %v6612_v40, %v6611_v39 }
 0x175   : > { %6557 = vst [vmem:[%s7670_s11 + $0x530] sm:$0x1e] %v2105_v45  ;;  %v2254_v45 = vor.u32 %v6616_v43, %v6615_v42  ;;  %v2381_v42 = vld [vmem:[%s7906_s7 + $0x138] sm:$0x3f] }
 0x176   : > { %6558 = vst [vmem:[%s7670_s11 + $0x538] sm:$0x1e] %v2106_v47  ;;  %v2259_v47 = vld [vmem:[%s7906_s7 + $0x68] sm:$0x7c] }
 0x177   : > { %6559 = vst [vmem:[%s7670_s11 + $0x510] sm:$0xe0] %v2125_v48 }
 0x178   : > { %6565 = vst [vmem:[%s7670_s11 + $0x540] sm:$0x1] %v2125_v48  ;;  %v2270_v48 = vld [vmem:[%s7906_s7 + $0x60] sm:$0xc0] }
 0x179   : > { %6560 = vst [vmem:[%s7670_s11 + $0x518] sm:$0xe0] %v2126_v50 }
 0x17a   : > { %6566 = vst [vmem:[%s7670_s11 + $0x548] sm:$0x1] %v2126_v50  ;;  %v2271_v50 = vld [vmem:[%s7906_s7 + $0x68] sm:$0xc0] }
 0x17b   : > { %6561 = vst [vmem:[%s7670_s11 + $0x520] sm:$0xe0] %v2127_v52 }
 0x17c   : > { %6567 = vst [vmem:[%s7670_s11 + $0x550] sm:$0x1] %v2127_v52  ;;  %v2261_v52 = vld [vmem:[%s7906_s7 + $0x78] sm:$0x7c] }
 0x17d   : > { %6562 = vst [vmem:[%s7670_s11 + $0x528] sm:$0xe0] %v2128_v54 }
 0x17e   : > { %6568 = vst [vmem:[%s7670_s11 + $0x558] sm:$0x1] %v2128_v54  ;;  %v2294_v54 = vrot.slane %v2270_v48, 7 }
 0x17f   : > { %6563 = vst [vmem:[%s7670_s11 + $0x530] sm:$0xe0] %v2129_v56 }
 0x180   : > { %6569 = vst [vmem:[%s7670_s11 + $0x560] sm:$0x1] %v2129_v56  ;;  %v2295_v56 = vrot.slane %v2271_v50, 7  ;;  %v2406_v50 = vrot.slane %v2381_v42, 4 }
 0x181   : > { %6564 = vst [vmem:[%s7670_s11 + $0x538] sm:$0xe0] %v2130_v58 }
 0x182   : > { %6570 = vst [vmem:[%s7670_s11 + $0x568] sm:$0x1] %v2130_v58  ;;  %v2273_v58 = vld [vmem:[%s7906_s7 + $0x78] sm:$0xc0] }
 0x183   : > { %6571 = vst [vmem:[%s7670_s11 + $0x540] sm:$0x3e] %v2161_v62  ;;  %v2277_v62 = vld [vmem:[%s7906_s7 + $0x98] sm:$0x7]  ;;  %v2297_v1 = vrot.slane %v2273_v58, 7 }
 0x184   : > { %6572 = vst [vmem:[%s7670_s11 + $0x548] sm:$0x3e] %v2162_v0  ;;  %v2278_v0 = vld [vmem:[%s7906_s7 + $0xa0] sm:$0x7] }
 0x185   : > { %6573 = vst [vmem:[%s7670_s11 + $0x550] sm:$0x3e] %v2163_v2  ;;  %v2300_v2 = vrot.slane %v2276_v60, 7  ;;  %v2411_v60 = vrot.slane %v2377_v51, 4 }
 0x186   : > { %6574 = vst [vmem:[%s7670_s11 + $0x558] sm:$0x3e] %v2164_v4  ;;  %v2298_v4 = vrot.slane %v2274_v61, 7 }
 0x187   : > { %6575 = vst [vmem:[%s7670_s11 + $0x560] sm:$0x3e] %v2165_v5  ;;  %v2302_v5 = vrot.slane %v2277_v62, 7  ;;  %v2439_v62 = vld [vmem:[%s7906_s7 + $0x158] sm:$0xe0] }
 0x188   : > { %6576 = vst [vmem:[%s7670_s11 + $0x568] sm:$0x3e] %v2166_v6  ;;  %v2280_v6 = vld [vmem:[%s7906_s7 + $0xb0] sm:$0x7] }
 0x189   : > { %6577 = vst [vmem:[%s7670_s11 + $0x540] sm:$0xc0] %v2179_v7  ;;  %v2299_v7 = vrot.slane %v2275_v63, 7  ;;  %v2445_v63 = vld [vmem:[%s7906_s7 + $0x188] sm:$0xf] }
 0x18a   : > { %6578 = vst [vmem:[%s7670_s11 + $0x548] sm:$0xc0] %v2180_v8  ;;  %v2304_v8 = vrot.slane %v2278_v0, 7 }
 0x18b   : > { %6579 = vst [vmem:[%s7670_s11 + $0x550] sm:$0xc0] %v2181_v9  ;;  %v2281_v9 = vld [vmem:[%s7906_s7 + $0xb8] sm:$0x7] }
 0x18c   : > { %6580 = vst [vmem:[%s7670_s11 + $0x558] sm:$0xc0] %v2182_v10  ;;  %v2306_v10 = vrot.slane %v2279_v3, 7  ;;  %v2440_v3 = vld [vmem:[%s7906_s7 + $0x160] sm:$0xe0] }
 0x18d   : > { %6581 = vst [vmem:[%s7670_s11 + $0x560] sm:$0xc0] %v2183_v11  ;;  %v2301_v11 = vsel %vm1565_vm7, %v2294_v54, %v2300_v2 }
 0x18e   : > { %6582 = vst [vmem:[%s7670_s11 + $0x568] sm:$0xc0] %v2184_v12  ;;  %v2308_v12 = vrot.slane %v2280_v6, 7  ;;  %v2465_v6 = vrot.slane %v2439_v62, 3 }
 0x18f   : > { %6583 = vst [vmem:[%s7670_s11 + $0x570] sm:$0x7] %v2185_v13  ;;  %v2303_v13 = vsel %vm1565_vm7, %v2295_v56, %v2302_v5 }
 0x190   : > { %6584 = vst [vmem:[%s7670_s11 + $0x578] sm:$0x7] %v2186_v14  ;;  %v2310_v14 = vrot.slane %v2281_v9, 7  ;;  %v2447_v9 = vld [vmem:[%s7906_s7 + $0x198] sm:$0xf] }
 0x191   : > { %6585 = vst [vmem:[%s7670_s11 + $0x580] sm:$0x7] %v2187_v15  ;;  %v2305_v15 = vsel %vm1565_vm7, %v2296_v57, %v2304_v8  ;;  %v2441_v8 = vld [vmem:[%s7906_s7 + $0x168] sm:$0xe0] }
 0x192   : > { %6586 = vst [vmem:[%s7670_s11 + $0x588] sm:$0x7] %v2188_v16  ;;  %v2336_v16 = vld [vmem:[%s7906_s7 + $0xc0] sm:$0xfe] }
 0x193   : > { %6587 = vst [vmem:[%s7670_s11 + $0x590] sm:$0x7] %v2189_v17  ;;  %v2307_v17 = vsel %vm1565_vm7, %v2297_v1, %v2306_v10 }
 0x194   : > { %6588 = vst [vmem:[%s7670_s11 + $0x598] sm:$0x7] %v2190_v18  ;;  %v2309_v18 = vsel %vm1565_vm7, %v2298_v4, %v2308_v12 }
 0x195   : > { %6589 = vst [vmem:[%s7670_s11 + $0x570] sm:$0xf8] %v2203_v19  ;;  %v2337_v19 = vld [vmem:[%s7906_s7 + $0xc8] sm:$0xfe] }
 0x196   : > { %6590 = vst [vmem:[%s7670_s11 + $0x578] sm:$0xf8] %v2204_v20  ;;  %v2311_v20 = vsel %vm1565_vm7, %v2299_v7, %v2310_v14  ;;  %v2448_v14 = vld [vmem:[%s7906_s7 + $0x1a0] sm:$0xf] }
 0x197   : > { %6591 = vst [vmem:[%s7670_s11 + $0x580] sm:$0xf8] %v2205_v21  ;;  %v2348_v21 = vrot.slane %v2336_v16, 5  ;;  %v2471_v16 = vrot.slane %v2441_v8, 3 }
 0x198   : > { %6592 = vst [vmem:[%s7670_s11 + $0x588] sm:$0xf8] %v2206_v22  ;;  %v2338_v22 = vld [vmem:[%s7906_s7 + $0xd0] sm:$0xfe] }
 0x199   : > { %6593 = vst [vmem:[%s7670_s11 + $0x590] sm:$0xf8] %v2207_v23  ;;  %v2349_v23 = vrot.slane %v2337_v19, 5  ;;  %v2449_v19 = vld [vmem:[%s7906_s7 + $0x1a8] sm:$0xf] }
 0x19a   : > { %6594 = vst [vmem:[%s7670_s11 + $0x598] sm:$0xf8] %v2208_v24  ;;  %v2339_v24 = vld [vmem:[%s7906_s7 + $0xd8] sm:$0xfe] }
 0x19b   : > { %6595 = vst [vmem:[%s7670_s11 + $0x5a0] sm:$0x3] %v2209_v25  ;;  %v2350_v25 = vrot.slane %v2338_v22, 5  ;;  %v2475_v22 = vrot.slane %v2448_v14, 3 }
 0x19c   : > { %6596 = vst [vmem:[%s7670_s11 + $0x5a8] sm:$0x3] %v2210_v26  ;;  %v2340_v26 = vld [vmem:[%s7906_s7 + $0xe0] sm:$0xfe] }
 0x19d   : > { %6597 = vst [vmem:[%s7670_s11 + $0x5b0] sm:$0x3] %v2211_v27  ;;  %v2351_v27 = vrot.slane %v2339_v24, 5  ;;  %v2510_v24 = vld [vmem:[%s7906_s7 + $0x1e0] sm:$0x7] }
 0x19e   : > { %6598 = vst [vmem:[%s7670_s11 + $0x5b8] sm:$0x3] %v2212_v28  ;;  %v2341_v28 = vld [vmem:[%s7906_s7 + $0xe8] sm:$0xfe] }
 0x19f   : > { %6599 = vst [vmem:[%s7670_s11 + $0x5c0] sm:$0x3] %v2213_v29  ;;  %v2372_v29 = vld [vmem:[%s7906_s7 + $0xf0] sm:$0x80] }
 0x1a0   : > { %6600 = vst [vmem:[%s7670_s11 + $0x5c8] sm:$0x3] %v2214_v30  ;;  %v2378_v30 = vld [vmem:[%s7906_s7 + $0x120] sm:$0x3f]  ;;  %v2396_v35 = vrot.slane %v2372_v29, 4 }
 0x1a1   : > { %6601 = vst [vmem:[%s7670_s11 + $0x5a0] sm:$0x7c] %v2227_v31  ;;  %v2352_v31 = vrot.slane %v2340_v26, 5  ;;  %v2511_v29 = vld [vmem:[%s7906_s7 + $0x1e8] sm:$0x7] }
 0x1a2   : > { %6602 = vst [vmem:[%s7670_s11 + $0x5a8] sm:$0x7c] %v2228_v32  ;;  %v2373_v32 = vld [vmem:[%s7906_s7 + $0xf8] sm:$0x80] }
 0x1a3   : > { %6603 = vst [vmem:[%s7670_s11 + $0x5b0] sm:$0x7c] %v2229_v33  ;;  %v2379_v33 = vld [vmem:[%s7906_s7 + $0x128] sm:$0x3f]  ;;  %v2399_v39 = vrot.slane %v2373_v32, 4  ;;  %v2529_v32 = vrot.slane %v2510_v24, 1 }
 0x1a4   : > { %6604 = vst [vmem:[%s7670_s11 + $0x5b8] sm:$0x7c] %v2230_v34  ;;  %v2353_v34 = vrot.slane %v2341_v28, 5  ;;  %v2400_v40 = vrot.slane %v2379_v33, 4  ;;  %v2505_v28 = vld [vmem:[%s7906_s7 + $0x1b8] sm:$0xfc] }
 0x1a5   : > { %6605 = vst [vmem:[%s7670_s11 + $0x5c0] sm:$0x7c] %v2231_v36  ;;  %v2397_v36 = vrot.slane %v2378_v30, 4  ;;  %v2506_v33 = vld [vmem:[%s7906_s7 + $0x1c0] sm:$0xfc] }
 0x1a6   : > { %6606 = vst [vmem:[%s7670_s11 + $0x5c8] sm:$0x7c] %v2232_v38  ;;  %v2380_v38 = vld [vmem:[%s7906_s7 + $0x130] sm:$0x3f]  ;;  %v2401_v48 = vsel %vm442_vm0, %v2399_v39, %v2400_v40  ;;  %v2513_v39 = vld [vmem:[%s7906_s7 + $0x1f8] sm:$0x7] }
 0x1a7   : > { %6609 = vst.msk [vmem:[%s7670_s11 + $0x5a7] ss:$8 sm:$0xf] %vm7753_vm1, %v2241_v41  ;;  %v2398_v43 = vsel %vm442_vm0, %v2396_v35, %v2397_v36  ;;  %v2617_v24 = vld [vmem:[%s7906_s7 + $0x298] sm:$0x3f] }
 0x1a8   : > { %6610 = vst.msk [vmem:[%s7670_s11 + $0x5a7] ss:$8 sm:$0x30] %vm7753_vm1, %v2241_v41  ;;  %v2375_v41 = vld [vmem:[%s7906_s7 + $0x108] sm:$0x80] }
 0x1a9   : > { %6613 = vst.msk [vmem:[%s7670_s11 + $0x5d0] ss:$8 sm:$0xf] %vm7753_vm1, %v2247_v44 }
 0x1aa   : > { %6614 = vst.msk [vmem:[%s7670_s11 + $0x5d0] ss:$8 sm:$0x30] %vm7753_vm1, %v2247_v44  ;;  %v2402_v44 = vrot.slane %v2374_v37, 4  ;;  %v2532_v37 = vrot.slane %v2511_v29, 1 }
 0x1ab   : > { %6617 = vst.msk [vmem:[%s7670_s11 + $0x5d1] ss:$8 sm:$0xf] %vm7753_vm1, %v2254_v45 }
 0x1ac   : > { %6618 = vst.msk [vmem:[%s7670_s11 + $0x5d1] ss:$8 sm:$0x30] %vm7753_vm1, %v2254_v45  ;;  %v2403_v45 = vrot.slane %v2380_v38, 4  ;;  %v2507_v38 = vld [vmem:[%s7906_s7 + $0x1c8] sm:$0xfc] }
 0x1ad   : > { %6619 = vst [vmem:[%s7670_s11 + $0x5d0] sm:$0x7c] %v2258_v46  ;;  %v2376_v46 = vld [vmem:[%s7906_s7 + $0x110] sm:$0x80] }
 0x1ae   : > { %6620 = vst [vmem:[%s7670_s11 + $0x5d8] sm:$0x7c] %v2259_v47  ;;  %v2382_v47 = vld [vmem:[%s7906_s7 + $0x140] sm:$0x3f] }
 0x1af   : > { %6621 = vst [vmem:[%s7670_s11 + $0x5e0] sm:$0x7c] %v2260_v49  ;;  %v2405_v49 = vrot.slane %v2375_v41, 4  ;;  %v2534_v41 = vrot.slane %v2506_v33, 1 }
 0x1b0   : > { %6622 = vst [vmem:[%s7670_s11 + $0x5e8] sm:$0x7c] %v2261_v52  ;;  %v2383_v52 = vld [vmem:[%s7906_s7 + $0x148] sm:$0x3f] }
 0x1b1   : > { %6623 = vst [vmem:[%s7670_s11 + $0x5f0] sm:$0x7c] %v2262_v53  ;;  %v2404_v53 = vsel %vm442_vm0, %v2402_v44, %v2403_v45  ;;  %v2407_v58 = vsel %vm442_vm0, %v2405_v49, %v2406_v50  ;;  %v2412_v61 = vrot.slane %v2383_v52, 4  ;;  %v2514_v44 = vld [vmem:[%s7906_s7 + $0x200] sm:$0x7] }
 0x1b2   : > { %6624 = vst [vmem:[%s7670_s11 + $0x5f8] sm:$0x7c] %v2263_v55  ;;  %v2409_v55 = vrot.slane %v2382_v47, 4  ;;  %v2538_v47 = vrot.slane %v2513_v39, 1  ;;  %v2515_v49 = vld [vmem:[%s7906_s7 + $0x208] sm:$0x7] }
 0x1b3   : > { %6625 = vst [vmem:[%s7670_s11 + $0x5d0] sm:$0x80] %v2294_v54  ;;  %v2408_v54 = vrot.slane %v2376_v46, 4  ;;  %v2413_v5 = vsel %vm442_vm0, %v2411_v60, %v2412_v61  ;;  %v2537_v46 = vrot.slane %v2507_v38, 1  ;;  %v2541_v52 = vrot.slane %v2514_v44, 1 }
 0x1b4   : > { %6626 = vst [vmem:[%s7670_s11 + $0x5d8] sm:$0x80] %v2295_v56  ;;  %v2438_v56 = vld [vmem:[%s7906_s7 + $0x150] sm:$0xe0]  ;;  %v2572_v60 = vld [vmem:[%s7906_s7 + $0x220] sm:$0xfe] }
 0x1b5   : > { %6627 = vst [vmem:[%s7670_s11 + $0x5e0] sm:$0x80] %v2296_v57  ;;  %v2444_v57 = vld [vmem:[%s7906_s7 + $0x180] sm:$0xf]  ;;  %v2410_v0 = vsel %vm442_vm0, %v2408_v54, %v2409_v55 }
 0x1b6   : > { %6628 = vst [vmem:[%s7670_s11 + $0x5e8] sm:$0x80] %v2297_v1  ;;  %v2462_v1 = vrot.slane %v2438_v56, 3  ;;  %v2463_v2 = vrot.slane %v2444_v57, 3  ;;  %v2570_v57 = vld [vmem:[%s7906_s7 + $0x210] sm:$0xfe] }
 0x1b7   : > { %6629 = vst [vmem:[%s7670_s11 + $0x5f0] sm:$0x80] %v2298_v4  ;;  %v2446_v4 = vld [vmem:[%s7906_s7 + $0x190] sm:$0xf]  ;;  %v2582_v62 = vrot.slane %v2570_v57, 7 }
 0x1b8   : > { %6630 = vst [vmem:[%s7670_s11 + $0x5f8] sm:$0x80] %v2299_v7  ;;  %v2466_v7 = vrot.slane %v2445_v63, 3  ;;  %v2464_v10 = vsel %vm1243_vm6, %v2462_v1, %v2463_v2  ;;  %v2469_v12 = vrot.slane %v2446_v4, 3  ;;  %v2573_v1 = vld [vmem:[%s7906_s7 + $0x228] sm:$0xfe] }
 0x1b9   : > { %6631 = vst [vmem:[%s7670_s11 + $0x600] sm:$0xf] %v2301_v11  ;;  %v2468_v11 = vrot.slane %v2440_v3, 3  ;;  %v2575_v3 = vld [vmem:[%s7906_s7 + $0x238] sm:$0xfe]  ;;  %v2585_v8 = vrot.slane %v2573_v1, 7 }
 0x1ba   : > { %6632 = vst [vmem:[%s7670_s11 + $0x608] sm:$0xf] %v2303_v13  ;;  %v2442_v13 = vld [vmem:[%s7906_s7 + $0x170] sm:$0xe0]  ;;  %v2606_v4 = vld [vmem:[%s7906_s7 + $0x240] sm:$0x80] }
 0x1bb   : > { %6633 = vst [vmem:[%s7670_s11 + $0x610] sm:$0xf] %v2305_v15  ;;  %v2467_v15 = vsel %vm1243_vm6, %v2465_v6, %v2466_v7  ;;  %v2607_v6 = vld [vmem:[%s7906_s7 + $0x248] sm:$0x80]  ;;  %v2689_v57 = vld [vmem:[%s8162_s12 + $0x40] sm:$0x1] }
 0x1bc   : > { %6634 = vst [vmem:[%s7670_s11 + $0x618] sm:$0xf] %v2307_v17  ;;  %v2472_v17 = vrot.slane %v2447_v9, 3  ;;  %v6703_v33 = vld [vmem:[%s7906_s7 + $0x302] ss:$8 sm:$0xf] }
 0x1bd   : > { %6635 = vst [vmem:[%s7670_s11 + $0x620] sm:$0xf] %v2309_v18  ;;  %v2443_v18 = vld [vmem:[%s7906_s7 + $0x178] sm:$0xe0]  ;;  %v2708_v1 = vld [vmem:[%s8162_s12 + $0x48] sm:$0x3f] }
 0x1be   : > { %6636 = vst [vmem:[%s7670_s11 + $0x628] sm:$0xf] %v2311_v20  ;;  %v2470_v20 = vsel %vm1243_vm6, %v2468_v11, %v2469_v12  ;;  %v2477_v26 = vrot.slane %v2443_v18, 3  ;;  %v2630_v11 = vrot.slane %v2606_v4, 6  ;;  %v2615_v18 = vld [vmem:[%s7906_s7 + $0x288] sm:$0x3f] }
 0x1bf   : > { %6637 = vst [vmem:[%s7670_s11 + $0x600] sm:$0xf0] %v2348_v21  ;;  %v6708_v39 = vld [vmem:[%s7906_s7 + $0x306] ss:$8 sm:$0x30] }
 0x1c0   : > { %6643 = vst [vmem:[%s7670_s11 + $0x630] sm:$0x7] %v2348_v21  ;;  %v2474_v21 = vrot.slane %v2442_v13, 3  ;;  %v2633_v13 = vrot.slane %v2607_v6, 6  ;;  %v2735_v4 = vld [vmem:[%s8162_s12 + $0x60] sm:$0xfc] }
 0x1c1   : > { %6638 = vst [vmem:[%s7670_s11 + $0x608] sm:$0xf0] %v2349_v23  ;;  %v2737_v6 = vld [vmem:[%s8162_s12 + $0x70] sm:$0xfc] }
 0x1c2   : > { %6644 = vst [vmem:[%s7670_s11 + $0x638] sm:$0x7] %v2349_v23  ;;  %v2504_v23 = vld [vmem:[%s7906_s7 + $0x1b0] sm:$0xfc]  ;;  %v2476_v30 = vsel %vm1243_vm6, %v2474_v21, %v2475_v22  ;;  %v2611_v21 = vld [vmem:[%s7906_s7 + $0x268] sm:$0x80] }
 0x1c3   : > { %6639 = vst [vmem:[%s7670_s11 + $0x610] sm:$0xf0] %v2350_v25 }
 0x1c4   : > { %6645 = vst [vmem:[%s7670_s11 + $0x640] sm:$0x7] %v2350_v25  ;;  %v2473_v25 = vsel %vm1243_vm6, %v2471_v16, %v2472_v17  ;;  %v2614_v16 = vld [vmem:[%s7906_s7 + $0x280] sm:$0x3f] }
 0x1c5   : > { %6640 = vst [vmem:[%s7670_s11 + $0x618] sm:$0xf0] %v2351_v27 }
 0x1c6   : > { %6646 = vst [vmem:[%s7670_s11 + $0x648] sm:$0x7] %v2351_v27  ;;  %v2478_v27 = vrot.slane %v2449_v19, 3  ;;  %v2610_v19 = vld [vmem:[%s7906_s7 + $0x260] sm:$0x80] }
 0x1c7   : > { %6641 = vst [vmem:[%s7670_s11 + $0x620] sm:$0xf0] %v2352_v31 }
 0x1c8   : > { %6647 = vst [vmem:[%s7670_s11 + $0x650] sm:$0x7] %v2352_v31  ;;  %v2528_v31 = vrot.slane %v2504_v23, 1  ;;  %v2479_v35 = vsel %vm1243_vm6, %v2477_v26, %v2478_v27  ;;  %v2637_v23 = vrot.slane %v2614_v16, 6  ;;  %v2640_v26 = vrot.slane %v2615_v18, 6 }
 0x1c9   : > { %6642 = vst [vmem:[%s7670_s11 + $0x628] sm:$0xf0] %v2353_v34  ;;  %v2742_v16 = vld [vmem:[%s8162_s12 + $0x98] sm:$0x7]  ;;  %v2743_v18 = vld [vmem:[%s8162_s12 + $0xa0] sm:$0x7] }
 0x1ca   : > { %6648 = vst [vmem:[%s7670_s11 + $0x658] sm:$0x7] %v2353_v34  ;;  %v2512_v34 = vld [vmem:[%s7906_s7 + $0x1f0] sm:$0x7] }
 0x1cb   : > { %6649 = vst [vmem:[%s7670_s11 + $0x630] sm:$0xf8] %v2398_v43  ;;  %v2535_v42 = vrot.slane %v2512_v34, 1  ;;  %v2508_v43 = vld [vmem:[%s7906_s7 + $0x1d0] sm:$0xfc] }
 0x1cc   : > { %6655 = vst [vmem:[%s7670_s11 + $0x660] sm:$0x3] %v2397_v36  ;;  %v2531_v36 = vrot.slane %v2505_v28, 1  ;;  %v2540_v51 = vrot.slane %v2508_v43, 1  ;;  %v2642_v28 = vrot.slane %v2610_v19, 6 }
 0x1cd   : > { %6650 = vst [vmem:[%s7670_s11 + $0x638] sm:$0xf8] %v2401_v48  ;;  %v2509_v48 = vld [vmem:[%s7906_s7 + $0x1d8] sm:$0xfc] }
 0x1ce   : > { %6656 = vst [vmem:[%s7670_s11 + $0x668] sm:$0x3] %v2400_v40  ;;  %v2530_v40 = vsel %vm1019_vm4, %v2528_v31, %v2529_v32  ;;  %v2543_v54 = vrot.slane %v2509_v48, 1  ;;  %v2542_v56 = vsel %vm1019_vm4, %v2540_v51, %v2541_v52  ;;  %v6712_v43 = vld [vmem:[%s7906_s7 + $0x332] ss:$8 sm:$0x30] }
 0x1cf   : > { %6651 = vst [vmem:[%s7670_s11 + $0x640] sm:$0xf8] %v2404_v53  ;;  %v2539_v53 = vsel %vm1019_vm4, %v2537_v46, %v2538_v47  ;;  %v2681_v46 = vld [vmem:[%s8162_s12] sm:$0xf8]  ;;  %v2683_v48 = vld [vmem:[%s8162_s12 + $0x10] sm:$0xf8] }
 0x1d0   : > { %6657 = vst [vmem:[%s7670_s11 + $0x670] sm:$0x3] %v2403_v45  ;;  %v2533_v45 = vsel %vm1019_vm4, %v2531_v36, %v2532_v37  ;;  %v2686_v51 = vld [vmem:[%s8162_s12 + $0x28] sm:$0xf8] }
 0x1d1   : > { %6652 = vst [vmem:[%s7670_s11 + $0x648] sm:$0xf8] %v2407_v58  ;;  %v2571_v58 = vld [vmem:[%s7906_s7 + $0x218] sm:$0xfe] }
 0x1d2   : > { %6658 = vst [vmem:[%s7670_s11 + $0x678] sm:$0x3] %v2406_v50  ;;  %v2536_v50 = vsel %vm1019_vm4, %v2534_v41, %v2535_v42  ;;  %v2583_v63 = vrot.slane %v2571_v58, 7  ;;  %v2690_v58 = vld [vmem:[%s8162_s12 + $0x48] sm:$0x1] }
 0x1d3   : > { %6653 = vst [vmem:[%s7670_s11 + $0x650] sm:$0xf8] %v2410_v0  ;;  %v2584_v0 = vrot.slane %v2572_v60, 7  ;;  %v2691_v60 = vld [vmem:[%s8162_s12 + $0x50] sm:$0x1] }
 0x1d4   : > { %6659 = vst [vmem:[%s7670_s11 + $0x680] sm:$0x3] %v2409_v55  ;;  %v2544_v55 = vrot.slane %v2515_v49, 1  ;;  %v2684_v49 = vld [vmem:[%s8162_s12 + $0x18] sm:$0xf8] }
 0x1d5   : > { %6654 = vst [vmem:[%s7670_s11 + $0x658] sm:$0xf8] %v2413_v5  ;;  %v2612_v5 = vld [vmem:[%s7906_s7 + $0x270] sm:$0x3f] }
 0x1d6   : > { %6660 = vst [vmem:[%s7670_s11 + $0x688] sm:$0x3] %v2412_v61  ;;  %v2545_v61 = vsel %vm1019_vm4, %v2543_v54, %v2544_v55  ;;  %v2705_v54 = vld [vmem:[%s8162_s12 + $0x30] sm:$0x3f] }
 0x1d7   : > { %6661 = vst [vmem:[%s7670_s11 + $0x660] sm:$0xfc] %v2464_v10  ;;  %v2587_v10 = vrot.slane %v2575_v3, 7  ;;  %v2710_v3 = vld [vmem:[%s8162_s12 + $0x58] sm:$0x3f] }
 0x1d8   : > { %6667 = vst [vmem:[%s7670_s11 + $0x690] sm:$0x1] %v2463_v2  ;;  %v2574_v2 = vld [vmem:[%s7906_s7 + $0x230] sm:$0xfe] }
 0x1d9   : > { %6662 = vst [vmem:[%s7670_s11 + $0x668] sm:$0xfc] %v2467_v15  ;;  %v2586_v9 = vrot.slane %v2574_v2, 7  ;;  %v2608_v15 = vld [vmem:[%s7906_s7 + $0x250] sm:$0x80] }
 0x1da   : > { %6668 = vst [vmem:[%s7670_s11 + $0x698] sm:$0x1] %v2466_v7  ;;  %v2613_v7 = vld [vmem:[%s7906_s7 + $0x278] sm:$0x3f]  ;;  %v2709_v2 = vld [vmem:[%s8162_s12 + $0x50] sm:$0x3f] }
 0x1db   : > { %6663 = vst [vmem:[%s7670_s11 + $0x670] sm:$0xfc] %v2470_v20  ;;  %v2634_v14 = vrot.slane %v2613_v7, 6  ;;  %v2616_v20 = vld [vmem:[%s7906_s7 + $0x290] sm:$0x3f]  ;;  %v2720_v7 = vrot.slane %v2708_v1, 7 }
 0x1dc   : > { %6669 = vst [vmem:[%s7670_s11 + $0x6a0] sm:$0x1] %v2469_v12  ;;  %v2631_v12 = vrot.slane %v2612_v5, 6  ;;  %v2643_v29 = vrot.slane %v2616_v20, 6  ;;  %v2736_v5 = vld [vmem:[%s8162_s12 + $0x68] sm:$0xfc] }
 0x1dd   : > { %6664 = vst [vmem:[%s7670_s11 + $0x678] sm:$0xfc] %v2473_v25  ;;  %v2635_v31 = vsel %vm1110_vm5, %v2633_v13, %v2634_v14  ;;  %v2738_v13 = vld [vmem:[%s8162_s12 + $0x78] sm:$0xfc]  ;;  %v2741_v14 = vld [vmem:[%s8162_s12 + $0x90] sm:$0x7] }
 0x1de   : > { %6670 = vst [vmem:[%s7670_s11 + $0x6a8] sm:$0x1] %v2472_v17  ;;  %v2609_v17 = vld [vmem:[%s7906_s7 + $0x258] sm:$0x80]  ;;  %v2644_v38 = vsel %vm1110_vm5, %v2642_v28, %v2643_v29  ;;  %v2762_v19 = vrot.slane %v2738_v13, 3  ;;  %v2765_v20 = vrot.slane %v2741_v14, 3 }
 0x1df   : > { %6665 = vst [vmem:[%s7670_s11 + $0x680] sm:$0xfc] %v2476_v30  ;;  %v2639_v25 = vrot.slane %v2609_v17, 6  ;;  %v2645_v30 = vrot.slane %v2611_v21, 6  ;;  %v2740_v17 = vld [vmem:[%s8162_s12 + $0x88] sm:$0xfc] }
 0x1e0   : > { %6671 = vst [vmem:[%s7670_s11 + $0x6b0] sm:$0x1] %v2475_v22  ;;  %v2636_v22 = vrot.slane %v2608_v15, 6  ;;  %v2739_v15 = vld [vmem:[%s8162_s12 + $0x80] sm:$0xfc] }
 0x1e1   : > { %6666 = vst [vmem:[%s7670_s11 + $0x688] sm:$0xfc] %v2479_v35  ;;  %v6704_v35 = vld [vmem:[%s7906_s7 + $0x302] ss:$8 sm:$0x30]  ;;  %v2641_v36 = vsel %vm1110_vm5, %v2639_v25, %v2640_v26  ;;  %v2764_v25 = vrot.slane %v2740_v17, 3 }
 0x1e2   : > { %6672 = vst [vmem:[%s7670_s11 + $0x6b8] sm:$0x1] %v2478_v27  ;;  %v2632_v27 = vsel %vm1110_vm5, %v2630_v11, %v2631_v12  ;;  %v2638_v34 = vsel %vm1110_vm5, %v2636_v22, %v2637_v23  ;;  %v2663_v41 = vor.u32 %v6704_v35, %v6703_v33  ;;  %v2760_v11 = vrot.slane %v2736_v5, 3  ;;  %v2744_v21 = vld [vmem:[%s8162_s12 + $0xa8] sm:$0x7] }
 0x1e3   : > { %6673 = vst [vmem:[%s7670_s11 + $0x690] sm:$0xfe] %v2530_v40  ;;  %v2761_v12 = vrot.slane %v2737_v6, 3  ;;  %v2763_v22 = vrot.slane %v2739_v15, 3  ;;  %v2767_v23 = vrot.slane %v2742_v16, 3  ;;  %v2769_v26 = vrot.slane %v2743_v18, 3 }
 0x1e4   : > { %6679 = vst [vmem:[%s7670_s11 + $0x6c0] sm:$0x3] %v2529_v32  ;;  %v2646_v32 = vrot.slane %v2617_v24, 6  ;;  %v2745_v24 = vld [vmem:[%s8162_s12 + $0xb0] sm:$0x7]  ;;  %v2771_v28 = vrot.slane %v2744_v21, 3 }
 0x1e5   : > { %6674 = vst [vmem:[%s7670_s11 + $0x698] sm:$0xfe] %v2533_v45  ;;  %v2770_v33 = vsel %vm1243_vm6, %v2761_v12, %v2769_v26  ;;  %v2829_v1 = vld [vmem:[%s8162_s12 + $0x110] sm:$0xc0]  ;;  %v2830_v6 = vld [vmem:[%s8162_s12 + $0x118] sm:$0xc0] }
 0x1e6   : > { %6680 = vst [vmem:[%s7670_s11 + $0x6c8] sm:$0x3] %v2532_v37  ;;  %v6707_v37 = vld [vmem:[%s7906_s7 + $0x306] ss:$8 sm:$0xf]  ;;  %v2647_v40 = vsel %vm1110_vm5, %v2645_v30, %v2646_v32  ;;  %v2773_v30 = vrot.slane %v2745_v24, 3 }
 0x1e7   : > { %6675 = vst [vmem:[%s7670_s11 + $0x6a0] sm:$0xfe] %v2536_v50  ;;  %v2670_v44 = vor.u32 %v6708_v39, %v6707_v37  ;;  %v2685_v50 = vld [vmem:[%s8162_s12 + $0x20] sm:$0xf8]  ;;  %v2803_v39 = vld [vmem:[%s8162_s12 + $0xd0] sm:$0xff]  ;;  %v2864_v14 = vrot.slane %v2830_v6, 5 }
 0x1e8   : > { %6681 = vst [vmem:[%s7670_s11 + $0x6d0] sm:$0x3] %v2535_v42  ;;  %v6711_v42 = vld [vmem:[%s7906_s7 + $0x332] ss:$8 sm:$0xf]  ;;  %v2774_v35 = vsel %vm1243_vm6, %v2763_v22, %v2773_v30 }
 0x1e9   : > { %6676 = vst [vmem:[%s7670_s11 + $0x6a8] sm:$0xfe] %v2539_v53  ;;  %v2677_v45 = vor.u32 %v6712_v43, %v6711_v42  ;;  %v2688_v53 = vld [vmem:[%s8162_s12 + $0x38] sm:$0x1]  ;;  %v2801_v37 = vld [vmem:[%s8162_s12 + $0xc0] sm:$0xff]  ;;  %v2806_v43 = vld [vmem:[%s8162_s12 + $0xe8] sm:$0xff] }
 0x1ea   : > { %6682 = vst [vmem:[%s7670_s11 + $0x6d8] sm:$0x3] %v2538_v47  ;;  %v2682_v47 = vld [vmem:[%s8162_s12 + $0x8] sm:$0xf8]  ;;  %v2807_v42 = vld [vmem:[%s8162_s12 + $0xf0] sm:$0x1] }
 0x1eb   : > { %6677 = vst [vmem:[%s7670_s11 + $0x6b0] sm:$0xfe] %v2542_v56  ;;  %v2707_v56 = vld [vmem:[%s8162_s12 + $0x40] sm:$0x3f]  ;;  %v2892_v16 = vld [vmem:[%s8162_s12 + $0x158] sm:$0xf0] }
 0x1ec   : > { %6683 = vst [vmem:[%s7670_s11 + $0x6e0] sm:$0x3] %v2541_v52  ;;  %v2687_v52 = vld [vmem:[%s8162_s12 + $0x30] sm:$0x1]  ;;  %v2898_v17 = vld [vmem:[%s8162_s12 + $0x188] sm:$0x1f] }
 0x1ed   : > { %6678 = vst [vmem:[%s7670_s11 + $0x6b8] sm:$0xfe] %v2545_v61  ;;  %v2692_v61 = vld [vmem:[%s8162_s12 + $0x58] sm:$0x1]  ;;  %v2893_v21 = vld [vmem:[%s8162_s12 + $0x160] sm:$0xf0] }
 0x1ee   : > { %6684 = vst [vmem:[%s7670_s11 + $0x6e8] sm:$0x3] %v2544_v55  ;;  %v2706_v55 = vld [vmem:[%s8162_s12 + $0x38] sm:$0x3f]  ;;  %v2918_v24 = vrot.slane %v2892_v16, 2 }
 0x1ef   : > { %6685 = vst [vmem:[%s7670_s11 + $0x6c0] sm:$0xfc] %v2582_v62  ;;  %v2894_v26 = vld [vmem:[%s8162_s12 + $0x168] sm:$0xf0] }
 0x1f0   : > { %6691 = vst [vmem:[%s7670_s11 + $0x6f0] sm:$0x1] %v2582_v62  ;;  %v2717_v62 = vrot.slane %v2705_v54, 7  ;;  %v2827_v54 = vld [vmem:[%s8162_s12 + $0x100] sm:$0xc0] }
 0x1f1   : > { %6686 = vst [vmem:[%s7670_s11 + $0x6c8] sm:$0xfc] %v2583_v63 }
 0x1f2   : > { %6692 = vst [vmem:[%s7670_s11 + $0x6f8] sm:$0x1] %v2583_v63  ;;  %v2718_v63 = vrot.slane %v2706_v55, 7  ;;  %v2833_v55 = vld [vmem:[%s8162_s12 + $0x130] sm:$0x7f] }
 0x1f3   : > { %6687 = vst [vmem:[%s7670_s11 + $0x6d0] sm:$0xfc] %v2584_v0 }
 0x1f4   : > { %6693 = vst [vmem:[%s7670_s11 + $0x700] sm:$0x1] %v2584_v0  ;;  %v2719_v0 = vrot.slane %v2707_v56, 7  ;;  %v2812_v56 = vld [vmem:[%s8162_s12 + $0x118] sm:$0x1] }
 0x1f5   : > { %6688 = vst [vmem:[%s7670_s11 + $0x6d8] sm:$0xfc] %v2585_v8 }
 0x1f6   : > { %6694 = vst [vmem:[%s7670_s11 + $0x708] sm:$0x1] %v2585_v8  ;;  %v2721_v8 = vrot.slane %v2709_v2, 7  ;;  %v2835_v2 = vld [vmem:[%s8162_s12 + $0x140] sm:$0x7f] }
 0x1f7   : > { %6689 = vst [vmem:[%s7670_s11 + $0x6e0] sm:$0xfc] %v2586_v9 }
 0x1f8   : > { %6695 = vst [vmem:[%s7670_s11 + $0x710] sm:$0x1] %v2586_v9  ;;  %v2722_v9 = vrot.slane %v2710_v3, 7 }
 0x1f9   : > { %6690 = vst [vmem:[%s7670_s11 + $0x6e8] sm:$0xfc] %v2587_v10 }
 0x1fa   : > { %6696 = vst [vmem:[%s7670_s11 + $0x718] sm:$0x1] %v2587_v10  ;;  %v2759_v10 = vrot.slane %v2735_v4, 3 }
 0x1fb   : > { %6697 = vst [vmem:[%s7670_s11 + $0x6f0] sm:$0xfe] %v2632_v27  ;;  %v2746_v27 = vld [vmem:[%s8162_s12 + $0xb8] sm:$0x7] }
 0x1fc   : > { %6698 = vst [vmem:[%s7670_s11 + $0x6f8] sm:$0xfe] %v2635_v31  ;;  %v2766_v29 = vsel %vm1243_vm6, %v2759_v10, %v2765_v20  ;;  %v2768_v31 = vsel %vm1243_vm6, %v2760_v11, %v2767_v23  ;;  %v2775_v32 = vrot.slane %v2746_v27, 3  ;;  %v2900_v27 = vld [vmem:[%s8162_s12 + $0x198] sm:$0x1f] }
 0x1fd   : > { %6699 = vst [vmem:[%s7670_s11 + $0x700] sm:$0xfe] %v2638_v34  ;;  %v2772_v34 = vsel %vm1243_vm6, %v2762_v19, %v2771_v28 }
 0x1fe   : > { %6700 = vst [vmem:[%s7670_s11 + $0x708] sm:$0xfe] %v2641_v36  ;;  %v2776_v36 = vsel %vm1243_vm6, %v2764_v25, %v2775_v32  ;;  %v2901_v32 = vld [vmem:[%s8162_s12 + $0x1a0] sm:$0x1f] }
 0x1ff   : > { %6701 = vst [vmem:[%s7670_s11 + $0x710] sm:$0xfe] %v2644_v38  ;;  %v2802_v38 = vld [vmem:[%s8162_s12 + $0xc8] sm:$0xff] }
 0x200   : > { %6702 = vst [vmem:[%s7670_s11 + $0x718] sm:$0xfe] %v2647_v40  ;;  %v2804_v40 = vld [vmem:[%s8162_s12 + $0xd8] sm:$0xff] }
 0x201   : > { %6705 = vst.msk [vmem:[%s7670_s11 + $0x720] ss:$8 sm:$0xf] %vm7753_vm1, %v2663_v41 }
 0x202   : > { %6706 = vst.msk [vmem:[%s7670_s11 + $0x720] ss:$8 sm:$0x30] %vm7753_vm1, %v2663_v41  ;;  %v2805_v41 = vld [vmem:[%s8162_s12 + $0xe0] sm:$0xff] }
 0x203   : > { %6709 = vst.msk [vmem:[%s7670_s11 + $0x721] ss:$8 sm:$0xf] %vm7753_vm1, %v2670_v44 }
 0x204   : > { %6710 = vst.msk [vmem:[%s7670_s11 + $0x721] ss:$8 sm:$0x30] %vm7753_vm1, %v2670_v44  ;;  %v2825_v44 = vld [vmem:[%s8162_s12 + $0xf0] sm:$0xc0] }
 0x205   : > { %6713 = vst.msk [vmem:[%s7670_s11 + $0x722] ss:$8 sm:$0xf] %vm7753_vm1, %v2677_v45 }
 0x206   : > { %6714 = vst.msk [vmem:[%s7670_s11 + $0x722] ss:$8 sm:$0x30] %vm7753_vm1, %v2677_v45  ;;  %v2831_v45 = vld [vmem:[%s8162_s12 + $0x120] sm:$0x7f] }
 0x207   : > { %6715 = vst [vmem:[%s7670_s11 + $0x720] sm:$0xf8] %v2681_v46  ;;  %v2808_v46 = vld [vmem:[%s8162_s12 + $0xf8] sm:$0x1] }
 0x208   : > { %6716 = vst [vmem:[%s7670_s11 + $0x728] sm:$0xf8] %v2682_v47  ;;  %v2809_v47 = vld [vmem:[%s8162_s12 + $0x100] sm:$0x1] }
 0x209   : > { %6717 = vst [vmem:[%s7670_s11 + $0x730] sm:$0xf8] %v2683_v48  ;;  %v2810_v48 = vld [vmem:[%s8162_s12 + $0x108] sm:$0x1] }
 0x20a   : > { %6718 = vst [vmem:[%s7670_s11 + $0x738] sm:$0xf8] %v2684_v49  ;;  %v2826_v49 = vld [vmem:[%s8162_s12 + $0xf8] sm:$0xc0] }
 0x20b   : > { %6719 = vst [vmem:[%s7670_s11 + $0x740] sm:$0xf8] %v2685_v50  ;;  %v2832_v50 = vld [vmem:[%s8162_s12 + $0x128] sm:$0x7f] }
 0x20c   : > { %6720 = vst [vmem:[%s7670_s11 + $0x748] sm:$0xf8] %v2686_v51  ;;  %v2811_v51 = vld [vmem:[%s8162_s12 + $0x110] sm:$0x1] }
 0x20d   : > { %6721 = vst [vmem:[%s7670_s11 + $0x750] sm:$0x1] %v2687_v52  ;;  %v2849_v52 = vrot.slane %v2825_v44, 5  ;;  %v2957_v44 = vld [vmem:[%s8162_s12 + $0x1b0] sm:$0xfe] }
 0x20e   : > { %6722 = vst [vmem:[%s7670_s11 + $0x758] sm:$0x1] %v2688_v53  ;;  %v2850_v53 = vrot.slane %v2831_v45, 5  ;;  %v2958_v45 = vld [vmem:[%s8162_s12 + $0x1b8] sm:$0xfe] }
 0x20f   : > { %6723 = vst [vmem:[%s7670_s11 + $0x760] sm:$0x1] %v2689_v57  ;;  %v2852_v57 = vrot.slane %v2826_v49, 5  ;;  %v2981_v49 = vrot.slane %v2957_v44, 6  ;;  %v3091_v44 = vld [vmem:[%s8162_s12 + $0x250] sm:$0xc0] }
 0x210   : > { %6724 = vst [vmem:[%s7670_s11 + $0x768] sm:$0x1] %v2690_v58  ;;  %v2853_v58 = vrot.slane %v2832_v50, 5  ;;  %v2982_v50 = vrot.slane %v2958_v45, 6 }
 0x211   : > { %6725 = vst [vmem:[%s7670_s11 + $0x770] sm:$0x1] %v2691_v60  ;;  %v2828_v60 = vld [vmem:[%s8162_s12 + $0x108] sm:$0xc0] }
 0x212   : > { %6726 = vst [vmem:[%s7670_s11 + $0x778] sm:$0x1] %v2692_v61  ;;  %v2834_v61 = vld [vmem:[%s8162_s12 + $0x138] sm:$0x7f]  ;;  %v2854_v3 = vsel %vm570_vm2, %v2852_v57, %v2853_v58  ;;  %v2858_v4 = vrot.slane %v2828_v60, 5 }
 0x213   : > { %6727 = vst [vmem:[%s7670_s11 + $0x750] sm:$0x7e] %v2717_v62  ;;  %v2851_v62 = vsel %vm570_vm2, %v2849_v52, %v2850_v53  ;;  %v2859_v5 = vrot.slane %v2834_v61, 5  ;;  %v2960_v52 = vld [vmem:[%s8162_s12 + $0x1c8] sm:$0xfe] }
 0x214   : > { %6728 = vst [vmem:[%s7670_s11 + $0x758] sm:$0x7e] %v2718_v63  ;;  %v2855_v63 = vrot.slane %v2827_v54, 5  ;;  %v2961_v54 = vld [vmem:[%s8162_s12 + $0x1d0] sm:$0xfe] }
 0x215   : > { %6729 = vst [vmem:[%s7670_s11 + $0x760] sm:$0x7e] %v2719_v0  ;;  %v2856_v0 = vrot.slane %v2833_v55, 5  ;;  %v2860_v13 = vsel %vm570_vm2, %v2858_v4, %v2859_v5  ;;  %v2964_v55 = vld [vmem:[%s8162_s12 + $0x1e8] sm:$0xf] }
 0x216   : > { %6730 = vst [vmem:[%s7670_s11 + $0x768] sm:$0x7e] %v2720_v7  ;;  %v2836_v7 = vld [vmem:[%s8162_s12 + $0x148] sm:$0x7f]  ;;  %v2965_v57 = vld [vmem:[%s8162_s12 + $0x1f0] sm:$0xf] }
 0x217   : > { %6731 = vst [vmem:[%s7670_s11 + $0x770] sm:$0x7e] %v2721_v8  ;;  %v2857_v8 = vsel %vm570_vm2, %v2855_v63, %v2856_v0  ;;  %v2865_v15 = vrot.slane %v2836_v7, 5  ;;  %v2966_v61 = vld [vmem:[%s8162_s12 + $0x1f8] sm:$0xf]  ;;  %v2989_v63 = vrot.slane %v2964_v55, 6 }
 0x218   : > { %6732 = vst [vmem:[%s7670_s11 + $0x778] sm:$0x7e] %v2722_v9  ;;  %v2861_v9 = vrot.slane %v2829_v1, 5  ;;  %v2993_v4 = vrot.slane %v2966_v61, 6  ;;  %v3098_v55 = vld [vmem:[%s8162_s12 + $0x288] sm:$0x7f] }
 0x219   : > { %6733 = vst [vmem:[%s7670_s11 + $0x750] sm:$0x80] %v2759_v10  ;;  %v2862_v10 = vrot.slane %v2835_v2, 5  ;;  %v2866_v23 = vsel %vm570_vm2, %v2864_v14, %v2865_v15  ;;  %v2991_v2 = vrot.slane %v2965_v57, 6  ;;  %v2990_v7 = vsel %vm1110_vm5, %v2982_v50, %v2989_v63  ;;  %v3025_v14 = vld [vmem:[%s8162_s12 + $0x220] sm:$0xff] }
 0x21a   : > { %6734 = vst [vmem:[%s7670_s11 + $0x758] sm:$0x80] %v2760_v11  ;;  %v2891_v11 = vld [vmem:[%s8162_s12 + $0x150] sm:$0xf0] }
 0x21b   : > { %6735 = vst [vmem:[%s7670_s11 + $0x760] sm:$0x80] %v2761_v12  ;;  %v2897_v12 = vld [vmem:[%s8162_s12 + $0x180] sm:$0x1f]  ;;  %v2863_v18 = vsel %vm570_vm2, %v2861_v9, %v2862_v10  ;;  %v3099_v61 = vld [vmem:[%s8162_s12 + $0x290] sm:$0x7f] }
 0x21c   : > { %6736 = vst [vmem:[%s7670_s11 + $0x768] sm:$0x80] %v2762_v19  ;;  %v2915_v19 = vrot.slane %v2891_v11, 2  ;;  %v2916_v20 = vrot.slane %v2897_v12, 2  ;;  %v3024_v12 = vld [vmem:[%s8162_s12 + $0x218] sm:$0xff] }
 0x21d   : > { %6737 = vst [vmem:[%s7670_s11 + $0x770] sm:$0x80] %v2763_v22  ;;  %v2899_v22 = vld [vmem:[%s8162_s12 + $0x190] sm:$0x1f] }
 0x21e   : > { %6738 = vst [vmem:[%s7670_s11 + $0x778] sm:$0x80] %v2764_v25  ;;  %v2919_v25 = vrot.slane %v2898_v17, 2  ;;  %v2917_v28 = vsel %vm952_vm3, %v2915_v19, %v2916_v20  ;;  %v2922_v30 = vrot.slane %v2899_v22, 2  ;;  %v3026_v17 = vld [vmem:[%s8162_s12 + $0x228] sm:$0xff]  ;;  %v3048_v19 = vrot.slane %v3024_v12, 2 }
 0x21f   : > { %6739 = vst [vmem:[%s7670_s11 + $0x780] sm:$0xff] %v2766_v29  ;;  %v2921_v29 = vrot.slane %v2893_v21, 2  ;;  %v3030_v21 = vld [vmem:[%s8162_s12 + $0x248] sm:$0x1]  ;;  %v3049_v22 = vrot.slane %v3025_v14, 2 }
 0x220   : > { %6740 = vst [vmem:[%s7670_s11 + $0x788] sm:$0xff] %v2768_v31  ;;  %v2895_v31 = vld [vmem:[%s8162_s12 + $0x170] sm:$0xf0] }
 0x221   : > { %6741 = vst [vmem:[%s7670_s11 + $0x790] sm:$0xff] %v2770_v33  ;;  %v2920_v33 = vsel %vm952_vm3, %v2918_v24, %v2919_v25  ;;  %v3031_v24 = vld [vmem:[%s8162_s12 + $0x250] sm:$0x1]  ;;  %v3157_v14 = vld [vmem:[%s8162_s12 + $0x2b0] sm:$0xf0] }
 0x222   : > { %6742 = vst [vmem:[%s7670_s11 + $0x798] sm:$0xff] %v2772_v34  ;;  %v2924_v34 = vrot.slane %v2894_v26, 2 }
 0x223   : > { %6743 = vst [vmem:[%s7670_s11 + $0x7a0] sm:$0xff] %v2774_v35  ;;  %v2925_v35 = vrot.slane %v2900_v27, 2  ;;  %v3032_v27 = vld [vmem:[%s8162_s12 + $0x258] sm:$0x1] }
 0x224   : > { %6744 = vst [vmem:[%s7670_s11 + $0x7a8] sm:$0xff] %v2776_v36  ;;  %v2896_v36 = vld [vmem:[%s8162_s12 + $0x178] sm:$0xf0] }
 0x225   : > { %6745 = vst [vmem:[%s7670_s11 + $0x7b0] sm:$0xff] %v2801_v37  ;;  %v2902_v37 = vld [vmem:[%s8162_s12 + $0x1a8] sm:$0x1f] }
 0x226   : > { %6746 = vst [vmem:[%s7670_s11 + $0x7b8] sm:$0xff] %v2802_v38  ;;  %v2923_v38 = vsel %vm952_vm3, %v2921_v29, %v2922_v30  ;;  %v3055_v29 = vrot.slane %v3030_v21, 2  ;;  %v3164_v21 = vld [vmem:[%s8162_s12 + $0x2e8] sm:$0x1f] }
 0x227   : > { %6747 = vst [vmem:[%s7670_s11 + $0x7c0] sm:$0xff] %v2803_v39  ;;  %v2927_v39 = vrot.slane %v2895_v31, 2 }
 0x228   : > { %6748 = vst [vmem:[%s7670_s11 + $0x7c8] sm:$0xff] %v2804_v40  ;;  %v2928_v40 = vrot.slane %v2901_v32, 2  ;;  %v3057_v32 = vrot.slane %v3031_v24, 2 }
 0x229   : > { %6749 = vst [vmem:[%s7670_s11 + $0x7d0] sm:$0xff] %v2805_v41  ;;  %v2926_v41 = vsel %vm952_vm3, %v2924_v34, %v2925_v35  ;;  %v3059_v34 = vrot.slane %v3032_v27, 2 }
 0x22a   : > { %6750 = vst [vmem:[%s7670_s11 + $0x7d8] sm:$0xff] %v2806_v43  ;;  %v2931_v43 = vrot.slane %v2902_v37, 2 }
 0x22b   : > { %6751 = vst [vmem:[%s7670_s11 + $0x7e0] sm:$0x1] %v2807_v42  ;;  %v2930_v42 = vrot.slane %v2896_v36, 2 }
 0x22c   : > { %6752 = vst [vmem:[%s7670_s11 + $0x7e8] sm:$0x1] %v2808_v46  ;;  %v2959_v46 = vld [vmem:[%s8162_s12 + $0x1c0] sm:$0xfe] }
 0x22d   : > { %6753 = vst [vmem:[%s7670_s11 + $0x7f0] sm:$0x1] %v2809_v47  ;;  %v2929_v47 = vsel %vm952_vm3, %v2927_v39, %v2928_v40 }
 0x22e   : > { %6754 = vst [vmem:[%s7670_s11 + $0x7f8] sm:$0x1] %v2810_v48  ;;  %v2932_v48 = vsel %vm952_vm3, %v2930_v42, %v2931_v43 }
 0x22f   : > { %6755 = vst [vmem:[%s7670_s11 + $0x800] sm:$0x1] %v2811_v51  ;;  %v2983_v51 = vrot.slane %v2959_v46, 6  ;;  %v3092_v46 = vld [vmem:[%s8162_s12 + $0x258] sm:$0xc0] }
 0x230   : > { %6756 = vst [vmem:[%s7670_s11 + $0x808] sm:$0x1] %v2812_v56  ;;  %v2962_v56 = vld [vmem:[%s8162_s12 + $0x1d8] sm:$0xfe] }
 0x231   : > { %6757 = vst [vmem:[%s7670_s11 + $0x7e0] sm:$0xfe] %v2851_v62  ;;  %v2985_v62 = vrot.slane %v2961_v54, 6  ;;  %v2986_v1 = vrot.slane %v2962_v56, 6  ;;  %v2992_v9 = vsel %vm1110_vm5, %v2983_v51, %v2991_v2  ;;  %v3097_v54 = vld [vmem:[%s8162_s12 + $0x280] sm:$0x7f] }
 0x232   : > { %6763 = vst [vmem:[%s7670_s11 + $0x810] sm:$0x3] %v2850_v53  ;;  %v2963_v53 = vld [vmem:[%s8162_s12 + $0x1e0] sm:$0xf]  ;;  %v3116_v56 = vrot.slane %v3092_v46, 7 }
 0x233   : > { %6758 = vst [vmem:[%s7670_s11 + $0x7e8] sm:$0xfe] %v2854_v3  ;;  %v2987_v60 = vrot.slane %v2963_v53, 6  ;;  %v2968_v3 = vld [vmem:[%s8162_s12 + $0x208] sm:$0xf] }
 0x234   : > { %6764 = vst [vmem:[%s7670_s11 + $0x818] sm:$0x3] %v2853_v58  ;;  %v2984_v58 = vrot.slane %v2960_v52, 6  ;;  %v3115_v52 = vrot.slane %v3091_v44, 7  ;;  %v3094_v53 = vld [vmem:[%s8162_s12 + $0x268] sm:$0xc0] }
 0x235   : > { %6759 = vst [vmem:[%s7670_s11 + $0x7f0] sm:$0xfe] %v2857_v8  ;;  %v2997_v8 = vrot.slane %v2968_v3, 6  ;;  %v3118_v63 = vrot.slane %v3094_v53, 7  ;;  %v3155_v2 = vld [vmem:[%s8162_s12 + $0x2a0] sm:$0xf0] }
 0x236   : > { %6765 = vst [vmem:[%s7670_s11 + $0x820] sm:$0x3] %v2856_v0  ;;  %v2967_v0 = vld [vmem:[%s8162_s12 + $0x200] sm:$0xf]  ;;  %v2994_v11 = vsel %vm1110_vm5, %v2984_v58, %v2993_v4  ;;  %v3161_v3 = vld [vmem:[%s8162_s12 + $0x2d0] sm:$0x1f] }
 0x237   : > { %6760 = vst [vmem:[%s7670_s11 + $0x7f8] sm:$0xfe] %v2860_v13  ;;  %v2995_v6 = vrot.slane %v2967_v0, 6  ;;  %v3123_v0 = vrot.slane %v3097_v54, 7  ;;  %v3180_v12 = vrot.slane %v3161_v3, 4 }
 0x238   : > { %6766 = vst [vmem:[%s7670_s11 + $0x828] sm:$0x3] %v2859_v5  ;;  %v2988_v5 = vsel %vm1110_vm5, %v2981_v49, %v2987_v60  ;;  %v3243_v44 = vld [vmem:[%s7658_s6 + $0x1e8] sm:$0x80]  ;;  %v3244_v54 = vld [vmem:[%s7658_s6 + $0x1f0] sm:$0x80] }
 0x239   : > { %6761 = vst [vmem:[%s7670_s11 + $0x800] sm:$0xfe] %v2863_v18  ;;  %v2996_v13 = vsel %vm1110_vm5, %v2985_v62, %v2995_v6  ;;  %v3029_v18 = vld [vmem:[%s8162_s12 + $0x240] sm:$0x1]  ;;  %v3269_v53 = vrot.slane %v3243_v44, 7 }
 0x23a   : > { %6767 = vst [vmem:[%s7670_s11 + $0x830] sm:$0x3] %v2862_v10  ;;  %v3023_v10 = vld [vmem:[%s8162_s12 + $0x210] sm:$0xff]  ;;  %v3053_v26 = vrot.slane %v3029_v18, 2  ;;  %v3253_v3 = vld [vmem:[%s7658_s6 + $0x238] sm:$0x3] }
 0x23b   : > { %6762 = vst [vmem:[%s7670_s11 + $0x808] sm:$0xfe] %v2866_v23  ;;  %v3047_v16 = vrot.slane %v3023_v10, 2  ;;  %v3028_v23 = vld [vmem:[%s8162_s12 + $0x238] sm:$0xff]  ;;  %v3124_v10 = vsel %vm1565_vm7, %v3115_v52, %v3123_v0  ;;  %v3272_v0 = vrot.slane %v3244_v54, 7 }
 0x23c   : > { %6768 = vst [vmem:[%s7670_s11 + $0x838] sm:$0x3] %v2865_v15  ;;  %v2998_v15 = vsel %vm1110_vm5, %v2986_v1, %v2997_v8  ;;  %v3052_v31 = vrot.slane %v3028_v23, 2  ;;  %v3156_v8 = vld [vmem:[%s8162_s12 + $0x2a8] sm:$0xf0]  ;;  %v3185_v23 = vrot.slane %v3157_v14, 4 }
 0x23d   : > { %6769 = vst [vmem:[%s7670_s11 + $0x810] sm:$0xfc] %v2917_v28  ;;  %v3054_v36 = vsel %vm952_vm3, %v3047_v16, %v3053_v26  ;;  %v3165_v26 = vld [vmem:[%s8162_s12 + $0x2f0] sm:$0x1f] }
 0x23e   : > { %6775 = vst [vmem:[%s7670_s11 + $0x840] sm:$0x7] %v2916_v20  ;;  %v3027_v20 = vld [vmem:[%s8162_s12 + $0x230] sm:$0xff] }
 0x23f   : > { %6770 = vst [vmem:[%s7670_s11 + $0x818] sm:$0xfc] %v2920_v33  ;;  %v3051_v28 = vrot.slane %v3027_v20, 2  ;;  %v3034_v33 = vld [vmem:[%s8162_s12 + $0x268] sm:$0x1] }
 0x240   : > { %6776 = vst [vmem:[%s7670_s11 + $0x848] sm:$0x7] %v2919_v25  ;;  %v3050_v25 = vrot.slane %v3026_v17, 2  ;;  %v3063_v39 = vrot.slane %v3034_v33, 2  ;;  %v3182_v17 = vrot.slane %v3156_v8, 4 }
 0x241   : > { %6771 = vst [vmem:[%s7670_s11 + $0x820] sm:$0xfc] %v2923_v38  ;;  %v3056_v38 = vsel %vm952_vm3, %v3048_v19, %v3055_v29  ;;  %v3158_v20 = vld [vmem:[%s8162_s12 + $0x2b8] sm:$0xf0]  ;;  %v3189_v29 = vrot.slane %v3164_v21, 4 }
 0x242   : > { %6777 = vst [vmem:[%s7670_s11 + $0x850] sm:$0x7] %v2922_v30  ;;  %v3033_v30 = vld [vmem:[%s8162_s12 + $0x260] sm:$0x1]  ;;  %v3060_v42 = vsel %vm952_vm3, %v3050_v25, %v3059_v34  ;;  %v3192_v34 = vrot.slane %v3165_v26, 4 }
 0x243   : > { %6772 = vst [vmem:[%s7670_s11 + $0x828] sm:$0xfc] %v2926_v41  ;;  %v3061_v37 = vrot.slane %v3033_v30, 2  ;;  %v3160_v30 = vld [vmem:[%s8162_s12 + $0x2c8] sm:$0xf0] }
 0x244   : > { %6778 = vst [vmem:[%s7670_s11 + $0x858] sm:$0x7] %v2925_v35  ;;  %v3089_v35 = vld [vmem:[%s8162_s12 + $0x240] sm:$0xc0] }
 0x245   : > { %6773 = vst [vmem:[%s7670_s11 + $0x830] sm:$0xfc] %v2929_v47  ;;  %v3113_v41 = vrot.slane %v3089_v35, 7  ;;  %v3062_v45 = vsel %vm952_vm3, %v3051_v28, %v3061_v37  ;;  %v3093_v47 = vld [vmem:[%s8162_s12 + $0x260] sm:$0xc0]  ;;  %v3194_v35 = vrot.slane %v3160_v30, 4 }
 0x246   : > { %6779 = vst [vmem:[%s7670_s11 + $0x860] sm:$0x7] %v2928_v40  ;;  %v3058_v40 = vsel %vm952_vm3, %v3049_v22, %v3057_v32  ;;  %v3117_v57 = vrot.slane %v3093_v47, 7  ;;  %v6837_v47 = vld [vmem:[%s8162_s12 + $0x391] ss:$8 sm:$0xf] }
 0x247   : > { %6774 = vst [vmem:[%s7670_s11 + $0x838] sm:$0xfc] %v2932_v48  ;;  %v3064_v48 = vsel %vm952_vm3, %v3052_v31, %v3063_v39  ;;  %v6830_v39 = vld [vmem:[%s8162_s12 + $0x337] ss:$8 sm:$0x30] }
 0x248   : > { %6780 = vst [vmem:[%s7670_s11 + $0x868] sm:$0x7] %v2931_v43  ;;  %v3090_v43 = vld [vmem:[%s8162_s12 + $0x248] sm:$0xc0]  ;;  %v3329_v30 = vld [vmem:[%s7658_s6 + $0x250] sm:$0xc0] }
 0x249   : > { %6781 = vst [vmem:[%s7670_s11 + $0x840] sm:$0xf8] %v2981_v49  ;;  %v3095_v49 = vld [vmem:[%s8162_s12 + $0x270] sm:$0x7f] }
 0x24a   : > { %6782 = vst [vmem:[%s7670_s11 + $0x848] sm:$0xf8] %v2982_v50  ;;  %v3096_v50 = vld [vmem:[%s8162_s12 + $0x278] sm:$0x7f] }
 0x24b   : > { %6783 = vst [vmem:[%s7670_s11 + $0x850] sm:$0xf8] %v2983_v51  ;;  %v3114_v51 = vrot.slane %v3090_v43, 7  ;;  %v3121_v60 = vrot.slane %v3096_v50, 7  ;;  %v3248_v43 = vld [vmem:[%s7658_s6 + $0x210] sm:$0x3] }
 0x24c   : > { %6784 = vst [vmem:[%s7670_s11 + $0x858] sm:$0xf8] %v2984_v58  ;;  %v3119_v58 = vrot.slane %v3095_v49, 7  ;;  %v3249_v49 = vld [vmem:[%s7658_s6 + $0x218] sm:$0x3] }
 0x24d   : > { %6785 = vst [vmem:[%s7670_s11 + $0x860] sm:$0xf8] %v2985_v62  ;;  %v3100_v62 = vld [vmem:[%s8162_s12 + $0x298] sm:$0x7f] }
 0x24e   : > { %6786 = vst [vmem:[%s7670_s11 + $0x868] sm:$0xf8] %v2986_v1  ;;  %v3125_v1 = vrot.slane %v3098_v55, 7  ;;  %v3120_v4 = vsel %vm1565_vm7, %v3113_v41, %v3119_v58  ;;  %v3129_v6 = vrot.slane %v3100_v62, 7  ;;  %v3250_v55 = vld [vmem:[%s7658_s6 + $0x220] sm:$0x3] }
 0x24f   : > { %6787 = vst [vmem:[%s7670_s11 + $0x870] sm:$0x3f] %v2988_v5  ;;  %v3127_v5 = vrot.slane %v3099_v61, 7  ;;  %v3245_v58 = vld [vmem:[%s7658_s6 + $0x1f8] sm:$0x80] }
 0x250   : > { %6788 = vst [vmem:[%s7670_s11 + $0x878] sm:$0x3f] %v2990_v7  ;;  %v3122_v7 = vsel %vm1565_vm7, %v3114_v51, %v3121_v60  ;;  %v3251_v60 = vld [vmem:[%s7658_s6 + $0x228] sm:$0x3]  ;;  %v3246_v61 = vld [vmem:[%s7658_s6 + $0x200] sm:$0x80] }
 0x251   : > { %6789 = vst [vmem:[%s7670_s11 + $0x880] sm:$0x3f] %v2992_v9  ;;  %v3162_v9 = vld [vmem:[%s8162_s12 + $0x2d8] sm:$0x1f]  ;;  %v3252_v62 = vld [vmem:[%s7658_s6 + $0x230] sm:$0x3] }
 0x252   : > { %6790 = vst [vmem:[%s7670_s11 + $0x888] sm:$0x3f] %v2994_v11  ;;  %v3179_v11 = vrot.slane %v3155_v2, 4  ;;  %v3183_v18 = vrot.slane %v3162_v9, 4  ;;  %v3273_v2 = vrot.slane %v3250_v55, 7  ;;  %v3279_v8 = vrot.slane %v3252_v62, 7 }
 0x253   : > { %6791 = vst [vmem:[%s7670_s11 + $0x890] sm:$0x3f] %v2996_v13  ;;  %v3126_v13 = vsel %vm1565_vm7, %v3116_v56, %v3125_v1  ;;  %v3247_v1 = vld [vmem:[%s7658_s6 + $0x208] sm:$0x80]  ;;  %v3403_v62 = vld [vmem:[%s7745_s28 + $0x1b8] sm:$0xf] }
 0x254   : > { %6792 = vst [vmem:[%s7670_s11 + $0x898] sm:$0x3f] %v2998_v15  ;;  %v3163_v15 = vld [vmem:[%s8162_s12 + $0x2e0] sm:$0x1f]  ;;  %v3184_v27 = vsel %vm442_vm0, %v3182_v17, %v3183_v18 }
 0x255   : > { %6793 = vst [vmem:[%s7670_s11 + $0x870] sm:$0xc0] %v3047_v16  ;;  %v3128_v16 = vsel %vm1565_vm7, %v3117_v57, %v3127_v5  ;;  %v3186_v24 = vrot.slane %v3163_v15, 4  ;;  %v3276_v5 = vrot.slane %v3251_v60, 7  ;;  %v3298_v15 = vld [vmem:[%s7658_s6 + $0x218] sm:$0xe] }
 0x256   : > { %6794 = vst [vmem:[%s7670_s11 + $0x878] sm:$0xc0] %v3048_v19  ;;  %v3130_v19 = vsel %vm1565_vm7, %v3118_v63, %v3129_v6  ;;  %v3299_v17 = vld [vmem:[%s7658_s6 + $0x220] sm:$0xe]  ;;  %v3310_v21 = vrot.slane %v3298_v15, 6 }
 0x257   : > { %6795 = vst [vmem:[%s7670_s11 + $0x880] sm:$0xc0] %v3049_v22  ;;  %v3181_v22 = vsel %vm442_vm0, %v3179_v11, %v3180_v12  ;;  %v3187_v32 = vsel %vm442_vm0, %v3185_v23, %v3186_v24  ;;  %v3282_v11 = vrot.slane %v3253_v3, 7  ;;  %v3311_v23 = vrot.slane %v3299_v17, 6  ;;  %v3406_v3 = vld [vmem:[%s7745_s28 + $0x1d0] sm:$0xf] }
 0x258   : > { %6796 = vst [vmem:[%s7670_s11 + $0x888] sm:$0xc0] %v3050_v25  ;;  %v3159_v25 = vld [vmem:[%s8162_s12 + $0x2c0] sm:$0xf0]  ;;  %v3436_v17 = vld [vmem:[%s7745_s28 + $0x1d0] sm:$0x78] }
 0x259   : > { %6797 = vst [vmem:[%s7670_s11 + $0x890] sm:$0xc0] %v3051_v28  ;;  %v3188_v28 = vrot.slane %v3158_v20, 4  ;;  %v3191_v33 = vrot.slane %v3159_v25, 4  ;;  %v3300_v20 = vld [vmem:[%s7658_s6 + $0x228] sm:$0xe] }
 0x25a   : > { %6798 = vst [vmem:[%s7670_s11 + $0x898] sm:$0xc0] %v3052_v31  ;;  %v3166_v31 = vld [vmem:[%s8162_s12 + $0x2f8] sm:$0x1f]  ;;  %v3312_v25 = vrot.slane %v3300_v20, 6 }
 0x25b   : > { %6799 = vst [vmem:[%s7670_s11 + $0x8a0] sm:$0x7f] %v3054_v36  ;;  %v3190_v36 = vsel %vm442_vm0, %v3188_v28, %v3189_v29  ;;  %v3195_v37 = vrot.slane %v3166_v31, 4  ;;  %v3327_v28 = vld [vmem:[%s7658_s6 + $0x240] sm:$0xc0] }
 0x25c   : > { %6800 = vst [vmem:[%s7670_s11 + $0x8a8] sm:$0x7f] %v3056_v38  ;;  %v6829_v38 = vld [vmem:[%s8162_s12 + $0x337] ss:$8 sm:$0xf] }
 0x25d   : > { %6801 = vst [vmem:[%s7670_s11 + $0x8b0] sm:$0x7f] %v3058_v40  ;;  %v3242_v40 = vld [vmem:[%s7658_s6 + $0x1e0] sm:$0x80]  ;;  %v3196_v46 = vsel %vm442_vm0, %v3194_v35, %v3195_v37  ;;  %v3224_v50 = vor.u32 %v6830_v39, %v6829_v38  ;;  %v3330_v31 = vld [vmem:[%s7658_s6 + $0x258] sm:$0xc0] }
 0x25e   : > { %6802 = vst [vmem:[%s7670_s11 + $0x8b8] sm:$0x7f] %v3060_v42  ;;  %v6833_v42 = vld [vmem:[%s8162_s12 + $0x364] ss:$8 sm:$0xf] }
 0x25f   : > { %6803 = vst [vmem:[%s7670_s11 + $0x8c0] sm:$0x7f] %v3062_v45  ;;  %v6834_v45 = vld [vmem:[%s8162_s12 + $0x364] ss:$8 sm:$0x30] }
 0x260   : > { %6804 = vst [vmem:[%s7670_s11 + $0x8c8] sm:$0x7f] %v3064_v48  ;;  %v6838_v48 = vld [vmem:[%s8162_s12 + $0x391] ss:$8 sm:$0x30] }
 0x261   : > { %6805 = vst [vmem:[%s7670_s11 + $0x8a0] sm:$0x80] %v3113_v41  ;;  %v3193_v41 = vsel %vm442_vm0, %v3191_v33, %v3192_v34  ;;  %v3332_v33 = vld [vmem:[%s7658_s6 + $0x268] sm:$0xc0]  ;;  %v3334_v35 = vld [vmem:[%s7658_s6 + $0x278] sm:$0x1] }
 0x262   : > { %6806 = vst [vmem:[%s7670_s11 + $0x8a8] sm:$0x80] %v3114_v51  ;;  %v3266_v51 = vrot.slane %v3242_v40, 7  ;;  %v3352_v38 = vld [vmem:[%s7658_s6 + $0x2a8] sm:$0xf8] }
 0x263   : > { %6807 = vst [vmem:[%s7670_s11 + $0x8b0] sm:$0x80] %v3115_v52  ;;  %v3267_v52 = vrot.slane %v3248_v43, 7  ;;  %v3336_v39 = vld [vmem:[%s7658_s6 + $0x288] sm:$0x1]  ;;  %v3364_v44 = vrot.slane %v3352_v38, 2 }
 0x264   : > { %6808 = vst [vmem:[%s7670_s11 + $0x8b8] sm:$0x80] %v3116_v56  ;;  %v3231_v56 = vor.u32 %v6834_v45, %v6833_v42  ;;  %v3337_v40 = vld [vmem:[%s7658_s6 + $0x290] sm:$0x1]  ;;  %v3353_v42 = vld [vmem:[%s7658_s6 + $0x2b0] sm:$0xf8] }
 0x265   : > { %6809 = vst [vmem:[%s7670_s11 + $0x8c0] sm:$0x80] %v3117_v57  ;;  %v3270_v57 = vrot.slane %v3249_v49, 7  ;;  %v3268_v6 = vsel %vm1565_vm7, %v3266_v51, %v3267_v52  ;;  %v3354_v45 = vld [vmem:[%s7658_s6 + $0x2b8] sm:$0xf8] }
 0x266   : > { %6810 = vst [vmem:[%s7670_s11 + $0x8c8] sm:$0x80] %v3118_v63  ;;  %v3238_v63 = vor.u32 %v6838_v48, %v6837_v47  ;;  %v3356_v47 = vld [vmem:[%s7658_s6 + $0x2c8] sm:$0xf8]  ;;  %v3365_v48 = vrot.slane %v3353_v42, 2 }
 0x267   : > { %6811 = vst [vmem:[%s7670_s11 + $0x8d0] sm:$0xff] %v3120_v4  ;;  %v3275_v4 = vrot.slane %v3245_v58, 7  ;;  %v3271_v9 = vsel %vm1565_vm7, %v3269_v53, %v3270_v57  ;;  %v6871_v49 = vld [vmem:[%s7658_s6 + $0x337] ss:$8 sm:$0xf]  ;;  %v3368_v54 = vrot.slane %v3356_v47, 2 }
 0x268   : > { %6812 = vst [vmem:[%s7670_s11 + $0x8d8] sm:$0xff] %v3122_v7  ;;  %v3278_v7 = vrot.slane %v3246_v61, 7  ;;  %v6872_v51 = vld [vmem:[%s7658_s6 + $0x337] ss:$8 sm:$0x30] }
 0x269   : > { %6813 = vst [vmem:[%s7670_s11 + $0x8e0] sm:$0xff] %v3124_v10  ;;  %v3281_v10 = vrot.slane %v3247_v1, 7  ;;  %v3277_v14 = vsel %vm1565_vm7, %v3275_v4, %v3276_v5  ;;  %v6875_v53 = vld [vmem:[%s7658_s6 + $0x361] ss:$8 sm:$0xf]  ;;  %v3415_v4 = vrot.slane %v3403_v62, 7 }
 0x26a   : > { %6814 = vst [vmem:[%s7670_s11 + $0x8e8] sm:$0xff] %v3126_v13  ;;  %v3297_v13 = vld [vmem:[%s7658_s6 + $0x210] sm:$0xe]  ;;  %v6876_v55 = vld [vmem:[%s7658_s6 + $0x361] ss:$8 sm:$0x30] }
 0x26b   : > { %6815 = vst [vmem:[%s7670_s11 + $0x8f0] sm:$0xff] %v3128_v16  ;;  %v3280_v16 = vsel %vm1565_vm7, %v3278_v7, %v3279_v8  ;;  %v6879_v57 = vld [vmem:[%s7658_s6 + $0x363] ss:$8 sm:$0xf]  ;;  %v3391_v60 = vor.u32 %v6876_v55, %v6875_v53  ;;  %v3418_v8 = vrot.slane %v3406_v3, 7 }
 0x26c   : > { %6816 = vst [vmem:[%s7670_s11 + $0x8f8] sm:$0xff] %v3130_v19  ;;  %v3309_v19 = vrot.slane %v3297_v13, 6  ;;  %v6880_v58 = vld [vmem:[%s7658_s6 + $0x363] ss:$8 sm:$0x30] }
 0x26d   : > { %6817 = vst [vmem:[%s7670_s11 + $0x900] sm:$0xff] %v3181_v22  ;;  %v3301_v22 = vld [vmem:[%s7658_s6 + $0x230] sm:$0xe]  ;;  %v3405_v1 = vld [vmem:[%s7745_s28 + $0x1c8] sm:$0xf] }
 0x26e   : > { %6823 = vst [vmem:[%s7670_s11 + $0x930] sm:$0x1] %v3180_v12  ;;  %v3274_v12 = vsel %vm1565_vm7, %v3272_v0, %v3273_v2  ;;  %v3313_v26 = vrot.slane %v3301_v22, 6  ;;  %v3402_v61 = vld [vmem:[%s7745_s28 + $0x1b0] sm:$0xf] }
 0x26f   : > { %6818 = vst [vmem:[%s7670_s11 + $0x908] sm:$0xff] %v3184_v27  ;;  %v3404_v0 = vld [vmem:[%s7745_s28 + $0x1c0] sm:$0xf]  ;;  %v3414_v2 = vrot.slane %v3402_v61, 7  ;;  %v3407_v7 = vld [vmem:[%s7745_s28 + $0x1d8] sm:$0xf] }
 0x270   : > { %6824 = vst [vmem:[%s7670_s11 + $0x938] sm:$0x1] %v3183_v18  ;;  %v3283_v18 = vsel %vm1565_vm7, %v3281_v10, %v3282_v11  ;;  %v3416_v5 = vrot.slane %v3404_v0, 7  ;;  %v3433_v10 = vld [vmem:[%s7745_s28 + $0x1b8] sm:$0x78] }
 0x271   : > { %6819 = vst [vmem:[%s7670_s11 + $0x910] sm:$0xff] %v3187_v32  ;;  %v3331_v32 = vld [vmem:[%s7658_s6 + $0x260] sm:$0xc0]  ;;  %v3474_v20 = vld [vmem:[%s7745_s28 + $0x210] sm:$0xf] }
 0x272   : > { %6825 = vst [vmem:[%s7670_s11 + $0x940] sm:$0x1] %v3186_v24  ;;  %v3302_v24 = vld [vmem:[%s7658_s6 + $0x238] sm:$0xe]  ;;  %v3434_v11 = vld [vmem:[%s7745_s28 + $0x1c0] sm:$0x78] }
 0x273   : > { %6820 = vst [vmem:[%s7670_s11 + $0x918] sm:$0xff] %v3190_v36  ;;  %v3314_v27 = vrot.slane %v3302_v24, 6  ;;  %v3335_v36 = vld [vmem:[%s7658_s6 + $0x280] sm:$0x1]  ;;  %v3446_v15 = vrot.slane %v3434_v11, 6 }
 0x274   : > { %6826 = vst [vmem:[%s7670_s11 + $0x948] sm:$0x1] %v3189_v29  ;;  %v3328_v29 = vld [vmem:[%s7658_s6 + $0x248] sm:$0xc0]  ;;  %v3475_v22 = vld [vmem:[%s7745_s28 + $0x218] sm:$0xf] }
 0x275   : > { %6821 = vst [vmem:[%s7670_s11 + $0x920] sm:$0xff] %v3193_v41  ;;  %v3338_v41 = vld [vmem:[%s7658_s6 + $0x298] sm:$0x1]  ;;  %v3476_v24 = vld [vmem:[%s7745_s28 + $0x220] sm:$0xf] }
 0x276   : > { %6827 = vst [vmem:[%s7670_s11 + $0x950] sm:$0x1] %v3192_v34  ;;  %v3333_v34 = vld [vmem:[%s7658_s6 + $0x270] sm:$0x1]  ;;  %v3473_v38 = vld [vmem:[%s7745_s28 + $0x208] sm:$0x80] }
 0x277   : > { %6822 = vst [vmem:[%s7670_s11 + $0x928] sm:$0xff] %v3196_v46  ;;  %v3355_v46 = vld [vmem:[%s7658_s6 + $0x2c0] sm:$0xf8]  ;;  %v3525_v53 = vld [vmem:[%s7745_s28 + $0x258] sm:$0xe0] }
 0x278   : > { %6828 = vst [vmem:[%s7670_s11 + $0x958] sm:$0x1] %v3195_v37  ;;  %v3351_v37 = vld [vmem:[%s7658_s6 + $0x2a0] sm:$0xf8]  ;;  %v3367_v52 = vrot.slane %v3355_v46, 2  ;;  %v3507_v46 = vrot.slane %v3473_v38, 6 }
 0x279   : > { %6831 = vst.msk [vmem:[%s7670_s11 + $0x931] ss:$8 sm:$0xf] %vm7753_vm1, %v3224_v50  ;;  %v3363_v43 = vrot.slane %v3351_v37, 2  ;;  %v3478_v37 = vld [vmem:[%s7745_s28 + $0x230] sm:$0xf] }
 0x27a   : > { %6832 = vst.msk [vmem:[%s7670_s11 + $0x931] ss:$8 sm:$0x30] %vm7753_vm1, %v3224_v50  ;;  %v3366_v50 = vrot.slane %v3354_v45, 2 }
 0x27b   : > { %6835 = vst.msk [vmem:[%s7670_s11 + $0x932] ss:$8 sm:$0xf] %vm7753_vm1, %v3231_v56 }
 0x27c   : > { %6836 = vst.msk [vmem:[%s7670_s11 + $0x932] ss:$8 sm:$0x30] %vm7753_vm1, %v3231_v56  ;;  %v3384_v56 = vor.u32 %v6872_v51, %v6871_v49  ;;  %v3524_v51 = vld [vmem:[%s7745_s28 + $0x250] sm:$0xe0] }
 0x27d   : > { %6839 = vst.msk [vmem:[%s7670_s11 + $0x933] ss:$8 sm:$0xf] %vm7753_vm1, %v3238_v63  ;;  %v3548_v62 = vrot.slane %v3524_v51, 7 }
 0x27e   : > { %6840 = vst.msk [vmem:[%s7670_s11 + $0x933] ss:$8 sm:$0x30] %vm7753_vm1, %v3238_v63  ;;  %v3398_v63 = vor.u32 %v6880_v58, %v6879_v57  ;;  %v3528_v58 = vld [vmem:[%s7745_s28 + $0x270] sm:$0x3] }
 0x27f   : > { %6841 = vst [vmem:[%s7670_s11 + $0x960] sm:$0x7] %v3268_v6  ;;  %v3417_v6 = vrot.slane %v3405_v1, 7  ;;  %v3527_v1 = vld [vmem:[%s7745_s28 + $0x268] sm:$0xe0]  ;;  %v3552_v3 = vrot.slane %v3528_v58, 7 }
 0x280   : > { %6842 = vst [vmem:[%s7670_s11 + $0x968] sm:$0x7] %v3271_v9  ;;  %v3432_v9 = vld [vmem:[%s7745_s28 + $0x1b0] sm:$0x78] }
 0x281   : > { %6843 = vst [vmem:[%s7670_s11 + $0x970] sm:$0x7] %v3274_v12  ;;  %v3419_v12 = vrot.slane %v3407_v7, 7  ;;  %v3444_v13 = vrot.slane %v3432_v9, 6  ;;  %v3533_v7 = vld [vmem:[%s7745_s28 + $0x298] sm:$0x3] }
 0x282   : > { %6844 = vst [vmem:[%s7670_s11 + $0x978] sm:$0x7] %v3277_v14  ;;  %v3445_v14 = vrot.slane %v3433_v10, 6  ;;  %v6937_v58 = vld [vmem:[%s7745_s28 + $0x394] ss:$8 sm:$0xf] }
 0x283   : > { %6845 = vst [vmem:[%s7670_s11 + $0x980] sm:$0x7] %v3280_v16  ;;  %v3435_v16 = vld [vmem:[%s7745_s28 + $0x1c8] sm:$0x78] }
 0x284   : > { %6846 = vst [vmem:[%s7670_s11 + $0x988] sm:$0x7] %v3283_v18  ;;  %v3437_v18 = vld [vmem:[%s7745_s28 + $0x1d8] sm:$0x78] }
 0x285   : > { %6847 = vst [vmem:[%s7670_s11 + $0x960] sm:$0x38] %v3309_v19  ;;  %v3468_v19 = vld [vmem:[%s7745_s28 + $0x1e0] sm:$0x80] }
 0x286   : > { %6848 = vst [vmem:[%s7670_s11 + $0x968] sm:$0x38] %v3310_v21  ;;  %v3469_v21 = vld [vmem:[%s7745_s28 + $0x1e8] sm:$0x80] }
 0x287   : > { %6849 = vst [vmem:[%s7670_s11 + $0x970] sm:$0x38] %v3311_v23  ;;  %v3470_v23 = vld [vmem:[%s7745_s28 + $0x1f0] sm:$0x80] }
 0x288   : > { %6850 = vst [vmem:[%s7670_s11 + $0x978] sm:$0x38] %v3312_v25  ;;  %v3447_v25 = vrot.slane %v3435_v16, 6  ;;  %v3589_v16 = vld [vmem:[%s7745_s28 + $0x2a8] sm:$0xfc] }
 0x289   : > { %6851 = vst [vmem:[%s7670_s11 + $0x980] sm:$0x38] %v3313_v26  ;;  %v3448_v26 = vrot.slane %v3436_v17, 6  ;;  %v3590_v17 = vld [vmem:[%s7745_s28 + $0x2b0] sm:$0xfc] }
 0x28a   : > { %6852 = vst [vmem:[%s7670_s11 + $0x988] sm:$0x38] %v3314_v27  ;;  %v3449_v27 = vrot.slane %v3437_v18, 6 }
 0x28b   : > { %6853 = vst [vmem:[%s7670_s11 + $0x960] sm:$0xc0] %v3327_v28  ;;  %v3492_v28 = vrot.slane %v3468_v19, 6 }
 0x28c   : > { %6854 = vst [vmem:[%s7670_s11 + $0x968] sm:$0xc0] %v3328_v29  ;;  %v3493_v29 = vrot.slane %v3474_v20, 6 }
 0x28d   : > { %6855 = vst [vmem:[%s7670_s11 + $0x970] sm:$0xc0] %v3329_v30  ;;  %v3495_v30 = vrot.slane %v3469_v21, 6 }
 0x28e   : > { %6856 = vst [vmem:[%s7670_s11 + $0x978] sm:$0xc0] %v3330_v31  ;;  %v3496_v31 = vrot.slane %v3475_v22, 6  ;;  %v3494_v42 = vsel %vm1110_vm5, %v3492_v28, %v3493_v29  ;;  %v3613_v22 = vrot.slane %v3589_v16, 7  ;;  %v3595_v28 = vld [vmem:[%s7745_s28 + $0x2d8] sm:$0x1] }
 0x28f   : > { %6857 = vst [vmem:[%s7670_s11 + $0x980] sm:$0xc0] %v3331_v32  ;;  %v3498_v32 = vrot.slane %v3470_v23, 6  ;;  %v3614_v23 = vrot.slane %v3590_v17, 7  ;;  %v3593_v29 = vld [vmem:[%s7745_s28 + $0x2c8] sm:$0xfc] }
 0x290   : > { %6858 = vst [vmem:[%s7670_s11 + $0x988] sm:$0xc0] %v3332_v33  ;;  %v3499_v33 = vrot.slane %v3476_v24, 6  ;;  %v3497_v45 = vsel %vm1110_vm5, %v3495_v30, %v3496_v31  ;;  %v3596_v30 = vld [vmem:[%s7745_s28 + $0x2e0] sm:$0x1] }
 0x291   : > { %6859 = vst [vmem:[%s7670_s11 + $0x990] sm:$0x1] %v3333_v34  ;;  %v3471_v34 = vld [vmem:[%s7745_s28 + $0x1f8] sm:$0x80]  ;;  %v3622_v38 = vrot.slane %v3596_v30, 7 }
 0x292   : > { %6860 = vst [vmem:[%s7670_s11 + $0x998] sm:$0x1] %v3334_v35  ;;  %v3477_v35 = vld [vmem:[%s7745_s28 + $0x228] sm:$0xf]  ;;  %v3500_v49 = vsel %vm1110_vm5, %v3498_v32, %v3499_v33  ;;  %v3736_v16 = vld [vmem:[%s7906_s7 + $0x158] sm:$0xe0] }
 0x293   : > { %6861 = vst [vmem:[%s7670_s11 + $0x9a0] sm:$0x1] %v3335_v36  ;;  %v3472_v36 = vld [vmem:[%s7745_s28 + $0x200] sm:$0x80]  ;;  %v3597_v33 = vld [vmem:[%s7745_s28 + $0x2e8] sm:$0x1] }
 0x294   : > { %6862 = vst [vmem:[%s7670_s11 + $0x9a8] sm:$0x1] %v3336_v39  ;;  %v3479_v39 = vld [vmem:[%s7745_s28 + $0x238] sm:$0xf]  ;;  %v3743_v30 = vld [vmem:[%s7906_s7 + $0x190] sm:$0x3] }
 0x295   : > { %6863 = vst [vmem:[%s7670_s11 + $0x9b0] sm:$0x1] %v3337_v40  ;;  %v3501_v40 = vrot.slane %v3471_v34, 6  ;;  %v3508_v47 = vrot.slane %v3479_v39, 6  ;;  %v3599_v39 = vld [vmem:[%s7745_s28 + $0x2f8] sm:$0x1] }
 0x296   : > { %6864 = vst [vmem:[%s7670_s11 + $0x9b8] sm:$0x1] %v3338_v41  ;;  %v3502_v41 = vrot.slane %v3477_v35, 6  ;;  %v3620_v35 = vrot.slane %v3595_v28, 7  ;;  %v3742_v28 = vld [vmem:[%s7906_s7 + $0x188] sm:$0x3] }
 0x297   : > { %6865 = vst [vmem:[%s7670_s11 + $0x990] sm:$0x3e] %v3363_v43  ;;  %v3504_v43 = vrot.slane %v3472_v36, 6  ;;  %v3509_v57 = vsel %vm1110_vm5, %v3507_v46, %v3508_v47  ;;  %v3598_v36 = vld [vmem:[%s7745_s28 + $0x2f0] sm:$0x1] }
 0x298   : > { %6866 = vst [vmem:[%s7670_s11 + $0x998] sm:$0x3e] %v3364_v44  ;;  %v3505_v44 = vrot.slane %v3478_v37, 6  ;;  %v3617_v37 = vrot.slane %v3593_v29, 7  ;;  %v3654_v46 = vld [vmem:[%s7745_s28 + $0x300] sm:$0x3e] }
 0x299   : > { %6867 = vst [vmem:[%s7670_s11 + $0x9a0] sm:$0x3e] %v3365_v48  ;;  %v3522_v48 = vld [vmem:[%s7745_s28 + $0x240] sm:$0xe0]  ;;  %v3655_v47 = vld [vmem:[%s7745_s28 + $0x308] sm:$0x3e] }
 0x29a   : > { %6868 = vst [vmem:[%s7670_s11 + $0x9a8] sm:$0x3e] %v3366_v50  ;;  %v3523_v50 = vld [vmem:[%s7745_s28 + $0x248] sm:$0xe0]  ;;  %v3506_v55 = vsel %vm1110_vm5, %v3504_v43, %v3505_v44  ;;  %v3621_v43 = vsel %vm1565_vm7, %v3613_v22, %v3620_v35  ;;  %v3628_v44 = vrot.slane %v3599_v39, 7  ;;  %v3767_v35 = vrot.slane %v3742_v28, 6 }
 0x29b   : > { %6869 = vst [vmem:[%s7670_s11 + $0x9b0] sm:$0x3e] %v3367_v52  ;;  %v3503_v52 = vsel %vm1110_vm5, %v3501_v40, %v3502_v41  ;;  %v3547_v61 = vrot.slane %v3523_v50, 7  ;;  %v3624_v40 = vrot.slane %v3597_v33, 7  ;;  %v3656_v50 = vld [vmem:[%s7745_s28 + $0x310] sm:$0x3e] }
 0x29c   : > { %6870 = vst [vmem:[%s7670_s11 + $0x9b8] sm:$0x3e] %v3368_v54  ;;  %v3526_v54 = vld [vmem:[%s7745_s28 + $0x260] sm:$0xe0]  ;;  %v3629_v51 = vsel %vm1565_vm7, %v3617_v37, %v3628_v44  ;;  %v3740_v29 = vld [vmem:[%s7906_s7 + $0x178] sm:$0xe0] }
 0x29d   : > { %6873 = vst.msk [vmem:[%s7670_s11 + $0x996] ss:$8 sm:$0xf] %vm7753_vm1, %v3384_v56  ;;  %v3550_v0 = vrot.slane %v3526_v54, 7  ;;  %v3657_v54 = vld [vmem:[%s7745_s28 + $0x318] sm:$0x3e] }
 0x29e   : > { %6874 = vst.msk [vmem:[%s7670_s11 + $0x996] ss:$8 sm:$0x30] %vm7753_vm1, %v3384_v56  ;;  %v3546_v56 = vrot.slane %v3522_v48, 7  ;;  %v3744_v33 = vld [vmem:[%s7906_s7 + $0x198] sm:$0x3] }
 0x29f   : > { %6877 = vst.msk [vmem:[%s7670_s11 + $0x997] ss:$8 sm:$0xf] %vm7753_vm1, %v3391_v60  ;;  %v3746_v39 = vld [vmem:[%s7906_s7 + $0x1a8] sm:$0x3] }
 0x2a0   : > { %6878 = vst.msk [vmem:[%s7670_s11 + $0x997] ss:$8 sm:$0x30] %vm7753_vm1, %v3391_v60  ;;  %v3529_v60 = vld [vmem:[%s7745_s28 + $0x278] sm:$0x3]  ;;  %v3553_v11 = vsel %vm1565_vm7, %v3546_v56, %v3552_v3  ;;  %v3775_v44 = vrot.slane %v3746_v39, 6 }
 0x2a1   : > { %6881 = vst.msk [vmem:[%s7670_s11 + $0x9c0] ss:$8 sm:$0xf] %vm7753_vm1, %v3398_v63  ;;  %v6945_v3 = vld [vmem:[%s7745_s28 + $0x3c2] ss:$8 sm:$0xf] }
 0x2a2   : > { %6882 = vst.msk [vmem:[%s7670_s11 + $0x9c0] ss:$8 sm:$0x30] %vm7753_vm1, %v3398_v63  ;;  %v3549_v63 = vrot.slane %v3525_v53, 7  ;;  %v3667_v53 = vrot.slane %v3655_v47, 7 }
 0x2a3   : > { %6883 = vst [vmem:[%s7670_s11 + $0x9c0] sm:$0x1e] %v3414_v2  ;;  %v3530_v2 = vld [vmem:[%s7745_s28 + $0x280] sm:$0x3]  ;;  %v3904_v28 = vld [vmem:[%s7906_s7 + $0x248] sm:$0xf0] }
 0x2a4   : > { %6884 = vst [vmem:[%s7670_s11 + $0x9c8] sm:$0x1e] %v3415_v4  ;;  %v3554_v4 = vrot.slane %v3529_v60, 7  ;;  %v3556_v9 = vrot.slane %v3530_v2, 7  ;;  %v3669_v60 = vrot.slane %v3657_v54, 7 }
 0x2a5   : > { %6885 = vst [vmem:[%s7670_s11 + $0x9d0] sm:$0x1e] %v3416_v5  ;;  %v3531_v5 = vld [vmem:[%s7745_s28 + $0x288] sm:$0x3] }
 0x2a6   : > { %6886 = vst [vmem:[%s7670_s11 + $0x9d8] sm:$0x1e] %v3417_v6  ;;  %v3532_v6 = vld [vmem:[%s7745_s28 + $0x290] sm:$0x3]  ;;  %v3558_v10 = vrot.slane %v3531_v5, 7  ;;  %v3557_v18 = vsel %vm1565_vm7, %v3548_v62, %v3556_v9 }
 0x2a7   : > { %6887 = vst [vmem:[%s7670_s11 + $0x9e0] sm:$0x1e] %v3418_v8  ;;  %v3551_v8 = vrot.slane %v3527_v1, 7  ;;  %v6942_v1 = vld [vmem:[%s7745_s28 + $0x397] ss:$8 sm:$0x30] }
 0x2a8   : > { %6888 = vst [vmem:[%s7670_s11 + $0x9e8] sm:$0x1e] %v3419_v12  ;;  %v3560_v12 = vrot.slane %v3532_v6, 7  ;;  %v3559_v19 = vsel %vm1565_vm7, %v3549_v63, %v3558_v10  ;;  %v3705_v6 = vld [vmem:[%s7906_s7 + $0x150] sm:$0x3e] }
 0x2a9   : > { %6889 = vst [vmem:[%s7670_s11 + $0x9c0] sm:$0xe0] %v3444_v13  ;;  %v3708_v10 = vld [vmem:[%s7906_s7 + $0x168] sm:$0x3e] }
 0x2aa   : > { %6895 = vst [vmem:[%s7670_s11 + $0x9f0] sm:$0x1] %v3444_v13  ;;  %v3562_v13 = vrot.slane %v3533_v7, 7  ;;  %v3561_v20 = vsel %vm1565_vm7, %v3550_v0, %v3560_v12  ;;  %v3706_v7 = vld [vmem:[%s7906_s7 + $0x158] sm:$0x3e]  ;;  %v3717_v12 = vrot.slane %v3705_v6, 7 }
 0x2ab   : > { %6890 = vst [vmem:[%s7670_s11 + $0x9c8] sm:$0xe0] %v3445_v14  ;;  %v3804_v54 = vld [vmem:[%s7906_s7 + $0x1c8] sm:$0x7f] }
 0x2ac   : > { %6896 = vst [vmem:[%s7670_s11 + $0x9f8] sm:$0x1] %v3445_v14  ;;  %v3588_v14 = vld [vmem:[%s7745_s28 + $0x2a0] sm:$0xfc]  ;;  %v3563_v24 = vsel %vm1565_vm7, %v3551_v8, %v3562_v13  ;;  %v3710_v13 = vld [vmem:[%s7906_s7 + $0x178] sm:$0x3e] }
 0x2ad   : > { %6891 = vst [vmem:[%s7670_s11 + $0x9d0] sm:$0xe0] %v3446_v15  ;;  %v3612_v21 = vrot.slane %v3588_v14, 7  ;;  %v3735_v14 = vld [vmem:[%s7906_s7 + $0x150] sm:$0xe0] }
 0x2ae   : > { %6897 = vst [vmem:[%s7670_s11 + $0xa00] sm:$0x1] %v3446_v15  ;;  %v3555_v15 = vsel %vm1565_vm7, %v3547_v61, %v3554_v4  ;;  %v6946_v4 = vld [vmem:[%s7745_s28 + $0x3c2] ss:$8 sm:$0x30] }
 0x2af   : > { %6892 = vst [vmem:[%s7670_s11 + $0x9d8] sm:$0xe0] %v3447_v25  ;;  %v3701_v9 = vor.u32 %v6946_v4, %v6945_v3  ;;  %v3839_v4 = vld [vmem:[%s7906_s7 + $0x1f0] sm:$0xc0]  ;;  %v3912_v39 = vld [vmem:[%s7906_s7 + $0x288] sm:$0x7] }
 0x2b0   : > { %6898 = vst [vmem:[%s7670_s11 + $0xa08] sm:$0x1] %v3447_v25  ;;  %v3591_v25 = vld [vmem:[%s7745_s28 + $0x2b8] sm:$0xfc] }
 0x2b1   : > { %6893 = vst [vmem:[%s7670_s11 + $0x9e0] sm:$0xe0] %v3448_v26  ;;  %v3615_v31 = vrot.slane %v3591_v25, 7  ;;  %v3738_v25 = vld [vmem:[%s7906_s7 + $0x168] sm:$0xe0] }
 0x2b2   : > { %6899 = vst [vmem:[%s7670_s11 + $0xa10] sm:$0x1] %v3448_v26  ;;  %v3594_v26 = vld [vmem:[%s7745_s28 + $0x2d0] sm:$0x1] }
 0x2b3   : > { %6894 = vst [vmem:[%s7670_s11 + $0x9e8] sm:$0xe0] %v3449_v27  ;;  %v3618_v32 = vrot.slane %v3594_v26, 7  ;;  %v3625_v48 = vsel %vm1565_vm7, %v3615_v31, %v3624_v40  ;;  %v3741_v26 = vld [vmem:[%s7906_s7 + $0x180] sm:$0x3]  ;;  %v3771_v40 = vrot.slane %v3744_v33, 6 }
 0x2b4   : > { %6900 = vst [vmem:[%s7670_s11 + $0xa18] sm:$0x1] %v3449_v27  ;;  %v3592_v27 = vld [vmem:[%s7745_s28 + $0x2c0] sm:$0xfc]  ;;  %v3905_v33 = vld [vmem:[%s7906_s7 + $0x250] sm:$0xf0] }
 0x2b5   : > { %6901 = vst [vmem:[%s7670_s11 + $0x9f0] sm:$0x3e] %v3494_v42  ;;  %v3616_v34 = vrot.slane %v3592_v27, 7  ;;  %v3619_v41 = vsel %vm1565_vm7, %v3612_v21, %v3618_v32  ;;  %v3626_v42 = vrot.slane %v3598_v36, 7  ;;  %v3739_v27 = vld [vmem:[%s7906_s7 + $0x170] sm:$0xe0] }
 0x2b6   : > { %6902 = vst [vmem:[%s7670_s11 + $0x9f8] sm:$0x3e] %v3497_v45  ;;  %v3623_v45 = vsel %vm1565_vm7, %v3614_v23, %v3622_v38  ;;  %v3765_v32 = vrot.slane %v3741_v26, 6  ;;  %v3745_v36 = vld [vmem:[%s7906_s7 + $0x1a0] sm:$0x3]  ;;  %v3769_v38 = vrot.slane %v3743_v30, 6 }
 0x2b7   : > { %6903 = vst [vmem:[%s7670_s11 + $0xa00] sm:$0x3e] %v3500_v49  ;;  %v3627_v49 = vsel %vm1565_vm7, %v3616_v34, %v3626_v42  ;;  %v3773_v42 = vrot.slane %v3745_v36, 6  ;;  %v3930_v36 = vrot.slane %v3904_v28, 2  ;;  %v4037_v28 = vld [vmem:[%s7906_s7 + $0x370] sm:$0x1f] }
 0x2b8   : > { %6904 = vst [vmem:[%s7670_s11 + $0xa08] sm:$0x3e] %v3503_v52  ;;  %v3666_v52 = vrot.slane %v3654_v46, 7  ;;  %v3801_v46 = vld [vmem:[%s7906_s7 + $0x1b0] sm:$0x7f] }
 0x2b9   : > { %6905 = vst [vmem:[%s7670_s11 + $0xa10] sm:$0x3e] %v3506_v55  ;;  %v3658_v55 = vld [vmem:[%s7745_s28 + $0x320] sm:$0x3e] }
 0x2ba   : > { %6906 = vst [vmem:[%s7670_s11 + $0xa18] sm:$0x3e] %v3509_v57  ;;  %v3668_v57 = vrot.slane %v3656_v50, 7 }
 0x2bb   : > { %6907 = vst [vmem:[%s7670_s11 + $0x9f0] sm:$0xc0] %v3546_v56  ;;  %v3659_v56 = vld [vmem:[%s7745_s28 + $0x328] sm:$0x3e] }
 0x2bc   : > { %6908 = vst [vmem:[%s7670_s11 + $0x9f8] sm:$0xc0] %v3547_v61  ;;  %v6938_v61 = vld [vmem:[%s7745_s28 + $0x394] ss:$8 sm:$0x30] }
 0x2bd   : > { %6909 = vst [vmem:[%s7670_s11 + $0xa00] sm:$0xc0] %v3548_v62  ;;  %v3670_v62 = vrot.slane %v3658_v55, 7  ;;  %v3687_v2 = vor.u32 %v6938_v61, %v6937_v58  ;;  %v3806_v58 = vld [vmem:[%s7906_s7 + $0x1d8] sm:$0x7f] }
 0x2be   : > { %6910 = vst [vmem:[%s7670_s11 + $0xa08] sm:$0xc0] %v3549_v63  ;;  %v6941_v63 = vld [vmem:[%s7745_s28 + $0x397] ss:$8 sm:$0xf] }
 0x2bf   : > { %6911 = vst [vmem:[%s7670_s11 + $0xa10] sm:$0xc0] %v3550_v0  ;;  %v3671_v0 = vrot.slane %v3659_v56, 7  ;;  %v3694_v5 = vor.u32 %v6942_v1, %v6941_v63  ;;  %v3805_v56 = vld [vmem:[%s7906_s7 + $0x1d0] sm:$0x7f]  ;;  %v3818_v1 = vrot.slane %v3806_v58, 4 }
 0x2c0   : > { %6912 = vst [vmem:[%s7670_s11 + $0xa18] sm:$0xc0] %v3551_v8  ;;  %v3707_v8 = vld [vmem:[%s7906_s7 + $0x160] sm:$0x3e]  ;;  %v3843_v61 = vld [vmem:[%s7906_s7 + $0x210] sm:$0x1f] }
 0x2c1   : > { %6913 = vst [vmem:[%s7670_s11 + $0xa20] sm:$0x7] %v3553_v11  ;;  %v3709_v11 = vld [vmem:[%s7906_s7 + $0x170] sm:$0x3e]  ;;  %v3719_v17 = vrot.slane %v3707_v8, 7  ;;  %v3862_v3 = vrot.slane %v3843_v61, 3 }
 0x2c2   : > { %6914 = vst [vmem:[%s7670_s11 + $0xa28] sm:$0x7] %v3555_v15  ;;  %v3718_v15 = vrot.slane %v3706_v7, 7  ;;  %v3838_v63 = vld [vmem:[%s7906_s7 + $0x1e8] sm:$0xc0] }
 0x2c3   : > { %6915 = vst [vmem:[%s7670_s11 + $0xa30] sm:$0x7] %v3557_v18  ;;  %v3737_v18 = vld [vmem:[%s7906_s7 + $0x160] sm:$0xe0]  ;;  %v3864_v6 = vrot.slane %v3838_v63, 3 }
 0x2c4   : > { %6916 = vst [vmem:[%s7670_s11 + $0xa38] sm:$0x7] %v3559_v19  ;;  %v3720_v19 = vrot.slane %v3708_v10, 7  ;;  %v3840_v8 = vld [vmem:[%s7906_s7 + $0x1f8] sm:$0xc0] }
 0x2c5   : > { %6917 = vst [vmem:[%s7670_s11 + $0xa40] sm:$0x7] %v3561_v20  ;;  %v3721_v20 = vrot.slane %v3709_v11, 7  ;;  %v3867_v11 = vrot.slane %v3839_v4, 3  ;;  %v3969_v58 = vld [vmem:[%s7906_s7 + $0x2a0] sm:$0xfe] }
 0x2c6   : > { %6918 = vst [vmem:[%s7670_s11 + $0xa48] sm:$0x7] %v3563_v24  ;;  %v3761_v24 = vrot.slane %v3737_v18, 6  ;;  %v3842_v18 = vld [vmem:[%s7906_s7 + $0x208] sm:$0xc0] }
 0x2c7   : > { %6919 = vst [vmem:[%s7670_s11 + $0xa20] sm:$0xf8] %v3612_v21  ;;  %v3722_v21 = vrot.slane %v3710_v13, 7  ;;  %v3841_v13 = vld [vmem:[%s7906_s7 + $0x200] sm:$0xc0]  ;;  %v3876_v26 = vrot.slane %v3842_v18, 3 }
 0x2c8   : > { %6920 = vst [vmem:[%s7670_s11 + $0xa28] sm:$0xf8] %v3613_v22  ;;  %v3759_v22 = vrot.slane %v3735_v14, 6  ;;  %v3847_v14 = vld [vmem:[%s7906_s7 + $0x230] sm:$0x1f] }
 0x2c9   : > { %6921 = vst [vmem:[%s7670_s11 + $0xa30] sm:$0xf8] %v3614_v23  ;;  %v3760_v23 = vrot.slane %v3736_v16, 6  ;;  %v3870_v16 = vrot.slane %v3840_v8, 3  ;;  %v3971_v61 = vld [vmem:[%s7906_s7 + $0x2b0] sm:$0xfe] }
 0x2ca   : > { %6922 = vst [vmem:[%s7670_s11 + $0xa38] sm:$0xf8] %v3615_v31  ;;  %v3762_v31 = vrot.slane %v3738_v25, 6  ;;  %v3973_v63 = vld [vmem:[%s7906_s7 + $0x2c0] sm:$0xfe] }
 0x2cb   : > { %6923 = vst [vmem:[%s7670_s11 + $0xa40] sm:$0xf8] %v3616_v34  ;;  %v3763_v34 = vrot.slane %v3739_v27, 6  ;;  %v3978_v4 = vld [vmem:[%s7906_s7 + $0x2e8] sm:$0x3] }
 0x2cc   : > { %6924 = vst [vmem:[%s7670_s11 + $0xa48] sm:$0xf8] %v3617_v37  ;;  %v3764_v37 = vrot.slane %v3740_v29, 6  ;;  %v3772_v47 = vsel %vm1110_vm5, %v3762_v31, %v3771_v40  ;;  %v3910_v29 = vld [vmem:[%s7906_s7 + $0x278] sm:$0x7] }
 0x2cd   : > { %6925 = vst [vmem:[%s7670_s11 + $0xa50] sm:$0x3] %v3619_v41  ;;  %v3766_v41 = vsel %vm1110_vm5, %v3759_v22, %v3765_v32  ;;  %v3979_v8 = vld [vmem:[%s7906_s7 + $0x2f0] sm:$0x3]  ;;  %v4030_v18 = vld [vmem:[%s7906_s7 + $0x338] sm:$0xc0] }
 0x2ce   : > { %6926 = vst [vmem:[%s7670_s11 + $0xa58] sm:$0x3] %v3621_v43  ;;  %v3768_v43 = vsel %vm1110_vm5, %v3760_v23, %v3767_v35  ;;  %v3776_v50 = vsel %vm1110_vm5, %v3764_v37, %v3775_v44  ;;  %v3913_v44 = vld [vmem:[%s7906_s7 + $0x290] sm:$0x7] }
 0x2cf   : > { %6927 = vst [vmem:[%s7670_s11 + $0xa60] sm:$0x3] %v3623_v45  ;;  %v3770_v45 = vsel %vm1110_vm5, %v3761_v24, %v3769_v38  ;;  %v3906_v38 = vld [vmem:[%s7906_s7 + $0x258] sm:$0xf0] }
 0x2d0   : > { %6928 = vst [vmem:[%s7670_s11 + $0xa68] sm:$0x3] %v3625_v48  ;;  %v3774_v48 = vsel %vm1110_vm5, %v3763_v34, %v3773_v42 }
 0x2d1   : > { %6929 = vst [vmem:[%s7670_s11 + $0xa70] sm:$0x3] %v3627_v49  ;;  %v3802_v49 = vld [vmem:[%s7906_s7 + $0x1b8] sm:$0x7f] }
 0x2d2   : > { %6930 = vst [vmem:[%s7670_s11 + $0xa78] sm:$0x3] %v3629_v51  ;;  %v3813_v51 = vrot.slane %v3801_v46, 4  ;;  %v3936_v46 = vrot.slane %v3906_v38, 2 }
 0x2d3   : > { %6931 = vst [vmem:[%s7670_s11 + $0xa50] sm:$0x7c] %v3666_v52  ;;  %v3803_v52 = vld [vmem:[%s7906_s7 + $0x1c0] sm:$0x7f] }
 0x2d4   : > { %6932 = vst [vmem:[%s7670_s11 + $0xa58] sm:$0x7c] %v3667_v53  ;;  %v3814_v53 = vrot.slane %v3802_v49, 4  ;;  %v3815_v55 = vrot.slane %v3803_v52, 4  ;;  %v3914_v49 = vld [vmem:[%s7906_s7 + $0x298] sm:$0x7] }
 0x2d5   : > { %6933 = vst [vmem:[%s7670_s11 + $0xa60] sm:$0x7c] %v3668_v57  ;;  %v3816_v57 = vrot.slane %v3804_v54, 4  ;;  %v3940_v52 = vrot.slane %v3913_v44, 2 }
 0x2d6   : > { %6934 = vst [vmem:[%s7670_s11 + $0xa68] sm:$0x7c] %v3669_v60  ;;  %v3837_v60 = vld [vmem:[%s7906_s7 + $0x1e0] sm:$0xc0] }
 0x2d7   : > { %6935 = vst [vmem:[%s7670_s11 + $0xa70] sm:$0x7c] %v3670_v62  ;;  %v3817_v62 = vrot.slane %v3805_v56, 4 }
 0x2d8   : > { %6936 = vst [vmem:[%s7670_s11 + $0xa78] sm:$0x7c] %v3671_v0  ;;  %v3844_v0 = vld [vmem:[%s7906_s7 + $0x218] sm:$0x1f] }
 0x2d9   : > { %6939 = vst.msk [vmem:[%s7670_s11 + $0xa57] ss:$8 sm:$0xf] %vm7753_vm1, %v3687_v2  ;;  %v3865_v7 = vrot.slane %v3844_v0, 3  ;;  %v3974_v0 = vld [vmem:[%s7906_s7 + $0x2c8] sm:$0xfe] }
 0x2da   : > { %6940 = vst.msk [vmem:[%s7670_s11 + $0xa57] ss:$8 sm:$0x30] %vm7753_vm1, %v3687_v2  ;;  %v3861_v2 = vrot.slane %v3837_v60, 3  ;;  %v3970_v60 = vld [vmem:[%s7906_s7 + $0x2a8] sm:$0xfe] }
 0x2db   : > { %6943 = vst.msk [vmem:[%s7670_s11 + $0xa80] ss:$8 sm:$0xf] %vm7753_vm1, %v3694_v5 }
 0x2dc   : > { %6944 = vst.msk [vmem:[%s7670_s11 + $0xa80] ss:$8 sm:$0x30] %vm7753_vm1, %v3694_v5  ;;  %v3845_v5 = vld [vmem:[%s7906_s7 + $0x220] sm:$0x1f]  ;;  %v3863_v10 = vsel %vm1243_vm6, %v3861_v2, %v3862_v3 }
 0x2dd   : > { %6947 = vst.msk [vmem:[%s7670_s11 + $0xa81] ss:$8 sm:$0xf] %vm7753_vm1, %v3701_v9  ;;  %v3976_v2 = vld [vmem:[%s7906_s7 + $0x2d8] sm:$0x3] }
 0x2de   : > { %6948 = vst.msk [vmem:[%s7670_s11 + $0xa81] ss:$8 sm:$0x30] %vm7753_vm1, %v3701_v9  ;;  %v3846_v9 = vld [vmem:[%s7906_s7 + $0x228] sm:$0x1f] }
 0x2df   : > { %6949 = vst [vmem:[%s7670_s11 + $0xa80] sm:$0x7c] %v3717_v12  ;;  %v3868_v12 = vrot.slane %v3845_v5, 3  ;;  %v3993_v5 = vld [vmem:[%s7906_s7 + $0x300] sm:$0x7f] }
 0x2e0   : > { %6950 = vst [vmem:[%s7670_s11 + $0xa88] sm:$0x7c] %v3718_v15  ;;  %v3866_v15 = vsel %vm1243_vm6, %v3864_v6, %v3865_v7  ;;  %v3994_v6 = vld [vmem:[%s7906_s7 + $0x308] sm:$0x7f] }
 0x2e1   : > { %6951 = vst [vmem:[%s7670_s11 + $0xa90] sm:$0x7c] %v3719_v17  ;;  %v3871_v17 = vrot.slane %v3846_v9, 3  ;;  %v3980_v9 = vld [vmem:[%s7906_s7 + $0x2f8] sm:$0x3] }
 0x2e2   : > { %6952 = vst [vmem:[%s7670_s11 + $0xa98] sm:$0x7c] %v3720_v19  ;;  %v3848_v19 = vld [vmem:[%s7906_s7 + $0x238] sm:$0x1f] }
 0x2e3   : > { %6953 = vst [vmem:[%s7670_s11 + $0xaa0] sm:$0x7c] %v3721_v20  ;;  %v3869_v20 = vsel %vm1243_vm6, %v3867_v11, %v3868_v12  ;;  %v3872_v25 = vsel %vm1243_vm6, %v3870_v16, %v3871_v17  ;;  %v3877_v27 = vrot.slane %v3848_v19, 3  ;;  %v4006_v11 = vrot.slane %v3994_v6, 6  ;;  %v4029_v16 = vld [vmem:[%s7906_s7 + $0x330] sm:$0xc0] }
 0x2e4   : > { %6954 = vst [vmem:[%s7670_s11 + $0xaa8] sm:$0x7c] %v3722_v21  ;;  %v3873_v21 = vrot.slane %v3841_v13, 3  ;;  %v3996_v13 = vld [vmem:[%s7906_s7 + $0x318] sm:$0x7f] }
 0x2e5   : > { %6955 = vst [vmem:[%s7670_s11 + $0xa80] sm:$0x80] %v3759_v22  ;;  %v3874_v22 = vrot.slane %v3847_v14, 3  ;;  %v3878_v35 = vsel %vm1243_vm6, %v3876_v26, %v3877_v27  ;;  %v3997_v14 = vld [vmem:[%s7906_s7 + $0x320] sm:$0x7f] }
 0x2e6   : > { %6956 = vst [vmem:[%s7670_s11 + $0xa88] sm:$0x80] %v3760_v23  ;;  %v3903_v23 = vld [vmem:[%s7906_s7 + $0x240] sm:$0xf0]  ;;  %v4036_v19 = vld [vmem:[%s7906_s7 + $0x368] sm:$0x1f] }
 0x2e7   : > { %6957 = vst [vmem:[%s7670_s11 + $0xa90] sm:$0x80] %v3761_v24  ;;  %v3909_v24 = vld [vmem:[%s7906_s7 + $0x270] sm:$0x7]  ;;  %v3875_v30 = vsel %vm1243_vm6, %v3873_v21, %v3874_v22  ;;  %v4009_v21 = vrot.slane %v3997_v14, 6  ;;  %v4057_v26 = vrot.slane %v4036_v19, 5 }
 0x2e8   : > { %6958 = vst [vmem:[%s7670_s11 + $0xa98] sm:$0x80] %v3762_v31  ;;  %v3927_v31 = vrot.slane %v3903_v23, 2  ;;  %v3928_v32 = vrot.slane %v3909_v24, 2  ;;  %v4053_v23 = vrot.slane %v4029_v16, 5 }
 0x2e9   : > { %6959 = vst [vmem:[%s7670_s11 + $0xaa0] sm:$0x80] %v3763_v34  ;;  %v3911_v34 = vld [vmem:[%s7906_s7 + $0x280] sm:$0x7]  ;;  %v4147_v6 = vld [vmem:[%s8162_s12 + $0x128] sm:$0x1f] }
 0x2ea   : > { %6960 = vst [vmem:[%s7670_s11 + $0xaa8] sm:$0x80] %v3764_v37  ;;  %v3931_v37 = vrot.slane %v3910_v29, 2  ;;  %v3929_v40 = vsel %vm952_vm3, %v3927_v31, %v3928_v32  ;;  %v3934_v42 = vrot.slane %v3911_v34, 2  ;;  %v4032_v29 = vld [vmem:[%s7906_s7 + $0x348] sm:$0xc0] }
 0x2eb   : > { %6961 = vst [vmem:[%s7670_s11 + $0xab0] sm:$0xf] %v3766_v41  ;;  %v3933_v41 = vrot.slane %v3905_v33, 2  ;;  %v4033_v31 = vld [vmem:[%s7906_s7 + $0x350] sm:$0xc0]  ;;  %v4168_v14 = vrot.slane %v4147_v6, 6 }
 0x2ec   : > { %6962 = vst [vmem:[%s7670_s11 + $0xab8] sm:$0xf] %v3768_v43  ;;  %v3907_v43 = vld [vmem:[%s7906_s7 + $0x260] sm:$0xf0]  ;;  %v4034_v33 = vld [vmem:[%s7906_s7 + $0x358] sm:$0xc0] }
 0x2ed   : > { %6963 = vst [vmem:[%s7670_s11 + $0xac0] sm:$0xf] %v3770_v45  ;;  %v3932_v45 = vsel %vm952_vm3, %v3930_v36, %v3931_v37  ;;  %v4040_v36 = vld [vmem:[%s7906_s7 + $0x388] sm:$0x1f]  ;;  %v4148_v16 = vld [vmem:[%s8162_s12 + $0x130] sm:$0x1f] }
 0x2ee   : > { %6964 = vst [vmem:[%s7670_s11 + $0xac8] sm:$0xf] %v3772_v47  ;;  %v3937_v47 = vrot.slane %v3912_v39, 2  ;;  %v4069_v44 = vrot.slane %v4040_v36, 5  ;;  %v4144_v19 = vld [vmem:[%s8162_s12 + $0x110] sm:$0x80] }
 0x2ef   : > { %6965 = vst [vmem:[%s7670_s11 + $0xad0] sm:$0xf] %v3774_v48  ;;  %v3908_v48 = vld [vmem:[%s7906_s7 + $0x268] sm:$0xf0] }
 0x2f0   : > { %6966 = vst [vmem:[%s7670_s11 + $0xad8] sm:$0xf] %v3776_v50  ;;  %v3935_v50 = vsel %vm952_vm3, %v3933_v41, %v3934_v42  ;;  %v3942_v54 = vrot.slane %v3908_v48, 2 }
 0x2f1   : > { %6967 = vst [vmem:[%s7670_s11 + $0xab0] sm:$0xf0] %v3813_v51 }
 0x2f2   : > { %6973 = vst [vmem:[%s7670_s11 + $0xae0] sm:$0x7] %v3813_v51  ;;  %v3939_v51 = vrot.slane %v3907_v43, 2 }
 0x2f3   : > { %6968 = vst [vmem:[%s7670_s11 + $0xab8] sm:$0xf0] %v3814_v53 }
 0x2f4   : > { %6974 = vst [vmem:[%s7670_s11 + $0xae8] sm:$0x7] %v3814_v53  ;;  %v3938_v53 = vsel %vm952_vm3, %v3936_v46, %v3937_v47  ;;  %v3941_v56 = vsel %vm952_vm3, %v3939_v51, %v3940_v52  ;;  %v7038_v51 = vld [vmem:[%s7906_s7 + $0x3f5] ss:$8 sm:$0x30] }
 0x2f5   : > { %6969 = vst [vmem:[%s7670_s11 + $0xac0] sm:$0xf0] %v3815_v55 }
 0x2f6   : > { %6975 = vst [vmem:[%s7670_s11 + $0xaf0] sm:$0x7] %v3815_v55  ;;  %v3943_v55 = vrot.slane %v3914_v49, 2  ;;  %v7037_v49 = vld [vmem:[%s7906_s7 + $0x3f5] ss:$8 sm:$0xf] }
 0x2f7   : > { %6970 = vst [vmem:[%s7670_s11 + $0xac8] sm:$0xf0] %v3816_v57 }
 0x2f8   : > { %6976 = vst [vmem:[%s7670_s11 + $0xaf8] sm:$0x7] %v3816_v57  ;;  %v3944_v57 = vsel %vm952_vm3, %v3942_v54, %v3943_v55  ;;  %v7041_v54 = vld [vmem:[%s7906_s7 + $0x421] ss:$8 sm:$0xf] }
 0x2f9   : > { %6971 = vst [vmem:[%s7670_s11 + $0xad0] sm:$0xf0] %v3817_v62 }
 0x2fa   : > { %6977 = vst [vmem:[%s7670_s11 + $0xb00] sm:$0x7] %v3817_v62  ;;  %v3972_v62 = vld [vmem:[%s7906_s7 + $0x2b8] sm:$0xfe] }
 0x2fb   : > { %6972 = vst [vmem:[%s7670_s11 + $0xad8] sm:$0xf0] %v3818_v1 }
 0x2fc   : > { %6978 = vst [vmem:[%s7670_s11 + $0xb08] sm:$0x7] %v3818_v1  ;;  %v3975_v1 = vld [vmem:[%s7906_s7 + $0x2d0] sm:$0x3] }
 0x2fd   : > { %6979 = vst [vmem:[%s7670_s11 + $0xae0] sm:$0xf8] %v3863_v10  ;;  %v4005_v10 = vrot.slane %v3993_v5, 6  ;;  %v4141_v5 = vld [vmem:[%s8162_s12 + $0xf8] sm:$0x80] }
 0x2fe   : > { %6985 = vst [vmem:[%s7670_s11 + $0xb10] sm:$0x3] %v3862_v3  ;;  %v3977_v3 = vld [vmem:[%s7906_s7 + $0x2e0] sm:$0x3] }
 0x2ff   : > { %6980 = vst [vmem:[%s7670_s11 + $0xae8] sm:$0xf8] %v3866_v15  ;;  %v3998_v15 = vld [vmem:[%s7906_s7 + $0x328] sm:$0x7f] }
 0x300   : > { %6986 = vst [vmem:[%s7670_s11 + $0xb18] sm:$0x3] %v3865_v7  ;;  %v3995_v7 = vld [vmem:[%s7906_s7 + $0x310] sm:$0x7f] }
 0x301   : > { %6981 = vst [vmem:[%s7670_s11 + $0xaf0] sm:$0xf8] %v3869_v20  ;;  %v4008_v20 = vrot.slane %v3996_v13, 6  ;;  %v4167_v13 = vrot.slane %v4141_v5, 6 }
 0x302   : > { %6987 = vst [vmem:[%s7670_s11 + $0xb20] sm:$0x3] %v3868_v12  ;;  %v4007_v12 = vrot.slane %v3995_v7, 6 }
 0x303   : > { %6982 = vst [vmem:[%s7670_s11 + $0xaf8] sm:$0xf8] %v3872_v25  ;;  %v4056_v25 = vrot.slane %v4030_v18, 5  ;;  %v4149_v18 = vld [vmem:[%s8162_s12 + $0x138] sm:$0x1f] }
 0x304   : > { %6988 = vst [vmem:[%s7670_s11 + $0xb28] sm:$0x3] %v3871_v17  ;;  %v4035_v17 = vld [vmem:[%s7906_s7 + $0x360] sm:$0x1f] }
 0x305   : > { %6983 = vst [vmem:[%s7670_s11 + $0xb00] sm:$0xf8] %v3875_v30  ;;  %v4054_v24 = vrot.slane %v4035_v17, 5  ;;  %v4038_v30 = vld [vmem:[%s7906_s7 + $0x378] sm:$0x1f]  ;;  %v4058_v43 = vsel %vm570_vm2, %v4056_v25, %v4057_v26  ;;  %v4174_v26 = vrot.slane %v4149_v18, 6 }
 0x306   : > { %6989 = vst [vmem:[%s7670_s11 + $0xb30] sm:$0x3] %v3874_v22  ;;  %v4010_v22 = vrot.slane %v3998_v15, 6  ;;  %v4063_v38 = vrot.slane %v4038_v30, 5  ;;  %v4142_v15 = vld [vmem:[%s8162_s12 + $0x100] sm:$0x80] }
 0x307   : > { %6984 = vst [vmem:[%s7670_s11 + $0xb08] sm:$0xf8] %v3878_v35  ;;  %v4060_v35 = vrot.slane %v4037_v28, 5  ;;  %v4055_v39 = vsel %vm570_vm2, %v4053_v23, %v4054_v24  ;;  %v4143_v17 = vld [vmem:[%s8162_s12 + $0x108] sm:$0x80]  ;;  %v4170_v23 = vrot.slane %v4142_v15, 6 }
 0x308   : > { %6990 = vst [vmem:[%s7670_s11 + $0xb38] sm:$0x3] %v3877_v27  ;;  %v4031_v27 = vld [vmem:[%s7906_s7 + $0x340] sm:$0xc0]  ;;  %v4171_v24 = vrot.slane %v4148_v16, 6  ;;  %v4173_v25 = vrot.slane %v4143_v17, 6 }
 0x309   : > { %6991 = vst [vmem:[%s7670_s11 + $0xb10] sm:$0xfc] %v3929_v40  ;;  %v4059_v34 = vrot.slane %v4031_v27, 5  ;;  %v4065_v40 = vrot.slane %v4033_v31, 5  ;;  %v4176_v27 = vrot.slane %v4144_v19, 6  ;;  %v4269_v15 = vld [vmem:[%s8162_s12 + $0x1c8] sm:$0xff] }
 0x30a   : > { %6997 = vst [vmem:[%s7670_s11 + $0xb40] sm:$0x1] %v3928_v32  ;;  %v4039_v32 = vld [vmem:[%s7906_s7 + $0x380] sm:$0x1f]  ;;  %v4172_v36 = vsel %vm1110_vm5, %v4170_v23, %v4171_v24  ;;  %v4264_v19 = vld [vmem:[%s8162_s12 + $0x1a0] sm:$0x80] }
 0x30b   : > { %6992 = vst [vmem:[%s7670_s11 + $0xb18] sm:$0xfc] %v3932_v45  ;;  %v4066_v41 = vrot.slane %v4039_v32, 5  ;;  %v7033_v45 = vld [vmem:[%s7906_s7 + $0x3f1] ss:$8 sm:$0xf]  ;;  %v4061_v46 = vsel %vm570_vm2, %v4059_v34, %v4060_v35 }
 0x30c   : > { %6998 = vst [vmem:[%s7670_s11 + $0xb48] sm:$0x1] %v3931_v37  ;;  %v4062_v37 = vrot.slane %v4032_v29, 5  ;;  %v4194_v32 = vld [vmem:[%s8162_s12 + $0x150] sm:$0xfe]  ;;  %v4294_v23 = vrot.slane %v4269_v15, 7 }
 0x30d   : > { %6993 = vst [vmem:[%s7670_s11 + $0xb20] sm:$0xfc] %v3935_v50  ;;  %v4067_v50 = vsel %vm570_vm2, %v4065_v40, %v4066_v41  ;;  %v4195_v34 = vld [vmem:[%s8162_s12 + $0x158] sm:$0xfe]  ;;  %v4196_v35 = vld [vmem:[%s8162_s12 + $0x160] sm:$0xfe] }
 0x30e   : > { %6999 = vst [vmem:[%s7670_s11 + $0xb50] sm:$0x1] %v3934_v42  ;;  %v4068_v42 = vrot.slane %v4034_v33, 5  ;;  %v4064_v48 = vsel %vm570_vm2, %v4062_v37, %v4063_v38  ;;  %v4169_v33 = vsel %vm1110_vm5, %v4167_v13, %v4168_v14  ;;  %v4175_v37 = vsel %vm1110_vm5, %v4173_v25, %v4174_v26  ;;  %v4263_v14 = vld [vmem:[%s8162_s12 + $0x198] sm:$0x80] }
 0x30f   : > { %6994 = vst [vmem:[%s7670_s11 + $0xb28] sm:$0xfc] %v3938_v53  ;;  %v4219_v40 = vrot.slane %v4195_v34, 2  ;;  %v4220_v41 = vrot.slane %v4196_v35, 2  ;;  %v4265_v24 = vld [vmem:[%s8162_s12 + $0x1a8] sm:$0x80] }
 0x310   : > { %7000 = vst [vmem:[%s7670_s11 + $0xb58] sm:$0x1] %v3937_v47  ;;  %v7034_v47 = vld [vmem:[%s7906_s7 + $0x3f1] ss:$8 sm:$0x30] }
 0x311   : > { %6995 = vst [vmem:[%s7670_s11 + $0xb30] sm:$0xfc] %v3941_v56  ;;  %v4086_v53 = vor.u32 %v7034_v47, %v7033_v45  ;;  %v4093_v56 = vor.u32 %v7038_v51, %v7037_v49  ;;  %v4198_v45 = vld [vmem:[%s8162_s12 + $0x170] sm:$0xfe]  ;;  %v4199_v47 = vld [vmem:[%s8162_s12 + $0x178] sm:$0xfe] }
 0x312   : > { %7001 = vst [vmem:[%s7670_s11 + $0xb60] sm:$0x1] %v3940_v52  ;;  %v4070_v52 = vsel %vm570_vm2, %v4068_v42, %v4069_v44  ;;  %v4200_v44 = vld [vmem:[%s8162_s12 + $0x180] sm:$0x3]  ;;  %v4203_v51 = vld [vmem:[%s8162_s12 + $0x198] sm:$0x3] }
 0x313   : > { %6996 = vst [vmem:[%s7670_s11 + $0xb38] sm:$0xfc] %v3944_v57  ;;  %v4104_v57 = vld [vmem:[%s8162_s12 + $0xf0] sm:$0xfc]  ;;  %v4271_v25 = vld [vmem:[%s8162_s12 + $0x1d8] sm:$0xff] }
 0x314   : > { %7002 = vst [vmem:[%s7670_s11 + $0xb68] sm:$0x1] %v3943_v55  ;;  %v7042_v55 = vld [vmem:[%s7906_s7 + $0x421] ss:$8 sm:$0x30] }
 0x315   : > { %7003 = vst [vmem:[%s7670_s11 + $0xb40] sm:$0xfe] %v3969_v58  ;;  %v4100_v58 = vor.u32 %v7042_v55, %v7041_v54  ;;  %v4204_v54 = vld [vmem:[%s8162_s12 + $0x1a0] sm:$0x3]  ;;  %v4223_v55 = vrot.slane %v4199_v47, 2 }
 0x316   : > { %7004 = vst [vmem:[%s7670_s11 + $0xb48] sm:$0xfe] %v3970_v60  ;;  %v4105_v60 = vld [vmem:[%s8162_s12 + $0xf8] sm:$0xfc]  ;;  %v4327_v34 = vld [vmem:[%s8162_s12 + $0x1e8] sm:$0xe0] }
 0x317   : > { %7005 = vst [vmem:[%s7670_s11 + $0xb50] sm:$0xfe] %v3971_v61  ;;  %v4106_v61 = vld [vmem:[%s8162_s12 + $0x100] sm:$0xfc]  ;;  %v4333_v35 = vld [vmem:[%s8162_s12 + $0x218] sm:$0x3f] }
 0x318   : > { %7006 = vst [vmem:[%s7670_s11 + $0xb58] sm:$0xfe] %v3972_v62  ;;  %v4116_v62 = vrot.slane %v4104_v57, 7  ;;  %v4118_v7 = vrot.slane %v4106_v61, 7  ;;  %v4205_v57 = vld [vmem:[%s8162_s12 + $0x1a8] sm:$0x3] }
 0x319   : > { %7007 = vst [vmem:[%s7670_s11 + $0xb60] sm:$0xfe] %v3973_v63  ;;  %v4107_v63 = vld [vmem:[%s8162_s12 + $0x108] sm:$0xfc]  ;;  %v4266_v61 = vld [vmem:[%s8162_s12 + $0x1b0] sm:$0xff] }
 0x31a   : > { %7008 = vst [vmem:[%s7670_s11 + $0xb68] sm:$0xfe] %v3974_v0  ;;  %v4108_v0 = vld [vmem:[%s8162_s12 + $0x110] sm:$0xfc]  ;;  %v4285_v6 = vrot.slane %v4266_v61, 7 }
 0x31b   : > { %7009 = vst [vmem:[%s7670_s11 + $0xb70] sm:$0x3] %v3975_v1  ;;  %v4109_v1 = vld [vmem:[%s8162_s12 + $0x118] sm:$0xfc]  ;;  %v4398_v61 = vld [vmem:[%s8162_s12 + $0x270] sm:$0xf] }
 0x31c   : > { %7010 = vst [vmem:[%s7670_s11 + $0xb78] sm:$0x3] %v3976_v2  ;;  %v4140_v2 = vld [vmem:[%s8162_s12 + $0xf0] sm:$0x80] }
 0x31d   : > { %7011 = vst [vmem:[%s7670_s11 + $0xb80] sm:$0x3] %v3977_v3  ;;  %v4146_v3 = vld [vmem:[%s8162_s12 + $0x120] sm:$0x1f] }
 0x31e   : > { %7012 = vst [vmem:[%s7670_s11 + $0xb88] sm:$0x3] %v3978_v4  ;;  %v4117_v4 = vrot.slane %v4105_v60, 7  ;;  %v4260_v60 = vld [vmem:[%s8162_s12 + $0x180] sm:$0x80] }
 0x31f   : > { %7013 = vst [vmem:[%s7670_s11 + $0xb90] sm:$0x3] %v3979_v8  ;;  %v4119_v8 = vrot.slane %v4107_v63, 7  ;;  %v4232_v63 = vrot.slane %v4204_v54, 2  ;;  %v4284_v5 = vrot.slane %v4260_v60, 7 }
 0x320   : > { %7014 = vst [vmem:[%s7670_s11 + $0xb98] sm:$0x3] %v3980_v9  ;;  %v4120_v9 = vrot.slane %v4108_v0, 7  ;;  %v4331_v54 = vld [vmem:[%s8162_s12 + $0x208] sm:$0xe0] }
 0x321   : > { %7015 = vst [vmem:[%s7670_s11 + $0xb70] sm:$0xfc] %v4005_v10  ;;  %v4286_v16 = vsel %vm1565_vm7, %v4284_v5, %v4285_v6  ;;  %v4392_v60 = vld [vmem:[%s8162_s12 + $0x240] sm:$0xf8]  ;;  %v4417_v5 = vrot.slane %v4398_v61, 1  ;;  %v4531_v61 = vld [vmem:[%s8162_s12 + $0x308] sm:$0xff] }
 0x322   : > { %7021 = vst [vmem:[%s7670_s11 + $0xba0] sm:$0x1] %v4005_v10  ;;  %v4121_v10 = vrot.slane %v4109_v1, 7  ;;  %v4234_v1 = vrot.slane %v4205_v57, 2 }
 0x323   : > { %7016 = vst [vmem:[%s7670_s11 + $0xb78] sm:$0xfc] %v4006_v11 }
 0x324   : > { %7022 = vst [vmem:[%s7670_s11 + $0xba8] sm:$0x1] %v4006_v11  ;;  %v4164_v11 = vrot.slane %v4140_v2, 6  ;;  %v4261_v2 = vld [vmem:[%s8162_s12 + $0x188] sm:$0x80]  ;;  %v4235_v13 = vsel %vm952_vm3, %v4223_v55, %v4234_v1 }
 0x325   : > { %7017 = vst [vmem:[%s7670_s11 + $0xb80] sm:$0xfc] %v4007_v12  ;;  %v4393_v1 = vld [vmem:[%s8162_s12 + $0x248] sm:$0xf8] }
 0x326   : > { %7023 = vst [vmem:[%s7670_s11 + $0xbb0] sm:$0x1] %v4007_v12  ;;  %v4165_v12 = vrot.slane %v4146_v3, 6  ;;  %v4267_v3 = vld [vmem:[%s8162_s12 + $0x1b8] sm:$0xff] }
 0x327   : > { %7018 = vst [vmem:[%s7670_s11 + $0xb88] sm:$0xfc] %v4008_v20 }
 0x328   : > { %7024 = vst [vmem:[%s7670_s11 + $0xbb8] sm:$0x1] %v4008_v20  ;;  %v4150_v20 = vld [vmem:[%s8162_s12 + $0x140] sm:$0x1f]  ;;  %v4166_v29 = vsel %vm1110_vm5, %v4164_v11, %v4165_v12  ;;  %v4287_v11 = vrot.slane %v4261_v2, 7  ;;  %v4288_v12 = vrot.slane %v4267_v3, 7 }
 0x329   : > { %7019 = vst [vmem:[%s7670_s11 + $0xb90] sm:$0xfc] %v4009_v21  ;;  %v4177_v28 = vrot.slane %v4150_v20, 6  ;;  %v4270_v20 = vld [vmem:[%s8162_s12 + $0x1d0] sm:$0xff]  ;;  %v4399_v2 = vld [vmem:[%s8162_s12 + $0x278] sm:$0xf] }
 0x32a   : > { %7025 = vst [vmem:[%s7670_s11 + $0xbc0] sm:$0x1] %v4009_v21  ;;  %v4145_v21 = vld [vmem:[%s8162_s12 + $0x118] sm:$0x80] }
 0x32b   : > { %7020 = vst [vmem:[%s7670_s11 + $0xb98] sm:$0xfc] %v4010_v22  ;;  %v4179_v30 = vrot.slane %v4145_v21, 6  ;;  %v4178_v38 = vsel %vm1110_vm5, %v4176_v27, %v4177_v28  ;;  %v4289_v21 = vsel %vm1565_vm7, %v4287_v11, %v4288_v12  ;;  %v4296_v27 = vrot.slane %v4264_v19, 7  ;;  %v4395_v11 = vld [vmem:[%s8162_s12 + $0x258] sm:$0xf8] }
 0x32c   : > { %7026 = vst [vmem:[%s7670_s11 + $0xbc8] sm:$0x1] %v4010_v22  ;;  %v4151_v22 = vld [vmem:[%s8162_s12 + $0x148] sm:$0x1f]  ;;  %v4297_v28 = vrot.slane %v4270_v20, 7  ;;  %v4425_v19 = vrot.slane %v4395_v11, 1 }
 0x32d   : > { %7027 = vst [vmem:[%s7670_s11 + $0xba0] sm:$0xfe] %v4055_v39  ;;  %v4180_v31 = vrot.slane %v4151_v22, 6  ;;  %v4218_v39 = vrot.slane %v4194_v32, 2  ;;  %v4293_v22 = vrot.slane %v4263_v14, 7  ;;  %v4299_v32 = vrot.slane %v4265_v24, 7 }
 0x32e   : > { %7028 = vst [vmem:[%s7670_s11 + $0xba8] sm:$0xfe] %v4058_v43  ;;  %v4197_v43 = vld [vmem:[%s8162_s12 + $0x168] sm:$0xfe] }
 0x32f   : > { %7029 = vst [vmem:[%s7670_s11 + $0xbb0] sm:$0xfe] %v4061_v46  ;;  %v4181_v42 = vsel %vm1110_vm5, %v4179_v30, %v4180_v31  ;;  %v4201_v46 = vld [vmem:[%s8162_s12 + $0x188] sm:$0x3]  ;;  %v4221_v49 = vrot.slane %v4197_v43, 2  ;;  %v4295_v31 = vsel %vm1565_vm7, %v4293_v22, %v4294_v23  ;;  %v4354_v43 = vrot.slane %v4333_v35, 4 }
 0x330   : > { %7030 = vst [vmem:[%s7670_s11 + $0xbb8] sm:$0xfe] %v4064_v48  ;;  %v4202_v48 = vld [vmem:[%s8162_s12 + $0x190] sm:$0x3]  ;;  %v4403_v22 = vld [vmem:[%s8162_s12 + $0x298] sm:$0xf] }
 0x331   : > { %7031 = vst [vmem:[%s7670_s11 + $0xbc0] sm:$0xfe] %v4067_v50  ;;  %v4224_v50 = vrot.slane %v4200_v44, 2  ;;  %v4332_v30 = vld [vmem:[%s8162_s12 + $0x210] sm:$0x3f]  ;;  %v4461_v35 = vld [vmem:[%s8162_s12 + $0x2b8] sm:$0xff] }
 0x332   : > { %7032 = vst [vmem:[%s7670_s11 + $0xbc8] sm:$0xfe] %v4070_v52  ;;  %v4222_v52 = vrot.slane %v4198_v45, 2  ;;  %v4329_v44 = vld [vmem:[%s8162_s12 + $0x1f8] sm:$0xe0] }
 0x333   : > { %7035 = vst.msk [vmem:[%s7670_s11 + $0xbd0] ss:$8 sm:$0xf] %vm7753_vm1, %v4086_v53  ;;  %v4335_v45 = vld [vmem:[%s8162_s12 + $0x228] sm:$0x3f] }
 0x334   : > { %7036 = vst.msk [vmem:[%s7670_s11 + $0xbd0] ss:$8 sm:$0x30] %vm7753_vm1, %v4086_v53  ;;  %v4226_v53 = vrot.slane %v4201_v46, 2 }
 0x335   : > { %7039 = vst.msk [vmem:[%s7670_s11 + $0xbd1] ss:$8 sm:$0xf] %vm7753_vm1, %v4093_v56 }
 0x336   : > { %7040 = vst.msk [vmem:[%s7670_s11 + $0xbd1] ss:$8 sm:$0x30] %vm7753_vm1, %v4093_v56  ;;  %v4228_v56 = vrot.slane %v4202_v48, 2  ;;  %v4227_v0 = vsel %vm952_vm3, %v4219_v40, %v4226_v53  ;;  %v4360_v53 = vrot.slane %v4335_v45, 4 }
 0x337   : > { %7043 = vst.msk [vmem:[%s7670_s11 + $0xbd2] ss:$8 sm:$0xf] %vm7753_vm1, %v4100_v58  ;;  %v4467_v45 = vld [vmem:[%s8162_s12 + $0x2e8] sm:$0x7] }
 0x338   : > { %7044 = vst.msk [vmem:[%s7670_s11 + $0xbd2] ss:$8 sm:$0x30] %vm7753_vm1, %v4100_v58  ;;  %v4230_v58 = vrot.slane %v4203_v51, 2 }
 0x339   : > { %7045 = vst [vmem:[%s7670_s11 + $0xbd0] sm:$0xf8] %v4116_v62 }
 0x33a   : > { %7051 = vst [vmem:[%s7670_s11 + $0xc00] sm:$0x1] %v4116_v62  ;;  %v4225_v62 = vsel %vm952_vm3, %v4218_v39, %v4224_v50  ;;  %v4336_v50 = vld [vmem:[%s8162_s12 + $0x230] sm:$0x3f] }
 0x33b   : > { %7046 = vst [vmem:[%s7670_s11 + $0xbd8] sm:$0xf8] %v4117_v4 }
 0x33c   : > { %7052 = vst [vmem:[%s7670_s11 + $0xc08] sm:$0x1] %v4117_v4  ;;  %v4229_v4 = vsel %vm952_vm3, %v4220_v41, %v4228_v56 }
 0x33d   : > { %7047 = vst [vmem:[%s7670_s11 + $0xbe0] sm:$0xf8] %v4118_v7 }
 0x33e   : > { %7053 = vst [vmem:[%s7670_s11 + $0xc10] sm:$0x1] %v4118_v7  ;;  %v4231_v7 = vsel %vm952_vm3, %v4221_v49, %v4230_v58  ;;  %v4363_v58 = vrot.slane %v4336_v50, 4 }
 0x33f   : > { %7048 = vst [vmem:[%s7670_s11 + $0xbe8] sm:$0xf8] %v4119_v8 }
 0x340   : > { %7054 = vst [vmem:[%s7670_s11 + $0xc18] sm:$0x1] %v4119_v8  ;;  %v4262_v8 = vld [vmem:[%s8162_s12 + $0x190] sm:$0x80] }
 0x341   : > { %7049 = vst [vmem:[%s7670_s11 + $0xbf0] sm:$0xf8] %v4120_v9  ;;  %v4290_v17 = vrot.slane %v4262_v8, 7 }
 0x342   : > { %7055 = vst [vmem:[%s7670_s11 + $0xc20] sm:$0x1] %v4120_v9  ;;  %v4268_v9 = vld [vmem:[%s8162_s12 + $0x1c0] sm:$0xff] }
 0x343   : > { %7050 = vst [vmem:[%s7670_s11 + $0xbf8] sm:$0xf8] %v4121_v10  ;;  %v4291_v18 = vrot.slane %v4268_v9, 7  ;;  %v4419_v9 = vrot.slane %v4393_v1, 1 }
 0x344   : > { %7056 = vst [vmem:[%s7670_s11 + $0xc28] sm:$0x1] %v4121_v10  ;;  %v4233_v10 = vsel %vm952_vm3, %v4222_v52, %v4232_v63  ;;  %v4365_v63 = vrot.slane %v4331_v54, 4  ;;  %v4530_v54 = vld [vmem:[%s8162_s12 + $0x300] sm:$0xff] }
 0x345   : > { %7057 = vst [vmem:[%s7670_s11 + $0xc00] sm:$0x7e] %v4166_v29  ;;  %v4292_v26 = vsel %vm1565_vm7, %v4290_v17, %v4291_v18  ;;  %v4326_v29 = vld [vmem:[%s8162_s12 + $0x1e0] sm:$0xe0]  ;;  %v4402_v17 = vld [vmem:[%s8162_s12 + $0x290] sm:$0xf] }
 0x346   : > { %7058 = vst [vmem:[%s7670_s11 + $0xc08] sm:$0x7e] %v4169_v33  ;;  %v4300_v33 = vrot.slane %v4271_v25, 7  ;;  %v4429_v25 = vrot.slane %v4402_v17, 1 }
 0x347   : > { %7059 = vst [vmem:[%s7670_s11 + $0xc10] sm:$0x7e] %v4172_v36  ;;  %v4298_v36 = vsel %vm1565_vm7, %v4296_v27, %v4297_v28 }
 0x348   : > { %7060 = vst [vmem:[%s7670_s11 + $0xc18] sm:$0x7e] %v4175_v37  ;;  %v4350_v37 = vrot.slane %v4326_v29, 4 }
 0x349   : > { %7061 = vst [vmem:[%s7670_s11 + $0xc20] sm:$0x7e] %v4178_v38  ;;  %v4351_v38 = vrot.slane %v4332_v30, 4  ;;  %v4458_v30 = vld [vmem:[%s8162_s12 + $0x2a0] sm:$0xff] }
 0x34a   : > { %7062 = vst [vmem:[%s7670_s11 + $0xc28] sm:$0x7e] %v4181_v42  ;;  %v4353_v42 = vrot.slane %v4327_v34, 4  ;;  %v4482_v34 = vrot.slane %v4458_v30, 5  ;;  %v4592_v30 = vld [vmem:[%s8162_s12 + $0x340] sm:$0xe0] }
 0x34b   : > { %7063 = vst [vmem:[%s7670_s11 + $0xc00] sm:$0x80] %v4218_v39  ;;  %v4328_v39 = vld [vmem:[%s8162_s12 + $0x1f0] sm:$0xe0]  ;;  %v4352_v46 = vsel %vm442_vm0, %v4350_v37, %v4351_v38 }
 0x34c   : > { %7064 = vst [vmem:[%s7670_s11 + $0xc08] sm:$0x80] %v4219_v40  ;;  %v4334_v40 = vld [vmem:[%s8162_s12 + $0x220] sm:$0x3f]  ;;  %v4356_v47 = vrot.slane %v4328_v39, 4  ;;  %v4355_v51 = vsel %vm442_vm0, %v4353_v42, %v4354_v43 }
 0x34d   : > { %7065 = vst [vmem:[%s7670_s11 + $0xc10] sm:$0x80] %v4220_v41  ;;  %v4301_v41 = vsel %vm1565_vm7, %v4299_v32, %v4300_v33  ;;  %v4357_v48 = vrot.slane %v4334_v40, 4  ;;  %v4465_v39 = vld [vmem:[%s8162_s12 + $0x2d8] sm:$0x7] }
 0x34e   : > { %7066 = vst [vmem:[%s7670_s11 + $0xc18] sm:$0x80] %v4221_v49  ;;  %v4330_v49 = vld [vmem:[%s8162_s12 + $0x200] sm:$0xe0]  ;;  %v4466_v42 = vld [vmem:[%s8162_s12 + $0x2e0] sm:$0x7] }
 0x34f   : > { %7067 = vst [vmem:[%s7670_s11 + $0xc20] sm:$0x80] %v4222_v52  ;;  %v4359_v52 = vrot.slane %v4329_v44, 4  ;;  %v4358_v56 = vsel %vm442_vm0, %v4356_v47, %v4357_v48  ;;  %v4362_v57 = vrot.slane %v4330_v49, 4  ;;  %v4490_v47 = vrot.slane %v4465_v39, 5 }
 0x350   : > { %7068 = vst [vmem:[%s7670_s11 + $0xc28] sm:$0x80] %v4223_v55  ;;  %v4337_v55 = vld [vmem:[%s8162_s12 + $0x238] sm:$0x3f]  ;;  %v4492_v50 = vrot.slane %v4466_v42, 5 }
 0x351   : > { %7069 = vst [vmem:[%s7670_s11 + $0xc30] sm:$0xff] %v4225_v62  ;;  %v4361_v62 = vsel %vm442_vm0, %v4359_v52, %v4360_v53  ;;  %v4364_v3 = vsel %vm442_vm0, %v4362_v57, %v4363_v58  ;;  %v4494_v52 = vrot.slane %v4467_v45, 5  ;;  %v4598_v39 = vld [vmem:[%s8162_s12 + $0x370] sm:$0x3f]  ;;  %v4600_v45 = vld [vmem:[%s8162_s12 + $0x380] sm:$0x3f] }
 0x352   : > { %7070 = vst [vmem:[%s7670_s11 + $0xc38] sm:$0xff] %v4227_v0  ;;  %v4366_v0 = vrot.slane %v4337_v55, 4 }
 0x353   : > { %7071 = vst [vmem:[%s7670_s11 + $0xc40] sm:$0xff] %v4229_v4  ;;  %v4416_v4 = vrot.slane %v4392_v60, 1  ;;  %v4525_v60 = vld [vmem:[%s8162_s12 + $0x2d8] sm:$0x80] }
 0x354   : > { %7072 = vst [vmem:[%s7670_s11 + $0xc48] sm:$0xff] %v4231_v7  ;;  %v4400_v7 = vld [vmem:[%s8162_s12 + $0x280] sm:$0xf]  ;;  %v4367_v8 = vsel %vm442_vm0, %v4365_v63, %v4366_v0 }
 0x355   : > { %7073 = vst [vmem:[%s7670_s11 + $0xc50] sm:$0xff] %v4233_v10  ;;  %v4420_v10 = vrot.slane %v4399_v2, 1  ;;  %v4423_v15 = vrot.slane %v4400_v7, 1  ;;  %v4526_v2 = vld [vmem:[%s8162_s12 + $0x2e0] sm:$0x80] }
 0x356   : > { %7074 = vst [vmem:[%s7670_s11 + $0xc58] sm:$0xff] %v4235_v13  ;;  %v4418_v13 = vsel %vm1019_vm4, %v4416_v4, %v4417_v5  ;;  %v4554_v11 = vrot.slane %v4526_v2, 1 }
 0x357   : > { %7075 = vst [vmem:[%s7670_s11 + $0xc60] sm:$0xff] %v4286_v16  ;;  %v4396_v16 = vld [vmem:[%s8162_s12 + $0x260] sm:$0xf8] }
 0x358   : > { %7081 = vst [vmem:[%s7670_s11 + $0xc90] sm:$0x1] %v4285_v6  ;;  %v4394_v6 = vld [vmem:[%s8162_s12 + $0x250] sm:$0xf8]  ;;  %v4428_v24 = vrot.slane %v4396_v16, 1 }
 0x359   : > { %7076 = vst [vmem:[%s7670_s11 + $0xc68] sm:$0xff] %v4289_v21  ;;  %v4422_v14 = vrot.slane %v4394_v6, 1  ;;  %v4397_v21 = vld [vmem:[%s8162_s12 + $0x268] sm:$0xf8]  ;;  %v4552_v6 = vrot.slane %v4531_v61, 1 }
 0x35a   : > { %7082 = vst [vmem:[%s7670_s11 + $0xc98] sm:$0x1] %v4288_v12  ;;  %v4401_v12 = vld [vmem:[%s8162_s12 + $0x288] sm:$0xf]  ;;  %v4431_v27 = vrot.slane %v4397_v21, 1  ;;  %v4430_v29 = vsel %vm1019_vm4, %v4428_v24, %v4429_v25 }
 0x35b   : > { %7077 = vst [vmem:[%s7670_s11 + $0xc70] sm:$0xff] %v4292_v26  ;;  %v4426_v20 = vrot.slane %v4401_v12, 1 }
 0x35c   : > { %7083 = vst [vmem:[%s7670_s11 + $0xca0] sm:$0x1] %v4291_v18  ;;  %v4421_v18 = vsel %vm1019_vm4, %v4419_v9, %v4420_v10  ;;  %v4533_v9 = vld [vmem:[%s8162_s12 + $0x318] sm:$0xff] }
 0x35d   : > { %7078 = vst [vmem:[%s7670_s11 + $0xc78] sm:$0xff] %v4295_v31  ;;  %v4427_v26 = vsel %vm1019_vm4, %v4425_v19, %v4426_v20  ;;  %v4459_v31 = vld [vmem:[%s8162_s12 + $0x2a8] sm:$0xff]  ;;  %v4558_v17 = vrot.slane %v4533_v9, 1 }
 0x35e   : > { %7084 = vst [vmem:[%s7670_s11 + $0xca8] sm:$0x1] %v4294_v23  ;;  %v4424_v23 = vsel %vm1019_vm4, %v4422_v14, %v4423_v15  ;;  %v4483_v37 = vrot.slane %v4459_v31, 5  ;;  %v4534_v14 = vld [vmem:[%s8162_s12 + $0x320] sm:$0xff]  ;;  %v4535_v19 = vld [vmem:[%s8162_s12 + $0x328] sm:$0xff] }
 0x35f   : > { %7079 = vst [vmem:[%s7670_s11 + $0xc80] sm:$0xff] %v4298_v36  ;;  %v4464_v36 = vld [vmem:[%s8162_s12 + $0x2d0] sm:$0x7] }
 0x360   : > { %7085 = vst [vmem:[%s7670_s11 + $0xcb0] sm:$0x1] %v4297_v28  ;;  %v4432_v28 = vrot.slane %v4403_v22, 1  ;;  %v4488_v44 = vrot.slane %v4464_v36, 5  ;;  %v4491_v57 = vsel %vm570_vm2, %v4483_v37, %v4490_v47  ;;  %v4561_v22 = vrot.slane %v4534_v14, 1 }
 0x361   : > { %7080 = vst [vmem:[%s7670_s11 + $0xc88] sm:$0xff] %v4301_v41  ;;  %v4463_v41 = vld [vmem:[%s8162_s12 + $0x2c8] sm:$0xff] }
 0x362   : > { %7086 = vst [vmem:[%s7670_s11 + $0xcb8] sm:$0x1] %v4300_v33  ;;  %v4433_v32 = vsel %vm1019_vm4, %v4431_v27, %v4432_v28  ;;  %v4460_v33 = vld [vmem:[%s8162_s12 + $0x2b0] sm:$0xff]  ;;  %v4487_v49 = vrot.slane %v4463_v41, 5  ;;  %v4489_v55 = vsel %vm570_vm2, %v4482_v34, %v4488_v44 }
 0x363   : > { %7087 = vst [vmem:[%s7670_s11 + $0xc90] sm:$0xfe] %v4352_v46  ;;  %v4484_v40 = vrot.slane %v4460_v33, 5  ;;  %v4594_v33 = vld [vmem:[%s8162_s12 + $0x350] sm:$0xe0] }
 0x364   : > { %7093 = vst [vmem:[%s7670_s11 + $0xcc0] sm:$0x3] %v4351_v38  ;;  %v4462_v38 = vld [vmem:[%s8162_s12 + $0x2c0] sm:$0xff]  ;;  %v4618_v42 = vrot.slane %v4594_v33, 6  ;;  %v4743_v33 = vld [vmem:[%s7658_s6 + $0x210] sm:$0x1c] }
 0x365   : > { %7088 = vst [vmem:[%s7670_s11 + $0xc98] sm:$0xfe] %v4355_v51  ;;  %v4486_v46 = vrot.slane %v4462_v38, 5  ;;  %v4469_v51 = vld [vmem:[%s8162_s12 + $0x2f8] sm:$0x7] }
 0x366   : > { %7094 = vst [vmem:[%s7670_s11 + $0xcc8] sm:$0x3] %v4354_v43  ;;  %v4485_v43 = vrot.slane %v4461_v35, 5  ;;  %v4597_v35 = vld [vmem:[%s8162_s12 + $0x368] sm:$0x3f] }
 0x367   : > { %7089 = vst [vmem:[%s7670_s11 + $0xca0] sm:$0xfe] %v4358_v56  ;;  %v4595_v38 = vld [vmem:[%s8162_s12 + $0x358] sm:$0xe0]  ;;  %v4622_v44 = vrot.slane %v4597_v35, 6 }
 0x368   : > { %7095 = vst [vmem:[%s7670_s11 + $0xcd0] sm:$0x3] %v4357_v48  ;;  %v4468_v48 = vld [vmem:[%s8162_s12 + $0x2f0] sm:$0x7]  ;;  %v4495_v1 = vsel %vm570_vm2, %v4485_v43, %v4494_v52  ;;  %v4619_v47 = vrot.slane %v4595_v38, 6  ;;  %v4755_v38 = vrot.slane %v4743_v33, 2 }
 0x369   : > { %7090 = vst [vmem:[%s7670_s11 + $0xca8] sm:$0xfe] %v4361_v62  ;;  %v4496_v56 = vrot.slane %v4468_v48, 5  ;;  %v4493_v62 = vsel %vm570_vm2, %v4484_v40, %v4492_v50  ;;  %v4624_v48 = vrot.slane %v4598_v39, 6  ;;  %v4656_v50 = vld [vmem:[%s8162_s12 + $0x390] sm:$0xf8] }
 0x36a   : > { %7096 = vst [vmem:[%s7670_s11 + $0xcd8] sm:$0x3] %v4360_v53  ;;  %v4524_v53 = vld [vmem:[%s8162_s12 + $0x2d0] sm:$0x80]  ;;  %v4747_v39 = vld [vmem:[%s7658_s6 + $0x230] sm:$0x1c] }
 0x36b   : > { %7091 = vst [vmem:[%s7670_s11 + $0xcb0] sm:$0xfe] %v4364_v3  ;;  %v4548_v63 = vrot.slane %v4524_v53, 1  ;;  %v4532_v3 = vld [vmem:[%s8162_s12 + $0x310] sm:$0xff]  ;;  %v4497_v4 = vsel %vm570_vm2, %v4486_v46, %v4496_v56  ;;  %v4628_v53 = vrot.slane %v4600_v45, 6  ;;  %v4759_v45 = vrot.slane %v4747_v39, 2 }
 0x36c   : > { %7097 = vst [vmem:[%s7670_s11 + $0xce0] sm:$0x3] %v4363_v58  ;;  %v4498_v58 = vrot.slane %v4469_v51, 5  ;;  %v4555_v12 = vrot.slane %v4532_v3, 1  ;;  %v4662_v51 = vld [vmem:[%s8162_s12 + $0x3c0] sm:$0xf] }
 0x36d   : > { %7092 = vst [vmem:[%s7670_s11 + $0xcb8] sm:$0xfe] %v4367_v8  ;;  %v4527_v8 = vld [vmem:[%s8162_s12 + $0x2e8] sm:$0x80]  ;;  %v4657_v56 = vld [vmem:[%s8162_s12 + $0x398] sm:$0xf8] }
 0x36e   : > { %7098 = vst [vmem:[%s7670_s11 + $0xce8] sm:$0x3] %v4366_v0  ;;  %v4549_v0 = vrot.slane %v4530_v54, 1  ;;  %v4499_v7 = vsel %vm570_vm2, %v4487_v49, %v4498_v58  ;;  %v4557_v16 = vrot.slane %v4527_v8, 1  ;;  %v4681_v61 = vrot.slane %v4662_v51, 3 }
 0x36f   : > { %7099 = vst [vmem:[%s7670_s11 + $0xcc0] sm:$0xfc] %v4418_v13  ;;  %v4528_v13 = vld [vmem:[%s8162_s12 + $0x2f0] sm:$0x80]  ;;  %v4683_v2 = vrot.slane %v4657_v56, 3 }
 0x370   : > { %7105 = vst [vmem:[%s7670_s11 + $0xcf0] sm:$0x7] %v4417_v5  ;;  %v4551_v5 = vrot.slane %v4525_v60, 1  ;;  %v4560_v21 = vrot.slane %v4528_v13, 1  ;;  %v4559_v24 = vsel %vm1019_vm4, %v4557_v16, %v4558_v17  ;;  %v4680_v60 = vrot.slane %v4656_v50, 3 }
 0x371   : > { %7100 = vst [vmem:[%s7670_s11 + $0xcc8] sm:$0xfc] %v4421_v18  ;;  %v4529_v18 = vld [vmem:[%s8162_s12 + $0x2f8] sm:$0x80]  ;;  %v4667_v16 = vld [vmem:[%s8162_s12 + $0x3e8] sm:$0xf] }
 0x372   : > { %7106 = vst [vmem:[%s7670_s11 + $0xcf8] sm:$0x7] %v4420_v10  ;;  %v4550_v10 = vsel %vm1019_vm4, %v4548_v63, %v4549_v0  ;;  %v4562_v27 = vsel %vm1019_vm4, %v4560_v21, %v4561_v22  ;;  %v4658_v63 = vld [vmem:[%s8162_s12 + $0x3a0] sm:$0xf8]  ;;  %v4777_v50 = vld [vmem:[%s7658_s6 + $0x228] sm:$0x70] }
 0x373   : > { %7101 = vst [vmem:[%s7670_s11 + $0xcd0] sm:$0xfc] %v4424_v23  ;;  %v4590_v23 = vld [vmem:[%s8162_s12 + $0x330] sm:$0xe0]  ;;  %v4686_v8 = vrot.slane %v4658_v63, 3 }
 0x374   : > { %7107 = vst [vmem:[%s7670_s11 + $0xd00] sm:$0x7] %v4423_v15  ;;  %v4553_v15 = vsel %vm1019_vm4, %v4551_v5, %v4552_v6  ;;  %v4659_v5 = vld [vmem:[%s8162_s12 + $0x3a8] sm:$0xf8]  ;;  %v4778_v51 = vld [vmem:[%s7658_s6 + $0x230] sm:$0x70] }
 0x375   : > { %7102 = vst [vmem:[%s7670_s11 + $0xcd8] sm:$0xfc] %v4427_v26  ;;  %v4564_v26 = vrot.slane %v4535_v19, 1  ;;  %v4689_v13 = vrot.slane %v4659_v5, 3  ;;  %v4790_v56 = vrot.slane %v4778_v51, 1 }
 0x376   : > { %7108 = vst [vmem:[%s7670_s11 + $0xd08] sm:$0x7] %v4426_v20  ;;  %v4556_v20 = vsel %vm1019_vm4, %v4554_v11, %v4555_v12  ;;  %v4666_v11 = vld [vmem:[%s8162_s12 + $0x3e0] sm:$0xf]  ;;  %v4846_v5 = vld [vmem:[%s7658_s6 + $0x2d0] sm:$0x7] }
 0x377   : > { %7103 = vst [vmem:[%s7670_s11 + $0xce0] sm:$0xfc] %v4430_v29  ;;  %v4591_v29 = vld [vmem:[%s8162_s12 + $0x338] sm:$0xe0]  ;;  %v4693_v19 = vrot.slane %v4666_v11, 3 }
 0x378   : > { %7109 = vst [vmem:[%s7670_s11 + $0xd10] sm:$0x7] %v4429_v25  ;;  %v4563_v25 = vrot.slane %v4529_v18, 1  ;;  %v4615_v36 = vrot.slane %v4591_v29, 6 }
 0x379   : > { %7104 = vst [vmem:[%s7670_s11 + $0xce8] sm:$0xfc] %v4433_v32  ;;  %v4593_v32 = vld [vmem:[%s8162_s12 + $0x348] sm:$0xe0] }
 0x37a   : > { %7110 = vst [vmem:[%s7670_s11 + $0xd18] sm:$0x7] %v4432_v28  ;;  %v4614_v28 = vrot.slane %v4590_v23, 6  ;;  %v4565_v31 = vsel %vm1019_vm4, %v4563_v25, %v4564_v26  ;;  %v4617_v41 = vrot.slane %v4593_v32, 6 }
 0x37b   : > { %7111 = vst [vmem:[%s7670_s11 + $0xcf0] sm:$0xf8] %v4482_v34  ;;  %v4596_v34 = vld [vmem:[%s8162_s12 + $0x360] sm:$0x3f] }
 0x37c   : > { %7112 = vst [vmem:[%s7670_s11 + $0xcf8] sm:$0xf8] %v4483_v37  ;;  %v4616_v37 = vrot.slane %v4592_v30, 6  ;;  %v7159_v23 = vld [vmem:[%s8162_s12 + $0x426] ss:$8 sm:$0xf] }
 0x37d   : > { %7113 = vst [vmem:[%s7670_s11 + $0xd00] sm:$0xf8] %v4484_v40  ;;  %v4599_v40 = vld [vmem:[%s8162_s12 + $0x378] sm:$0x3f] }
 0x37e   : > { %7114 = vst [vmem:[%s7670_s11 + $0xd08] sm:$0xf8] %v4485_v43  ;;  %v4620_v43 = vrot.slane %v4596_v34, 6  ;;  %v4625_v58 = vsel %vm1110_vm5, %v4616_v37, %v4624_v48  ;;  %v7160_v25 = vld [vmem:[%s8162_s12 + $0x426] ss:$8 sm:$0x30] }
 0x37f   : > { %7115 = vst [vmem:[%s7670_s11 + $0xd10] sm:$0xf8] %v4486_v46  ;;  %v4601_v46 = vld [vmem:[%s8162_s12 + $0x388] sm:$0x3f]  ;;  %v4725_v29 = vor.u32 %v7160_v25, %v7159_v23  ;;  %v4744_v34 = vld [vmem:[%s7658_s6 + $0x218] sm:$0x1c] }
 0x380   : > { %7116 = vst [vmem:[%s7670_s11 + $0xd18] sm:$0xf8] %v4487_v49  ;;  %v4626_v49 = vrot.slane %v4599_v40, 6  ;;  %v4621_v52 = vsel %vm1110_vm5, %v4614_v28, %v4620_v43  ;;  %v4630_v54 = vrot.slane %v4601_v46, 6  ;;  %v4756_v40 = vrot.slane %v4744_v34, 2 }
 0x381   : > { %7117 = vst [vmem:[%s7670_s11 + $0xd20] sm:$0x3f] %v4489_v55  ;;  %v4623_v55 = vsel %vm1110_vm5, %v4615_v36, %v4622_v44  ;;  %v7167_v30 = vld [vmem:[%s8162_s12 + $0x480] ss:$8 sm:$0xf] }
 0x382   : > { %7118 = vst [vmem:[%s7670_s11 + $0xd28] sm:$0x3f] %v4491_v57  ;;  %v4663_v57 = vld [vmem:[%s8162_s12 + $0x3c8] sm:$0xf]  ;;  %v4774_v43 = vld [vmem:[%s7658_s6 + $0x210] sm:$0x70] }
 0x383   : > { %7119 = vst [vmem:[%s7670_s11 + $0xd30] sm:$0x3f] %v4493_v62  ;;  %v4627_v62 = vsel %vm1110_vm5, %v4617_v41, %v4626_v49  ;;  %v4684_v3 = vrot.slane %v4663_v57, 3  ;;  %v4775_v46 = vld [vmem:[%s7658_s6 + $0x218] sm:$0x70]  ;;  %v4786_v48 = vrot.slane %v4774_v43, 1 }
 0x384   : > { %7120 = vst [vmem:[%s7670_s11 + $0xd38] sm:$0x3f] %v4495_v1  ;;  %v4629_v1 = vsel %vm1110_vm5, %v4618_v42, %v4628_v53  ;;  %v4776_v49 = vld [vmem:[%s7658_s6 + $0x220] sm:$0x70]  ;;  %v4804_v57 = vld [vmem:[%s7658_s6 + $0x270] sm:$0xe] }
 0x385   : > { %7121 = vst [vmem:[%s7670_s11 + $0xd40] sm:$0x3f] %v4497_v4  ;;  %v4631_v4 = vsel %vm1110_vm5, %v4619_v47, %v4630_v54  ;;  %v4788_v53 = vrot.slane %v4776_v49, 1  ;;  %v4779_v54 = vld [vmem:[%s7658_s6 + $0x238] sm:$0x70] }
 0x386   : > { %7122 = vst [vmem:[%s7670_s11 + $0xd48] sm:$0x3f] %v4499_v7  ;;  %v4682_v7 = vsel %vm1243_vm6, %v4680_v60, %v4681_v61  ;;  %v4806_v60 = vld [vmem:[%s7658_s6 + $0x280] sm:$0xe] }
 0x387   : > { %7123 = vst [vmem:[%s7670_s11 + $0xd20] sm:$0xc0] %v4550_v10  ;;  %v4660_v10 = vld [vmem:[%s8162_s12 + $0x3b0] sm:$0xf8] }
 0x388   : > { %7129 = vst [vmem:[%s7670_s11 + $0xd50] sm:$0x7f] %v4549_v0  ;;  %v4664_v0 = vld [vmem:[%s8162_s12 + $0x3d0] sm:$0xf]  ;;  %v4692_v18 = vrot.slane %v4660_v10, 3 }
 0x389   : > { %7124 = vst [vmem:[%s7670_s11 + $0xd28] sm:$0xc0] %v4553_v15  ;;  %v4687_v9 = vrot.slane %v4664_v0, 3  ;;  %v4661_v15 = vld [vmem:[%s8162_s12 + $0x3b8] sm:$0xf8]  ;;  %v4818_v0 = vrot.slane %v4806_v60, 3 }
 0x38a   : > { %7130 = vst [vmem:[%s7670_s11 + $0xd58] sm:$0x7f] %v4552_v6  ;;  %v4665_v6 = vld [vmem:[%s8162_s12 + $0x3d8] sm:$0xf]  ;;  %v4695_v21 = vrot.slane %v4661_v15, 3 }
 0x38b   : > { %7125 = vst [vmem:[%s7670_s11 + $0xd30] sm:$0xc0] %v4556_v20  ;;  %v4690_v14 = vrot.slane %v4665_v6, 3  ;;  %v4841_v6 = vld [vmem:[%s7658_s6 + $0x2a8] sm:$0xc0] }
 0x38c   : > { %7131 = vst [vmem:[%s7670_s11 + $0xd60] sm:$0x7f] %v4555_v12  ;;  %v4685_v12 = vsel %vm1243_vm6, %v4683_v2, %v4684_v3  ;;  %v4808_v2 = vld [vmem:[%s7658_s6 + $0x290] sm:$0xe]  ;;  %v4842_v15 = vld [vmem:[%s7658_s6 + $0x2b0] sm:$0xc0] }
 0x38d   : > { %7126 = vst [vmem:[%s7670_s11 + $0xd38] sm:$0xc0] %v4559_v24  ;;  %v4691_v20 = vsel %vm1243_vm6, %v4689_v13, %v4690_v14  ;;  %v4694_v24 = vsel %vm1243_vm6, %v4692_v18, %v4693_v19  ;;  %v4867_v13 = vrot.slane %v4841_v6, 5  ;;  %v4849_v18 = vld [vmem:[%s7658_s6 + $0x2e8] sm:$0x7] }
 0x38e   : > { %7132 = vst [vmem:[%s7670_s11 + $0xd68] sm:$0x7f] %v4558_v17  ;;  %v4688_v17 = vsel %vm1243_vm6, %v4686_v8, %v4687_v9  ;;  %v7201_v33 = vld [vmem:[%s7658_s6 + $0x362] ss:$8 sm:$0xf] }
 0x38f   : > { %7127 = vst [vmem:[%s7670_s11 + $0xd40] sm:$0xc0] %v4562_v27  ;;  %v7206_v39 = vld [vmem:[%s7658_s6 + $0x364] ss:$8 sm:$0x30] }
 0x390   : > { %7133 = vst [vmem:[%s7670_s11 + $0xd70] sm:$0x7f] %v4561_v22  ;;  %v4696_v22 = vrot.slane %v4667_v16, 3  ;;  %v4848_v16 = vld [vmem:[%s7658_s6 + $0x2e0] sm:$0x7] }
 0x391   : > { %7128 = vst [vmem:[%s7670_s11 + $0xd48] sm:$0xc0] %v4565_v31  ;;  %v7168_v31 = vld [vmem:[%s8162_s12 + $0x480] ss:$8 sm:$0x30]  ;;  %v4871_v23 = vrot.slane %v4848_v16, 5 }
 0x392   : > { %7134 = vst [vmem:[%s7670_s11 + $0xd78] sm:$0x7f] %v4564_v26  ;;  %v7163_v26 = vld [vmem:[%s8162_s12 + $0x453] ss:$8 sm:$0xf]  ;;  %v4697_v27 = vsel %vm1243_vm6, %v4695_v21, %v4696_v22  ;;  %v4739_v35 = vor.u32 %v7168_v31, %v7167_v30 }
 0x393   : > { %7135 = vst [vmem:[%s7670_s11 + $0xd50] sm:$0x80] %v4614_v28  ;;  %v7164_v28 = vld [vmem:[%s8162_s12 + $0x453] ss:$8 sm:$0x30] }
 0x394   : > { %7136 = vst [vmem:[%s7670_s11 + $0xd58] sm:$0x80] %v4615_v36  ;;  %v4732_v32 = vor.u32 %v7164_v28, %v7163_v26  ;;  %v4745_v36 = vld [vmem:[%s7658_s6 + $0x220] sm:$0x1c]  ;;  %v4845_v21 = vld [vmem:[%s7658_s6 + $0x2c8] sm:$0xc0] }
 0x395   : > { %7137 = vst [vmem:[%s7670_s11 + $0xd60] sm:$0x80] %v4616_v37  ;;  %v4746_v37 = vld [vmem:[%s7658_s6 + $0x228] sm:$0x1c]  ;;  %v4874_v26 = vrot.slane %v4849_v18, 5  ;;  %v4879_v30 = vrot.slane %v4845_v21, 5 }
 0x396   : > { %7138 = vst [vmem:[%s7670_s11 + $0xd68] sm:$0x80] %v4617_v41  ;;  %v4748_v41 = vld [vmem:[%s7658_s6 + $0x238] sm:$0x1c]  ;;  %v4758_v44 = vrot.slane %v4746_v37, 2 }
 0x397   : > { %7139 = vst [vmem:[%s7670_s11 + $0xd70] sm:$0x80] %v4618_v42  ;;  %v4757_v42 = vrot.slane %v4745_v36, 2  ;;  %v7205_v37 = vld [vmem:[%s7658_s6 + $0x364] ss:$8 sm:$0xf] }
 0x398   : > { %7140 = vst [vmem:[%s7670_s11 + $0xd78] sm:$0x80] %v4619_v47  ;;  %v4760_v47 = vrot.slane %v4748_v41, 2  ;;  %v7210_v43 = vld [vmem:[%s7658_s6 + $0x366] ss:$8 sm:$0x30] }
 0x399   : > { %7141 = vst [vmem:[%s7670_s11 + $0xd80] sm:$0xff] %v4621_v52  ;;  %v4787_v52 = vrot.slane %v4775_v46, 1  ;;  %v4916_v46 = vld [vmem:[%s7745_s28 + $0x1b8] sm:$0x78]  ;;  %v4952_v60 = vld [vmem:[%s7745_s28 + $0x1e8] sm:$0x3] }
 0x39a   : > { %7142 = vst [vmem:[%s7670_s11 + $0xd88] sm:$0xff] %v4623_v55  ;;  %v4789_v55 = vrot.slane %v4777_v50, 1  ;;  %v4919_v50 = vld [vmem:[%s7745_s28 + $0x1d0] sm:$0x78]  ;;  %v4954_v6 = vld [vmem:[%s7745_s28 + $0x1f8] sm:$0x3] }
 0x39b   : > { %7143 = vst [vmem:[%s7670_s11 + $0xd90] sm:$0xff] %v4625_v58  ;;  %v4805_v58 = vld [vmem:[%s7658_s6 + $0x278] sm:$0xe]  ;;  %v4956_v16 = vld [vmem:[%s7745_s28 + $0x208] sm:$0x3] }
 0x39c   : > { %7144 = vst [vmem:[%s7670_s11 + $0xd98] sm:$0xff] %v4627_v62  ;;  %v4816_v62 = vrot.slane %v4804_v57, 3  ;;  %v4817_v63 = vrot.slane %v4805_v58, 3  ;;  %v4946_v57 = vld [vmem:[%s7745_s28 + $0x1b8] sm:$0xc0] }
 0x39d   : > { %7145 = vst [vmem:[%s7670_s11 + $0xda0] sm:$0xff] %v4629_v1  ;;  %v4807_v1 = vld [vmem:[%s7658_s6 + $0x288] sm:$0xe] }
 0x39e   : > { %7146 = vst [vmem:[%s7670_s11 + $0xda8] sm:$0xff] %v4631_v4  ;;  %v4840_v4 = vld [vmem:[%s7658_s6 + $0x2a0] sm:$0xc0]  ;;  %v4819_v8 = vrot.slane %v4807_v1, 3  ;;  %v4953_v1 = vld [vmem:[%s7745_s28 + $0x1f0] sm:$0x3] }
 0x39f   : > { %7147 = vst [vmem:[%s7670_s11 + $0xdb0] sm:$0xff] %v4682_v7  ;;  %v4847_v7 = vld [vmem:[%s7658_s6 + $0x2d8] sm:$0x7]  ;;  %v4864_v11 = vrot.slane %v4840_v4, 5  ;;  %v4973_v4 = vrot.slane %v4952_v60, 1 }
 0x3a0   : > { %7153 = vst [vmem:[%s7670_s11 + $0xde0] sm:$0x1] %v4681_v61  ;;  %v4791_v61 = vrot.slane %v4779_v54, 1  ;;  %v4920_v54 = vld [vmem:[%s7745_s28 + $0x1d8] sm:$0x78] }
 0x3a1   : > { %7148 = vst [vmem:[%s7670_s11 + $0xdb8] sm:$0xff] %v4685_v12  ;;  %v4865_v12 = vrot.slane %v4846_v5, 5  ;;  %v4948_v5 = vld [vmem:[%s7745_s28 + $0x1c8] sm:$0xc0] }
 0x3a2   : > { %7154 = vst [vmem:[%s7670_s11 + $0xde8] sm:$0x1] %v4684_v3  ;;  %v4809_v3 = vld [vmem:[%s7658_s6 + $0x298] sm:$0xe] }
 0x3a3   : > { %7149 = vst [vmem:[%s7670_s11 + $0xdc0] sm:$0xff] %v4688_v17  ;;  %v4821_v10 = vrot.slane %v4809_v3, 3  ;;  %v4843_v17 = vld [vmem:[%s7658_s6 + $0x2b8] sm:$0xc0]  ;;  %v4972_v3 = vrot.slane %v4946_v57, 1 }
 0x3a4   : > { %7155 = vst [vmem:[%s7670_s11 + $0xdf0] sm:$0x1] %v4687_v9  ;;  %v4820_v9 = vrot.slane %v4808_v2, 3  ;;  %v4873_v25 = vrot.slane %v4843_v17, 5  ;;  %v4932_v2 = vrot.slane %v4920_v54, 2 }
 0x3a5   : > { %7150 = vst [vmem:[%s7670_s11 + $0xdc8] sm:$0xff] %v4691_v20  ;;  %v4850_v20 = vld [vmem:[%s7658_s6 + $0x2f0] sm:$0x7] }
 0x3a6   : > { %7156 = vst [vmem:[%s7670_s11 + $0xdf8] sm:$0x1] %v4690_v14  ;;  %v4868_v14 = vrot.slane %v4847_v7, 5  ;;  %v4875_v36 = vsel %vm570_vm2, %v4873_v25, %v4874_v26  ;;  %v5012_v25 = vld [vmem:[%s7745_s28 + $0x218] sm:$0x7c] }
 0x3a7   : > { %7151 = vst [vmem:[%s7670_s11 + $0xdd0] sm:$0xff] %v4694_v24  ;;  %v4851_v24 = vld [vmem:[%s7658_s6 + $0x2f8] sm:$0x7] }
 0x3a8   : > { %7157 = vst [vmem:[%s7670_s11 + $0xe00] sm:$0x1] %v4693_v19  ;;  %v4844_v19 = vld [vmem:[%s7658_s6 + $0x2c0] sm:$0xc0]  ;;  %v4869_v31 = vsel %vm570_vm2, %v4867_v13, %v4868_v14  ;;  %v4978_v13 = vrot.slane %v4948_v5, 1  ;;  %v4979_v14 = vrot.slane %v4954_v6, 1 }
 0x3a9   : > { %7152 = vst [vmem:[%s7670_s11 + $0xdd8] sm:$0xff] %v4697_v27  ;;  %v4866_v27 = vsel %vm570_vm2, %v4864_v11, %v4865_v12  ;;  %v4876_v28 = vrot.slane %v4844_v19, 5  ;;  %v4955_v11 = vld [vmem:[%s7745_s28 + $0x200] sm:$0x3]  ;;  %v4974_v12 = vsel %vm1019_vm4, %v4972_v3, %v4973_v4  ;;  %v5088_v3 = vld [vmem:[%s7745_s28 + $0x2f8] sm:$0xf] }
 0x3aa   : > { %7158 = vst [vmem:[%s7670_s11 + $0xe08] sm:$0x1] %v4696_v22  ;;  %v4870_v22 = vrot.slane %v4842_v15, 5  ;;  %v4950_v15 = vld [vmem:[%s7745_s28 + $0x1d8] sm:$0xc0]  ;;  %v4982_v19 = vrot.slane %v4955_v11, 1 }
 0x3ab   : > { %7161 = vst.msk [vmem:[%s7670_s11 + $0xde1] ss:$8 sm:$0xf] %vm7753_vm1, %v4725_v29  ;;  %v4984_v21 = vrot.slane %v4950_v15, 1  ;;  %v5143_v5 = vld [vmem:[%s7745_s28 + $0x300] sm:$0xf0] }
 0x3ac   : > { %7162 = vst.msk [vmem:[%s7670_s11 + $0xde1] ss:$8 sm:$0x30] %vm7753_vm1, %v4725_v29  ;;  %v4877_v29 = vrot.slane %v4850_v20, 5  ;;  %v4872_v34 = vsel %vm570_vm2, %v4870_v22, %v4871_v23  ;;  %v4980_v20 = vsel %vm1019_vm4, %v4978_v13, %v4979_v14  ;;  %v4985_v22 = vrot.slane %v4956_v16, 1 }
 0x3ad   : > { %7165 = vst.msk [vmem:[%s7670_s11 + $0xde2] ss:$8 sm:$0xf] %vm7753_vm1, %v4732_v32  ;;  %v5149_v6 = vld [vmem:[%s7745_s28 + $0x330] sm:$0x1]  ;;  %v5117_v13 = vrot.slane %v5088_v3, 2 }
 0x3ae   : > { %7166 = vst.msk [vmem:[%s7670_s11 + $0xde2] ss:$8 sm:$0x30] %vm7753_vm1, %v4732_v32  ;;  %v4880_v32 = vrot.slane %v4851_v24, 5  ;;  %v5011_v24 = vld [vmem:[%s7745_s28 + $0x210] sm:$0x7c]  ;;  %v4986_v26 = vsel %vm1019_vm4, %v4984_v21, %v4985_v22 }
 0x3af   : > { %7169 = vst.msk [vmem:[%s7670_s11 + $0xde3] ss:$8 sm:$0xf] %vm7753_vm1, %v4739_v35  ;;  %v5168_v15 = vrot.slane %v5149_v6, 2  ;;  %v5220_v3 = vld [vmem:[%s7906_s7 + $0x170] sm:$0xf0] }
 0x3b0   : > { %7170 = vst.msk [vmem:[%s7670_s11 + $0xde3] ss:$8 sm:$0x30] %vm7753_vm1, %v4739_v35  ;;  %v7202_v35 = vld [vmem:[%s7658_s6 + $0x362] ss:$8 sm:$0x30] }
 0x3b1   : > { %7171 = vst [vmem:[%s7670_s11 + $0xe10] sm:$0x7] %v4755_v38  ;;  %v4878_v38 = vsel %vm570_vm2, %v4876_v28, %v4877_v29  ;;  %v4897_v41 = vor.u32 %v7202_v35, %v7201_v33  ;;  %v5023_v28 = vrot.slane %v5011_v24, 1  ;;  %v5024_v29 = vrot.slane %v5012_v25, 1  ;;  %v5041_v35 = vld [vmem:[%s7745_s28 + $0x270] sm:$0x1f] }
 0x3b2   : > { %7172 = vst [vmem:[%s7670_s11 + $0xe18] sm:$0x7] %v4756_v40  ;;  %v4881_v40 = vsel %vm570_vm2, %v4879_v30, %v4880_v32  ;;  %v5014_v30 = vld [vmem:[%s7745_s28 + $0x228] sm:$0x7c]  ;;  %v5016_v32 = vld [vmem:[%s7745_s28 + $0x238] sm:$0x7c] }
 0x3b3   : > { %7173 = vst [vmem:[%s7670_s11 + $0xe20] sm:$0x7] %v4757_v42  ;;  %v7209_v42 = vld [vmem:[%s7658_s6 + $0x366] ss:$8 sm:$0xf] }
 0x3b4   : > { %7174 = vst [vmem:[%s7670_s11 + $0xe28] sm:$0x7] %v4758_v44  ;;  %v4904_v44 = vor.u32 %v7206_v39, %v7205_v37  ;;  %v4911_v49 = vor.u32 %v7210_v43, %v7209_v42  ;;  %v5028_v37 = vrot.slane %v5016_v32, 1  ;;  %v5043_v39 = vld [vmem:[%s7745_s28 + $0x280] sm:$0x1f] }
 0x3b5   : > { %7175 = vst [vmem:[%s7670_s11 + $0xe30] sm:$0x7] %v4759_v45  ;;  %v4915_v45 = vld [vmem:[%s7745_s28 + $0x1b0] sm:$0x78]  ;;  %v5055_v43 = vrot.slane %v5043_v39, 2 }
 0x3b6   : > { %7176 = vst [vmem:[%s7670_s11 + $0xe38] sm:$0x7] %v4760_v47  ;;  %v4917_v47 = vld [vmem:[%s7745_s28 + $0x1c0] sm:$0x78]  ;;  %v4927_v51 = vrot.slane %v4915_v45, 2 }
 0x3b7   : > { %7177 = vst [vmem:[%s7670_s11 + $0xe10] sm:$0x38] %v4786_v48  ;;  %v4918_v48 = vld [vmem:[%s7745_s28 + $0x1c8] sm:$0x78]  ;;  %v5045_v45 = vld [vmem:[%s7745_s28 + $0x290] sm:$0x1f] }
 0x3b8   : > { %7178 = vst [vmem:[%s7670_s11 + $0xe18] sm:$0x38] %v4787_v52  ;;  %v4945_v52 = vld [vmem:[%s7745_s28 + $0x1b0] sm:$0xc0]  ;;  %v4930_v58 = vrot.slane %v4918_v48, 2 }
 0x3b9   : > { %7179 = vst [vmem:[%s7670_s11 + $0xe20] sm:$0x38] %v4788_v53  ;;  %v4928_v53 = vrot.slane %v4916_v46, 2  ;;  %v5046_v46 = vld [vmem:[%s7745_s28 + $0x298] sm:$0x1f] }
 0x3ba   : > { %7180 = vst [vmem:[%s7670_s11 + $0xe28] sm:$0x38] %v4789_v55  ;;  %v4951_v55 = vld [vmem:[%s7745_s28 + $0x1e0] sm:$0x3]  ;;  %v5083_v48 = vld [vmem:[%s7745_s28 + $0x2d0] sm:$0xf] }
 0x3bb   : > { %7181 = vst [vmem:[%s7670_s11 + $0xe30] sm:$0x38] %v4790_v56  ;;  %v4929_v56 = vrot.slane %v4917_v47, 2  ;;  %v5077_v47 = vld [vmem:[%s7745_s28 + $0x2a0] sm:$0xe0]  ;;  %v5058_v54 = vrot.slane %v5046_v46, 2 }
 0x3bc   : > { %7182 = vst [vmem:[%s7670_s11 + $0xe38] sm:$0x38] %v4791_v61  ;;  %v4931_v61 = vrot.slane %v4919_v50, 2  ;;  %v5084_v50 = vld [vmem:[%s7745_s28 + $0x2d8] sm:$0xf] }
 0x3bd   : > { %7183 = vst [vmem:[%s7670_s11 + $0xe10] sm:$0xc0] %v4816_v62  ;;  %v5147_v24 = vld [vmem:[%s7745_s28 + $0x320] sm:$0xf0]  ;;  %v5153_v25 = vld [vmem:[%s7745_s28 + $0x350] sm:$0x1] }
 0x3be   : > { %7189 = vst [vmem:[%s7670_s11 + $0xe40] sm:$0x1] %v4816_v62  ;;  %v4969_v62 = vrot.slane %v4945_v52, 1  ;;  %v5085_v52 = vld [vmem:[%s7745_s28 + $0x2e0] sm:$0xf] }
 0x3bf   : > { %7184 = vst [vmem:[%s7670_s11 + $0xe18] sm:$0xc0] %v4817_v63  ;;  %v7267_v39 = vld [vmem:[%s7745_s28 + $0x397] ss:$8 sm:$0xf] }
 0x3c0   : > { %7190 = vst [vmem:[%s7670_s11 + $0xe48] sm:$0x1] %v4817_v63  ;;  %v4970_v63 = vrot.slane %v4951_v55, 1  ;;  %v5101_v55 = vrot.slane %v5077_v47, 2 }
 0x3c1   : > { %7185 = vst [vmem:[%s7670_s11 + $0xe20] sm:$0xc0] %v4818_v0  ;;  %v7271_v47 = vld [vmem:[%s7745_s28 + $0x3c2] ss:$8 sm:$0xf] }
 0x3c2   : > { %7191 = vst [vmem:[%s7670_s11 + $0xe50] sm:$0x1] %v4818_v0  ;;  %v4947_v0 = vld [vmem:[%s7745_s28 + $0x1c0] sm:$0xc0]  ;;  %v4971_v7 = vsel %vm1019_vm4, %v4969_v62, %v4970_v63  ;;  %v5080_v62 = vld [vmem:[%s7745_s28 + $0x2b8] sm:$0xe0] }
 0x3c3   : > { %7186 = vst [vmem:[%s7670_s11 + $0xe28] sm:$0xc0] %v4819_v8 }
 0x3c4   : > { %7192 = vst [vmem:[%s7670_s11 + $0xe58] sm:$0x1] %v4819_v8  ;;  %v4975_v8 = vrot.slane %v4947_v0, 1  ;;  %v5081_v0 = vld [vmem:[%s7745_s28 + $0x2c0] sm:$0xe0] }
 0x3c5   : > { %7187 = vst [vmem:[%s7670_s11 + $0xe30] sm:$0xc0] %v4820_v9 }
 0x3c6   : > { %7193 = vst [vmem:[%s7670_s11 + $0xe60] sm:$0x1] %v4820_v9  ;;  %v4976_v9 = vrot.slane %v4953_v1, 1  ;;  %v5087_v1 = vld [vmem:[%s7745_s28 + $0x2f0] sm:$0xf] }
 0x3c7   : > { %7188 = vst [vmem:[%s7670_s11 + $0xe38] sm:$0xc0] %v4821_v10  ;;  %v5114_v11 = vrot.slane %v5087_v1, 2  ;;  %v5219_v1 = vld [vmem:[%s7906_s7 + $0x168] sm:$0xf0] }
 0x3c8   : > { %7194 = vst [vmem:[%s7670_s11 + $0xe68] sm:$0x1] %v4821_v10  ;;  %v4949_v10 = vld [vmem:[%s7745_s28 + $0x1d0] sm:$0xc0]  ;;  %v4977_v17 = vsel %vm1019_vm4, %v4975_v8, %v4976_v9  ;;  %v5110_v8 = vrot.slane %v5080_v62, 2 }
 0x3c9   : > { %7195 = vst [vmem:[%s7670_s11 + $0xe40] sm:$0x3e] %v4866_v27  ;;  %v4981_v18 = vrot.slane %v4949_v10, 1  ;;  %v5013_v27 = vld [vmem:[%s7745_s28 + $0x220] sm:$0x7c]  ;;  %v5113_v10 = vrot.slane %v5081_v0, 2 }
 0x3ca   : > { %7196 = vst [vmem:[%s7670_s11 + $0xe48] sm:$0x3e] %v4869_v31  ;;  %v5015_v31 = vld [vmem:[%s7745_s28 + $0x230] sm:$0x7c]  ;;  %v5025_v33 = vrot.slane %v5013_v27, 1 }
 0x3cb   : > { %7197 = vst [vmem:[%s7670_s11 + $0xe50] sm:$0x3e] %v4872_v34  ;;  %v4983_v23 = vsel %vm1019_vm4, %v4981_v18, %v4982_v19  ;;  %v5026_v34 = vrot.slane %v5014_v30, 1  ;;  %v5150_v18 = vld [vmem:[%s7745_s28 + $0x338] sm:$0x1] }
 0x3cc   : > { %7198 = vst [vmem:[%s7670_s11 + $0xe58] sm:$0x3e] %v4875_v36  ;;  %v5027_v36 = vrot.slane %v5015_v31, 1  ;;  %v5218_v62 = vld [vmem:[%s7906_s7 + $0x160] sm:$0xf0] }
 0x3cd   : > { %7199 = vst [vmem:[%s7670_s11 + $0xe60] sm:$0x3e] %v4878_v38  ;;  %v5042_v38 = vld [vmem:[%s7745_s28 + $0x278] sm:$0x1f]  ;;  %v5246_v6 = vrot.slane %v5218_v62, 2 }
 0x3ce   : > { %7200 = vst [vmem:[%s7670_s11 + $0xe68] sm:$0x3e] %v4881_v40  ;;  %v5044_v40 = vld [vmem:[%s7745_s28 + $0x288] sm:$0x1f]  ;;  %v5054_v42 = vrot.slane %v5042_v38, 2 }
 0x3cf   : > { %7203 = vst.msk [vmem:[%s7670_s11 + $0xe46] ss:$8 sm:$0xf] %vm7753_vm1, %v4897_v41  ;;  %v5372_v62 = vld [vmem:[%s7906_s7 + $0x210] sm:$0xfe] }
 0x3d0   : > { %7204 = vst.msk [vmem:[%s7670_s11 + $0xe46] ss:$8 sm:$0x30] %vm7753_vm1, %v4897_v41  ;;  %v5053_v41 = vrot.slane %v5041_v35, 2 }
 0x3d1   : > { %7207 = vst.msk [vmem:[%s7670_s11 + $0xe47] ss:$8 sm:$0xf] %vm7753_vm1, %v4904_v44 }
 0x3d2   : > { %7208 = vst.msk [vmem:[%s7670_s11 + $0xe47] ss:$8 sm:$0x30] %vm7753_vm1, %v4904_v44  ;;  %v5056_v44 = vrot.slane %v5044_v40, 2 }
 0x3d3   : > { %7211 = vst.msk [vmem:[%s7670_s11 + $0xe70] ss:$8 sm:$0xf] %vm7753_vm1, %v4911_v49 }
 0x3d4   : > { %7212 = vst.msk [vmem:[%s7670_s11 + $0xe70] ss:$8 sm:$0x30] %vm7753_vm1, %v4911_v49  ;;  %v5078_v49 = vld [vmem:[%s7745_s28 + $0x2a8] sm:$0xe0] }
 0x3d5   : > { %7213 = vst [vmem:[%s7670_s11 + $0xe70] sm:$0x1e] %v4927_v51  ;;  %v5079_v51 = vld [vmem:[%s7745_s28 + $0x2b0] sm:$0xe0]  ;;  %v5104_v57 = vrot.slane %v5078_v49, 2 }
 0x3d6   : > { %7214 = vst [vmem:[%s7670_s11 + $0xe78] sm:$0x1e] %v4928_v53  ;;  %v5057_v53 = vrot.slane %v5045_v45, 2  ;;  %v5107_v60 = vrot.slane %v5079_v51, 2  ;;  %v5222_v45 = vld [vmem:[%s7906_s7 + $0x180] sm:$0x1] }
 0x3d7   : > { %7215 = vst [vmem:[%s7670_s11 + $0xe80] sm:$0x1e] %v4929_v56  ;;  %v5102_v56 = vrot.slane %v5083_v48, 2  ;;  %v5217_v48 = vld [vmem:[%s7906_s7 + $0x158] sm:$0xf0] }
 0x3d8   : > { %7216 = vst [vmem:[%s7670_s11 + $0xe88] sm:$0x1e] %v4930_v58  ;;  %v5105_v58 = vrot.slane %v5084_v50, 2  ;;  %v5223_v49 = vld [vmem:[%s7906_s7 + $0x188] sm:$0x1] }
 0x3d9   : > { %7217 = vst [vmem:[%s7670_s11 + $0xe90] sm:$0x1e] %v4931_v61  ;;  %v5108_v61 = vrot.slane %v5085_v52, 2  ;;  %v7272_v51 = vld [vmem:[%s7745_s28 + $0x3c2] ss:$8 sm:$0x30] }
 0x3da   : > { %7218 = vst [vmem:[%s7670_s11 + $0xe98] sm:$0x1e] %v4932_v2  ;;  %v5082_v2 = vld [vmem:[%s7745_s28 + $0x2c8] sm:$0xe0]  ;;  %v5205_v0 = vor.u32 %v7272_v51, %v7271_v47  ;;  %v5316_v51 = vld [vmem:[%s7906_s7 + $0x200] sm:$0x3] }
 0x3db   : > { %7219 = vst [vmem:[%s7670_s11 + $0xe70] sm:$0xe0] %v4971_v7  ;;  %v5106_v7 = vsel %vm952_vm3, %v5104_v57, %v5105_v58  ;;  %v5109_v16 = vsel %vm952_vm3, %v5107_v60, %v5108_v61  ;;  %v5243_v60 = vrot.slane %v5217_v48, 2  ;;  %v5315_v48 = vld [vmem:[%s7906_s7 + $0x1f8] sm:$0x3] }
 0x3dc   : > { %7225 = vst [vmem:[%s7670_s11 + $0xea0] sm:$0x1] %v4970_v63  ;;  %v5086_v63 = vld [vmem:[%s7745_s28 + $0x2e8] sm:$0xf] }
 0x3dd   : > { %7220 = vst [vmem:[%s7670_s11 + $0xe78] sm:$0xe0] %v4974_v12  ;;  %v5116_v12 = vrot.slane %v5082_v2, 2  ;;  %v5225_v2 = vld [vmem:[%s7906_s7 + $0x198] sm:$0x1] }
 0x3de   : > { %7226 = vst [vmem:[%s7670_s11 + $0xea8] sm:$0x1] %v4973_v4  ;;  %v5103_v4 = vsel %vm952_vm3, %v5101_v55, %v5102_v56  ;;  %v7275_v55 = vld [vmem:[%s7745_s28 + $0x3c5] ss:$8 sm:$0xf] }
 0x3df   : > { %7221 = vst [vmem:[%s7670_s11 + $0xe80] sm:$0xe0] %v4977_v17  ;;  %v5144_v17 = vld [vmem:[%s7745_s28 + $0x308] sm:$0xf0]  ;;  %v5118_v30 = vsel %vm952_vm3, %v5116_v12, %v5117_v13 }
 0x3e0   : > { %7227 = vst [vmem:[%s7670_s11 + $0xeb0] sm:$0x1] %v4976_v9  ;;  %v5111_v9 = vrot.slane %v5086_v63, 2  ;;  %v5170_v27 = vrot.slane %v5144_v17, 2  ;;  %v5224_v63 = vld [vmem:[%s7906_s7 + $0x190] sm:$0x1] }
 0x3e1   : > { %7222 = vst [vmem:[%s7670_s11 + $0xe88] sm:$0xe0] %v4980_v20  ;;  %v5151_v20 = vld [vmem:[%s7745_s28 + $0x340] sm:$0x1] }
 0x3e2   : > { %7228 = vst [vmem:[%s7670_s11 + $0xeb8] sm:$0x1] %v4979_v14  ;;  %v5167_v14 = vrot.slane %v5143_v5, 2  ;;  %v5112_v21 = vsel %vm952_vm3, %v5110_v8, %v5111_v9  ;;  %v5174_v32 = vrot.slane %v5151_v20, 2  ;;  %v5247_v8 = vrot.slane %v5224_v63, 2 }
 0x3e3   : > { %7223 = vst [vmem:[%s7670_s11 + $0xe90] sm:$0xe0] %v4983_v23  ;;  %v5152_v23 = vld [vmem:[%s7745_s28 + $0x348] sm:$0x1] }
 0x3e4   : > { %7229 = vst [vmem:[%s7670_s11 + $0xec0] sm:$0x1] %v4982_v19  ;;  %v5145_v19 = vld [vmem:[%s7745_s28 + $0x310] sm:$0xf0]  ;;  %v5177_v35 = vrot.slane %v5152_v23, 2  ;;  %v5169_v40 = vsel %vm952_vm3, %v5167_v14, %v5168_v15 }
 0x3e5   : > { %7224 = vst [vmem:[%s7670_s11 + $0xe98] sm:$0xe0] %v4986_v26  ;;  %v5115_v26 = vsel %vm952_vm3, %v5113_v10, %v5114_v11  ;;  %v5173_v31 = vrot.slane %v5145_v19, 2  ;;  %v5249_v10 = vrot.slane %v5219_v1, 2  ;;  %v5270_v19 = vld [vmem:[%s7906_s7 + $0x180] sm:$0x1f] }
 0x3e6   : > { %7230 = vst [vmem:[%s7670_s11 + $0xec8] sm:$0x1] %v4985_v22  ;;  %v5146_v22 = vld [vmem:[%s7745_s28 + $0x318] sm:$0xf0] }
 0x3e7   : > { %7231 = vst [vmem:[%s7670_s11 + $0xea0] sm:$0x3e] %v5023_v28  ;;  %v5171_v28 = vrot.slane %v5150_v18, 2  ;;  %v5175_v46 = vsel %vm952_vm3, %v5173_v31, %v5174_v32  ;;  %v5248_v18 = vsel %vm952_vm3, %v5246_v6, %v5247_v8  ;;  %v5275_v32 = vld [vmem:[%s7906_s7 + $0x1a8] sm:$0x1f] }
 0x3e8   : > { %7232 = vst [vmem:[%s7670_s11 + $0xea8] sm:$0x3e] %v5024_v29  ;;  %v5148_v29 = vld [vmem:[%s7745_s28 + $0x328] sm:$0xf0]  ;;  %v5373_v1 = vld [vmem:[%s7906_s7 + $0x218] sm:$0xfe] }
 0x3e9   : > { %7233 = vst [vmem:[%s7670_s11 + $0xeb0] sm:$0x3e] %v5025_v33  ;;  %v5154_v33 = vld [vmem:[%s7745_s28 + $0x358] sm:$0x1]  ;;  %v5182_v38 = vrot.slane %v5148_v29, 2 }
 0x3ea   : > { %7234 = vst [vmem:[%s7670_s11 + $0xeb8] sm:$0x3e] %v5026_v34  ;;  %v5176_v34 = vrot.slane %v5146_v22, 2  ;;  %v5271_v22 = vld [vmem:[%s7906_s7 + $0x188] sm:$0x1f] }
 0x3eb   : > { %7235 = vst [vmem:[%s7670_s11 + $0xec0] sm:$0x3e] %v5027_v36  ;;  %v5179_v36 = vrot.slane %v5147_v24, 2  ;;  %v5282_v24 = vrot.slane %v5270_v19, 1  ;;  %v5375_v6 = vld [vmem:[%s7906_s7 + $0x228] sm:$0xfe] }
 0x3ec   : > { %7236 = vst [vmem:[%s7670_s11 + $0xec8] sm:$0x3e] %v5028_v37  ;;  %v5180_v37 = vrot.slane %v5153_v25, 2  ;;  %v5178_v50 = vsel %vm952_vm3, %v5176_v34, %v5177_v35  ;;  %v5272_v25 = vld [vmem:[%s7906_s7 + $0x190] sm:$0x1f] }
 0x3ed   : > { %7237 = vst [vmem:[%s7670_s11 + $0xea0] sm:$0xc0] %v5053_v41  ;;  %v5284_v29 = vrot.slane %v5272_v25, 1  ;;  %v5307_v34 = vld [vmem:[%s7906_s7 + $0x1b8] sm:$0xf8] }
 0x3ee   : > { %7243 = vst [vmem:[%s7670_s11 + $0xed0] sm:$0x7] %v5053_v41  ;;  %v5183_v41 = vrot.slane %v5154_v33, 2  ;;  %v5181_v52 = vsel %vm952_vm3, %v5179_v36, %v5180_v37  ;;  %v5306_v33 = vld [vmem:[%s7906_s7 + $0x1b0] sm:$0xf8]  ;;  %v5287_v36 = vrot.slane %v5275_v32, 1 }
 0x3ef   : > { %7238 = vst [vmem:[%s7670_s11 + $0xea8] sm:$0xc0] %v5054_v42  ;;  %v5308_v35 = vld [vmem:[%s7906_s7 + $0x1c0] sm:$0xf8]  ;;  %v5330_v37 = vrot.slane %v5306_v33, 7 }
 0x3f0   : > { %7244 = vst [vmem:[%s7670_s11 + $0xed8] sm:$0x7] %v5054_v42  ;;  %v7268_v42 = vld [vmem:[%s7745_s28 + $0x397] ss:$8 sm:$0x30] }
 0x3f1   : > { %7239 = vst [vmem:[%s7670_s11 + $0xeb0] sm:$0xc0] %v5055_v43  ;;  %v5376_v8 = vld [vmem:[%s7906_s7 + $0x230] sm:$0xfe]  ;;  %v5413_v33 = vld [vmem:[%s7906_s7 + $0x268] sm:$0x80] }
 0x3f2   : > { %7245 = vst [vmem:[%s7670_s11 + $0xee0] sm:$0x7] %v5055_v43  ;;  %v5172_v43 = vsel %vm952_vm3, %v5170_v27, %v5171_v28  ;;  %v5273_v27 = vld [vmem:[%s7906_s7 + $0x198] sm:$0x1f]  ;;  %v5274_v28 = vld [vmem:[%s7906_s7 + $0x1a0] sm:$0x1f] }
 0x3f3   : > { %7240 = vst [vmem:[%s7670_s11 + $0xeb8] sm:$0xc0] %v5056_v44  ;;  %v5286_v31 = vrot.slane %v5274_v28, 1  ;;  %v5410_v19 = vld [vmem:[%s7906_s7 + $0x250] sm:$0x80] }
 0x3f4   : > { %7246 = vst [vmem:[%s7670_s11 + $0xee8] sm:$0x7] %v5056_v44  ;;  %v5216_v44 = vld [vmem:[%s7906_s7 + $0x150] sm:$0xf0]  ;;  %v5412_v28 = vld [vmem:[%s7906_s7 + $0x260] sm:$0x80] }
 0x3f5   : > { %7241 = vst [vmem:[%s7670_s11 + $0xec0] sm:$0xc0] %v5057_v53  ;;  %v5240_v57 = vrot.slane %v5216_v44, 2  ;;  %v5311_v44 = vld [vmem:[%s7906_s7 + $0x1d8] sm:$0xf8] }
 0x3f6   : > { %7247 = vst [vmem:[%s7670_s11 + $0xef0] sm:$0x7] %v5057_v53  ;;  %v5184_v53 = vsel %vm952_vm3, %v5182_v38, %v5183_v41  ;;  %v5331_v38 = vrot.slane %v5307_v34, 7  ;;  %v5312_v41 = vld [vmem:[%s7906_s7 + $0x1e0] sm:$0x3] }
 0x3f7   : > { %7242 = vst [vmem:[%s7670_s11 + $0xec8] sm:$0xc0] %v5058_v54  ;;  %v5336_v47 = vrot.slane %v5312_v41, 7  ;;  %v5419_v34 = vld [vmem:[%s7906_s7 + $0x298] sm:$0x3f]  ;;  %v5447_v41 = vrot.slane %v5413_v33, 5 }
 0x3f8   : > { %7248 = vst [vmem:[%s7670_s11 + $0xef8] sm:$0x7] %v5058_v54  ;;  %v5199_v54 = vor.u32 %v7268_v42, %v7267_v39  ;;  %v5332_v39 = vrot.slane %v5308_v35, 7  ;;  %v5310_v42 = vld [vmem:[%s7906_s7 + $0x1d0] sm:$0xf8] }
 0x3f9   : > { %7249 = vst [vmem:[%s7670_s11 + $0xed0] sm:$0xf8] %v5103_v4  ;;  %v5226_v4 = vld [vmem:[%s7906_s7 + $0x1a0] sm:$0x1] }
 0x3fa   : > { %7255 = vst [vmem:[%s7670_s11 + $0xf00] sm:$0x3] %v5102_v56  ;;  %v7276_v56 = vld [vmem:[%s7745_s28 + $0x3c5] ss:$8 sm:$0x30]  ;;  %v5253_v14 = vrot.slane %v5226_v4, 2 }
 0x3fb   : > { %7250 = vst [vmem:[%s7670_s11 + $0xed8] sm:$0xf8] %v5106_v7  ;;  %v5212_v5 = vor.u32 %v7276_v56, %v7275_v55  ;;  %v5221_v7 = vld [vmem:[%s7906_s7 + $0x178] sm:$0xf0]  ;;  %v5342_v55 = vrot.slane %v5315_v48, 7  ;;  %v5337_v56 = vsel %vm1565_vm7, %v5330_v37, %v5336_v47 }
 0x3fc   : > { %7256 = vst [vmem:[%s7670_s11 + $0xf08] sm:$0x3] %v5105_v58  ;;  %v5241_v58 = vrot.slane %v5222_v45, 2  ;;  %v5314_v45 = vld [vmem:[%s7906_s7 + $0x1f0] sm:$0x3] }
 0x3fd   : > { %7251 = vst [vmem:[%s7670_s11 + $0xee0] sm:$0xf8] %v5109_v16  ;;  %v5255_v16 = vrot.slane %v5221_v7, 2  ;;  %v5374_v4 = vld [vmem:[%s7906_s7 + $0x220] sm:$0xfe] }
 0x3fe   : > { %7257 = vst [vmem:[%s7670_s11 + $0xf10] sm:$0x3] %v5108_v61  ;;  %v5244_v61 = vrot.slane %v5223_v49, 2  ;;  %v5242_v12 = vsel %vm952_vm3, %v5240_v57, %v5241_v58  ;;  %v5334_v49 = vrot.slane %v5310_v42, 7  ;;  %v5344_v57 = vrot.slane %v5316_v51, 7 }
 0x3ff   : > { %7252 = vst [vmem:[%s7670_s11 + $0xee8] sm:$0xf8] %v5112_v21  ;;  %v5386_v7 = vrot.slane %v5374_v4, 6  ;;  %v5448_v42 = vrot.slane %v5419_v34, 5  ;;  %v5476_v48 = vld [vmem:[%s7906_s7 + $0x2b0] sm:$0xf0] }
 0x400   : > { %7258 = vst [vmem:[%s7670_s11 + $0xf18] sm:$0x3] %v5111_v9  ;;  %v5227_v9 = vld [vmem:[%s7906_s7 + $0x1a8] sm:$0x1]  ;;  %v5245_v15 = vsel %vm952_vm3, %v5243_v60, %v5244_v61 }
 0x401   : > { %7253 = vst [vmem:[%s7670_s11 + $0xef0] sm:$0xf8] %v5115_v26  ;;  %v5256_v17 = vrot.slane %v5227_v9, 2  ;;  %v5283_v26 = vrot.slane %v5271_v22, 1  ;;  %v5387_v9 = vrot.slane %v5375_v6, 6 }
 0x402   : > { %7259 = vst [vmem:[%s7670_s11 + $0xf20] sm:$0x3] %v5114_v11  ;;  %v5250_v11 = vrot.slane %v5225_v2, 2  ;;  %v5546_v6 = vld [vmem:[%s7906_s7 + $0x330] sm:$0x3] }
 0x403   : > { %7254 = vst [vmem:[%s7670_s11 + $0xef8] sm:$0xf8] %v5118_v30  ;;  %v5257_v23 = vsel %vm952_vm3, %v5255_v16, %v5256_v17  ;;  %v5285_v30 = vrot.slane %v5273_v27, 1 }
 0x404   : > { %7260 = vst [vmem:[%s7670_s11 + $0xf28] sm:$0x3] %v5117_v13  ;;  %v5252_v13 = vrot.slane %v5220_v3, 2  ;;  %v5251_v20 = vsel %vm952_vm3, %v5249_v10, %v5250_v11  ;;  %v5384_v3 = vrot.slane %v5372_v62, 6  ;;  %v5377_v10 = vld [vmem:[%s7906_s7 + $0x238] sm:$0xfe] }
 0x405   : > { %7261 = vst [vmem:[%s7670_s11 + $0xf00] sm:$0x7c] %v5169_v40  ;;  %v5309_v40 = vld [vmem:[%s7906_s7 + $0x1c8] sm:$0xf8]  ;;  %v5408_v11 = vld [vmem:[%s7906_s7 + $0x240] sm:$0x80] }
 0x406   : > { %7262 = vst [vmem:[%s7670_s11 + $0xf08] sm:$0x7c] %v5172_v43  ;;  %v5254_v21 = vsel %vm952_vm3, %v5252_v13, %v5253_v14  ;;  %v5313_v43 = vld [vmem:[%s7906_s7 + $0x1e8] sm:$0x3]  ;;  %v5388_v13 = vrot.slane %v5376_v8, 6  ;;  %v5389_v16 = vrot.slane %v5377_v10, 6 }
 0x407   : > { %7263 = vst [vmem:[%s7670_s11 + $0xf10] sm:$0x7c] %v5175_v46  ;;  %v5333_v46 = vrot.slane %v5309_v40, 7  ;;  %v5409_v14 = vld [vmem:[%s7906_s7 + $0x248] sm:$0x80]  ;;  %v5432_v17 = vrot.slane %v5408_v11, 5 }
 0x408   : > { %7264 = vst [vmem:[%s7670_s11 + $0xf18] sm:$0x7c] %v5178_v50  ;;  %v5338_v50 = vrot.slane %v5313_v43, 7  ;;  %v5475_v43 = vld [vmem:[%s7906_s7 + $0x2a8] sm:$0xf0] }
 0x409   : > { %7265 = vst [vmem:[%s7670_s11 + $0xf20] sm:$0x7c] %v5181_v52  ;;  %v5335_v52 = vrot.slane %v5311_v44, 7  ;;  %v5343_v63 = vsel %vm1565_vm7, %v5333_v46, %v5342_v55  ;;  %v5481_v44 = vld [vmem:[%s7906_s7 + $0x2d8] sm:$0x1f]  ;;  %v5501_v51 = vrot.slane %v5475_v43, 3 }
 0x40a   : > { %7266 = vst [vmem:[%s7670_s11 + $0xf28] sm:$0x7c] %v5184_v53  ;;  %v5340_v53 = vrot.slane %v5314_v45, 7  ;;  %v5339_v58 = vsel %vm1565_vm7, %v5331_v38, %v5338_v50  ;;  %v5449_v50 = vsel %vm570_vm2, %v5447_v41, %v5448_v42  ;;  %v5541_v10 = vld [vmem:[%s7906_s7 + $0x308] sm:$0xf8] }
 0x40b   : > { %7269 = vst.msk [vmem:[%s7670_s11 + $0xf07] ss:$8 sm:$0xf] %vm7753_vm1, %v5199_v54  ;;  %v5547_v11 = vld [vmem:[%s7906_s7 + $0x338] sm:$0x3] }
 0x40c   : > { %7270 = vst.msk [vmem:[%s7670_s11 + $0xf07] ss:$8 sm:$0x30] %vm7753_vm1, %v5199_v54  ;;  %v5317_v54 = vld [vmem:[%s7906_s7 + $0x208] sm:$0x3]  ;;  %v5341_v61 = vsel %vm1565_vm7, %v5332_v39, %v5340_v53 }
 0x40d   : > { %7273 = vst.msk [vmem:[%s7670_s11 + $0xf30] ss:$8 sm:$0xf] %vm7753_vm1, %v5205_v0  ;;  %v5346_v60 = vrot.slane %v5317_v54, 7  ;;  %v5477_v53 = vld [vmem:[%s7906_s7 + $0x2b8] sm:$0xf0] }
 0x40e   : > { %7274 = vst.msk [vmem:[%s7670_s11 + $0xf30] ss:$8 sm:$0x30] %vm7753_vm1, %v5205_v0  ;;  %v5345_v0 = vsel %vm1565_vm7, %v5334_v49, %v5344_v57  ;;  %v5483_v54 = vld [vmem:[%s7906_s7 + $0x2e8] sm:$0x1f]  ;;  %v5507_v62 = vrot.slane %v5477_v53, 3 }
 0x40f   : > { %7277 = vst.msk [vmem:[%s7670_s11 + $0xf31] ss:$8 sm:$0xf] %vm7753_vm1, %v5212_v5  ;;  %v5347_v2 = vsel %vm1565_vm7, %v5335_v52, %v5346_v60  ;;  %v5484_v60 = vld [vmem:[%s7906_s7 + $0x2f0] sm:$0x1f] }
 0x410   : > { %7278 = vst.msk [vmem:[%s7670_s11 + $0xf31] ss:$8 sm:$0x30] %vm7753_vm1, %v5212_v5  ;;  %v5385_v5 = vrot.slane %v5373_v1, 6  ;;  %v5485_v1 = vld [vmem:[%s7906_s7 + $0x2f8] sm:$0x1f] }
 0x411   : > { %7279 = vst [vmem:[%s7670_s11 + $0xf30] sm:$0x7c] %v5242_v12  ;;  %v5414_v12 = vld [vmem:[%s7906_s7 + $0x270] sm:$0x3f]  ;;  %v5511_v4 = vrot.slane %v5484_v60, 3 }
 0x412   : > { %7280 = vst [vmem:[%s7670_s11 + $0xf38] sm:$0x7c] %v5245_v15  ;;  %v5415_v15 = vld [vmem:[%s7906_s7 + $0x278] sm:$0x3f]  ;;  %v5607_v41 = vld [vmem:[%s7906_s7 + $0x368] sm:$0xfe] }
 0x413   : > { %7281 = vst [vmem:[%s7670_s11 + $0xf40] sm:$0x7c] %v5248_v18  ;;  %v5433_v18 = vrot.slane %v5414_v12, 5  ;;  %v5436_v22 = vrot.slane %v5415_v15, 5  ;;  %v5542_v15 = vld [vmem:[%s7906_s7 + $0x310] sm:$0xf8] }
 0x414   : > { %7282 = vst [vmem:[%s7670_s11 + $0xf48] sm:$0x7c] %v5251_v20  ;;  %v5416_v20 = vld [vmem:[%s7906_s7 + $0x280] sm:$0x3f]  ;;  %v5639_v53 = vld [vmem:[%s8162_s12 + $0xf0] sm:$0xe0] }
 0x415   : > { %7283 = vst [vmem:[%s7670_s11 + $0xf50] sm:$0x7c] %v5254_v21  ;;  %v5435_v21 = vrot.slane %v5409_v14, 5  ;;  %v5434_v25 = vsel %vm570_vm2, %v5432_v17, %v5433_v18  ;;  %v5439_v27 = vrot.slane %v5416_v20, 5  ;;  %v5565_v14 = vrot.slane %v5546_v6, 1 }
 0x416   : > { %7284 = vst [vmem:[%s7670_s11 + $0xf58] sm:$0x7c] %v5257_v23  ;;  %v5411_v23 = vld [vmem:[%s7906_s7 + $0x258] sm:$0x80] }
 0x417   : > { %7285 = vst [vmem:[%s7670_s11 + $0xf30] sm:$0x80] %v5282_v24  ;;  %v5543_v20 = vld [vmem:[%s7906_s7 + $0x318] sm:$0xf8] }
 0x418   : > { %7291 = vst [vmem:[%s7670_s11 + $0xf60] sm:$0xf] %v5282_v24  ;;  %v5417_v24 = vld [vmem:[%s7906_s7 + $0x288] sm:$0x3f] }
 0x419   : > { %7286 = vst [vmem:[%s7670_s11 + $0xf38] sm:$0x80] %v5283_v26  ;;  %v5442_v32 = vrot.slane %v5417_v24, 5  ;;  %v7363_v43 = vld [vmem:[%s7906_s7 + $0x3f4] ss:$8 sm:$0xf] }
 0x41a   : > { %7292 = vst [vmem:[%s7670_s11 + $0xf68] sm:$0xf] %v5283_v26  ;;  %v5438_v26 = vrot.slane %v5410_v19, 5  ;;  %v5568_v19 = vrot.slane %v5547_v11, 1 }
 0x41b   : > { %7287 = vst [vmem:[%s7670_s11 + $0xf40] sm:$0x80] %v5284_v29 }
 0x41c   : > { %7293 = vst [vmem:[%s7670_s11 + $0xf70] sm:$0xf] %v5284_v29  ;;  %v5418_v29 = vld [vmem:[%s7906_s7 + $0x290] sm:$0x3f]  ;;  %v5440_v35 = vsel %vm570_vm2, %v5438_v26, %v5439_v27 }
 0x41d   : > { %7288 = vst [vmem:[%s7670_s11 + $0xf48] sm:$0x80] %v5285_v30  ;;  %v5550_v26 = vld [vmem:[%s7906_s7 + $0x350] sm:$0x3] }
 0x41e   : > { %7294 = vst [vmem:[%s7670_s11 + $0xf78] sm:$0xf] %v5285_v30  ;;  %v5437_v30 = vsel %vm570_vm2, %v5435_v21, %v5436_v22  ;;  %v5549_v21 = vld [vmem:[%s7906_s7 + $0x348] sm:$0x3]  ;;  %v5577_v34 = vrot.slane %v5550_v26, 1 }
 0x41f   : > { %7289 = vst [vmem:[%s7670_s11 + $0xf50] sm:$0x80] %v5286_v31  ;;  %v5708_v26 = vld [vmem:[%s8162_s12 + $0x138] sm:$0xfc] }
 0x420   : > { %7295 = vst [vmem:[%s7670_s11 + $0xf80] sm:$0xf] %v5286_v31  ;;  %v5441_v31 = vrot.slane %v5411_v23, 5  ;;  %v5570_v23 = vrot.slane %v5542_v15, 1 }
 0x421   : > { %7290 = vst [vmem:[%s7670_s11 + $0xf58] sm:$0x80] %v5287_v36 }
 0x422   : > { %7296 = vst [vmem:[%s7670_s11 + $0xf88] sm:$0xf] %v5287_v36  ;;  %v5444_v36 = vrot.slane %v5412_v28, 5  ;;  %v5443_v40 = vsel %vm570_vm2, %v5441_v31, %v5442_v32  ;;  %v5573_v28 = vrot.slane %v5543_v20, 1  ;;  %v5551_v31 = vld [vmem:[%s7906_s7 + $0x358] sm:$0x3] }
 0x423   : > { %7297 = vst [vmem:[%s7670_s11 + $0xf60] sm:$0xf0] %v5330_v37  ;;  %v5445_v37 = vrot.slane %v5418_v29, 5  ;;  %v5574_v29 = vrot.slane %v5549_v21, 1 }
 0x424   : > { %7298 = vst [vmem:[%s7670_s11 + $0xf68] sm:$0xf0] %v5331_v38  ;;  %v5474_v38 = vld [vmem:[%s7906_s7 + $0x2a0] sm:$0xf0] }
 0x425   : > { %7299 = vst [vmem:[%s7670_s11 + $0xf70] sm:$0xf0] %v5332_v39  ;;  %v5480_v39 = vld [vmem:[%s7906_s7 + $0x2d0] sm:$0x1f]  ;;  %v5446_v45 = vsel %vm570_vm2, %v5444_v36, %v5445_v37 }
 0x426   : > { %7300 = vst [vmem:[%s7670_s11 + $0xf78] sm:$0xf0] %v5333_v46  ;;  %v5498_v46 = vrot.slane %v5474_v38, 3  ;;  %v5499_v47 = vrot.slane %v5480_v39, 3 }
 0x427   : > { %7301 = vst [vmem:[%s7670_s11 + $0xf80] sm:$0xf0] %v5334_v49  ;;  %v5482_v49 = vld [vmem:[%s7906_s7 + $0x2e0] sm:$0x1f] }
 0x428   : > { %7302 = vst [vmem:[%s7670_s11 + $0xf88] sm:$0xf0] %v5335_v52  ;;  %v5502_v52 = vrot.slane %v5481_v44, 3  ;;  %v5500_v55 = vsel %vm1243_vm6, %v5498_v46, %v5499_v47  ;;  %v5505_v57 = vrot.slane %v5482_v49, 3  ;;  %v5609_v44 = vld [vmem:[%s7906_s7 + $0x378] sm:$0xfe] }
 0x429   : > { %7303 = vst [vmem:[%s7670_s11 + $0xf90] sm:$0x7] %v5337_v56  ;;  %v5504_v56 = vrot.slane %v5476_v48, 3  ;;  %v5610_v46 = vld [vmem:[%s7906_s7 + $0x380] sm:$0xfe] }
 0x42a   : > { %7304 = vst [vmem:[%s7670_s11 + $0xf98] sm:$0x7] %v5339_v58  ;;  %v5478_v58 = vld [vmem:[%s7906_s7 + $0x2c0] sm:$0xf0]  ;;  %v5611_v48 = vld [vmem:[%s7906_s7 + $0x388] sm:$0xfe] }
 0x42b   : > { %7305 = vst [vmem:[%s7670_s11 + $0xfa0] sm:$0x7] %v5341_v61  ;;  %v5503_v61 = vsel %vm1243_vm6, %v5501_v51, %v5502_v52  ;;  %v7368_v49 = vld [vmem:[%s7906_s7 + $0x420] ss:$8 sm:$0x30] }
 0x42c   : > { %7306 = vst [vmem:[%s7670_s11 + $0xfa8] sm:$0x7] %v5343_v63  ;;  %v5508_v63 = vrot.slane %v5483_v54, 3  ;;  %v7372_v51 = vld [vmem:[%s7906_s7 + $0x424] ss:$8 sm:$0x30] }
 0x42d   : > { %7307 = vst [vmem:[%s7670_s11 + $0xfb0] sm:$0x7] %v5345_v0  ;;  %v5479_v0 = vld [vmem:[%s7906_s7 + $0x2c8] sm:$0xf0]  ;;  %v5645_v54 = vld [vmem:[%s8162_s12 + $0x120] sm:$0x7] }
 0x42e   : > { %7308 = vst [vmem:[%s7670_s11 + $0xfb8] sm:$0x7] %v5347_v2  ;;  %v5506_v2 = vsel %vm1243_vm6, %v5504_v56, %v5505_v57  ;;  %v5513_v8 = vrot.slane %v5479_v0, 3  ;;  %v5664_v60 = vrot.slane %v5645_v54, 2  ;;  %v5647_v0 = vld [vmem:[%s8162_s12 + $0x130] sm:$0x7] }
 0x42f   : > { %7309 = vst [vmem:[%s7670_s11 + $0xf90] sm:$0xf8] %v5384_v3  ;;  %v5670_v6 = vrot.slane %v5647_v0, 2  ;;  %v5808_v0 = vld [vmem:[%s8162_s12 + $0x1e8] sm:$0x7] }
 0x430   : > { %7315 = vst [vmem:[%s7670_s11 + $0xfc0] sm:$0x3] %v5384_v3  ;;  %v5510_v3 = vrot.slane %v5478_v58, 3  ;;  %v5663_v58 = vrot.slane %v5639_v53, 2 }
 0x431   : > { %7310 = vst [vmem:[%s7670_s11 + $0xf98] sm:$0xf8] %v5385_v5 }
 0x432   : > { %7316 = vst [vmem:[%s7670_s11 + $0xfc8] sm:$0x3] %v5385_v5  ;;  %v5540_v5 = vld [vmem:[%s7906_s7 + $0x300] sm:$0xf8]  ;;  %v5512_v12 = vsel %vm1243_vm6, %v5510_v3, %v5511_v4 }
 0x433   : > { %7311 = vst [vmem:[%s7670_s11 + $0xfa0] sm:$0xf8] %v5386_v7 }
 0x434   : > { %7317 = vst [vmem:[%s7670_s11 + $0xfd0] sm:$0x3] %v5386_v7  ;;  %v5509_v7 = vsel %vm1243_vm6, %v5507_v62, %v5508_v63 }
 0x435   : > { %7312 = vst [vmem:[%s7670_s11 + $0xfa8] sm:$0xf8] %v5387_v9 }
 0x436   : > { %7318 = vst [vmem:[%s7670_s11 + $0xfd8] sm:$0x3] %v5387_v9  ;;  %v5514_v9 = vrot.slane %v5485_v1, 3 }
 0x437   : > { %7313 = vst [vmem:[%s7670_s11 + $0xfb0] sm:$0xf8] %v5388_v13 }
 0x438   : > { %7319 = vst [vmem:[%s7670_s11 + $0xfe0] sm:$0x3] %v5388_v13  ;;  %v5564_v13 = vrot.slane %v5540_v5, 1  ;;  %v5515_v17 = vsel %vm1243_vm6, %v5513_v8, %v5514_v9  ;;  %v5665_v5 = vsel %vm952_vm3, %v5663_v58, %v5664_v60  ;;  %v5649_v8 = vld [vmem:[%s8162_s12 + $0x140] sm:$0x7] }
 0x439   : > { %7314 = vst [vmem:[%s7670_s11 + $0xfb8] sm:$0xf8] %v5389_v16 }
 0x43a   : > { %7320 = vst [vmem:[%s7670_s11 + $0xfe8] sm:$0x3] %v5389_v16  ;;  %v5548_v16 = vld [vmem:[%s7906_s7 + $0x340] sm:$0x3] }
 0x43b   : > { %7321 = vst [vmem:[%s7670_s11 + $0xfc0] sm:$0xfc] %v5434_v25  ;;  %v5571_v24 = vrot.slane %v5548_v16, 1  ;;  %v5544_v25 = vld [vmem:[%s7906_s7 + $0x320] sm:$0xf8]  ;;  %v5676_v16 = vrot.slane %v5649_v8, 2 }
 0x43c   : > { %7327 = vst [vmem:[%s7670_s11 + $0xff0] sm:$0x1] %v5433_v18  ;;  %v5567_v18 = vrot.slane %v5541_v10, 1  ;;  %v5576_v33 = vrot.slane %v5544_v25, 1 }
 0x43d   : > { %7322 = vst [vmem:[%s7670_s11 + $0xfc8] sm:$0xfc] %v5437_v30  ;;  %v5545_v30 = vld [vmem:[%s7906_s7 + $0x328] sm:$0xf8] }
 0x43e   : > { %7328 = vst [vmem:[%s7670_s11 + $0xff8] sm:$0x1] %v5436_v22  ;;  %v5566_v22 = vsel %vm1019_vm4, %v5564_v13, %v5565_v14  ;;  %v5579_v36 = vrot.slane %v5545_v30, 1  ;;  %v5578_v38 = vsel %vm1019_vm4, %v5576_v33, %v5577_v34  ;;  %v5650_v13 = vld [vmem:[%s8162_s12 + $0x148] sm:$0x7] }
 0x43f   : > { %7323 = vst [vmem:[%s7670_s11 + $0xfd0] sm:$0xfc] %v5440_v35  ;;  %v5575_v35 = vsel %vm1019_vm4, %v5573_v28, %v5574_v29  ;;  %v5679_v20 = vrot.slane %v5650_v13, 2  ;;  %v5710_v28 = vld [vmem:[%s8162_s12 + $0x148] sm:$0xfc] }
 0x440   : > { %7329 = vst [vmem:[%s7670_s11 + $0x1000] sm:$0x1] %v5439_v27  ;;  %v5569_v27 = vsel %vm1019_vm4, %v5567_v18, %v5568_v19 }
 0x441   : > { %7324 = vst [vmem:[%s7670_s11 + $0xfd8] sm:$0xfc] %v5443_v40  ;;  %v5606_v40 = vld [vmem:[%s7906_s7 + $0x360] sm:$0xfe] }
 0x442   : > { %7330 = vst [vmem:[%s7670_s11 + $0x1008] sm:$0x1] %v5442_v32  ;;  %v5572_v32 = vsel %vm1019_vm4, %v5570_v23, %v5571_v24  ;;  %v5706_v23 = vld [vmem:[%s8162_s12 + $0x128] sm:$0xfc] }
 0x443   : > { %7325 = vst [vmem:[%s7670_s11 + $0xfe0] sm:$0xfc] %v5446_v45  ;;  %v7364_v45 = vld [vmem:[%s7906_s7 + $0x3f4] ss:$8 sm:$0x30]  ;;  %v5718_v30 = vrot.slane %v5706_v23, 1 }
 0x444   : > { %7331 = vst [vmem:[%s7670_s11 + $0x1010] sm:$0x1] %v5445_v37  ;;  %v5580_v37 = vrot.slane %v5551_v31, 1 }
 0x445   : > { %7326 = vst [vmem:[%s7670_s11 + $0xfe8] sm:$0xfc] %v5449_v50  ;;  %v7371_v50 = vld [vmem:[%s7906_s7 + $0x424] ss:$8 sm:$0xf] }
 0x446   : > { %7332 = vst [vmem:[%s7670_s11 + $0x1018] sm:$0x1] %v5448_v42  ;;  %v5581_v39 = vsel %vm1019_vm4, %v5579_v36, %v5580_v37  ;;  %v5608_v42 = vld [vmem:[%s7906_s7 + $0x370] sm:$0xfe]  ;;  %v5635_v62 = vor.u32 %v7372_v51, %v7371_v50  ;;  %v5736_v36 = vld [vmem:[%s8162_s12 + $0x158] sm:$0xf0] }
 0x447   : > { %7333 = vst [vmem:[%s7670_s11 + $0xff0] sm:$0xfe] %v5500_v55  ;;  %v5640_v55 = vld [vmem:[%s8162_s12 + $0xf8] sm:$0xe0]  ;;  %v5745_v51 = vld [vmem:[%s8162_s12 + $0x1a0] sm:$0x1f] }
 0x448   : > { %7339 = vst [vmem:[%s7670_s11 + $0x1020] sm:$0x3] %v5499_v47  ;;  %v7367_v47 = vld [vmem:[%s7906_s7 + $0x420] ss:$8 sm:$0xf] }
 0x449   : > { %7334 = vst [vmem:[%s7670_s11 + $0xff8] sm:$0xfe] %v5503_v61  ;;  %v5628_v56 = vor.u32 %v7368_v49, %v7367_v47  ;;  %v5641_v61 = vld [vmem:[%s8162_s12 + $0x100] sm:$0xe0] }
 0x44a   : > { %7340 = vst [vmem:[%s7670_s11 + $0x1028] sm:$0x3] %v5502_v52  ;;  %v5621_v52 = vor.u32 %v7364_v45, %v7363_v43  ;;  %v5669_v3 = vrot.slane %v5641_v61, 2  ;;  %v5743_v45 = vld [vmem:[%s8162_s12 + $0x190] sm:$0x1f] }
 0x44b   : > { %7335 = vst [vmem:[%s7670_s11 + $0x1000] sm:$0xfe] %v5506_v2  ;;  %v5642_v2 = vld [vmem:[%s8162_s12 + $0x108] sm:$0xe0]  ;;  %v5769_v54 = vrot.slane %v5743_v45, 5 }
 0x44c   : > { %7341 = vst [vmem:[%s7670_s11 + $0x1030] sm:$0x3] %v5505_v57  ;;  %v5646_v57 = vld [vmem:[%s8162_s12 + $0x128] sm:$0x7]  ;;  %v5672_v10 = vrot.slane %v5642_v2, 2 }
 0x44d   : > { %7336 = vst [vmem:[%s7670_s11 + $0x1008] sm:$0xfe] %v5509_v7  ;;  %v5667_v1 = vrot.slane %v5646_v57, 2  ;;  %v5643_v7 = vld [vmem:[%s8162_s12 + $0x110] sm:$0xe0] }
 0x44e   : > { %7342 = vst [vmem:[%s7670_s11 + $0x1038] sm:$0x3] %v5508_v63  ;;  %v5666_v63 = vrot.slane %v5640_v55, 2  ;;  %v5675_v15 = vrot.slane %v5643_v7, 2  ;;  %v5807_v57 = vld [vmem:[%s8162_s12 + $0x1e0] sm:$0x7] }
 0x44f   : > { %7337 = vst [vmem:[%s7670_s11 + $0x1010] sm:$0xfe] %v5512_v12  ;;  %v5644_v12 = vld [vmem:[%s8162_s12 + $0x118] sm:$0xe0] }
 0x450   : > { %7343 = vst [vmem:[%s7670_s11 + $0x1040] sm:$0x3] %v5511_v4  ;;  %v5648_v4 = vld [vmem:[%s8162_s12 + $0x138] sm:$0x7]  ;;  %v5677_v21 = vsel %vm952_vm3, %v5675_v15, %v5676_v16 }
 0x451   : > { %7338 = vst [vmem:[%s7670_s11 + $0x1018] sm:$0xfe] %v5515_v17  ;;  %v5673_v11 = vrot.slane %v5648_v4, 2  ;;  %v5705_v17 = vld [vmem:[%s8162_s12 + $0x120] sm:$0xfc] }
 0x452   : > { %7344 = vst [vmem:[%s7670_s11 + $0x1048] sm:$0x3] %v5514_v9  ;;  %v5668_v9 = vsel %vm952_vm3, %v5666_v63, %v5667_v1  ;;  %v5802_v63 = vld [vmem:[%s8162_s12 + $0x1b8] sm:$0xfc] }
 0x453   : > { %7345 = vst [vmem:[%s7670_s11 + $0x1020] sm:$0xfc] %v5566_v22  ;;  %v5674_v18 = vsel %vm952_vm3, %v5672_v10, %v5673_v11  ;;  %v5717_v22 = vrot.slane %v5705_v17, 1  ;;  %v5828_v8 = vrot.slane %v5802_v63, 2  ;;  %v5811_v17 = vld [vmem:[%s8162_s12 + $0x200] sm:$0x7] }
 0x454   : > { %7351 = vst [vmem:[%s7670_s11 + $0x1050] sm:$0x1] %v5565_v14  ;;  %v5671_v14 = vsel %vm952_vm3, %v5669_v3, %v5670_v6  ;;  %v5826_v3 = vrot.slane %v5807_v57, 2 }
 0x455   : > { %7346 = vst [vmem:[%s7670_s11 + $0x1028] sm:$0xfc] %v5569_v27  ;;  %v5709_v27 = vld [vmem:[%s8162_s12 + $0x140] sm:$0xfc] }
 0x456   : > { %7352 = vst [vmem:[%s7670_s11 + $0x1058] sm:$0x1] %v5568_v19  ;;  %v5678_v19 = vrot.slane %v5644_v12, 2  ;;  %v5721_v33 = vrot.slane %v5709_v27, 1  ;;  %v5810_v12 = vld [vmem:[%s8162_s12 + $0x1f8] sm:$0x7] }
 0x457   : > { %7347 = vst [vmem:[%s7670_s11 + $0x1030] sm:$0xfc] %v5572_v32  ;;  %v5720_v32 = vrot.slane %v5708_v26, 1 }
 0x458   : > { %7353 = vst [vmem:[%s7670_s11 + $0x1060] sm:$0x1] %v5571_v24  ;;  %v5707_v24 = vld [vmem:[%s8162_s12 + $0x130] sm:$0xfc]  ;;  %v5680_v25 = vsel %vm952_vm3, %v5678_v19, %v5679_v20 }
 0x459   : > { %7348 = vst [vmem:[%s7670_s11 + $0x1038] sm:$0xfc] %v5575_v35  ;;  %v5719_v31 = vrot.slane %v5707_v24, 1 }
 0x45a   : > { %7354 = vst [vmem:[%s7670_s11 + $0x1068] sm:$0x1] %v5574_v29  ;;  %v5735_v29 = vld [vmem:[%s8162_s12 + $0x150] sm:$0xf0] }
 0x45b   : > { %7349 = vst [vmem:[%s7670_s11 + $0x1040] sm:$0xfc] %v5578_v38  ;;  %v5759_v35 = vrot.slane %v5735_v29, 5  ;;  %v5738_v38 = vld [vmem:[%s8162_s12 + $0x168] sm:$0xf0]  ;;  %v5867_v29 = vld [vmem:[%s8162_s12 + $0x210] sm:$0xff] }
 0x45c   : > { %7355 = vst [vmem:[%s7670_s11 + $0x1070] sm:$0x1] %v5577_v34  ;;  %v5722_v34 = vrot.slane %v5710_v28, 1  ;;  %v5762_v47 = vrot.slane %v5738_v38, 5  ;;  %v5874_v38 = vld [vmem:[%s8162_s12 + $0x248] sm:$0x1] }
 0x45d   : > { %7350 = vst [vmem:[%s7670_s11 + $0x1048] sm:$0xfc] %v5581_v39  ;;  %v5739_v39 = vld [vmem:[%s8162_s12 + $0x170] sm:$0xf0] }
 0x45e   : > { %7356 = vst [vmem:[%s7670_s11 + $0x1078] sm:$0x1] %v5580_v37  ;;  %v5737_v37 = vld [vmem:[%s8162_s12 + $0x160] sm:$0xf0] }
 0x45f   : > { %7357 = vst [vmem:[%s7670_s11 + $0x1050] sm:$0xfe] %v5606_v40  ;;  %v5741_v40 = vld [vmem:[%s8162_s12 + $0x180] sm:$0x1f]  ;;  %v5761_v43 = vrot.slane %v5737_v37, 5 }
 0x460   : > { %7358 = vst [vmem:[%s7670_s11 + $0x1058] sm:$0xfe] %v5607_v41  ;;  %v5742_v41 = vld [vmem:[%s8162_s12 + $0x188] sm:$0x1f]  ;;  %v5765_v49 = vrot.slane %v5741_v40, 5 }
 0x461   : > { %7359 = vst [vmem:[%s7670_s11 + $0x1060] sm:$0xfe] %v5608_v42  ;;  %v5760_v42 = vrot.slane %v5736_v36, 5  ;;  %v5767_v50 = vrot.slane %v5742_v41, 5  ;;  %v5871_v36 = vld [vmem:[%s8162_s12 + $0x230] sm:$0xff]  ;;  %v5872_v41 = vld [vmem:[%s8162_s12 + $0x238] sm:$0xff] }
 0x462   : > { %7360 = vst [vmem:[%s7670_s11 + $0x1068] sm:$0xfe] %v5609_v44  ;;  %v5740_v44 = vld [vmem:[%s8162_s12 + $0x178] sm:$0xf0]  ;;  %v5766_v58 = vsel %vm570_vm2, %v5759_v35, %v5765_v49  ;;  %v5873_v37 = vld [vmem:[%s8162_s12 + $0x240] sm:$0x1] }
 0x463   : > { %7361 = vst [vmem:[%s7670_s11 + $0x1070] sm:$0xfe] %v5610_v46  ;;  %v5744_v46 = vld [vmem:[%s8162_s12 + $0x198] sm:$0x1f]  ;;  %v5764_v53 = vrot.slane %v5740_v44, 5  ;;  %v5895_v45 = vrot.slane %v5871_v36, 7 }
 0x464   : > { %7362 = vst [vmem:[%s7670_s11 + $0x1078] sm:$0xfe] %v5611_v48  ;;  %v5763_v48 = vrot.slane %v5739_v39, 5  ;;  %v5771_v55 = vrot.slane %v5744_v46, 5  ;;  %v5897_v46 = vrot.slane %v5873_v37, 7 }
 0x465   : > { %7365 = vst.msk [vmem:[%s7670_s11 + $0x1080] ss:$8 sm:$0xf] %vm7753_vm1, %v5621_v52  ;;  %v5878_v49 = vld [vmem:[%s8162_s12 + $0x268] sm:$0x1] }
 0x466   : > { %7366 = vst.msk [vmem:[%s7670_s11 + $0x1080] ss:$8 sm:$0x30] %vm7753_vm1, %v5621_v52  ;;  %v5746_v52 = vld [vmem:[%s8162_s12 + $0x1a8] sm:$0x1f]  ;;  %v5772_v4 = vsel %vm570_vm2, %v5762_v47, %v5771_v55  ;;  %v5907_v57 = vrot.slane %v5878_v49, 7 }
 0x467   : > { %7369 = vst.msk [vmem:[%s7670_s11 + $0x1081] ss:$8 sm:$0xf] %vm7753_vm1, %v5628_v56  ;;  %v5775_v61 = vrot.slane %v5746_v52, 5  ;;  %v6023_v36 = vld [vmem:[%s8162_s12 + $0x300] sm:$0xfc] }
 0x468   : > { %7370 = vst.msk [vmem:[%s7670_s11 + $0x1081] ss:$8 sm:$0x30] %vm7753_vm1, %v5628_v56  ;;  %v5801_v56 = vld [vmem:[%s8162_s12 + $0x1b0] sm:$0xfc] }
 0x469   : > { %7373 = vst.msk [vmem:[%s7670_s11 + $0x1082] ss:$8 sm:$0xf] %vm7753_vm1, %v5635_v62  ;;  %v5825_v2 = vrot.slane %v5801_v56, 2  ;;  %v5776_v10 = vsel %vm570_vm2, %v5764_v53, %v5775_v61  ;;  %v5940_v61 = vld [vmem:[%s8162_s12 + $0x278] sm:$0x7f] }
 0x46a   : > { %7374 = vst.msk [vmem:[%s7670_s11 + $0x1082] ss:$8 sm:$0x30] %vm7753_vm1, %v5635_v62  ;;  %v5768_v62 = vsel %vm570_vm2, %v5760_v42, %v5767_v50  ;;  %v5896_v50 = vrot.slane %v5872_v41, 7  ;;  %v6024_v37 = vld [vmem:[%s8162_s12 + $0x308] sm:$0xfc] }
 0x46b   : > { %7375 = vst [vmem:[%s7670_s11 + $0x1080] sm:$0xf8] %v5665_v5  ;;  %v5803_v5 = vld [vmem:[%s8162_s12 + $0x1c0] sm:$0xfc]  ;;  %v5827_v13 = vsel %vm952_vm3, %v5825_v2, %v5826_v3  ;;  %v5935_v2 = vld [vmem:[%s8162_s12 + $0x250] sm:$0xc0] }
 0x46c   : > { %7381 = vst [vmem:[%s7670_s11 + $0x10b0] sm:$0x1] %v5664_v60  ;;  %v5773_v60 = vrot.slane %v5745_v51, 5  ;;  %v6009_v41 = vld [vmem:[%s8162_s12 + $0x2f0] sm:$0x3f] }
 0x46d   : > { %7376 = vst [vmem:[%s7670_s11 + $0x1088] sm:$0xf8] %v5668_v9  ;;  %v5829_v9 = vrot.slane %v5808_v0, 2  ;;  %v6030_v49 = vld [vmem:[%s8162_s12 + $0x338] sm:$0x7] }
 0x46e   : > { %7382 = vst [vmem:[%s7670_s11 + $0x10b8] sm:$0x1] %v5667_v1  ;;  %v5770_v1 = vsel %vm570_vm2, %v5761_v43, %v5769_v54  ;;  %v5774_v7 = vsel %vm570_vm2, %v5763_v48, %v5773_v60  ;;  %v5939_v54 = vld [vmem:[%s8162_s12 + $0x270] sm:$0x7f]  ;;  %v5934_v60 = vld [vmem:[%s8162_s12 + $0x248] sm:$0xc0] }
 0x46f   : > { %7377 = vst [vmem:[%s7670_s11 + $0x1090] sm:$0xf8] %v5671_v14  ;;  %v5831_v14 = vrot.slane %v5803_v5, 2  ;;  %v5958_v0 = vrot.slane %v5939_v54, 4  ;;  %v5960_v5 = vrot.slane %v5934_v60, 4 }
 0x470   : > { %7383 = vst [vmem:[%s7670_s11 + $0x10c0] sm:$0x1] %v5670_v6  ;;  %v5809_v6 = vld [vmem:[%s8162_s12 + $0x1f0] sm:$0x7]  ;;  %v6032_v54 = vld [vmem:[%s8162_s12 + $0x348] sm:$0x7] }
 0x471   : > { %7378 = vst [vmem:[%s7670_s11 + $0x1098] sm:$0xf8] %v5674_v18  ;;  %v5832_v15 = vrot.slane %v5809_v6, 2  ;;  %v5830_v18 = vsel %vm952_vm3, %v5828_v8, %v5829_v9  ;;  %v5961_v6 = vrot.slane %v5940_v61, 4  ;;  %v5936_v8 = vld [vmem:[%s8162_s12 + $0x258] sm:$0xc0] }
 0x472   : > { %7384 = vst [vmem:[%s7670_s11 + $0x10c8] sm:$0x1] %v5673_v11  ;;  %v5804_v11 = vld [vmem:[%s8162_s12 + $0x1c8] sm:$0xfc]  ;;  %v6034_v61 = vld [vmem:[%s8162_s12 + $0x358] sm:$0x7] }
 0x473   : > { %7379 = vst [vmem:[%s7670_s11 + $0x10a0] sm:$0xf8] %v5677_v21  ;;  %v5834_v19 = vrot.slane %v5804_v11, 2  ;;  %v5806_v21 = vld [vmem:[%s8162_s12 + $0x1d8] sm:$0xfc]  ;;  %v5833_v23 = vsel %vm952_vm3, %v5831_v14, %v5832_v15  ;;  %v5963_v11 = vrot.slane %v5935_v2, 4 }
 0x474   : > { %7385 = vst [vmem:[%s7670_s11 + $0x10d0] sm:$0x1] %v5676_v16  ;;  %v5805_v16 = vld [vmem:[%s8162_s12 + $0x1d0] sm:$0xfc]  ;;  %v5840_v27 = vrot.slane %v5806_v21, 2  ;;  %v6063_v2 = vrot.slane %v6034_v61, 4 }
 0x475   : > { %7380 = vst [vmem:[%s7670_s11 + $0x10a8] sm:$0xf8] %v5680_v25  ;;  %v5837_v24 = vrot.slane %v5805_v16, 2  ;;  %v5838_v25 = vrot.slane %v5811_v17, 2  ;;  %v5943_v14 = vld [vmem:[%s8162_s12 + $0x290] sm:$0x7f] }
 0x476   : > { %7386 = vst [vmem:[%s7670_s11 + $0x10d8] sm:$0x1] %v5679_v20  ;;  %v5835_v20 = vrot.slane %v5810_v12, 2  ;;  %v5966_v16 = vrot.slane %v5936_v8, 4 }
 0x477   : > { %7387 = vst [vmem:[%s7670_s11 + $0x10b0] sm:$0x7e] %v5717_v22  ;;  %v5812_v22 = vld [vmem:[%s8162_s12 + $0x208] sm:$0x7] }
 0x478   : > { %7388 = vst [vmem:[%s7670_s11 + $0x10b8] sm:$0x7e] %v5718_v30  ;;  %v5836_v26 = vsel %vm952_vm3, %v5834_v19, %v5835_v20  ;;  %v5841_v28 = vrot.slane %v5812_v22, 2  ;;  %v5839_v30 = vsel %vm952_vm3, %v5837_v24, %v5838_v25  ;;  %v5944_v19 = vld [vmem:[%s8162_s12 + $0x298] sm:$0x7f]  ;;  %v5970_v22 = vrot.slane %v5943_v14, 4 }
 0x479   : > { %7389 = vst [vmem:[%s7670_s11 + $0x10c0] sm:$0x7e] %v5719_v31  ;;  %v5868_v31 = vld [vmem:[%s8162_s12 + $0x218] sm:$0xff] }
 0x47a   : > { %7390 = vst [vmem:[%s7670_s11 + $0x10c8] sm:$0x7e] %v5720_v32  ;;  %v5869_v32 = vld [vmem:[%s8162_s12 + $0x220] sm:$0xff]  ;;  %v5892_v39 = vrot.slane %v5868_v31, 7  ;;  %v6002_v31 = vld [vmem:[%s8162_s12 + $0x2b8] sm:$0xf8] }
 0x47b   : > { %7391 = vst [vmem:[%s7670_s11 + $0x10d0] sm:$0x7e] %v5721_v33  ;;  %v5842_v33 = vsel %vm952_vm3, %v5840_v27, %v5841_v28  ;;  %v5893_v40 = vrot.slane %v5869_v32, 7  ;;  %v6003_v32 = vld [vmem:[%s8162_s12 + $0x2c0] sm:$0xf8] }
 0x47c   : > { %7392 = vst [vmem:[%s7670_s11 + $0x10d8] sm:$0x7e] %v5722_v34  ;;  %v5891_v34 = vrot.slane %v5867_v29, 7  ;;  %v6000_v29 = vld [vmem:[%s8162_s12 + $0x2a8] sm:$0xf8] }
 0x47d   : > { %7393 = vst [vmem:[%s7670_s11 + $0x10b0] sm:$0x80] %v5759_v35  ;;  %v5870_v35 = vld [vmem:[%s8162_s12 + $0x228] sm:$0xff]  ;;  %v6096_v14 = vld [vmem:[%s8162_s12 + $0x398] sm:$0x1] }
 0x47e   : > { %7394 = vst [vmem:[%s7670_s11 + $0x10b8] sm:$0x80] %v5760_v42  ;;  %v5875_v42 = vld [vmem:[%s8162_s12 + $0x250] sm:$0x1]  ;;  %v5894_v44 = vrot.slane %v5870_v35, 7  ;;  %v5898_v55 = vsel %vm1565_vm7, %v5891_v34, %v5897_v46 }
 0x47f   : > { %7395 = vst [vmem:[%s7670_s11 + $0x10c0] sm:$0x80] %v5761_v43  ;;  %v5876_v43 = vld [vmem:[%s8162_s12 + $0x258] sm:$0x1]  ;;  %v5901_v51 = vrot.slane %v5875_v42, 7  ;;  %v6047_v42 = vrot.slane %v6023_v36, 4 }
 0x480   : > { %7396 = vst [vmem:[%s7670_s11 + $0x10c8] sm:$0x80] %v5762_v47  ;;  %v5899_v47 = vrot.slane %v5874_v38, 7  ;;  %v5903_v52 = vrot.slane %v5876_v43, 7  ;;  %v6006_v35 = vld [vmem:[%s8162_s12 + $0x2d8] sm:$0x3f] }
 0x481   : > { %7397 = vst [vmem:[%s7670_s11 + $0x10d0] sm:$0x80] %v5763_v48  ;;  %v5877_v48 = vld [vmem:[%s8162_s12 + $0x260] sm:$0x1]  ;;  %v6025_v38 = vld [vmem:[%s8162_s12 + $0x310] sm:$0xfc] }
 0x482   : > { %7398 = vst [vmem:[%s7670_s11 + $0x10d8] sm:$0x80] %v5764_v53  ;;  %v5933_v53 = vld [vmem:[%s8162_s12 + $0x240] sm:$0xc0]  ;;  %v5905_v56 = vrot.slane %v5877_v48, 7 }
 0x483   : > { %7399 = vst [vmem:[%s7670_s11 + $0x10e0] sm:$0xff] %v5766_v58  ;;  %v5900_v58 = vsel %vm1565_vm7, %v5892_v39, %v5899_v47  ;;  %v5957_v63 = vrot.slane %v5933_v53, 4  ;;  %v6010_v43 = vld [vmem:[%s8162_s12 + $0x2f8] sm:$0x3f]  ;;  %v6029_v47 = vld [vmem:[%s8162_s12 + $0x330] sm:$0x7] }
 0x484   : > { %7400 = vst [vmem:[%s7670_s11 + $0x10e8] sm:$0xff] %v5768_v62  ;;  %v5902_v62 = vsel %vm1565_vm7, %v5893_v40, %v5901_v51  ;;  %v6026_v46 = vld [vmem:[%s8162_s12 + $0x318] sm:$0xfc]  ;;  %v6027_v48 = vld [vmem:[%s8162_s12 + $0x320] sm:$0xfc]  ;;  %v6053_v53 = vrot.slane %v6029_v47, 4 }
 0x485   : > { %7401 = vst [vmem:[%s7670_s11 + $0x10f0] sm:$0xff] %v5770_v1  ;;  %v5904_v1 = vsel %vm1565_vm7, %v5894_v44, %v5903_v52  ;;  %v6031_v51 = vld [vmem:[%s8162_s12 + $0x340] sm:$0x7]  ;;  %v6050_v52 = vrot.slane %v6026_v46, 4  ;;  %v6162_v36 = vld [vmem:[%s8162_s12 + $0x3c8] sm:$0x7f] }
 0x486   : > { %7402 = vst [vmem:[%s7670_s11 + $0x10f8] sm:$0xff] %v5772_v4  ;;  %v5906_v4 = vsel %vm1565_vm7, %v5895_v45, %v5905_v56  ;;  %v6055_v56 = vrot.slane %v6030_v49, 4  ;;  %v6057_v60 = vrot.slane %v6031_v51, 4  ;;  %v6158_v47 = vld [vmem:[%s8162_s12 + $0x3a8] sm:$0xc0] }
 0x487   : > { %7403 = vst [vmem:[%s7670_s11 + $0x1100] sm:$0xff] %v5774_v7  ;;  %v5908_v7 = vsel %vm1565_vm7, %v5896_v50, %v5907_v57  ;;  %v6033_v57 = vld [vmem:[%s8162_s12 + $0x350] sm:$0x7] }
 0x488   : > { %7404 = vst [vmem:[%s7670_s11 + $0x1108] sm:$0xff] %v5776_v10  ;;  %v5959_v10 = vsel %vm442_vm0, %v5957_v63, %v5958_v0  ;;  %v6054_v63 = vsel %vm442_vm0, %v6047_v42, %v6053_v53  ;;  %v6165_v53 = vld [vmem:[%s8162_s12 + $0x3e0] sm:$0x7f] }
 0x489   : > { %7405 = vst [vmem:[%s7670_s11 + $0x1110] sm:$0xff] %v5827_v13  ;;  %v5937_v13 = vld [vmem:[%s8162_s12 + $0x260] sm:$0xc0] }
 0x48a   : > { %7411 = vst [vmem:[%s7670_s11 + $0x1140] sm:$0x1] %v5826_v3  ;;  %v5941_v3 = vld [vmem:[%s8162_s12 + $0x280] sm:$0x7f]  ;;  %v5969_v21 = vrot.slane %v5937_v13, 4 }
 0x48b   : > { %7406 = vst [vmem:[%s7670_s11 + $0x1118] sm:$0xff] %v5830_v18  ;;  %v5964_v12 = vrot.slane %v5941_v3, 4  ;;  %v5938_v18 = vld [vmem:[%s8162_s12 + $0x268] sm:$0xc0]  ;;  %v6089_v3 = vld [vmem:[%s8162_s12 + $0x360] sm:$0xff] }
 0x48c   : > { %7412 = vst [vmem:[%s7670_s11 + $0x1148] sm:$0x1] %v5829_v9  ;;  %v5942_v9 = vld [vmem:[%s8162_s12 + $0x288] sm:$0x7f]  ;;  %v5972_v24 = vrot.slane %v5938_v18, 4 }
 0x48d   : > { %7407 = vst [vmem:[%s7670_s11 + $0x1120] sm:$0xff] %v5833_v23  ;;  %v5967_v17 = vrot.slane %v5942_v9, 4  ;;  %v6113_v9 = vrot.slane %v6089_v3, 1  ;;  %v6095_v13 = vld [vmem:[%s8162_s12 + $0x390] sm:$0x1] }
 0x48e   : > { %7413 = vst [vmem:[%s7670_s11 + $0x1150] sm:$0x1] %v5832_v15  ;;  %v5962_v15 = vsel %vm442_vm0, %v5960_v5, %v5961_v6  ;;  %v6097_v18 = vld [vmem:[%s8162_s12 + $0x3a0] sm:$0x1] }
 0x48f   : > { %7408 = vst [vmem:[%s7670_s11 + $0x1128] sm:$0xff] %v5836_v26  ;;  %v5968_v23 = vsel %vm442_vm0, %v5966_v16, %v5967_v17  ;;  %v5971_v26 = vsel %vm442_vm0, %v5969_v21, %v5970_v22 }
 0x490   : > { %7414 = vst [vmem:[%s7670_s11 + $0x1158] sm:$0x1] %v5835_v20  ;;  %v5965_v20 = vsel %vm442_vm0, %v5963_v11, %v5964_v12  ;;  %v6093_v11 = vld [vmem:[%s8162_s12 + $0x380] sm:$0xff] }
 0x491   : > { %7409 = vst [vmem:[%s7670_s11 + $0x1130] sm:$0xff] %v5839_v30  ;;  %v6001_v30 = vld [vmem:[%s8162_s12 + $0x2b0] sm:$0xf8]  ;;  %v6117_v21 = vrot.slane %v6093_v11, 1 }
 0x492   : > { %7415 = vst [vmem:[%s7670_s11 + $0x1160] sm:$0x1] %v5838_v25  ;;  %v5973_v25 = vrot.slane %v5944_v19, 4  ;;  %v6098_v19 = vld [vmem:[%s8162_s12 + $0x3a8] sm:$0x1] }
 0x493   : > { %7410 = vst [vmem:[%s7670_s11 + $0x1138] sm:$0xff] %v5842_v33  ;;  %v6004_v33 = vld [vmem:[%s8162_s12 + $0x2c8] sm:$0xf8] }
 0x494   : > { %7416 = vst [vmem:[%s7670_s11 + $0x1168] sm:$0x1] %v5841_v28  ;;  %v5974_v27 = vsel %vm442_vm0, %v5972_v24, %v5973_v25  ;;  %v5999_v28 = vld [vmem:[%s8162_s12 + $0x2a0] sm:$0xf8]  ;;  %v6099_v24 = vld [vmem:[%s8162_s12 + $0x3b0] sm:$0x1] }
 0x495   : > { %7417 = vst [vmem:[%s7670_s11 + $0x1140] sm:$0xfe] %v5891_v34  ;;  %v6005_v34 = vld [vmem:[%s8162_s12 + $0x2d0] sm:$0x3f] }
 0x496   : > { %7418 = vst [vmem:[%s7670_s11 + $0x1148] sm:$0xfe] %v5892_v39  ;;  %v6007_v39 = vld [vmem:[%s8162_s12 + $0x2e0] sm:$0x3f] }
 0x497   : > { %7419 = vst [vmem:[%s7670_s11 + $0x1150] sm:$0xfe] %v5893_v40  ;;  %v6008_v40 = vld [vmem:[%s8162_s12 + $0x2e8] sm:$0x3f] }
 0x498   : > { %7420 = vst [vmem:[%s7670_s11 + $0x1158] sm:$0xfe] %v5894_v44  ;;  %v6048_v44 = vrot.slane %v6024_v37, 4 }
 0x499   : > { %7421 = vst [vmem:[%s7670_s11 + $0x1160] sm:$0xfe] %v5895_v45  ;;  %v6049_v45 = vrot.slane %v6025_v38, 4 }
 0x49a   : > { %7422 = vst [vmem:[%s7670_s11 + $0x1168] sm:$0xfe] %v5896_v50  ;;  %v6028_v50 = vld [vmem:[%s8162_s12 + $0x328] sm:$0xfc] }
 0x49b   : > { %7423 = vst [vmem:[%s7670_s11 + $0x1170] sm:$0x3] %v5898_v55  ;;  %v6051_v55 = vrot.slane %v6027_v48, 4  ;;  %v6164_v48 = vld [vmem:[%s8162_s12 + $0x3d8] sm:$0x7f] }
 0x49c   : > { %7424 = vst [vmem:[%s7670_s11 + $0x1178] sm:$0x3] %v5900_v58  ;;  %v6052_v58 = vrot.slane %v6028_v50, 4 }
 0x49d   : > { %7425 = vst [vmem:[%s7670_s11 + $0x1180] sm:$0x3] %v5902_v62  ;;  %v6059_v62 = vrot.slane %v6032_v54, 4 }
 0x49e   : > { %7426 = vst [vmem:[%s7670_s11 + $0x1188] sm:$0x3] %v5904_v1  ;;  %v6056_v1 = vsel %vm442_vm0, %v6048_v44, %v6055_v56  ;;  %v6189_v56 = vrot.slane %v6164_v48, 6 }
 0x49f   : > { %7427 = vst [vmem:[%s7670_s11 + $0x1190] sm:$0x3] %v5906_v4  ;;  %v6058_v4 = vsel %vm442_vm0, %v6049_v45, %v6057_v60  ;;  %v6060_v5 = vsel %vm442_vm0, %v6050_v52, %v6059_v62  ;;  %v6192_v62 = vrot.slane %v6165_v53, 6 }
 0x4a0   : > { %7428 = vst [vmem:[%s7670_s11 + $0x1198] sm:$0x3] %v5908_v7  ;;  %v6091_v7 = vld [vmem:[%s8162_s12 + $0x370] sm:$0xff] }
 0x4a1   : > { %7429 = vst [vmem:[%s7670_s11 + $0x1170] sm:$0xfc] %v5959_v10  ;;  %v6092_v10 = vld [vmem:[%s8162_s12 + $0x378] sm:$0xff]  ;;  %v6115_v16 = vrot.slane %v6091_v7, 1 }
 0x4a2   : > { %7435 = vst [vmem:[%s7670_s11 + $0x11a0] sm:$0x7] %v5958_v0  ;;  %v6061_v0 = vrot.slane %v6033_v57, 4  ;;  %v6160_v57 = vld [vmem:[%s8162_s12 + $0x3b8] sm:$0xc0] }
 0x4a3   : > { %7430 = vst [vmem:[%s7670_s11 + $0x1178] sm:$0xfc] %v5962_v15  ;;  %v7494_v7 = vld [vmem:[%s8162_s12 + $0x456] ss:$8 sm:$0x30] }
 0x4a4   : > { %7436 = vst [vmem:[%s7670_s11 + $0x11a8] sm:$0x7] %v5961_v6  ;;  %v6090_v6 = vld [vmem:[%s8162_s12 + $0x368] sm:$0xff]  ;;  %v6062_v8 = vsel %vm442_vm0, %v6051_v55, %v6061_v0  ;;  %v6194_v0 = vrot.slane %v6160_v57, 6 }
 0x4a5   : > { %7431 = vst [vmem:[%s7670_s11 + $0x1180] sm:$0xfc] %v5965_v20  ;;  %v6114_v15 = vrot.slane %v6090_v6, 1  ;;  %v6116_v20 = vrot.slane %v6092_v10, 1 }
 0x4a6   : > { %7437 = vst [vmem:[%s7670_s11 + $0x11b0] sm:$0x7] %v5964_v12  ;;  %v6064_v12 = vsel %vm442_vm0, %v6052_v58, %v6063_v2  ;;  %v7489_v2 = vld [vmem:[%s8162_s12 + $0x451] ss:$8 sm:$0xf] }
 0x4a7   : > { %7432 = vst [vmem:[%s7670_s11 + $0x1188] sm:$0xfc] %v5968_v23  ;;  %v6121_v23 = vrot.slane %v6096_v14, 1  ;;  %v7498_v10 = vld [vmem:[%s8162_s12 + $0x483] ss:$8 sm:$0x30] }
 0x4a8   : > { %7438 = vst [vmem:[%s7670_s11 + $0x11b8] sm:$0x7] %v5967_v17  ;;  %v6094_v17 = vld [vmem:[%s8162_s12 + $0x388] sm:$0xff] }
 0x4a9   : > { %7433 = vst [vmem:[%s7670_s11 + $0x1190] sm:$0xfc] %v5971_v26  ;;  %v6118_v26 = vrot.slane %v6094_v17, 1 }
 0x4aa   : > { %7439 = vst [vmem:[%s7670_s11 + $0x11c0] sm:$0x7] %v5970_v22  ;;  %v6119_v22 = vrot.slane %v6095_v13, 1 }
 0x4ab   : > { %7434 = vst [vmem:[%s7670_s11 + $0x1198] sm:$0xfc] %v5974_v27  ;;  %v6123_v27 = vrot.slane %v6097_v18, 1 }
 0x4ac   : > { %7440 = vst [vmem:[%s7670_s11 + $0x11c8] sm:$0x7] %v5973_v25  ;;  %v6100_v25 = vld [vmem:[%s8162_s12 + $0x3b8] sm:$0x1] }
 0x4ad   : > { %7441 = vst [vmem:[%s7670_s11 + $0x11a0] sm:$0xf8] %v5999_v28  ;;  %v6125_v28 = vrot.slane %v6098_v19, 1  ;;  %v6124_v37 = vsel %vm1019_vm4, %v6115_v16, %v6123_v27 }
 0x4ae   : > { %7442 = vst [vmem:[%s7670_s11 + $0x11a8] sm:$0xf8] %v6000_v29  ;;  %v6155_v29 = vld [vmem:[%s8162_s12 + $0x390] sm:$0xc0] }
 0x4af   : > { %7443 = vst [vmem:[%s7670_s11 + $0x11b0] sm:$0xf8] %v6001_v30  ;;  %v6161_v30 = vld [vmem:[%s8162_s12 + $0x3c0] sm:$0x7f]  ;;  %v6179_v38 = vrot.slane %v6155_v29, 6 }
 0x4b0   : > { %7444 = vst [vmem:[%s7670_s11 + $0x11b8] sm:$0xf8] %v6002_v31  ;;  %v6120_v31 = vsel %vm1019_vm4, %v6113_v9, %v6119_v22 }
 0x4b1   : > { %7445 = vst [vmem:[%s7670_s11 + $0x11c0] sm:$0xf8] %v6003_v32  ;;  %v6127_v32 = vrot.slane %v6099_v24, 1 }
 0x4b2   : > { %7446 = vst [vmem:[%s7670_s11 + $0x11c8] sm:$0xf8] %v6004_v33  ;;  %v6129_v33 = vrot.slane %v6100_v25, 1 }
 0x4b3   : > { %7447 = vst [vmem:[%s7670_s11 + $0x11d0] sm:$0x3f] %v6005_v34  ;;  %v6122_v34 = vsel %vm1019_vm4, %v6114_v15, %v6121_v23 }
 0x4b4   : > { %7448 = vst [vmem:[%s7670_s11 + $0x11d8] sm:$0x3f] %v6006_v35  ;;  %v6156_v35 = vld [vmem:[%s8162_s12 + $0x398] sm:$0xc0]  ;;  %v6130_v46 = vsel %vm1019_vm4, %v6118_v26, %v6129_v33 }
 0x4b5   : > { %7449 = vst [vmem:[%s7670_s11 + $0x11e0] sm:$0x3f] %v6007_v39  ;;  %v6180_v39 = vrot.slane %v6161_v30, 6 }
 0x4b6   : > { %7450 = vst [vmem:[%s7670_s11 + $0x11e8] sm:$0x3f] %v6008_v40  ;;  %v6126_v40 = vsel %vm1019_vm4, %v6116_v20, %v6125_v28 }
 0x4b7   : > { %7451 = vst [vmem:[%s7670_s11 + $0x11f0] sm:$0x3f] %v6009_v41  ;;  %v6157_v41 = vld [vmem:[%s8162_s12 + $0x3a0] sm:$0xc0]  ;;  %v6181_v49 = vsel %vm1110_vm5, %v6179_v38, %v6180_v39 }
 0x4b8   : > { %7452 = vst [vmem:[%s7670_s11 + $0x11f8] sm:$0x3f] %v6010_v43  ;;  %v6128_v43 = vsel %vm1019_vm4, %v6117_v21, %v6127_v32  ;;  %v6185_v50 = vrot.slane %v6157_v41, 6 }
 0x4b9   : > { %7453 = vst [vmem:[%s7670_s11 + $0x11d0] sm:$0xc0] %v6047_v42  ;;  %v6163_v42 = vld [vmem:[%s8162_s12 + $0x3d0] sm:$0x7f] }
 0x4ba   : > { %7454 = vst [vmem:[%s7670_s11 + $0x11d8] sm:$0xc0] %v6048_v44  ;;  %v6182_v44 = vrot.slane %v6156_v35, 6  ;;  %v6186_v51 = vrot.slane %v6163_v42, 6 }
 0x4bb   : > { %7455 = vst [vmem:[%s7670_s11 + $0x11e0] sm:$0xc0] %v6049_v45  ;;  %v6183_v45 = vrot.slane %v6162_v36, 6 }
 0x4bc   : > { %7456 = vst [vmem:[%s7670_s11 + $0x11e8] sm:$0xc0] %v6050_v52  ;;  %v6159_v52 = vld [vmem:[%s8162_s12 + $0x3b0] sm:$0xc0]  ;;  %v6187_v60 = vsel %vm1110_vm5, %v6185_v50, %v6186_v51 }
 0x4bd   : > { %7457 = vst [vmem:[%s7670_s11 + $0x11f0] sm:$0xc0] %v6051_v55  ;;  %v6184_v54 = vsel %vm1110_vm5, %v6182_v44, %v6183_v45  ;;  %v6188_v55 = vrot.slane %v6158_v47, 6  ;;  %v6191_v61 = vrot.slane %v6159_v52, 6 }
 0x4be   : > { %7458 = vst [vmem:[%s7670_s11 + $0x11f8] sm:$0xc0] %v6052_v58  ;;  %v6166_v58 = vld [vmem:[%s8162_s12 + $0x3e8] sm:$0x7f] }
 0x4bf   : > { %7459 = vst [vmem:[%s7670_s11 + $0x1200] sm:$0x7f] %v6054_v63  ;;  %v6190_v63 = vsel %vm1110_vm5, %v6188_v55, %v6189_v56  ;;  %v6193_v3 = vsel %vm1110_vm5, %v6191_v61, %v6192_v62 }
 0x4c0   : > { %7460 = vst [vmem:[%s7670_s11 + $0x1208] sm:$0x7f] %v6056_v1  ;;  %v6195_v1 = vrot.slane %v6166_v58, 6 }
 0x4c1   : > { %7461 = vst [vmem:[%s7670_s11 + $0x1210] sm:$0x7f] %v6058_v4  ;;  %v7490_v4 = vld [vmem:[%s8162_s12 + $0x451] ss:$8 sm:$0x30] }
 0x4c2   : > { %7462 = vst [vmem:[%s7670_s11 + $0x1218] sm:$0x7f] %v6060_v5  ;;  %v7493_v5 = vld [vmem:[%s8162_s12 + $0x456] ss:$8 sm:$0xf]  ;;  %v6196_v6 = vsel %vm1110_vm5, %v6194_v0, %v6195_v1 }
 0x4c3   : > { %7463 = vst [vmem:[%s7670_s11 + $0x1220] sm:$0x7f] %v6062_v8  ;;  %v6224_v8 = vor.u32 %v7490_v4, %v7489_v2  ;;  %v6231_v11 = vor.u32 %v7494_v7, %v7493_v5 }
 0x4c4   : > { %7464 = vst [vmem:[%s7670_s11 + $0x1228] sm:$0x7f] %v6064_v12 }
 0x4c5   : > { %7465 = vst [vmem:[%s7670_s11 + $0x1200] sm:$0x80] %v6113_v9  ;;  %v7497_v9 = vld [vmem:[%s8162_s12 + $0x483] ss:$8 sm:$0xf] }
 0x4c6   : > { %7466 = vst [vmem:[%s7670_s11 + $0x1208] sm:$0x80] %v6114_v15  ;;  %v6238_v12 = vor.u32 %v7498_v10, %v7497_v9 }
 0x4c7   : > { %7467 = vst [vmem:[%s7670_s11 + $0x1210] sm:$0x80] %v6115_v16 }
 0x4c8   : > { %7468 = vst [vmem:[%s7670_s11 + $0x1218] sm:$0x80] %v6116_v20 }
 0x4c9   : > { %7469 = vst [vmem:[%s7670_s11 + $0x1220] sm:$0x80] %v6117_v21 }
 0x4ca   : > { %7470 = vst [vmem:[%s7670_s11 + $0x1228] sm:$0x80] %v6118_v26 }
 0x4cb   : > { %7471 = vst [vmem:[%s7670_s11 + $0x1230] sm:$0xff] %v6120_v31 }
 0x4cc   : > { %7472 = vst [vmem:[%s7670_s11 + $0x1238] sm:$0xff] %v6122_v34 }
 0x4cd   : > { %7473 = vst [vmem:[%s7670_s11 + $0x1240] sm:$0xff] %v6124_v37 }
 0x4ce   : > { %7474 = vst [vmem:[%s7670_s11 + $0x1248] sm:$0xff] %v6126_v40 }
 0x4cf   : > { %7475 = vst [vmem:[%s7670_s11 + $0x1250] sm:$0xff] %v6128_v43 }
 0x4d0   : > { %7476 = vst [vmem:[%s7670_s11 + $0x1258] sm:$0xff] %v6130_v46 }
 0x4d1   : > { %7477 = vst [vmem:[%s7670_s11 + $0x1260] sm:$0xff] %v6181_v49 }
 0x4d2   : > { %7483 = vst [vmem:[%s7670_s11 + $0x1290] sm:$0x1] %v6180_v39 }
 0x4d3   : > { %7478 = vst [vmem:[%s7670_s11 + $0x1268] sm:$0xff] %v6184_v54 }
 0x4d4   : > { %7484 = vst [vmem:[%s7670_s11 + $0x1298] sm:$0x1] %v6183_v45 }
 0x4d5   : > { %7479 = vst [vmem:[%s7670_s11 + $0x1270] sm:$0xff] %v6187_v60 }
 0x4d6   : > { %7485 = vst [vmem:[%s7670_s11 + $0x12a0] sm:$0x1] %v6186_v51 }
 0x4d7   : > { %7480 = vst [vmem:[%s7670_s11 + $0x1278] sm:$0xff] %v6190_v63 }
 0x4d8   : > { %7486 = vst [vmem:[%s7670_s11 + $0x12a8] sm:$0x1] %v6189_v56 }
 0x4d9   : > { %7481 = vst [vmem:[%s7670_s11 + $0x1280] sm:$0xff] %v6193_v3 }
 0x4da   : > { %7487 = vst [vmem:[%s7670_s11 + $0x12b0] sm:$0x1] %v6192_v62 }
 0x4db   : > { %7482 = vst [vmem:[%s7670_s11 + $0x1288] sm:$0xff] %v6196_v6 }
 0x4dc   : > { %7488 = vst [vmem:[%s7670_s11 + $0x12b8] sm:$0x1] %v6195_v1 }
 0x4dd   : > { %7491 = vst.msk [vmem:[%s7670_s11 + $0x1291] ss:$8 sm:$0xf] %vm7753_vm1, %v6224_v8 }
 0x4de   : > { %7492 = vst.msk [vmem:[%s7670_s11 + $0x1291] ss:$8 sm:$0x30] %vm7753_vm1, %v6224_v8 }
 0x4df   : > { %7495 = vst.msk [vmem:[%s7670_s11 + $0x1292] ss:$8 sm:$0xf] %vm7753_vm1, %v6231_v11 }
 0x4e0   : > { %7496 = vst.msk [vmem:[%s7670_s11 + $0x1292] ss:$8 sm:$0x30] %vm7753_vm1, %v6231_v11 }
 0x4e1   : > { %7499 = vst.msk [vmem:[%s7670_s11 + $0x1293] ss:$8 sm:$0xf] %vm7753_vm1, %v6238_v12 }
 0x4e2   : > { %7500 = vst.msk [vmem:[%s7670_s11 + $0x1293] ss:$8 sm:$0x30] %vm7753_vm1, %v6238_v12 }
 0x4e3 PF: > { %s14_s19 = sadd.s32 1, %s7586_s19   ;;  %s10791_s15 = smov %s7578_s17 }
 0x4e4   : > { %p11_p10 = scmp.ge.s32.totalorder %s14_s19, 6   ;;  %s10792_s16 = smov %s7582_s18 }
 0x4e5   : > { %s10793_s17 = smov %s10796_s20  ;;  %s10794_s18 = smov %s10800_s21 }
 0x4e6   :  { %13 = sbr.rel (!%p11_p10) target bundleno = 3 (0x3), region = 170 }

</bundles_post_ra>
